<compile_context>
chip_gen: v5e
topology: v5e:2x2
jax: 0.10.0
libtpu: 0.0.40
codegen_flags: <defaults>
</compile_context>

<pallas_src>
import math
from functools import partial

import jax
import jax.numpy as jnp
from jax.experimental import pallas as pl
from jax.experimental.pallas import tpu as pltpu

# ------------------------------ configuration ------------------------------
FEATURE = 32        # `feature` ctor arg (512 in the paper; small here)
LATENT = 8          # config.lantent_size
SAMPLES = 2         # config.samples
BN_EPS = 1e-5

LANE = 128          # output channels padded to lane-dense multiples of 128
K_ALIGN = 16        # contraction dim aligned to bf16 sublane packing only
SUBLANE = 8

CL1_CFG = [dict(stride=2, dilation=(1, 1, 1), expansion=4, downsample=True),
           dict(stride=1, dilation=(1, 1, 1), expansion=4, downsample=False),
           dict(stride=1, dilation=(2, 2, 2), expansion=4, downsample=False),
           dict(stride=1, dilation=(3, 3, 3), expansion=4, downsample=False)]
CL2_CFG = [dict(stride=2, dilation=(1, 1, 1), expansion=8, downsample=True),
           dict(stride=1, dilation=(1, 1, 1), expansion=4, downsample=False),
           dict(stride=1, dilation=(2, 2, 2), expansion=4, downsample=False),
           dict(stride=1, dilation=(3, 3, 3), expansion=4, downsample=False)]


def _round_up(x, m):
    return (x + m - 1) // m * m


# ------------------ Pallas kernel: matmul with fused epilogue ------------------
def _mm_affine_kernel(a_ref, b_ref, scale_ref, shift_ref, o_ref, *, relu):
    """o = [relu]( (A @ B) * scale + shift ) — bf16 MXU inputs, f32 accumulate."""
    acc = jnp.dot(a_ref[...], b_ref[...], preferred_element_type=jnp.float32)
    y = acc * scale_ref[...] + shift_ref[...]
    if relu:
        y = jnp.maximum(y, 0.0)
    o_ref[...] = y.astype(o_ref.dtype)


def _pick_tm(m):
    m8 = _round_up(m, SUBLANE)
    if m8 <= 256:
        return m8               # single M block for small problems
    if m8 <= 1024:
        return 128              # >=2 parallel blocks (megacore on v7x)
    return 256                  # big-M: larger tiles amortize per-step overhead


def fused_matmul(a, b, scale, shift, relu):
    """(M, Kp) @ (Kp, Np) with per-output-channel affine (+ReLU) fused epilogue.

    a: (M, Kp) any float dtype (cast to bf16 here); b: (Kp, Np) bf16, Np % 128 == 0.
    scale/shift: (1, Np) f32. K is one full block — no K grid axis / accumulator.
    """
    M, Kp = a.shape
    Kb, Np = b.shape
    assert Kp == Kb and Np % LANE == 0
    a = a.astype(jnp.bfloat16)
    tm = _pick_tm(M)
    Mp = _round_up(M, tm)
    if Mp != M:
        a = jnp.pad(a, ((0, Mp - M), (0, 0)))
    tn = 256 if Np % 256 == 0 else LANE
    grid = (Mp // tm, Np // tn)
    out = pl.pallas_call(
        partial(_mm_affine_kernel, relu=relu),
        out_shape=jax.ShapeDtypeStruct((Mp, Np), jnp.float32),
        grid=grid,
        in_specs=[pl.BlockSpec((tm, Kp), lambda i, j: (i, 0)),
                  pl.BlockSpec((Kp, tn), lambda i, j: (0, j)),
                  pl.BlockSpec((1, tn), lambda i, j: (0, j)),
                  pl.BlockSpec((1, tn), lambda i, j: (0, j))],
        out_specs=pl.BlockSpec((tm, tn), lambda i, j: (i, j)),
        compiler_params=pltpu.CompilerParams(
            dimension_semantics=("parallel", "parallel"),
            vmem_limit_bytes=32 * 1024 * 1024),
    )(a, b, scale, shift)
    return out[:M]


# ------------------------------ fused conv layers ------------------------------
def conv3d_fused(x, layer, stride=(1, 1, 1), padding=(0, 0, 0),
                 dilation=(1, 1, 1)):
    """Conv3d (cross-correlation) + folded BN/bias (+ReLU) via one fused matmul.
    x: (B, D, H, W, Cin) f32; layer: prepared dict from prep_conv()."""
    kd, kh, kw = layer['ksize']
    Cin, Cout = layer['cin'], layer['cout']
    B, D, H, W, _ = x.shape
    sd, sh, sw = stride
    pd, ph, pw = padding
    dd, dh, dw = dilation
    x = x.astype(jnp.bfloat16)                      # bf16 MXU inputs / im2col
    Do = (D + 2 * pd - dd * (kd - 1) - 1) // sd + 1
    Ho = (H + 2 * ph - dh * (kh - 1) - 1) // sh + 1
    Wo = (W + 2 * pw - dw * (kw - 1) - 1) // sw + 1
    if (kd, kh, kw) == (1, 1, 1) and stride == (1, 1, 1) and padding == (0, 0, 0):
        A = x.reshape(B * D * H * W, Cin)           # pure channel mix: no im2col
    else:
        xp = jnp.pad(x, ((0, 0), (pd, pd), (ph, ph), (pw, pw), (0, 0)))
        cols = []
        for i in range(kd):
            for j in range(kh):
                for k in range(kw):
                    sl = xp[:, i * dd: i * dd + sd * (Do - 1) + 1: sd,
                            j * dh: j * dh + sh * (Ho - 1) + 1: sh,
                            k * dw: k * dw + sw * (Wo - 1) + 1: sw, :]
                    cols.append(sl)
        # TODO(synk): drive the tap reduction inside the Pallas grid instead of
        # materializing the (bf16) im2col tensor in HBM.
        A = jnp.concatenate(cols, axis=-1).reshape(B * Do * Ho * Wo,
                                                   kd * kh * kw * Cin)
    K = kd * kh * kw * Cin
    Kp = layer['w'].shape[0]
    if Kp != K:
        A = jnp.pad(A, ((0, 0), (0, Kp - K)))
    out = fused_matmul(A, layer['w'], layer['scale'], layer['shift'],
                       layer['relu'])
    return out[:, :Cout].reshape(B, Do, Ho, Wo, Cout)


# Sub-pixel decomposition of ConvTranspose3d(k=3, s=2, p=1, op=1):
#   out[2m + parity] per dim uses:
#     parity 0 -> kernel tap 1 at input offset 0
#     parity 1 -> kernel tap 0 at input offset +1  and  tap 2 at offset 0
_DIM_TAPS = {0: [(1, 0)], 1: [(0, 1), (2, 0)]}
_PARITIES = [(a, b, c) for a in (0, 1) for b in (0, 1) for c in (0, 1)]


def _deconv_taps(parity):
    pd, ph, pw = parity
    return [((kd_i, od), (kh_i, oh), (kw_i, ow))
            for (kd_i, od) in _DIM_TAPS[pd]
            for (kh_i, oh) in _DIM_TAPS[ph]
            for (kw_i, ow) in _DIM_TAPS[pw]]


def conv_transpose3d_fused(x, layer):
    """ConvTranspose3d(k=3,s=2,p=1,op=1) + folded BN/bias (+ReLU): 8 parity
    matmuls at the input resolution, outputs interleaved (no zero-insert)."""
    B, D, H, W, Cin = x.shape
    Cout = layer['cout']
    x = x.astype(jnp.bfloat16)
    xe = jnp.pad(x, ((0, 0), (0, 1), (0, 1), (0, 1), (0, 0)))  # one zero row/end
    parts = []
    for par in _PARITIES:
        taps = _deconv_taps(par)
        cols = [xe[:, od:od + D, oh:oh + H, ow:ow + W, :]
                for (_, od), (_, oh), (_, ow) in taps]
        A = jnp.concatenate(cols, axis=-1).reshape(B * D * H * W,
                                                   len(taps) * Cin)
        wpar = layer['w'][par]
        K, Kp = len(taps) * Cin, wpar.shape[0]
        if Kp != K:
            A = jnp.pad(A, ((0, 0), (0, Kp - K)))
        out = fused_matmul(A, wpar, layer['scale'], layer['shift'],
                           layer['relu'])
        parts.append(out[:, :Cout].reshape(B, D, H, W, Cout))
    y = jnp.stack(parts, axis=0).reshape(2, 2, 2, B, D, H, W, Cout)
    y = jnp.transpose(y, (3, 4, 0, 5, 1, 6, 2, 7))
    return y.reshape(B, 2 * D, 2 * H, 2 * W, Cout)


def avg_pool3d(x, k):
    """Non-overlapping AvgPool3d (kernel == stride), sizes divide exactly."""
    B, D, H, W, C = x.shape
    kd, kh, kw = k
    x = x.reshape(B, D // kd, kd, H // kh, kh, W // kw, kw, C)
    return x.mean(axis=(2, 4, 6))


# ------------------------------ parameter init ------------------------------
_PKEY = jax.random.PRNGKey(0)
_PCOUNT = [0]


def _next_key():
    _PCOUNT[0] += 1
    return jax.random.fold_in(_PKEY, _PCOUNT[0])


def conv_w(kd, kh, kw, cin, cout):
    fan_in = kd * kh * kw * cin
    return jax.random.normal(_next_key(), (kd, kh, kw, cin, cout),
                             jnp.float32) / math.sqrt(fan_in)


def convT_w(cin, cout):
    return jax.random.normal(_next_key(), (cin, cout, 3, 3, 3),
                             jnp.float32) / math.sqrt(27 * cin)


def bias_p(c):
    return jax.random.normal(_next_key(), (c,), jnp.float32) * 0.01


def bn_p(c):
    return dict(gamma=jnp.ones((c,), jnp.float32), beta=jnp.zeros((c,), jnp.float32),
                mean=jnp.zeros((c,), jnp.float32), var=jnp.ones((c,), jnp.float32))


def make_bneck(inplanes, planes, cfg):
    exp = cfg['expansion']
    p = dict(conv1=conv_w(1, 1, 1, inplanes, planes), bn1=bn_p(planes),
             conv2=conv_w(1, 1, 3, planes, planes), bn2=bn_p(planes),
             conv3=conv_w(1, 3, 1, planes, planes), bn3=bn_p(planes),
             conv4=conv_w(3, 1, 1, planes, planes), bn4=bn_p(planes),
             conv5=conv_w(1, 1, 1, planes, planes * exp), bn5=bn_p(planes * exp))
    if cfg['downsample']:
        p['ds_conv'] = conv_w(1, 1, 1, inplanes, planes * exp)
        p['ds_bn'] = bn_p(planes * exp)
    if cfg['stride'] != 1:
        for nm in ('ds2', 'ds3', 'ds4'):
            p[nm + '_conv'] = conv_w(1, 1, 1, planes, planes)
            p[nm + '_bn'] = bn_p(planes)
    return p


def init_params():
    F, L = FEATURE, LATENT
    P = {}
    P['oper1'] = [dict(w=conv_w(3, 3, 3, 1, 3), bn=bn_p(3)),
                  dict(w=conv_w(3, 3, 3, 3, 64), bn=bn_p(64)),
                  dict(w=conv_w(3, 3, 3, 64, F), bn=bn_p(F))]
    cl1_io = [(F, F // 4)] * 4
    P['cl1'] = [make_bneck(i, q, cfg) for (i, q), cfg in zip(cl1_io, CL1_CFG)]
    cl2_io = [(F, F // 4), (2 * F, F // 2), (2 * F, F // 2), (2 * F, F // 2)]
    P['cl2'] = [make_bneck(i, q, cfg) for (i, q), cfg in zip(cl2_io, CL2_CFG)]
    P['cs0'] = dict(wt=convT_w(2 * F, F), b=bias_p(F), bn=bn_p(F))
    P['cs1'] = dict(wt=convT_w(F, F), b=bias_p(F), bn=bn_p(F))
    P['cs2'] = dict(w=conv_w(1, 1, 1, F, 2), b=bias_p(2))
    P['cvae'] = dict(
        dec_x=[dict(w=conv_w(3, 3, 3, 1, 3), bn=bn_p(3)),
               dict(w=conv_w(3, 3, 3, 3, 16), bn=bn_p(16)),
               dict(w=conv_w(3, 3, 3, 16, 16), bn=bn_p(16)),
               dict(w=conv_w(3, 3, 3, 16, L), bn=bn_p(L)),
               dict(w=conv_w(3, 3, 3, L, L), bn=bn_p(L))],
        dec=dict(wt1=convT_w(2 * L, L), b1=bias_p(L), bn1=bn_p(L),
                 wt2=convT_w(L, L), b2=bias_p(L), bn2=bn_p(L),
                 w3=conv_w(1, 1, 1, L, 2), b3=bias_p(2)))
    # TODO(synk): CVAE encoder / mean / log_var params only feed the training
    # branch (reparameterization), which is not executed in eval mode.
    return P


# ------------------- one-time weight / BN folding (outside jit) -------------------
def _prep_affine(cout, bn=None, bias=None):
    if bn is not None:
        scale = bn['gamma'] / jnp.sqrt(bn['var'] + BN_EPS)
        shift = bn['beta'] - bn['mean'] * scale
    else:
        scale = jnp.ones((cout,), jnp.float32)
        shift = jnp.zeros((cout,), jnp.float32)
    if bias is not None:
        # y = (conv + bias)*scale + shift = conv*scale + (bias*scale + shift)
        shift = shift + bias * scale
    Np = _round_up(cout, LANE)
    scale = jnp.pad(scale, (0, Np - cout)).reshape(1, Np).astype(jnp.float32)
    shift = jnp.pad(shift, (0, Np - cout)).reshape(1, Np).astype(jnp.float32)
    return scale, shift


def prep_conv(w, bn=None, bias=None, relu=False):
    kd, kh, kw, cin, cout = w.shape
    K = kd * kh * kw * cin
    Kp = _round_up(K, K_ALIGN)
    Np = _round_up(cout, LANE)
    Wm = jnp.pad(w.reshape(K, cout).astype(jnp.float32),
                 ((0, Kp - K), (0, Np - cout))).astype(jnp.bfloat16)
    scale, shift = _prep_affine(cout, bn, bias)
    return dict(w=Wm, scale=scale, shift=shift, relu=relu,
                ksize=(kd, kh, kw), cin=cin, cout=cout)


def prep_deconv(wt, bn=None, bias=None, relu=False):
    """wt: (Cin, Cout, 3, 3, 3) PyTorch ConvTranspose3d layout -> per-parity
    (Kp, Np) bf16 weight matrices for the sub-pixel decomposition."""
    cin, cout = wt.shape[0], wt.shape[1]
    Np = _round_up(cout, LANE)
    wmats = {}
    for par in _PARITIES:
        taps = _deconv_taps(par)
        blocks = [wt[:, :, kd_i, kh_i, kw_i]
                  for (kd_i, _), (kh_i, _), (kw_i, _) in taps]
        K = len(taps) * cin
        Kp = _round_up(K, K_ALIGN)
        Wm = jnp.concatenate(blocks, axis=0).astype(jnp.float32)
        Wm = jnp.pad(Wm, ((0, Kp - K), (0, Np - cout))).astype(jnp.bfloat16)
        wmats[par] = Wm
    scale, shift = _prep_affine(cout, bn, bias)
    return dict(w=wmats, scale=scale, shift=shift, relu=relu,
                cin=cin, cout=cout)


def prepare_params(P):
    """Fold inference-BN (+bias) into per-channel scale/shift and pre-pack all
    weights as MXU-ready bf16 matrices.  Runs once, outside the jitted forward."""
    Q = {}
    Q['oper1'] = [prep_conv(l['w'], bn=l['bn'], relu=True) for l in P['oper1']]

    def prep_bneck(p, cfg):
        q = dict(conv1=prep_conv(p['conv1'], bn=p['bn1'], relu=True),
                 conv2=prep_conv(p['conv2'], bn=p['bn2']),
                 conv3=prep_conv(p['conv3'], bn=p['bn3']),
                 conv4=prep_conv(p['conv4'], bn=p['bn4']),
                 conv5=prep_conv(p['conv5'], bn=p['bn5']))
        if cfg['downsample']:
            q['ds'] = prep_conv(p['ds_conv'], bn=p['ds_bn'])
        if cfg['stride'] != 1:
            for nm in ('ds2', 'ds3', 'ds4'):
                q[nm] = prep_conv(p[nm + '_conv'], bn=p[nm + '_bn'])
        return q

    Q['cl1'] = [prep_bneck(p, cfg) for p, cfg in zip(P['cl1'], CL1_CFG)]
    Q['cl2'] = [prep_bneck(p, cfg) for p, cfg in zip(P['cl2'], CL2_CFG)]
    Q['cs0'] = prep_deconv(P['cs0']['wt'], bn=P['cs0']['bn'], bias=P['cs0']['b'],
                           relu=True)
    Q['cs1'] = prep_deconv(P['cs1']['wt'], bn=P['cs1']['bn'], bias=P['cs1']['b'],
                           relu=True)
    Q['cs2'] = prep_conv(P['cs2']['w'], bias=P['cs2']['b'])
    cv = P['cvae']
    Q['cvae'] = dict(
        dec_x=[prep_conv(l['w'], bn=l['bn'], relu=True) for l in cv['dec_x']],
        dec=dict(wt1=prep_deconv(cv['dec']['wt1'], bn=cv['dec']['bn1'],
                                 bias=cv['dec']['b1'], relu=True),
                 wt2=prep_deconv(cv['dec']['wt2'], bn=cv['dec']['bn2'],
                                 bias=cv['dec']['b2'], relu=True),
                 w3=prep_conv(cv['dec']['w3'], bias=cv['dec']['b3'])))
    return Q


# ------------------------------ module forward ------------------------------
def bottleneck_forward(p, x, stride, dilation, expansion, downsample):
    del expansion  # channel counts are encoded in the weights
    d = dilation
    residual = x
    out1 = conv3d_fused(x, p['conv1'])                                  # bn1+relu fused
    out2 = conv3d_fused(out1, p['conv2'], stride=(1, 1, stride),
                        padding=(0, 0, d[0]), dilation=(1, 1, d[0]))    # bn2 (no relu)
    out2_relu = jnp.maximum(out2, 0.0)
    out3 = conv3d_fused(out2_relu, p['conv3'], stride=(1, stride, 1),
                        padding=(0, d[1], 0), dilation=(1, d[1], 1))    # bn3 (no relu)
    if stride != 1:
        out2 = conv3d_fused(avg_pool3d(out2, (1, stride, 1)), p['ds2'])
    out3 = out3 + out2
    out3_relu = jnp.maximum(out3, 0.0)
    out4 = conv3d_fused(out3_relu, p['conv4'], stride=(stride, 1, 1),
                        padding=(d[2], 0, 0), dilation=(d[2], 1, 1))    # bn4 (no relu)
    if stride != 1:
        out2 = conv3d_fused(avg_pool3d(out2, (stride, 1, 1)), p['ds3'])
        out3 = conv3d_fused(avg_pool3d(out3, (stride, 1, 1)), p['ds4'])
    out4 = out4 + out2 + out3
    out4_relu = jnp.maximum(out4, 0.0)
    out5 = conv3d_fused(out4_relu, p['conv5'])                          # bn5 (no relu)
    if downsample:
        residual = conv3d_fused(avg_pool3d(x, (2, 2, 2)), p['ds'])
    return jnp.maximum(out5 + residual, 0.0)


def cvae_eval(p, x, key):
    """CVAE inference branch: returns (None, None, sketch_gsnn, None)."""
    def dec_x(xx):
        L = p['dec_x']
        h = conv3d_fused(xx, L[0], padding=(1, 1, 1))
        h = conv3d_fused(h, L[1], padding=(1, 1, 1))
        h = conv3d_fused(h, L[2], padding=(1, 1, 1))
        h = avg_pool3d(h, (2, 2, 2))
        h = conv3d_fused(h, L[3], padding=(1, 1, 1))
        h = avg_pool3d(h, (2, 2, 2))
        h = conv3d_fused(h, L[4], padding=(1, 1, 1))
        return h

    def dec(z):
        d = p['dec']
        h = conv_transpose3d_fused(z, d['wt1'])
        h = conv_transpose3d_fused(h, d['wt2'])
        # Dropout3d(0.1) is identity in eval mode; bias fused into w3 epilogue.
        return conv3d_fused(h, d['w3'])

    B, D, H, W, _ = x.shape
    dx = dec_x(x)  # PyTorch recomputes this per sample; results are identical.
    outs = []
    for i in range(SAMPLES):
        z = jax.random.normal(jax.random.fold_in(key, i),
                              (B, D // 4, H // 4, W // 4, LATENT), jnp.float32)
        outs.append(dec(jnp.concatenate([dx, z], axis=-1)))
    sketch_gsnn = jnp.mean(jnp.stack(outs, axis=0), axis=0)
    return None, None, sketch_gsnn, None


def stage1_forward(params, tsdf, depth_mapping_3d, key):
    del depth_mapping_3d  # unused in the reference forward as well
    x = tsdf
    for lyr in params['oper1']:
        x = conv3d_fused(x, lyr, padding=(1, 1, 1))
    c1 = x
    for p, cfg in zip(params['cl1'], CL1_CFG):
        c1 = bottleneck_forward(p, c1, **cfg)
    c2 = c1
    for p, cfg in zip(params['cl2'], CL2_CFG):
        c2 = bottleneck_forward(p, c2, **cfg)
    up1 = conv_transpose3d_fused(c2, params['cs0']) + c1
    up2 = conv_transpose3d_fused(up1, params['cs1'])
    pred_sketch_raw = conv3d_fused(up2, params['cs2'])   # Dropout3d identity (eval)
    pred_sketch_binary = jnp.argmax(pred_sketch_raw, axis=-1,
                                    keepdims=True).astype(jnp.float32)
    # TODO(synk): CVAE training branch (gt concat + reparameterization) not
    # executed — module runs in eval mode, matching PyTorch .eval() semantics.
    pred_mean, pred_log_var, pred_sketch_gsnn, pred_sketch = cvae_eval(
        params['cvae'], pred_sketch_binary, key)
    return (pred_sketch_raw, pred_sketch_gsnn, pred_sketch,
            pred_mean, pred_log_var)


# ------------------------------------ main ------------------------------------
if __name__ == "__main__":
    raw_params = init_params()
    params = prepare_params(raw_params)          # one-time fold/pack, outside jit
    key = jax.random.PRNGKey(0)
    k_in, k_z = jax.random.split(jax.random.fold_in(key, 12345))
    B, S = 1, 8                                  # spatial size must divide by 4
    tsdf = jax.random.normal(k_in, (B, S, S, S, 1), jnp.float32)   # NDHWC
    depth_mapping_3d = jnp.zeros((B, S * S * S), jnp.int32)        # unused

    # Params are captured by closure (static metadata like kernel sizes /
    # relu flags stay Python-static; weights become baked constants).
    fwd = jax.jit(lambda t, d, k: stage1_forward(params, t, d, k))
    out = fwd(tsdf, depth_mapping_3d, k_z)
    jax.block_until_ready((out[0], out[1]))
    assert out[0].shape == (B, S, S, S, 2)       # pred_sketch_raw
    assert out[1].shape == (B, S, S, S, 2)       # pred_sketch_gsnn
    print("KERNEL_OK")
</pallas_src>

<mosaic_0001>
module attributes {stable_mosaic.version = 11 : i64} {
  func.func @_mm_affine_kernel(%arg0: i32, %arg1: i32, %arg2: memref<128x32xbf16, #tpu.memory_space<vmem>>, %arg3: memref<32x128xbf16, #tpu.memory_space<vmem>>, %arg4: memref<1x128xf32, #tpu.memory_space<vmem>>, %arg5: memref<1x128xf32, #tpu.memory_space<vmem>>, %arg6: memref<128x128xf32, #tpu.memory_space<vmem>>) attributes {dimension_semantics = [#tpu.dimension_semantics<parallel>, #tpu.dimension_semantics<parallel>], iteration_bounds = array<i64: 4, 1>, scalar_prefetch = 0 : i64, scratch_operands = 0 : i64, tpu.core_type = #tpu.core_type<tc>, window_params = [{transform_indices = @transform_0, window_bounds = array<i64: 128, 32>}, {transform_indices = @transform_1, window_bounds = array<i64: 32, 128>}, {transform_indices = @transform_2, window_bounds = array<i64: 1, 128>}, {transform_indices = @transform_3, window_bounds = array<i64: 1, 128>}, {transform_indices = @transform_4, window_bounds = array<i64: 128, 128>}]} {
    %c0 = arith.constant 0 : index
    %c0_0 = arith.constant 0 : index
    %0 = vector.load %arg2[%c0, %c0_0] : memref<128x32xbf16, #tpu.memory_space<vmem>>, vector<128x32xbf16>
    %c0_1 = arith.constant 0 : index
    %c0_2 = arith.constant 0 : index
    %1 = vector.load %arg3[%c0_1, %c0_2] : memref<32x128xbf16, #tpu.memory_space<vmem>>, vector<32x128xbf16>
    %cst = arith.constant dense<0.000000e+00> : vector<128x128xf32>
    %2 = tpu.matmul %0, %1, %cst {dimension_numbers = #tpu.dot_dimension_numbers<[1], [0], [0], [1], [0, 0, 1, 1], [], []>} : vector<128x32xbf16>, vector<32x128xbf16>, vector<128x128xf32> -> vector<128x128xf32>
    %c0_3 = arith.constant 0 : index
    %c0_4 = arith.constant 0 : index
    %3 = vector.load %arg4[%c0_3, %c0_4] : memref<1x128xf32, #tpu.memory_space<vmem>>, vector<1x128xf32>
    %4 = vector.broadcast %3 : vector<1x128xf32> to vector<128x128xf32>
    %5 = arith.mulf %2, %4 : vector<128x128xf32>
    %c0_5 = arith.constant 0 : index
    %c0_6 = arith.constant 0 : index
    %6 = vector.load %arg5[%c0_5, %c0_6] : memref<1x128xf32, #tpu.memory_space<vmem>>, vector<1x128xf32>
    %7 = vector.broadcast %6 : vector<1x128xf32> to vector<128x128xf32>
    %8 = arith.addf %5, %7 : vector<128x128xf32>
    %cst_7 = arith.constant 0.000000e+00 : f32
    %9 = vector.broadcast %cst_7 : f32 to vector<128x128xf32>
    %10 = arith.maximumf %8, %9 : vector<128x128xf32>
    %c0_8 = arith.constant 0 : index
    %c0_9 = arith.constant 0 : index
    %11 = vector.load %arg6[%c0_8, %c0_9] : memref<128x128xf32, #tpu.memory_space<vmem>>, vector<128x128xf32>
    tpu.vector_store %arg6[%c0_8, %c0_9], %10 {strides = array<i32>} : memref<128x128xf32, #tpu.memory_space<vmem>>, vector<128x128xf32>,
    return
  }
  func.func @transform_0(%arg0: i32, %arg1: i32) -> (i32, i32) {
    %c0_i32 = arith.constant 0 : i32
    %c0_i32_0 = arith.constant 0 : i32
    return %arg0, %c0_i32 : i32, i32
  }
  func.func @transform_1(%arg0: i32, %arg1: i32) -> (i32, i32) {
    %c0_i32 = arith.constant 0 : i32
    %c0_i32_0 = arith.constant 0 : i32
    return %c0_i32, %arg1 : i32, i32
  }
  func.func @transform_2(%arg0: i32, %arg1: i32) -> (i32, i32) {
    %c0_i32 = arith.constant 0 : i32
    %c0_i32_0 = arith.constant 0 : i32
    return %c0_i32, %arg1 : i32, i32
  }
  func.func @transform_3(%arg0: i32, %arg1: i32) -> (i32, i32) {
    %c0_i32 = arith.constant 0 : i32
    %c0_i32_0 = arith.constant 0 : i32
    return %c0_i32, %arg1 : i32, i32
  }
  func.func @transform_4(%arg0: i32, %arg1: i32) -> (i32, i32) {
    %c0_i32 = arith.constant 0 : i32
    return %arg0, %arg1 : i32, i32
  }
}

module attributes {stable_mosaic.version = 11 : i64} {
  func.func @_mm_affine_kernel(%arg0: i32, %arg1: i32, %arg2: memref<128x96xbf16, #tpu.memory_space<vmem>>, %arg3: memref<96x128xbf16, #tpu.memory_space<vmem>>, %arg4: memref<1x128xf32, #tpu.memory_space<vmem>>, %arg5: memref<1x128xf32, #tpu.memory_space<vmem>>, %arg6: memref<128x128xf32, #tpu.memory_space<vmem>>) attributes {dimension_semantics = [#tpu.dimension_semantics<parallel>, #tpu.dimension_semantics<parallel>], iteration_bounds = array<i64: 4, 1>, scalar_prefetch = 0 : i64, scratch_operands = 0 : i64, tpu.core_type = #tpu.core_type<tc>, window_params = [{transform_indices = @transform_0, window_bounds = array<i64: 128, 96>}, {transform_indices = @transform_1, window_bounds = array<i64: 96, 128>}, {transform_indices = @transform_2, window_bounds = array<i64: 1, 128>}, {transform_indices = @transform_3, window_bounds = array<i64: 1, 128>}, {transform_indices = @transform_4, window_bounds = array<i64: 128, 128>}]} {
    %c0 = arith.constant 0 : index
    %c0_0 = arith.constant 0 : index
    %0 = vector.load %arg2[%c0, %c0_0] : memref<128x96xbf16, #tpu.memory_space<vmem>>, vector<128x96xbf16>
    %c0_1 = arith.constant 0 : index
    %c0_2 = arith.constant 0 : index
    %1 = vector.load %arg3[%c0_1, %c0_2] : memref<96x128xbf16, #tpu.memory_space<vmem>>, vector<96x128xbf16>
    %cst = arith.constant dense<0.000000e+00> : vector<128x128xf32>
    %2 = tpu.matmul %0, %1, %cst {dimension_numbers = #tpu.dot_dimension_numbers<[1], [0], [0], [1], [0, 0, 1, 1], [], []>} : vector<128x96xbf16>, vector<96x128xbf16>, vector<128x128xf32> -> vector<128x128xf32>
    %c0_3 = arith.constant 0 : index
    %c0_4 = arith.constant 0 : index
    %3 = vector.load %arg4[%c0_3, %c0_4] : memref<1x128xf32, #tpu.memory_space<vmem>>, vector<1x128xf32>
    %4 = vector.broadcast %3 : vector<1x128xf32> to vector<128x128xf32>
    %5 = arith.mulf %2, %4 : vector<128x128xf32>
    %c0_5 = arith.constant 0 : index
    %c0_6 = arith.constant 0 : index
    %6 = vector.load %arg5[%c0_5, %c0_6] : memref<1x128xf32, #tpu.memory_space<vmem>>, vector<1x128xf32>
    %7 = vector.broadcast %6 : vector<1x128xf32> to vector<128x128xf32>
    %8 = arith.addf %5, %7 : vector<128x128xf32>
    %cst_7 = arith.constant 0.000000e+00 : f32
    %9 = vector.broadcast %cst_7 : f32 to vector<128x128xf32>
    %10 = arith.maximumf %8, %9 : vector<128x128xf32>
    %c0_8 = arith.constant 0 : index
    %c0_9 = arith.constant 0 : index
    %11 = vector.load %arg6[%c0_8, %c0_9] : memref<128x128xf32, #tpu.memory_space<vmem>>, vector<128x128xf32>
    tpu.vector_store %arg6[%c0_8, %c0_9], %10 {strides = array<i32>} : memref<128x128xf32, #tpu.memory_space<vmem>>, vector<128x128xf32>,
    return
  }
  func.func @transform_0(%arg0: i32, %arg1: i32) -> (i32, i32) {
    %c0_i32 = arith.constant 0 : i32
    %c0_i32_0 = arith.constant 0 : i32
    return %arg0, %c0_i32 : i32, i32
  }
  func.func @transform_1(%arg0: i32, %arg1: i32) -> (i32, i32) {
    %c0_i32 = arith.constant 0 : i32
    %c0_i32_0 = arith.constant 0 : i32
    return %c0_i32, %arg1 : i32, i32
  }
  func.func @transform_2(%arg0: i32, %arg1: i32) -> (i32, i32) {
    %c0_i32 = arith.constant 0 : i32
    %c0_i32_0 = arith.constant 0 : i32
    return %c0_i32, %arg1 : i32, i32
  }
  func.func @transform_3(%arg0: i32, %arg1: i32) -> (i32, i32) {
    %c0_i32 = arith.constant 0 : i32
    %c0_i32_0 = arith.constant 0 : i32
    return %c0_i32, %arg1 : i32, i32
  }
  func.func @transform_4(%arg0: i32, %arg1: i32) -> (i32, i32) {
    %c0_i32 = arith.constant 0 : i32
    return %arg0, %arg1 : i32, i32
  }
}

module attributes {stable_mosaic.version = 11 : i64} {
  func.func @_mm_affine_kernel(%arg0: i32, %arg1: i32, %arg2: memref<128x1728xbf16, #tpu.memory_space<vmem>>, %arg3: memref<1728x128xbf16, #tpu.memory_space<vmem>>, %arg4: memref<1x128xf32, #tpu.memory_space<vmem>>, %arg5: memref<1x128xf32, #tpu.memory_space<vmem>>, %arg6: memref<128x128xf32, #tpu.memory_space<vmem>>) attributes {dimension_semantics = [#tpu.dimension_semantics<parallel>, #tpu.dimension_semantics<parallel>], iteration_bounds = array<i64: 4, 1>, scalar_prefetch = 0 : i64, scratch_operands = 0 : i64, tpu.core_type = #tpu.core_type<tc>, window_params = [{transform_indices = @transform_0, window_bounds = array<i64: 128, 1728>}, {transform_indices = @transform_1, window_bounds = array<i64: 1728, 128>}, {transform_indices = @transform_2, window_bounds = array<i64: 1, 128>}, {transform_indices = @transform_3, window_bounds = array<i64: 1, 128>}, {transform_indices = @transform_4, window_bounds = array<i64: 128, 128>}]} {
    %c0 = arith.constant 0 : index
    %c0_0 = arith.constant 0 : index
    %0 = vector.load %arg2[%c0, %c0_0] : memref<128x1728xbf16, #tpu.memory_space<vmem>>, vector<128x1728xbf16>
    %c0_1 = arith.constant 0 : index
    %c0_2 = arith.constant 0 : index
    %1 = vector.load %arg3[%c0_1, %c0_2] : memref<1728x128xbf16, #tpu.memory_space<vmem>>, vector<1728x128xbf16>
    %cst = arith.constant dense<0.000000e+00> : vector<128x128xf32>
    %2 = tpu.matmul %0, %1, %cst {dimension_numbers = #tpu.dot_dimension_numbers<[1], [0], [0], [1], [0, 0, 1, 1], [], []>} : vector<128x1728xbf16>, vector<1728x128xbf16>, vector<128x128xf32> -> vector<128x128xf32>
    %c0_3 = arith.constant 0 : index
    %c0_4 = arith.constant 0 : index
    %3 = vector.load %arg4[%c0_3, %c0_4] : memref<1x128xf32, #tpu.memory_space<vmem>>, vector<1x128xf32>
    %4 = vector.broadcast %3 : vector<1x128xf32> to vector<128x128xf32>
    %5 = arith.mulf %2, %4 : vector<128x128xf32>
    %c0_5 = arith.constant 0 : index
    %c0_6 = arith.constant 0 : index
    %6 = vector.load %arg5[%c0_5, %c0_6] : memref<1x128xf32, #tpu.memory_space<vmem>>, vector<1x128xf32>
    %7 = vector.broadcast %6 : vector<1x128xf32> to vector<128x128xf32>
    %8 = arith.addf %5, %7 : vector<128x128xf32>
    %cst_7 = arith.constant 0.000000e+00 : f32
    %9 = vector.broadcast %cst_7 : f32 to vector<128x128xf32>
    %10 = arith.maximumf %8, %9 : vector<128x128xf32>
    %c0_8 = arith.constant 0 : index
    %c0_9 = arith.constant 0 : index
    %11 = vector.load %arg6[%c0_8, %c0_9] : memref<128x128xf32, #tpu.memory_space<vmem>>, vector<128x128xf32>
    tpu.vector_store %arg6[%c0_8, %c0_9], %10 {strides = array<i32>} : memref<128x128xf32, #tpu.memory_space<vmem>>, vector<128x128xf32>,
    return
  }
  func.func @transform_0(%arg0: i32, %arg1: i32) -> (i32, i32) {
    %c0_i32 = arith.constant 0 : i32
    %c0_i32_0 = arith.constant 0 : i32
    return %arg0, %c0_i32 : i32, i32
  }
  func.func @transform_1(%arg0: i32, %arg1: i32) -> (i32, i32) {
    %c0_i32 = arith.constant 0 : i32
    %c0_i32_0 = arith.constant 0 : i32
    return %c0_i32, %arg1 : i32, i32
  }
  func.func @transform_2(%arg0: i32, %arg1: i32) -> (i32, i32) {
    %c0_i32 = arith.constant 0 : i32
    %c0_i32_0 = arith.constant 0 : i32
    return %c0_i32, %arg1 : i32, i32
  }
  func.func @transform_3(%arg0: i32, %arg1: i32) -> (i32, i32) {
    %c0_i32 = arith.constant 0 : i32
    %c0_i32_0 = arith.constant 0 : i32
    return %c0_i32, %arg1 : i32, i32
  }
  func.func @transform_4(%arg0: i32, %arg1: i32) -> (i32, i32) {
    %c0_i32 = arith.constant 0 : i32
    return %arg0, %arg1 : i32, i32
  }
}

module attributes {stable_mosaic.version = 11 : i64} {
  func.func @_mm_affine_kernel(%arg0: i32, %arg1: i32, %arg2: memref<256x32xbf16, #tpu.memory_space<vmem>>, %arg3: memref<32x128xbf16, #tpu.memory_space<vmem>>, %arg4: memref<1x128xf32, #tpu.memory_space<vmem>>, %arg5: memref<1x128xf32, #tpu.memory_space<vmem>>, %arg6: memref<256x128xf32, #tpu.memory_space<vmem>>) attributes {dimension_semantics = [#tpu.dimension_semantics<parallel>, #tpu.dimension_semantics<parallel>], iteration_bounds = array<i64: 1, 1>, scalar_prefetch = 0 : i64, scratch_operands = 0 : i64, tpu.core_type = #tpu.core_type<tc>, window_params = [{transform_indices = @transform_0, window_bounds = array<i64: 256, 32>}, {transform_indices = @transform_1, window_bounds = array<i64: 32, 128>}, {transform_indices = @transform_2, window_bounds = array<i64: 1, 128>}, {transform_indices = @transform_3, window_bounds = array<i64: 1, 128>}, {transform_indices = @transform_4, window_bounds = array<i64: 256, 128>}]} {
    %c0 = arith.constant 0 : index
    %c0_0 = arith.constant 0 : index
    %0 = vector.load %arg2[%c0, %c0_0] : memref<256x32xbf16, #tpu.memory_space<vmem>>, vector<256x32xbf16>
    %c0_1 = arith.constant 0 : index
    %c0_2 = arith.constant 0 : index
    %1 = vector.load %arg3[%c0_1, %c0_2] : memref<32x128xbf16, #tpu.memory_space<vmem>>, vector<32x128xbf16>
    %cst = arith.constant dense<0.000000e+00> : vector<256x128xf32>
    %2 = tpu.matmul %0, %1, %cst {dimension_numbers = #tpu.dot_dimension_numbers<[1], [0], [0], [1], [0, 0, 1, 1], [], []>} : vector<256x32xbf16>, vector<32x128xbf16>, vector<256x128xf32> -> vector<256x128xf32>
    %c0_3 = arith.constant 0 : index
    %c0_4 = arith.constant 0 : index
    %3 = vector.load %arg4[%c0_3, %c0_4] : memref<1x128xf32, #tpu.memory_space<vmem>>, vector<1x128xf32>
    %4 = vector.broadcast %3 : vector<1x128xf32> to vector<256x128xf32>
    %5 = arith.mulf %2, %4 : vector<256x128xf32>
    %c0_5 = arith.constant 0 : index
    %c0_6 = arith.constant 0 : index
    %6 = vector.load %arg5[%c0_5, %c0_6] : memref<1x128xf32, #tpu.memory_space<vmem>>, vector<1x128xf32>
    %7 = vector.broadcast %6 : vector<1x128xf32> to vector<256x128xf32>
    %8 = arith.addf %5, %7 : vector<256x128xf32>
    %c0_7 = arith.constant 0 : index
    %c0_8 = arith.constant 0 : index
    %9 = vector.load %arg6[%c0_7, %c0_8] : memref<256x128xf32, #tpu.memory_space<vmem>>, vector<256x128xf32>
    tpu.vector_store %arg6[%c0_7, %c0_8], %8 {strides = array<i32>} : memref<256x128xf32, #tpu.memory_space<vmem>>, vector<256x128xf32>,
    return
  }
  func.func @transform_0(%arg0: i32, %arg1: i32) -> (i32, i32) {
    %c0_i32 = arith.constant 0 : i32
    %c0_i32_0 = arith.constant 0 : i32
    return %arg0, %c0_i32 : i32, i32
  }
  func.func @transform_1(%arg0: i32, %arg1: i32) -> (i32, i32) {
    %c0_i32 = arith.constant 0 : i32
    %c0_i32_0 = arith.constant 0 : i32
    return %c0_i32, %arg1 : i32, i32
  }
  func.func @transform_2(%arg0: i32, %arg1: i32) -> (i32, i32) {
    %c0_i32 = arith.constant 0 : i32
    %c0_i32_0 = arith.constant 0 : i32
    return %c0_i32, %arg1 : i32, i32
  }
  func.func @transform_3(%arg0: i32, %arg1: i32) -> (i32, i32) {
    %c0_i32 = arith.constant 0 : i32
    %c0_i32_0 = arith.constant 0 : i32
    return %c0_i32, %arg1 : i32, i32
  }
  func.func @transform_4(%arg0: i32, %arg1: i32) -> (i32, i32) {
    %c0_i32 = arith.constant 0 : i32
    return %arg0, %arg1 : i32, i32
  }
}

module attributes {stable_mosaic.version = 11 : i64} {
  func.func @_mm_affine_kernel(%arg0: i32, %arg1: i32, %arg2: memref<128x32xbf16, #tpu.memory_space<vmem>>, %arg3: memref<32x128xbf16, #tpu.memory_space<vmem>>, %arg4: memref<1x128xf32, #tpu.memory_space<vmem>>, %arg5: memref<1x128xf32, #tpu.memory_space<vmem>>, %arg6: memref<128x128xf32, #tpu.memory_space<vmem>>) attributes {dimension_semantics = [#tpu.dimension_semantics<parallel>, #tpu.dimension_semantics<parallel>], iteration_bounds = array<i64: 1, 1>, scalar_prefetch = 0 : i64, scratch_operands = 0 : i64, tpu.core_type = #tpu.core_type<tc>, window_params = [{transform_indices = @transform_0, window_bounds = array<i64: 128, 32>}, {transform_indices = @transform_1, window_bounds = array<i64: 32, 128>}, {transform_indices = @transform_2, window_bounds = array<i64: 1, 128>}, {transform_indices = @transform_3, window_bounds = array<i64: 1, 128>}, {transform_indices = @transform_4, window_bounds = array<i64: 128, 128>}]} {
    %c0 = arith.constant 0 : index
    %c0_0 = arith.constant 0 : index
    %0 = vector.load %arg2[%c0, %c0_0] : memref<128x32xbf16, #tpu.memory_space<vmem>>, vector<128x32xbf16>
    %c0_1 = arith.constant 0 : index
    %c0_2 = arith.constant 0 : index
    %1 = vector.load %arg3[%c0_1, %c0_2] : memref<32x128xbf16, #tpu.memory_space<vmem>>, vector<32x128xbf16>
    %cst = arith.constant dense<0.000000e+00> : vector<128x128xf32>
    %2 = tpu.matmul %0, %1, %cst {dimension_numbers = #tpu.dot_dimension_numbers<[1], [0], [0], [1], [0, 0, 1, 1], [], []>} : vector<128x32xbf16>, vector<32x128xbf16>, vector<128x128xf32> -> vector<128x128xf32>
    %c0_3 = arith.constant 0 : index
    %c0_4 = arith.constant 0 : index
    %3 = vector.load %arg4[%c0_3, %c0_4] : memref<1x128xf32, #tpu.memory_space<vmem>>, vector<1x128xf32>
    %4 = vector.broadcast %3 : vector<1x128xf32> to vector<128x128xf32>
    %5 = arith.mulf %2, %4 : vector<128x128xf32>
    %c0_5 = arith.constant 0 : index
    %c0_6 = arith.constant 0 : index
    %6 = vector.load %arg5[%c0_5, %c0_6] : memref<1x128xf32, #tpu.memory_space<vmem>>, vector<1x128xf32>
    %7 = vector.broadcast %6 : vector<1x128xf32> to vector<128x128xf32>
    %8 = arith.addf %5, %7 : vector<128x128xf32>
    %c0_7 = arith.constant 0 : index
    %c0_8 = arith.constant 0 : index
    %9 = vector.load %arg6[%c0_7, %c0_8] : memref<128x128xf32, #tpu.memory_space<vmem>>, vector<128x128xf32>
    tpu.vector_store %arg6[%c0_7, %c0_8], %8 {strides = array<i32>} : memref<128x128xf32, #tpu.memory_space<vmem>>, vector<128x128xf32>,
    return
  }
  func.func @transform_0(%arg0: i32, %arg1: i32) -> (i32, i32) {
    %c0_i32 = arith.constant 0 : i32
    %c0_i32_0 = arith.constant 0 : i32
    return %arg0, %c0_i32 : i32, i32
  }
  func.func @transform_1(%arg0: i32, %arg1: i32) -> (i32, i32) {
    %c0_i32 = arith.constant 0 : i32
    %c0_i32_0 = arith.constant 0 : i32
    return %c0_i32, %arg1 : i32, i32
  }
  func.func @transform_2(%arg0: i32, %arg1: i32) -> (i32, i32) {
    %c0_i32 = arith.constant 0 : i32
    %c0_i32_0 = arith.constant 0 : i32
    return %c0_i32, %arg1 : i32, i32
  }
  func.func @transform_3(%arg0: i32, %arg1: i32) -> (i32, i32) {
    %c0_i32 = arith.constant 0 : i32
    %c0_i32_0 = arith.constant 0 : i32
    return %c0_i32, %arg1 : i32, i32
  }
  func.func @transform_4(%arg0: i32, %arg1: i32) -> (i32, i32) {
    %c0_i32 = arith.constant 0 : i32
    return %arg0, %arg1 : i32, i32
  }
}

module attributes {stable_mosaic.version = 11 : i64} {
  func.func @_mm_affine_kernel(%arg0: i32, %arg1: i32, %arg2: memref<128x16xbf16, #tpu.memory_space<vmem>>, %arg3: memref<16x128xbf16, #tpu.memory_space<vmem>>, %arg4: memref<1x128xf32, #tpu.memory_space<vmem>>, %arg5: memref<1x128xf32, #tpu.memory_space<vmem>>, %arg6: memref<128x128xf32, #tpu.memory_space<vmem>>) attributes {dimension_semantics = [#tpu.dimension_semantics<parallel>, #tpu.dimension_semantics<parallel>], iteration_bounds = array<i64: 1, 1>, scalar_prefetch = 0 : i64, scratch_operands = 0 : i64, tpu.core_type = #tpu.core_type<tc>, window_params = [{transform_indices = @transform_0, window_bounds = array<i64: 128, 16>}, {transform_indices = @transform_1, window_bounds = array<i64: 16, 128>}, {transform_indices = @transform_2, window_bounds = array<i64: 1, 128>}, {transform_indices = @transform_3, window_bounds = array<i64: 1, 128>}, {transform_indices = @transform_4, window_bounds = array<i64: 128, 128>}]} {
    %c0 = arith.constant 0 : index
    %c0_0 = arith.constant 0 : index
    %0 = vector.load %arg2[%c0, %c0_0] : memref<128x16xbf16, #tpu.memory_space<vmem>>, vector<128x16xbf16>
    %c0_1 = arith.constant 0 : index
    %c0_2 = arith.constant 0 : index
    %1 = vector.load %arg3[%c0_1, %c0_2] : memref<16x128xbf16, #tpu.memory_space<vmem>>, vector<16x128xbf16>
    %cst = arith.constant dense<0.000000e+00> : vector<128x128xf32>
    %2 = tpu.matmul %0, %1, %cst {dimension_numbers = #tpu.dot_dimension_numbers<[1], [0], [0], [1], [0, 0, 1, 1], [], []>} : vector<128x16xbf16>, vector<16x128xbf16>, vector<128x128xf32> -> vector<128x128xf32>
    %c0_3 = arith.constant 0 : index
    %c0_4 = arith.constant 0 : index
    %3 = vector.load %arg4[%c0_3, %c0_4] : memref<1x128xf32, #tpu.memory_space<vmem>>, vector<1x128xf32>
    %4 = vector.broadcast %3 : vector<1x128xf32> to vector<128x128xf32>
    %5 = arith.mulf %2, %4 : vector<128x128xf32>
    %c0_5 = arith.constant 0 : index
    %c0_6 = arith.constant 0 : index
    %6 = vector.load %arg5[%c0_5, %c0_6] : memref<1x128xf32, #tpu.memory_space<vmem>>, vector<1x128xf32>
    %7 = vector.broadcast %6 : vector<1x128xf32> to vector<128x128xf32>
    %8 = arith.addf %5, %7 : vector<128x128xf32>
    %c0_7 = arith.constant 0 : index
    %c0_8 = arith.constant 0 : index
    %9 = vector.load %arg6[%c0_7, %c0_8] : memref<128x128xf32, #tpu.memory_space<vmem>>, vector<128x128xf32>
    tpu.vector_store %arg6[%c0_7, %c0_8], %8 {strides = array<i32>} : memref<128x128xf32, #tpu.memory_space<vmem>>, vector<128x128xf32>,
    return
  }
  func.func @transform_0(%arg0: i32, %arg1: i32) -> (i32, i32) {
    %c0_i32 = arith.constant 0 : i32
    %c0_i32_0 = arith.constant 0 : i32
    return %arg0, %c0_i32 : i32, i32
  }
  func.func @transform_1(%arg0: i32, %arg1: i32) -> (i32, i32) {
    %c0_i32 = arith.constant 0 : i32
    %c0_i32_0 = arith.constant 0 : i32
    return %c0_i32, %arg1 : i32, i32
  }
  func.func @transform_2(%arg0: i32, %arg1: i32) -> (i32, i32) {
    %c0_i32 = arith.constant 0 : i32
    %c0_i32_0 = arith.constant 0 : i32
    return %c0_i32, %arg1 : i32, i32
  }
  func.func @transform_3(%arg0: i32, %arg1: i32) -> (i32, i32) {
    %c0_i32 = arith.constant 0 : i32
    %c0_i32_0 = arith.constant 0 : i32
    return %c0_i32, %arg1 : i32, i32
  }
  func.func @transform_4(%arg0: i32, %arg1: i32) -> (i32, i32) {
    %c0_i32 = arith.constant 0 : i32
    return %arg0, %arg1 : i32, i32
  }
}

module attributes {stable_mosaic.version = 11 : i64} {
  func.func @_mm_affine_kernel(%arg0: i32, %arg1: i32, %arg2: memref<64x32xbf16, #tpu.memory_space<vmem>>, %arg3: memref<32x128xbf16, #tpu.memory_space<vmem>>, %arg4: memref<1x128xf32, #tpu.memory_space<vmem>>, %arg5: memref<1x128xf32, #tpu.memory_space<vmem>>, %arg6: memref<64x128xf32, #tpu.memory_space<vmem>>) attributes {dimension_semantics = [#tpu.dimension_semantics<parallel>, #tpu.dimension_semantics<parallel>], iteration_bounds = array<i64: 1, 1>, scalar_prefetch = 0 : i64, scratch_operands = 0 : i64, tpu.core_type = #tpu.core_type<tc>, window_params = [{transform_indices = @transform_0, window_bounds = array<i64: 64, 32>}, {transform_indices = @transform_1, window_bounds = array<i64: 32, 128>}, {transform_indices = @transform_2, window_bounds = array<i64: 1, 128>}, {transform_indices = @transform_3, window_bounds = array<i64: 1, 128>}, {transform_indices = @transform_4, window_bounds = array<i64: 64, 128>}]} {
    %c0 = arith.constant 0 : index
    %c0_0 = arith.constant 0 : index
    %0 = vector.load %arg2[%c0, %c0_0] : memref<64x32xbf16, #tpu.memory_space<vmem>>, vector<64x32xbf16>
    %c0_1 = arith.constant 0 : index
    %c0_2 = arith.constant 0 : index
    %1 = vector.load %arg3[%c0_1, %c0_2] : memref<32x128xbf16, #tpu.memory_space<vmem>>, vector<32x128xbf16>
    %cst = arith.constant dense<0.000000e+00> : vector<64x128xf32>
    %2 = tpu.matmul %0, %1, %cst {dimension_numbers = #tpu.dot_dimension_numbers<[1], [0], [0], [1], [0, 0, 1, 1], [], []>} : vector<64x32xbf16>, vector<32x128xbf16>, vector<64x128xf32> -> vector<64x128xf32>
    %c0_3 = arith.constant 0 : index
    %c0_4 = arith.constant 0 : index
    %3 = vector.load %arg4[%c0_3, %c0_4] : memref<1x128xf32, #tpu.memory_space<vmem>>, vector<1x128xf32>
    %4 = vector.broadcast %3 : vector<1x128xf32> to vector<64x128xf32>
    %5 = arith.mulf %2, %4 : vector<64x128xf32>
    %c0_5 = arith.constant 0 : index
    %c0_6 = arith.constant 0 : index
    %6 = vector.load %arg5[%c0_5, %c0_6] : memref<1x128xf32, #tpu.memory_space<vmem>>, vector<1x128xf32>
    %7 = vector.broadcast %6 : vector<1x128xf32> to vector<64x128xf32>
    %8 = arith.addf %5, %7 : vector<64x128xf32>
    %c0_7 = arith.constant 0 : index
    %c0_8 = arith.constant 0 : index
    %9 = vector.load %arg6[%c0_7, %c0_8] : memref<64x128xf32, #tpu.memory_space<vmem>>, vector<64x128xf32>
    tpu.vector_store %arg6[%c0_7, %c0_8], %8 {strides = array<i32>} : memref<64x128xf32, #tpu.memory_space<vmem>>, vector<64x128xf32>,
    return
  }
  func.func @transform_0(%arg0: i32, %arg1: i32) -> (i32, i32) {
    %c0_i32 = arith.constant 0 : i32
    %c0_i32_0 = arith.constant 0 : i32
    return %arg0, %c0_i32 : i32, i32
  }
  func.func @transform_1(%arg0: i32, %arg1: i32) -> (i32, i32) {
    %c0_i32 = arith.constant 0 : i32
    %c0_i32_0 = arith.constant 0 : i32
    return %c0_i32, %arg1 : i32, i32
  }
  func.func @transform_2(%arg0: i32, %arg1: i32) -> (i32, i32) {
    %c0_i32 = arith.constant 0 : i32
    %c0_i32_0 = arith.constant 0 : i32
    return %c0_i32, %arg1 : i32, i32
  }
  func.func @transform_3(%arg0: i32, %arg1: i32) -> (i32, i32) {
    %c0_i32 = arith.constant 0 : i32
    %c0_i32_0 = arith.constant 0 : i32
    return %c0_i32, %arg1 : i32, i32
  }
  func.func @transform_4(%arg0: i32, %arg1: i32) -> (i32, i32) {
    %c0_i32 = arith.constant 0 : i32
    return %arg0, %arg1 : i32, i32
  }
}

module attributes {stable_mosaic.version = 11 : i64} {
  func.func @_mm_affine_kernel(%arg0: i32, %arg1: i32, %arg2: memref<64x16xbf16, #tpu.memory_space<vmem>>, %arg3: memref<16x128xbf16, #tpu.memory_space<vmem>>, %arg4: memref<1x128xf32, #tpu.memory_space<vmem>>, %arg5: memref<1x128xf32, #tpu.memory_space<vmem>>, %arg6: memref<64x128xf32, #tpu.memory_space<vmem>>) attributes {dimension_semantics = [#tpu.dimension_semantics<parallel>, #tpu.dimension_semantics<parallel>], iteration_bounds = array<i64: 1, 1>, scalar_prefetch = 0 : i64, scratch_operands = 0 : i64, tpu.core_type = #tpu.core_type<tc>, window_params = [{transform_indices = @transform_0, window_bounds = array<i64: 64, 16>}, {transform_indices = @transform_1, window_bounds = array<i64: 16, 128>}, {transform_indices = @transform_2, window_bounds = array<i64: 1, 128>}, {transform_indices = @transform_3, window_bounds = array<i64: 1, 128>}, {transform_indices = @transform_4, window_bounds = array<i64: 64, 128>}]} {
    %c0 = arith.constant 0 : index
    %c0_0 = arith.constant 0 : index
    %0 = vector.load %arg2[%c0, %c0_0] : memref<64x16xbf16, #tpu.memory_space<vmem>>, vector<64x16xbf16>
    %c0_1 = arith.constant 0 : index
    %c0_2 = arith.constant 0 : index
    %1 = vector.load %arg3[%c0_1, %c0_2] : memref<16x128xbf16, #tpu.memory_space<vmem>>, vector<16x128xbf16>
    %cst = arith.constant dense<0.000000e+00> : vector<64x128xf32>
    %2 = tpu.matmul %0, %1, %cst {dimension_numbers = #tpu.dot_dimension_numbers<[1], [0], [0], [1], [0, 0, 1, 1], [], []>} : vector<64x16xbf16>, vector<16x128xbf16>, vector<64x128xf32> -> vector<64x128xf32>
    %c0_3 = arith.constant 0 : index
    %c0_4 = arith.constant 0 : index
    %3 = vector.load %arg4[%c0_3, %c0_4] : memref<1x128xf32, #tpu.memory_space<vmem>>, vector<1x128xf32>
    %4 = vector.broadcast %3 : vector<1x128xf32> to vector<64x128xf32>
    %5 = arith.mulf %2, %4 : vector<64x128xf32>
    %c0_5 = arith.constant 0 : index
    %c0_6 = arith.constant 0 : index
    %6 = vector.load %arg5[%c0_5, %c0_6] : memref<1x128xf32, #tpu.memory_space<vmem>>, vector<1x128xf32>
    %7 = vector.broadcast %6 : vector<1x128xf32> to vector<64x128xf32>
    %8 = arith.addf %5, %7 : vector<64x128xf32>
    %c0_7 = arith.constant 0 : index
    %c0_8 = arith.constant 0 : index
    %9 = vector.load %arg6[%c0_7, %c0_8] : memref<64x128xf32, #tpu.memory_space<vmem>>, vector<64x128xf32>
    tpu.vector_store %arg6[%c0_7, %c0_8], %8 {strides = array<i32>} : memref<64x128xf32, #tpu.memory_space<vmem>>, vector<64x128xf32>,
    return
  }
  func.func @transform_0(%arg0: i32, %arg1: i32) -> (i32, i32) {
    %c0_i32 = arith.constant 0 : i32
    %c0_i32_0 = arith.constant 0 : i32
    return %arg0, %c0_i32 : i32, i32
  }
  func.func @transform_1(%arg0: i32, %arg1: i32) -> (i32, i32) {
    %c0_i32 = arith.constant 0 : i32
    %c0_i32_0 = arith.constant 0 : i32
    return %c0_i32, %arg1 : i32, i32
  }
  func.func @transform_2(%arg0: i32, %arg1: i32) -> (i32, i32) {
    %c0_i32 = arith.constant 0 : i32
    %c0_i32_0 = arith.constant 0 : i32
    return %c0_i32, %arg1 : i32, i32
  }
  func.func @transform_3(%arg0: i32, %arg1: i32) -> (i32, i32) {
    %c0_i32 = arith.constant 0 : i32
    %c0_i32_0 = arith.constant 0 : i32
    return %c0_i32, %arg1 : i32, i32
  }
  func.func @transform_4(%arg0: i32, %arg1: i32) -> (i32, i32) {
    %c0_i32 = arith.constant 0 : i32
    return %arg0, %arg1 : i32, i32
  }
}

module attributes {stable_mosaic.version = 11 : i64} {
  func.func @_mm_affine_kernel(%arg0: i32, %arg1: i32, %arg2: memref<64x32xbf16, #tpu.memory_space<vmem>>, %arg3: memref<32x128xbf16, #tpu.memory_space<vmem>>, %arg4: memref<1x128xf32, #tpu.memory_space<vmem>>, %arg5: memref<1x128xf32, #tpu.memory_space<vmem>>, %arg6: memref<64x128xf32, #tpu.memory_space<vmem>>) attributes {dimension_semantics = [#tpu.dimension_semantics<parallel>, #tpu.dimension_semantics<parallel>], iteration_bounds = array<i64: 1, 1>, scalar_prefetch = 0 : i64, scratch_operands = 0 : i64, tpu.core_type = #tpu.core_type<tc>, window_params = [{transform_indices = @transform_0, window_bounds = array<i64: 64, 32>}, {transform_indices = @transform_1, window_bounds = array<i64: 32, 128>}, {transform_indices = @transform_2, window_bounds = array<i64: 1, 128>}, {transform_indices = @transform_3, window_bounds = array<i64: 1, 128>}, {transform_indices = @transform_4, window_bounds = array<i64: 64, 128>}]} {
    %c0 = arith.constant 0 : index
    %c0_0 = arith.constant 0 : index
    %0 = vector.load %arg2[%c0, %c0_0] : memref<64x32xbf16, #tpu.memory_space<vmem>>, vector<64x32xbf16>
    %c0_1 = arith.constant 0 : index
    %c0_2 = arith.constant 0 : index
    %1 = vector.load %arg3[%c0_1, %c0_2] : memref<32x128xbf16, #tpu.memory_space<vmem>>, vector<32x128xbf16>
    %cst = arith.constant dense<0.000000e+00> : vector<64x128xf32>
    %2 = tpu.matmul %0, %1, %cst {dimension_numbers = #tpu.dot_dimension_numbers<[1], [0], [0], [1], [0, 0, 1, 1], [], []>} : vector<64x32xbf16>, vector<32x128xbf16>, vector<64x128xf32> -> vector<64x128xf32>
    %c0_3 = arith.constant 0 : index
    %c0_4 = arith.constant 0 : index
    %3 = vector.load %arg4[%c0_3, %c0_4] : memref<1x128xf32, #tpu.memory_space<vmem>>, vector<1x128xf32>
    %4 = vector.broadcast %3 : vector<1x128xf32> to vector<64x128xf32>
    %5 = arith.mulf %2, %4 : vector<64x128xf32>
    %c0_5 = arith.constant 0 : index
    %c0_6 = arith.constant 0 : index
    %6 = vector.load %arg5[%c0_5, %c0_6] : memref<1x128xf32, #tpu.memory_space<vmem>>, vector<1x128xf32>
    %7 = vector.broadcast %6 : vector<1x128xf32> to vector<64x128xf32>
    %8 = arith.addf %5, %7 : vector<64x128xf32>
    %cst_7 = arith.constant 0.000000e+00 : f32
    %9 = vector.broadcast %cst_7 : f32 to vector<64x128xf32>
    %10 = arith.maximumf %8, %9 : vector<64x128xf32>
    %c0_8 = arith.constant 0 : index
    %c0_9 = arith.constant 0 : index
    %11 = vector.load %arg6[%c0_8, %c0_9] : memref<64x128xf32, #tpu.memory_space<vmem>>, vector<64x128xf32>
    tpu.vector_store %arg6[%c0_8, %c0_9], %10 {strides = array<i32>} : memref<64x128xf32, #tpu.memory_space<vmem>>, vector<64x128xf32>,
    return
  }
  func.func @transform_0(%arg0: i32, %arg1: i32) -> (i32, i32) {
    %c0_i32 = arith.constant 0 : i32
    %c0_i32_0 = arith.constant 0 : i32
    return %arg0, %c0_i32 : i32, i32
  }
  func.func @transform_1(%arg0: i32, %arg1: i32) -> (i32, i32) {
    %c0_i32 = arith.constant 0 : i32
    %c0_i32_0 = arith.constant 0 : i32
    return %c0_i32, %arg1 : i32, i32
  }
  func.func @transform_2(%arg0: i32, %arg1: i32) -> (i32, i32) {
    %c0_i32 = arith.constant 0 : i32
    %c0_i32_0 = arith.constant 0 : i32
    return %c0_i32, %arg1 : i32, i32
  }
  func.func @transform_3(%arg0: i32, %arg1: i32) -> (i32, i32) {
    %c0_i32 = arith.constant 0 : i32
    %c0_i32_0 = arith.constant 0 : i32
    return %c0_i32, %arg1 : i32, i32
  }
  func.func @transform_4(%arg0: i32, %arg1: i32) -> (i32, i32) {
    %c0_i32 = arith.constant 0 : i32
    return %arg0, %arg1 : i32, i32
  }
}

module attributes {stable_mosaic.version = 11 : i64} {
  func.func @_mm_affine_kernel(%arg0: i32, %arg1: i32, %arg2: memref<64x16xbf16, #tpu.memory_space<vmem>>, %arg3: memref<16x128xbf16, #tpu.memory_space<vmem>>, %arg4: memref<1x128xf32, #tpu.memory_space<vmem>>, %arg5: memref<1x128xf32, #tpu.memory_space<vmem>>, %arg6: memref<64x128xf32, #tpu.memory_space<vmem>>) attributes {dimension_semantics = [#tpu.dimension_semantics<parallel>, #tpu.dimension_semantics<parallel>], iteration_bounds = array<i64: 1, 1>, scalar_prefetch = 0 : i64, scratch_operands = 0 : i64, tpu.core_type = #tpu.core_type<tc>, window_params = [{transform_indices = @transform_0, window_bounds = array<i64: 64, 16>}, {transform_indices = @transform_1, window_bounds = array<i64: 16, 128>}, {transform_indices = @transform_2, window_bounds = array<i64: 1, 128>}, {transform_indices = @transform_3, window_bounds = array<i64: 1, 128>}, {transform_indices = @transform_4, window_bounds = array<i64: 64, 128>}]} {
    %c0 = arith.constant 0 : index
    %c0_0 = arith.constant 0 : index
    %0 = vector.load %arg2[%c0, %c0_0] : memref<64x16xbf16, #tpu.memory_space<vmem>>, vector<64x16xbf16>
    %c0_1 = arith.constant 0 : index
    %c0_2 = arith.constant 0 : index
    %1 = vector.load %arg3[%c0_1, %c0_2] : memref<16x128xbf16, #tpu.memory_space<vmem>>, vector<16x128xbf16>
    %cst = arith.constant dense<0.000000e+00> : vector<64x128xf32>
    %2 = tpu.matmul %0, %1, %cst {dimension_numbers = #tpu.dot_dimension_numbers<[1], [0], [0], [1], [0, 0, 1, 1], [], []>} : vector<64x16xbf16>, vector<16x128xbf16>, vector<64x128xf32> -> vector<64x128xf32>
    %c0_3 = arith.constant 0 : index
    %c0_4 = arith.constant 0 : index
    %3 = vector.load %arg4[%c0_3, %c0_4] : memref<1x128xf32, #tpu.memory_space<vmem>>, vector<1x128xf32>
    %4 = vector.broadcast %3 : vector<1x128xf32> to vector<64x128xf32>
    %5 = arith.mulf %2, %4 : vector<64x128xf32>
    %c0_5 = arith.constant 0 : index
    %c0_6 = arith.constant 0 : index
    %6 = vector.load %arg5[%c0_5, %c0_6] : memref<1x128xf32, #tpu.memory_space<vmem>>, vector<1x128xf32>
    %7 = vector.broadcast %6 : vector<1x128xf32> to vector<64x128xf32>
    %8 = arith.addf %5, %7 : vector<64x128xf32>
    %c0_7 = arith.constant 0 : index
    %c0_8 = arith.constant 0 : index
    %9 = vector.load %arg6[%c0_7, %c0_8] : memref<64x128xf32, #tpu.memory_space<vmem>>, vector<64x128xf32>
    tpu.vector_store %arg6[%c0_7, %c0_8], %8 {strides = array<i32>} : memref<64x128xf32, #tpu.memory_space<vmem>>, vector<64x128xf32>,
    return
  }
  func.func @transform_0(%arg0: i32, %arg1: i32) -> (i32, i32) {
    %c0_i32 = arith.constant 0 : i32
    %c0_i32_0 = arith.constant 0 : i32
    return %arg0, %c0_i32 : i32, i32
  }
  func.func @transform_1(%arg0: i32, %arg1: i32) -> (i32, i32) {
    %c0_i32 = arith.constant 0 : i32
    %c0_i32_0 = arith.constant 0 : i32
    return %c0_i32, %arg1 : i32, i32
  }
  func.func @transform_2(%arg0: i32, %arg1: i32) -> (i32, i32) {
    %c0_i32 = arith.constant 0 : i32
    %c0_i32_0 = arith.constant 0 : i32
    return %c0_i32, %arg1 : i32, i32
  }
  func.func @transform_3(%arg0: i32, %arg1: i32) -> (i32, i32) {
    %c0_i32 = arith.constant 0 : i32
    %c0_i32_0 = arith.constant 0 : i32
    return %c0_i32, %arg1 : i32, i32
  }
  func.func @transform_4(%arg0: i32, %arg1: i32) -> (i32, i32) {
    %c0_i32 = arith.constant 0 : i32
    return %arg0, %arg1 : i32, i32
  }
}

module attributes {stable_mosaic.version = 11 : i64} {
  func.func @_mm_affine_kernel(%arg0: i32, %arg1: i32, %arg2: memref<32x32xbf16, #tpu.memory_space<vmem>>, %arg3: memref<32x128xbf16, #tpu.memory_space<vmem>>, %arg4: memref<1x128xf32, #tpu.memory_space<vmem>>, %arg5: memref<1x128xf32, #tpu.memory_space<vmem>>, %arg6: memref<32x128xf32, #tpu.memory_space<vmem>>) attributes {dimension_semantics = [#tpu.dimension_semantics<parallel>, #tpu.dimension_semantics<parallel>], iteration_bounds = array<i64: 1, 1>, scalar_prefetch = 0 : i64, scratch_operands = 0 : i64, tpu.core_type = #tpu.core_type<tc>, window_params = [{transform_indices = @transform_0, window_bounds = array<i64: 32, 32>}, {transform_indices = @transform_1, window_bounds = array<i64: 32, 128>}, {transform_indices = @transform_2, window_bounds = array<i64: 1, 128>}, {transform_indices = @transform_3, window_bounds = array<i64: 1, 128>}, {transform_indices = @transform_4, window_bounds = array<i64: 32, 128>}]} {
    %c0 = arith.constant 0 : index
    %c0_0 = arith.constant 0 : index
    %0 = vector.load %arg2[%c0, %c0_0] : memref<32x32xbf16, #tpu.memory_space<vmem>>, vector<32x32xbf16>
    %c0_1 = arith.constant 0 : index
    %c0_2 = arith.constant 0 : index
    %1 = vector.load %arg3[%c0_1, %c0_2] : memref<32x128xbf16, #tpu.memory_space<vmem>>, vector<32x128xbf16>
    %cst = arith.constant dense<0.000000e+00> : vector<32x128xf32>
    %2 = tpu.matmul %0, %1, %cst {dimension_numbers = #tpu.dot_dimension_numbers<[1], [0], [0], [1], [0, 0, 1, 1], [], []>} : vector<32x32xbf16>, vector<32x128xbf16>, vector<32x128xf32> -> vector<32x128xf32>
    %c0_3 = arith.constant 0 : index
    %c0_4 = arith.constant 0 : index
    %3 = vector.load %arg4[%c0_3, %c0_4] : memref<1x128xf32, #tpu.memory_space<vmem>>, vector<1x128xf32>
    %4 = vector.broadcast %3 : vector<1x128xf32> to vector<32x128xf32>
    %5 = arith.mulf %2, %4 : vector<32x128xf32>
    %c0_5 = arith.constant 0 : index
    %c0_6 = arith.constant 0 : index
    %6 = vector.load %arg5[%c0_5, %c0_6] : memref<1x128xf32, #tpu.memory_space<vmem>>, vector<1x128xf32>
    %7 = vector.broadcast %6 : vector<1x128xf32> to vector<32x128xf32>
    %8 = arith.addf %5, %7 : vector<32x128xf32>
    %c0_7 = arith.constant 0 : index
    %c0_8 = arith.constant 0 : index
    %9 = vector.load %arg6[%c0_7, %c0_8] : memref<32x128xf32, #tpu.memory_space<vmem>>, vector<32x128xf32>
    tpu.vector_store %arg6[%c0_7, %c0_8], %8 {strides = array<i32>} : memref<32x128xf32, #tpu.memory_space<vmem>>, vector<32x128xf32>,
    return
  }
  func.func @transform_0(%arg0: i32, %arg1: i32) -> (i32, i32) {
    %c0_i32 = arith.constant 0 : i32
    %c0_i32_0 = arith.constant 0 : i32
    return %arg0, %c0_i32 : i32, i32
  }
  func.func @transform_1(%arg0: i32, %arg1: i32) -> (i32, i32) {
    %c0_i32 = arith.constant 0 : i32
    %c0_i32_0 = arith.constant 0 : i32
    return %c0_i32, %arg1 : i32, i32
  }
  func.func @transform_2(%arg0: i32, %arg1: i32) -> (i32, i32) {
    %c0_i32 = arith.constant 0 : i32
    %c0_i32_0 = arith.constant 0 : i32
    return %c0_i32, %arg1 : i32, i32
  }
  func.func @transform_3(%arg0: i32, %arg1: i32) -> (i32, i32) {
    %c0_i32 = arith.constant 0 : i32
    %c0_i32_0 = arith.constant 0 : i32
    return %c0_i32, %arg1 : i32, i32
  }
  func.func @transform_4(%arg0: i32, %arg1: i32) -> (i32, i32) {
    %c0_i32 = arith.constant 0 : i32
    return %arg0, %arg1 : i32, i32
  }
}

module attributes {stable_mosaic.version = 11 : i64} {
  func.func @_mm_affine_kernel(%arg0: i32, %arg1: i32, %arg2: memref<16x32xbf16, #tpu.memory_space<vmem>>, %arg3: memref<32x128xbf16, #tpu.memory_space<vmem>>, %arg4: memref<1x128xf32, #tpu.memory_space<vmem>>, %arg5: memref<1x128xf32, #tpu.memory_space<vmem>>, %arg6: memref<16x128xf32, #tpu.memory_space<vmem>>) attributes {dimension_semantics = [#tpu.dimension_semantics<parallel>, #tpu.dimension_semantics<parallel>], iteration_bounds = array<i64: 1, 1>, scalar_prefetch = 0 : i64, scratch_operands = 0 : i64, tpu.core_type = #tpu.core_type<tc>, window_params = [{transform_indices = @transform_0, window_bounds = array<i64: 16, 32>}, {transform_indices = @transform_1, window_bounds = array<i64: 32, 128>}, {transform_indices = @transform_2, window_bounds = array<i64: 1, 128>}, {transform_indices = @transform_3, window_bounds = array<i64: 1, 128>}, {transform_indices = @transform_4, window_bounds = array<i64: 16, 128>}]} {
    %c0 = arith.constant 0 : index
    %c0_0 = arith.constant 0 : index
    %0 = vector.load %arg2[%c0, %c0_0] : memref<16x32xbf16, #tpu.memory_space<vmem>>, vector<16x32xbf16>
    %c0_1 = arith.constant 0 : index
    %c0_2 = arith.constant 0 : index
    %1 = vector.load %arg3[%c0_1, %c0_2] : memref<32x128xbf16, #tpu.memory_space<vmem>>, vector<32x128xbf16>
    %cst = arith.constant dense<0.000000e+00> : vector<16x128xf32>
    %2 = tpu.matmul %0, %1, %cst {dimension_numbers = #tpu.dot_dimension_numbers<[1], [0], [0], [1], [0, 0, 1, 1], [], []>} : vector<16x32xbf16>, vector<32x128xbf16>, vector<16x128xf32> -> vector<16x128xf32>
    %c0_3 = arith.constant 0 : index
    %c0_4 = arith.constant 0 : index
    %3 = vector.load %arg4[%c0_3, %c0_4] : memref<1x128xf32, #tpu.memory_space<vmem>>, vector<1x128xf32>
    %4 = vector.broadcast %3 : vector<1x128xf32> to vector<16x128xf32>
    %5 = arith.mulf %2, %4 : vector<16x128xf32>
    %c0_5 = arith.constant 0 : index
    %c0_6 = arith.constant 0 : index
    %6 = vector.load %arg5[%c0_5, %c0_6] : memref<1x128xf32, #tpu.memory_space<vmem>>, vector<1x128xf32>
    %7 = vector.broadcast %6 : vector<1x128xf32> to vector<16x128xf32>
    %8 = arith.addf %5, %7 : vector<16x128xf32>
    %c0_7 = arith.constant 0 : index
    %c0_8 = arith.constant 0 : index
    %9 = vector.load %arg6[%c0_7, %c0_8] : memref<16x128xf32, #tpu.memory_space<vmem>>, vector<16x128xf32>
    tpu.vector_store %arg6[%c0_7, %c0_8], %8 {strides = array<i32>} : memref<16x128xf32, #tpu.memory_space<vmem>>, vector<16x128xf32>,
    return
  }
  func.func @transform_0(%arg0: i32, %arg1: i32) -> (i32, i32) {
    %c0_i32 = arith.constant 0 : i32
    %c0_i32_0 = arith.constant 0 : i32
    return %arg0, %c0_i32 : i32, i32
  }
  func.func @transform_1(%arg0: i32, %arg1: i32) -> (i32, i32) {
    %c0_i32 = arith.constant 0 : i32
    %c0_i32_0 = arith.constant 0 : i32
    return %c0_i32, %arg1 : i32, i32
  }
  func.func @transform_2(%arg0: i32, %arg1: i32) -> (i32, i32) {
    %c0_i32 = arith.constant 0 : i32
    %c0_i32_0 = arith.constant 0 : i32
    return %c0_i32, %arg1 : i32, i32
  }
  func.func @transform_3(%arg0: i32, %arg1: i32) -> (i32, i32) {
    %c0_i32 = arith.constant 0 : i32
    %c0_i32_0 = arith.constant 0 : i32
    return %c0_i32, %arg1 : i32, i32
  }
  func.func @transform_4(%arg0: i32, %arg1: i32) -> (i32, i32) {
    %c0_i32 = arith.constant 0 : i32
    return %arg0, %arg1 : i32, i32
  }
}

module attributes {stable_mosaic.version = 11 : i64} {
  func.func @_mm_affine_kernel(%arg0: i32, %arg1: i32, %arg2: memref<8x32xbf16, #tpu.memory_space<vmem>>, %arg3: memref<32x128xbf16, #tpu.memory_space<vmem>>, %arg4: memref<1x128xf32, #tpu.memory_space<vmem>>, %arg5: memref<1x128xf32, #tpu.memory_space<vmem>>, %arg6: memref<8x128xf32, #tpu.memory_space<vmem>>) attributes {dimension_semantics = [#tpu.dimension_semantics<parallel>, #tpu.dimension_semantics<parallel>], iteration_bounds = array<i64: 1, 1>, scalar_prefetch = 0 : i64, scratch_operands = 0 : i64, tpu.core_type = #tpu.core_type<tc>, window_params = [{transform_indices = @transform_0, window_bounds = array<i64: 8, 32>}, {transform_indices = @transform_1, window_bounds = array<i64: 32, 128>}, {transform_indices = @transform_2, window_bounds = array<i64: 1, 128>}, {transform_indices = @transform_3, window_bounds = array<i64: 1, 128>}, {transform_indices = @transform_4, window_bounds = array<i64: 8, 128>}]} {
    %c0 = arith.constant 0 : index
    %c0_0 = arith.constant 0 : index
    %0 = vector.load %arg2[%c0, %c0_0] : memref<8x32xbf16, #tpu.memory_space<vmem>>, vector<8x32xbf16>
    %c0_1 = arith.constant 0 : index
    %c0_2 = arith.constant 0 : index
    %1 = vector.load %arg3[%c0_1, %c0_2] : memref<32x128xbf16, #tpu.memory_space<vmem>>, vector<32x128xbf16>
    %cst = arith.constant dense<0.000000e+00> : vector<8x128xf32>
    %2 = tpu.matmul %0, %1, %cst {dimension_numbers = #tpu.dot_dimension_numbers<[1], [0], [0], [1], [0, 0, 1, 1], [], []>} : vector<8x32xbf16>, vector<32x128xbf16>, vector<8x128xf32> -> vector<8x128xf32>
    %c0_3 = arith.constant 0 : index
    %c0_4 = arith.constant 0 : index
    %3 = vector.load %arg4[%c0_3, %c0_4] : memref<1x128xf32, #tpu.memory_space<vmem>>, vector<1x128xf32>
    %4 = vector.broadcast %3 : vector<1x128xf32> to vector<8x128xf32>
    %5 = arith.mulf %2, %4 : vector<8x128xf32>
    %c0_5 = arith.constant 0 : index
    %c0_6 = arith.constant 0 : index
    %6 = vector.load %arg5[%c0_5, %c0_6] : memref<1x128xf32, #tpu.memory_space<vmem>>, vector<1x128xf32>
    %7 = vector.broadcast %6 : vector<1x128xf32> to vector<8x128xf32>
    %8 = arith.addf %5, %7 : vector<8x128xf32>
    %c0_7 = arith.constant 0 : index
    %c0_8 = arith.constant 0 : index
    %9 = vector.load %arg6[%c0_7, %c0_8] : memref<8x128xf32, #tpu.memory_space<vmem>>, vector<8x128xf32>
    tpu.vector_store %arg6[%c0_7, %c0_8], %8 {strides = array<i32>} : memref<8x128xf32, #tpu.memory_space<vmem>>, vector<8x128xf32>,
    return
  }
  func.func @transform_0(%arg0: i32, %arg1: i32) -> (i32, i32) {
    %c0_i32 = arith.constant 0 : i32
    %c0_i32_0 = arith.constant 0 : i32
    return %arg0, %c0_i32 : i32, i32
  }
  func.func @transform_1(%arg0: i32, %arg1: i32) -> (i32, i32) {
    %c0_i32 = arith.constant 0 : i32
    %c0_i32_0 = arith.constant 0 : i32
    return %c0_i32, %arg1 : i32, i32
  }
  func.func @transform_2(%arg0: i32, %arg1: i32) -> (i32, i32) {
    %c0_i32 = arith.constant 0 : i32
    %c0_i32_0 = arith.constant 0 : i32
    return %c0_i32, %arg1 : i32, i32
  }
  func.func @transform_3(%arg0: i32, %arg1: i32) -> (i32, i32) {
    %c0_i32 = arith.constant 0 : i32
    %c0_i32_0 = arith.constant 0 : i32
    return %c0_i32, %arg1 : i32, i32
  }
  func.func @transform_4(%arg0: i32, %arg1: i32) -> (i32, i32) {
    %c0_i32 = arith.constant 0 : i32
    return %arg0, %arg1 : i32, i32
  }
}

module attributes {stable_mosaic.version = 11 : i64} {
  func.func @_mm_affine_kernel(%arg0: i32, %arg1: i32, %arg2: memref<16x16xbf16, #tpu.memory_space<vmem>>, %arg3: memref<16x128xbf16, #tpu.memory_space<vmem>>, %arg4: memref<1x128xf32, #tpu.memory_space<vmem>>, %arg5: memref<1x128xf32, #tpu.memory_space<vmem>>, %arg6: memref<16x128xf32, #tpu.memory_space<vmem>>) attributes {dimension_semantics = [#tpu.dimension_semantics<parallel>, #tpu.dimension_semantics<parallel>], iteration_bounds = array<i64: 1, 1>, scalar_prefetch = 0 : i64, scratch_operands = 0 : i64, tpu.core_type = #tpu.core_type<tc>, window_params = [{transform_indices = @transform_0, window_bounds = array<i64: 16, 16>}, {transform_indices = @transform_1, window_bounds = array<i64: 16, 128>}, {transform_indices = @transform_2, window_bounds = array<i64: 1, 128>}, {transform_indices = @transform_3, window_bounds = array<i64: 1, 128>}, {transform_indices = @transform_4, window_bounds = array<i64: 16, 128>}]} {
    %c0 = arith.constant 0 : index
    %c0_0 = arith.constant 0 : index
    %0 = vector.load %arg2[%c0, %c0_0] : memref<16x16xbf16, #tpu.memory_space<vmem>>, vector<16x16xbf16>
    %c0_1 = arith.constant 0 : index
    %c0_2 = arith.constant 0 : index
    %1 = vector.load %arg3[%c0_1, %c0_2] : memref<16x128xbf16, #tpu.memory_space<vmem>>, vector<16x128xbf16>
    %cst = arith.constant dense<0.000000e+00> : vector<16x128xf32>
    %2 = tpu.matmul %0, %1, %cst {dimension_numbers = #tpu.dot_dimension_numbers<[1], [0], [0], [1], [0, 0, 1, 1], [], []>} : vector<16x16xbf16>, vector<16x128xbf16>, vector<16x128xf32> -> vector<16x128xf32>
    %c0_3 = arith.constant 0 : index
    %c0_4 = arith.constant 0 : index
    %3 = vector.load %arg4[%c0_3, %c0_4] : memref<1x128xf32, #tpu.memory_space<vmem>>, vector<1x128xf32>
    %4 = vector.broadcast %3 : vector<1x128xf32> to vector<16x128xf32>
    %5 = arith.mulf %2, %4 : vector<16x128xf32>
    %c0_5 = arith.constant 0 : index
    %c0_6 = arith.constant 0 : index
    %6 = vector.load %arg5[%c0_5, %c0_6] : memref<1x128xf32, #tpu.memory_space<vmem>>, vector<1x128xf32>
    %7 = vector.broadcast %6 : vector<1x128xf32> to vector<16x128xf32>
    %8 = arith.addf %5, %7 : vector<16x128xf32>
    %c0_7 = arith.constant 0 : index
    %c0_8 = arith.constant 0 : index
    %9 = vector.load %arg6[%c0_7, %c0_8] : memref<16x128xf32, #tpu.memory_space<vmem>>, vector<16x128xf32>
    tpu.vector_store %arg6[%c0_7, %c0_8], %8 {strides = array<i32>} : memref<16x128xf32, #tpu.memory_space<vmem>>, vector<16x128xf32>,
    return
  }
  func.func @transform_0(%arg0: i32, %arg1: i32) -> (i32, i32) {
    %c0_i32 = arith.constant 0 : i32
    %c0_i32_0 = arith.constant 0 : i32
    return %arg0, %c0_i32 : i32, i32
  }
  func.func @transform_1(%arg0: i32, %arg1: i32) -> (i32, i32) {
    %c0_i32 = arith.constant 0 : i32
    %c0_i32_0 = arith.constant 0 : i32
    return %c0_i32, %arg1 : i32, i32
  }
  func.func @transform_2(%arg0: i32, %arg1: i32) -> (i32, i32) {
    %c0_i32 = arith.constant 0 : i32
    %c0_i32_0 = arith.constant 0 : i32
    return %c0_i32, %arg1 : i32, i32
  }
  func.func @transform_3(%arg0: i32, %arg1: i32) -> (i32, i32) {
    %c0_i32 = arith.constant 0 : i32
    %c0_i32_0 = arith.constant 0 : i32
    return %c0_i32, %arg1 : i32, i32
  }
  func.func @transform_4(%arg0: i32, %arg1: i32) -> (i32, i32) {
    %c0_i32 = arith.constant 0 : i32
    return %arg0, %arg1 : i32, i32
  }
}

module attributes {stable_mosaic.version = 11 : i64} {
  func.func @_mm_affine_kernel(%arg0: i32, %arg1: i32, %arg2: memref<8x16xbf16, #tpu.memory_space<vmem>>, %arg3: memref<16x128xbf16, #tpu.memory_space<vmem>>, %arg4: memref<1x128xf32, #tpu.memory_space<vmem>>, %arg5: memref<1x128xf32, #tpu.memory_space<vmem>>, %arg6: memref<8x128xf32, #tpu.memory_space<vmem>>) attributes {dimension_semantics = [#tpu.dimension_semantics<parallel>, #tpu.dimension_semantics<parallel>], iteration_bounds = array<i64: 1, 1>, scalar_prefetch = 0 : i64, scratch_operands = 0 : i64, tpu.core_type = #tpu.core_type<tc>, window_params = [{transform_indices = @transform_0, window_bounds = array<i64: 8, 16>}, {transform_indices = @transform_1, window_bounds = array<i64: 16, 128>}, {transform_indices = @transform_2, window_bounds = array<i64: 1, 128>}, {transform_indices = @transform_3, window_bounds = array<i64: 1, 128>}, {transform_indices = @transform_4, window_bounds = array<i64: 8, 128>}]} {
    %c0 = arith.constant 0 : index
    %c0_0 = arith.constant 0 : index
    %0 = vector.load %arg2[%c0, %c0_0] : memref<8x16xbf16, #tpu.memory_space<vmem>>, vector<8x16xbf16>
    %c0_1 = arith.constant 0 : index
    %c0_2 = arith.constant 0 : index
    %1 = vector.load %arg3[%c0_1, %c0_2] : memref<16x128xbf16, #tpu.memory_space<vmem>>, vector<16x128xbf16>
    %cst = arith.constant dense<0.000000e+00> : vector<8x128xf32>
    %2 = tpu.matmul %0, %1, %cst {dimension_numbers = #tpu.dot_dimension_numbers<[1], [0], [0], [1], [0, 0, 1, 1], [], []>} : vector<8x16xbf16>, vector<16x128xbf16>, vector<8x128xf32> -> vector<8x128xf32>
    %c0_3 = arith.constant 0 : index
    %c0_4 = arith.constant 0 : index
    %3 = vector.load %arg4[%c0_3, %c0_4] : memref<1x128xf32, #tpu.memory_space<vmem>>, vector<1x128xf32>
    %4 = vector.broadcast %3 : vector<1x128xf32> to vector<8x128xf32>
    %5 = arith.mulf %2, %4 : vector<8x128xf32>
    %c0_5 = arith.constant 0 : index
    %c0_6 = arith.constant 0 : index
    %6 = vector.load %arg5[%c0_5, %c0_6] : memref<1x128xf32, #tpu.memory_space<vmem>>, vector<1x128xf32>
    %7 = vector.broadcast %6 : vector<1x128xf32> to vector<8x128xf32>
    %8 = arith.addf %5, %7 : vector<8x128xf32>
    %c0_7 = arith.constant 0 : index
    %c0_8 = arith.constant 0 : index
    %9 = vector.load %arg6[%c0_7, %c0_8] : memref<8x128xf32, #tpu.memory_space<vmem>>, vector<8x128xf32>
    tpu.vector_store %arg6[%c0_7, %c0_8], %8 {strides = array<i32>} : memref<8x128xf32, #tpu.memory_space<vmem>>, vector<8x128xf32>,
    return
  }
  func.func @transform_0(%arg0: i32, %arg1: i32) -> (i32, i32) {
    %c0_i32 = arith.constant 0 : i32
    %c0_i32_0 = arith.constant 0 : i32
    return %arg0, %c0_i32 : i32, i32
  }
  func.func @transform_1(%arg0: i32, %arg1: i32) -> (i32, i32) {
    %c0_i32 = arith.constant 0 : i32
    %c0_i32_0 = arith.constant 0 : i32
    return %c0_i32, %arg1 : i32, i32
  }
  func.func @transform_2(%arg0: i32, %arg1: i32) -> (i32, i32) {
    %c0_i32 = arith.constant 0 : i32
    %c0_i32_0 = arith.constant 0 : i32
    return %c0_i32, %arg1 : i32, i32
  }
  func.func @transform_3(%arg0: i32, %arg1: i32) -> (i32, i32) {
    %c0_i32 = arith.constant 0 : i32
    %c0_i32_0 = arith.constant 0 : i32
    return %c0_i32, %arg1 : i32, i32
  }
  func.func @transform_4(%arg0: i32, %arg1: i32) -> (i32, i32) {
    %c0_i32 = arith.constant 0 : i32
    return %arg0, %arg1 : i32, i32
  }
}

module attributes {stable_mosaic.version = 11 : i64} {
  func.func @_mm_affine_kernel(%arg0: i32, %arg1: i32, %arg2: memref<8x64xbf16, #tpu.memory_space<vmem>>, %arg3: memref<64x128xbf16, #tpu.memory_space<vmem>>, %arg4: memref<1x128xf32, #tpu.memory_space<vmem>>, %arg5: memref<1x128xf32, #tpu.memory_space<vmem>>, %arg6: memref<8x128xf32, #tpu.memory_space<vmem>>) attributes {dimension_semantics = [#tpu.dimension_semantics<parallel>, #tpu.dimension_semantics<parallel>], iteration_bounds = array<i64: 1, 1>, scalar_prefetch = 0 : i64, scratch_operands = 0 : i64, tpu.core_type = #tpu.core_type<tc>, window_params = [{transform_indices = @transform_0, window_bounds = array<i64: 8, 64>}, {transform_indices = @transform_1, window_bounds = array<i64: 64, 128>}, {transform_indices = @transform_2, window_bounds = array<i64: 1, 128>}, {transform_indices = @transform_3, window_bounds = array<i64: 1, 128>}, {transform_indices = @transform_4, window_bounds = array<i64: 8, 128>}]} {
    %c0 = arith.constant 0 : index
    %c0_0 = arith.constant 0 : index
    %0 = vector.load %arg2[%c0, %c0_0] : memref<8x64xbf16, #tpu.memory_space<vmem>>, vector<8x64xbf16>
    %c0_1 = arith.constant 0 : index
    %c0_2 = arith.constant 0 : index
    %1 = vector.load %arg3[%c0_1, %c0_2] : memref<64x128xbf16, #tpu.memory_space<vmem>>, vector<64x128xbf16>
    %cst = arith.constant dense<0.000000e+00> : vector<8x128xf32>
    %2 = tpu.matmul %0, %1, %cst {dimension_numbers = #tpu.dot_dimension_numbers<[1], [0], [0], [1], [0, 0, 1, 1], [], []>} : vector<8x64xbf16>, vector<64x128xbf16>, vector<8x128xf32> -> vector<8x128xf32>
    %c0_3 = arith.constant 0 : index
    %c0_4 = arith.constant 0 : index
    %3 = vector.load %arg4[%c0_3, %c0_4] : memref<1x128xf32, #tpu.memory_space<vmem>>, vector<1x128xf32>
    %4 = vector.broadcast %3 : vector<1x128xf32> to vector<8x128xf32>
    %5 = arith.mulf %2, %4 : vector<8x128xf32>
    %c0_5 = arith.constant 0 : index
    %c0_6 = arith.constant 0 : index
    %6 = vector.load %arg5[%c0_5, %c0_6] : memref<1x128xf32, #tpu.memory_space<vmem>>, vector<1x128xf32>
    %7 = vector.broadcast %6 : vector<1x128xf32> to vector<8x128xf32>
    %8 = arith.addf %5, %7 : vector<8x128xf32>
    %cst_7 = arith.constant 0.000000e+00 : f32
    %9 = vector.broadcast %cst_7 : f32 to vector<8x128xf32>
    %10 = arith.maximumf %8, %9 : vector<8x128xf32>
    %c0_8 = arith.constant 0 : index
    %c0_9 = arith.constant 0 : index
    %11 = vector.load %arg6[%c0_8, %c0_9] : memref<8x128xf32, #tpu.memory_space<vmem>>, vector<8x128xf32>
    tpu.vector_store %arg6[%c0_8, %c0_9], %10 {strides = array<i32>} : memref<8x128xf32, #tpu.memory_space<vmem>>, vector<8x128xf32>,
    return
  }
  func.func @transform_0(%arg0: i32, %arg1: i32) -> (i32, i32) {
    %c0_i32 = arith.constant 0 : i32
    %c0_i32_0 = arith.constant 0 : i32
    return %arg0, %c0_i32 : i32, i32
  }
  func.func @transform_1(%arg0: i32, %arg1: i32) -> (i32, i32) {
    %c0_i32 = arith.constant 0 : i32
    %c0_i32_0 = arith.constant 0 : i32
    return %c0_i32, %arg1 : i32, i32
  }
  func.func @transform_2(%arg0: i32, %arg1: i32) -> (i32, i32) {
    %c0_i32 = arith.constant 0 : i32
    %c0_i32_0 = arith.constant 0 : i32
    return %c0_i32, %arg1 : i32, i32
  }
  func.func @transform_3(%arg0: i32, %arg1: i32) -> (i32, i32) {
    %c0_i32 = arith.constant 0 : i32
    %c0_i32_0 = arith.constant 0 : i32
    return %c0_i32, %arg1 : i32, i32
  }
  func.func @transform_4(%arg0: i32, %arg1: i32) -> (i32, i32) {
    %c0_i32 = arith.constant 0 : i32
    return %arg0, %arg1 : i32, i32
  }
}

module attributes {stable_mosaic.version = 11 : i64} {
  func.func @_mm_affine_kernel(%arg0: i32, %arg1: i32, %arg2: memref<8x48xbf16, #tpu.memory_space<vmem>>, %arg3: memref<48x128xbf16, #tpu.memory_space<vmem>>, %arg4: memref<1x128xf32, #tpu.memory_space<vmem>>, %arg5: memref<1x128xf32, #tpu.memory_space<vmem>>, %arg6: memref<8x128xf32, #tpu.memory_space<vmem>>) attributes {dimension_semantics = [#tpu.dimension_semantics<parallel>, #tpu.dimension_semantics<parallel>], iteration_bounds = array<i64: 1, 1>, scalar_prefetch = 0 : i64, scratch_operands = 0 : i64, tpu.core_type = #tpu.core_type<tc>, window_params = [{transform_indices = @transform_0, window_bounds = array<i64: 8, 48>}, {transform_indices = @transform_1, window_bounds = array<i64: 48, 128>}, {transform_indices = @transform_2, window_bounds = array<i64: 1, 128>}, {transform_indices = @transform_3, window_bounds = array<i64: 1, 128>}, {transform_indices = @transform_4, window_bounds = array<i64: 8, 128>}]} {
    %c0 = arith.constant 0 : index
    %c0_0 = arith.constant 0 : index
    %0 = vector.load %arg2[%c0, %c0_0] : memref<8x48xbf16, #tpu.memory_space<vmem>>, vector<8x48xbf16>
    %c0_1 = arith.constant 0 : index
    %c0_2 = arith.constant 0 : index
    %1 = vector.load %arg3[%c0_1, %c0_2] : memref<48x128xbf16, #tpu.memory_space<vmem>>, vector<48x128xbf16>
    %cst = arith.constant dense<0.000000e+00> : vector<8x128xf32>
    %2 = tpu.matmul %0, %1, %cst {dimension_numbers = #tpu.dot_dimension_numbers<[1], [0], [0], [1], [0, 0, 1, 1], [], []>} : vector<8x48xbf16>, vector<48x128xbf16>, vector<8x128xf32> -> vector<8x128xf32>
    %c0_3 = arith.constant 0 : index
    %c0_4 = arith.constant 0 : index
    %3 = vector.load %arg4[%c0_3, %c0_4] : memref<1x128xf32, #tpu.memory_space<vmem>>, vector<1x128xf32>
    %4 = vector.broadcast %3 : vector<1x128xf32> to vector<8x128xf32>
    %5 = arith.mulf %2, %4 : vector<8x128xf32>
    %c0_5 = arith.constant 0 : index
    %c0_6 = arith.constant 0 : index
    %6 = vector.load %arg5[%c0_5, %c0_6] : memref<1x128xf32, #tpu.memory_space<vmem>>, vector<1x128xf32>
    %7 = vector.broadcast %6 : vector<1x128xf32> to vector<8x128xf32>
    %8 = arith.addf %5, %7 : vector<8x128xf32>
    %c0_7 = arith.constant 0 : index
    %c0_8 = arith.constant 0 : index
    %9 = vector.load %arg6[%c0_7, %c0_8] : memref<8x128xf32, #tpu.memory_space<vmem>>, vector<8x128xf32>
    tpu.vector_store %arg6[%c0_7, %c0_8], %8 {strides = array<i32>} : memref<8x128xf32, #tpu.memory_space<vmem>>, vector<8x128xf32>,
    return
  }
  func.func @transform_0(%arg0: i32, %arg1: i32) -> (i32, i32) {
    %c0_i32 = arith.constant 0 : i32
    %c0_i32_0 = arith.constant 0 : i32
    return %arg0, %c0_i32 : i32, i32
  }
  func.func @transform_1(%arg0: i32, %arg1: i32) -> (i32, i32) {
    %c0_i32 = arith.constant 0 : i32
    %c0_i32_0 = arith.constant 0 : i32
    return %c0_i32, %arg1 : i32, i32
  }
  func.func @transform_2(%arg0: i32, %arg1: i32) -> (i32, i32) {
    %c0_i32 = arith.constant 0 : i32
    %c0_i32_0 = arith.constant 0 : i32
    return %c0_i32, %arg1 : i32, i32
  }
  func.func @transform_3(%arg0: i32, %arg1: i32) -> (i32, i32) {
    %c0_i32 = arith.constant 0 : i32
    %c0_i32_0 = arith.constant 0 : i32
    return %c0_i32, %arg1 : i32, i32
  }
  func.func @transform_4(%arg0: i32, %arg1: i32) -> (i32, i32) {
    %c0_i32 = arith.constant 0 : i32
    return %arg0, %arg1 : i32, i32
  }
}

module attributes {stable_mosaic.version = 11 : i64} {
  func.func @_mm_affine_kernel(%arg0: i32, %arg1: i32, %arg2: memref<8x16xbf16, #tpu.memory_space<vmem>>, %arg3: memref<16x128xbf16, #tpu.memory_space<vmem>>, %arg4: memref<1x128xf32, #tpu.memory_space<vmem>>, %arg5: memref<1x128xf32, #tpu.memory_space<vmem>>, %arg6: memref<8x128xf32, #tpu.memory_space<vmem>>) attributes {dimension_semantics = [#tpu.dimension_semantics<parallel>, #tpu.dimension_semantics<parallel>], iteration_bounds = array<i64: 1, 1>, scalar_prefetch = 0 : i64, scratch_operands = 0 : i64, tpu.core_type = #tpu.core_type<tc>, window_params = [{transform_indices = @transform_0, window_bounds = array<i64: 8, 16>}, {transform_indices = @transform_1, window_bounds = array<i64: 16, 128>}, {transform_indices = @transform_2, window_bounds = array<i64: 1, 128>}, {transform_indices = @transform_3, window_bounds = array<i64: 1, 128>}, {transform_indices = @transform_4, window_bounds = array<i64: 8, 128>}]} {
    %c0 = arith.constant 0 : index
    %c0_0 = arith.constant 0 : index
    %0 = vector.load %arg2[%c0, %c0_0] : memref<8x16xbf16, #tpu.memory_space<vmem>>, vector<8x16xbf16>
    %c0_1 = arith.constant 0 : index
    %c0_2 = arith.constant 0 : index
    %1 = vector.load %arg3[%c0_1, %c0_2] : memref<16x128xbf16, #tpu.memory_space<vmem>>, vector<16x128xbf16>
    %cst = arith.constant dense<0.000000e+00> : vector<8x128xf32>
    %2 = tpu.matmul %0, %1, %cst {dimension_numbers = #tpu.dot_dimension_numbers<[1], [0], [0], [1], [0, 0, 1, 1], [], []>} : vector<8x16xbf16>, vector<16x128xbf16>, vector<8x128xf32> -> vector<8x128xf32>
    %c0_3 = arith.constant 0 : index
    %c0_4 = arith.constant 0 : index
    %3 = vector.load %arg4[%c0_3, %c0_4] : memref<1x128xf32, #tpu.memory_space<vmem>>, vector<1x128xf32>
    %4 = vector.broadcast %3 : vector<1x128xf32> to vector<8x128xf32>
    %5 = arith.mulf %2, %4 : vector<8x128xf32>
    %c0_5 = arith.constant 0 : index
    %c0_6 = arith.constant 0 : index
    %6 = vector.load %arg5[%c0_5, %c0_6] : memref<1x128xf32, #tpu.memory_space<vmem>>, vector<1x128xf32>
    %7 = vector.broadcast %6 : vector<1x128xf32> to vector<8x128xf32>
    %8 = arith.addf %5, %7 : vector<8x128xf32>
    %c0_7 = arith.constant 0 : index
    %c0_8 = arith.constant 0 : index
    %9 = vector.load %arg6[%c0_7, %c0_8] : memref<8x128xf32, #tpu.memory_space<vmem>>, vector<8x128xf32>
    tpu.vector_store %arg6[%c0_7, %c0_8], %8 {strides = array<i32>} : memref<8x128xf32, #tpu.memory_space<vmem>>, vector<8x128xf32>,
    return
  }
  func.func @transform_0(%arg0: i32, %arg1: i32) -> (i32, i32) {
    %c0_i32 = arith.constant 0 : i32
    %c0_i32_0 = arith.constant 0 : i32
    return %arg0, %c0_i32 : i32, i32
  }
  func.func @transform_1(%arg0: i32, %arg1: i32) -> (i32, i32) {
    %c0_i32 = arith.constant 0 : i32
    %c0_i32_0 = arith.constant 0 : i32
    return %c0_i32, %arg1 : i32, i32
  }
  func.func @transform_2(%arg0: i32, %arg1: i32) -> (i32, i32) {
    %c0_i32 = arith.constant 0 : i32
    %c0_i32_0 = arith.constant 0 : i32
    return %c0_i32, %arg1 : i32, i32
  }
  func.func @transform_3(%arg0: i32, %arg1: i32) -> (i32, i32) {
    %c0_i32 = arith.constant 0 : i32
    %c0_i32_0 = arith.constant 0 : i32
    return %c0_i32, %arg1 : i32, i32
  }
  func.func @transform_4(%arg0: i32, %arg1: i32) -> (i32, i32) {
    %c0_i32 = arith.constant 0 : i32
    return %arg0, %arg1 : i32, i32
  }
}

module attributes {stable_mosaic.version = 11 : i64} {
  func.func @_mm_affine_kernel(%arg0: i32, %arg1: i32, %arg2: memref<8x512xbf16, #tpu.memory_space<vmem>>, %arg3: memref<512x128xbf16, #tpu.memory_space<vmem>>, %arg4: memref<1x128xf32, #tpu.memory_space<vmem>>, %arg5: memref<1x128xf32, #tpu.memory_space<vmem>>, %arg6: memref<8x128xf32, #tpu.memory_space<vmem>>) attributes {dimension_semantics = [#tpu.dimension_semantics<parallel>, #tpu.dimension_semantics<parallel>], iteration_bounds = array<i64: 1, 1>, scalar_prefetch = 0 : i64, scratch_operands = 0 : i64, tpu.core_type = #tpu.core_type<tc>, window_params = [{transform_indices = @transform_0, window_bounds = array<i64: 8, 512>}, {transform_indices = @transform_1, window_bounds = array<i64: 512, 128>}, {transform_indices = @transform_2, window_bounds = array<i64: 1, 128>}, {transform_indices = @transform_3, window_bounds = array<i64: 1, 128>}, {transform_indices = @transform_4, window_bounds = array<i64: 8, 128>}]} {
    %c0 = arith.constant 0 : index
    %c0_0 = arith.constant 0 : index
    %0 = vector.load %arg2[%c0, %c0_0] : memref<8x512xbf16, #tpu.memory_space<vmem>>, vector<8x512xbf16>
    %c0_1 = arith.constant 0 : index
    %c0_2 = arith.constant 0 : index
    %1 = vector.load %arg3[%c0_1, %c0_2] : memref<512x128xbf16, #tpu.memory_space<vmem>>, vector<512x128xbf16>
    %cst = arith.constant dense<0.000000e+00> : vector<8x128xf32>
    %2 = tpu.matmul %0, %1, %cst {dimension_numbers = #tpu.dot_dimension_numbers<[1], [0], [0], [1], [0, 0, 1, 1], [], []>} : vector<8x512xbf16>, vector<512x128xbf16>, vector<8x128xf32> -> vector<8x128xf32>
    %c0_3 = arith.constant 0 : index
    %c0_4 = arith.constant 0 : index
    %3 = vector.load %arg4[%c0_3, %c0_4] : memref<1x128xf32, #tpu.memory_space<vmem>>, vector<1x128xf32>
    %4 = vector.broadcast %3 : vector<1x128xf32> to vector<8x128xf32>
    %5 = arith.mulf %2, %4 : vector<8x128xf32>
    %c0_5 = arith.constant 0 : index
    %c0_6 = arith.constant 0 : index
    %6 = vector.load %arg5[%c0_5, %c0_6] : memref<1x128xf32, #tpu.memory_space<vmem>>, vector<1x128xf32>
    %7 = vector.broadcast %6 : vector<1x128xf32> to vector<8x128xf32>
    %8 = arith.addf %5, %7 : vector<8x128xf32>
    %cst_7 = arith.constant 0.000000e+00 : f32
    %9 = vector.broadcast %cst_7 : f32 to vector<8x128xf32>
    %10 = arith.maximumf %8, %9 : vector<8x128xf32>
    %c0_8 = arith.constant 0 : index
    %c0_9 = arith.constant 0 : index
    %11 = vector.load %arg6[%c0_8, %c0_9] : memref<8x128xf32, #tpu.memory_space<vmem>>, vector<8x128xf32>
    tpu.vector_store %arg6[%c0_8, %c0_9], %10 {strides = array<i32>} : memref<8x128xf32, #tpu.memory_space<vmem>>, vector<8x128xf32>,
    return
  }
  func.func @transform_0(%arg0: i32, %arg1: i32) -> (i32, i32) {
    %c0_i32 = arith.constant 0 : i32
    %c0_i32_0 = arith.constant 0 : i32
    return %arg0, %c0_i32 : i32, i32
  }
  func.func @transform_1(%arg0: i32, %arg1: i32) -> (i32, i32) {
    %c0_i32 = arith.constant 0 : i32
    %c0_i32_0 = arith.constant 0 : i32
    return %c0_i32, %arg1 : i32, i32
  }
  func.func @transform_2(%arg0: i32, %arg1: i32) -> (i32, i32) {
    %c0_i32 = arith.constant 0 : i32
    %c0_i32_0 = arith.constant 0 : i32
    return %c0_i32, %arg1 : i32, i32
  }
  func.func @transform_3(%arg0: i32, %arg1: i32) -> (i32, i32) {
    %c0_i32 = arith.constant 0 : i32
    %c0_i32_0 = arith.constant 0 : i32
    return %c0_i32, %arg1 : i32, i32
  }
  func.func @transform_4(%arg0: i32, %arg1: i32) -> (i32, i32) {
    %c0_i32 = arith.constant 0 : i32
    return %arg0, %arg1 : i32, i32
  }
}

module attributes {stable_mosaic.version = 11 : i64} {
  func.func @_mm_affine_kernel(%arg0: i32, %arg1: i32, %arg2: memref<8x256xbf16, #tpu.memory_space<vmem>>, %arg3: memref<256x128xbf16, #tpu.memory_space<vmem>>, %arg4: memref<1x128xf32, #tpu.memory_space<vmem>>, %arg5: memref<1x128xf32, #tpu.memory_space<vmem>>, %arg6: memref<8x128xf32, #tpu.memory_space<vmem>>) attributes {dimension_semantics = [#tpu.dimension_semantics<parallel>, #tpu.dimension_semantics<parallel>], iteration_bounds = array<i64: 1, 1>, scalar_prefetch = 0 : i64, scratch_operands = 0 : i64, tpu.core_type = #tpu.core_type<tc>, window_params = [{transform_indices = @transform_0, window_bounds = array<i64: 8, 256>}, {transform_indices = @transform_1, window_bounds = array<i64: 256, 128>}, {transform_indices = @transform_2, window_bounds = array<i64: 1, 128>}, {transform_indices = @transform_3, window_bounds = array<i64: 1, 128>}, {transform_indices = @transform_4, window_bounds = array<i64: 8, 128>}]} {
    %c0 = arith.constant 0 : index
    %c0_0 = arith.constant 0 : index
    %0 = vector.load %arg2[%c0, %c0_0] : memref<8x256xbf16, #tpu.memory_space<vmem>>, vector<8x256xbf16>
    %c0_1 = arith.constant 0 : index
    %c0_2 = arith.constant 0 : index
    %1 = vector.load %arg3[%c0_1, %c0_2] : memref<256x128xbf16, #tpu.memory_space<vmem>>, vector<256x128xbf16>
    %cst = arith.constant dense<0.000000e+00> : vector<8x128xf32>
    %2 = tpu.matmul %0, %1, %cst {dimension_numbers = #tpu.dot_dimension_numbers<[1], [0], [0], [1], [0, 0, 1, 1], [], []>} : vector<8x256xbf16>, vector<256x128xbf16>, vector<8x128xf32> -> vector<8x128xf32>
    %c0_3 = arith.constant 0 : index
    %c0_4 = arith.constant 0 : index
    %3 = vector.load %arg4[%c0_3, %c0_4] : memref<1x128xf32, #tpu.memory_space<vmem>>, vector<1x128xf32>
    %4 = vector.broadcast %3 : vector<1x128xf32> to vector<8x128xf32>
    %5 = arith.mulf %2, %4 : vector<8x128xf32>
    %c0_5 = arith.constant 0 : index
    %c0_6 = arith.constant 0 : index
    %6 = vector.load %arg5[%c0_5, %c0_6] : memref<1x128xf32, #tpu.memory_space<vmem>>, vector<1x128xf32>
    %7 = vector.broadcast %6 : vector<1x128xf32> to vector<8x128xf32>
    %8 = arith.addf %5, %7 : vector<8x128xf32>
    %cst_7 = arith.constant 0.000000e+00 : f32
    %9 = vector.broadcast %cst_7 : f32 to vector<8x128xf32>
    %10 = arith.maximumf %8, %9 : vector<8x128xf32>
    %c0_8 = arith.constant 0 : index
    %c0_9 = arith.constant 0 : index
    %11 = vector.load %arg6[%c0_8, %c0_9] : memref<8x128xf32, #tpu.memory_space<vmem>>, vector<8x128xf32>
    tpu.vector_store %arg6[%c0_8, %c0_9], %10 {strides = array<i32>} : memref<8x128xf32, #tpu.memory_space<vmem>>, vector<8x128xf32>,
    return
  }
  func.func @transform_0(%arg0: i32, %arg1: i32) -> (i32, i32) {
    %c0_i32 = arith.constant 0 : i32
    %c0_i32_0 = arith.constant 0 : i32
    return %arg0, %c0_i32 : i32, i32
  }
  func.func @transform_1(%arg0: i32, %arg1: i32) -> (i32, i32) {
    %c0_i32 = arith.constant 0 : i32
    %c0_i32_0 = arith.constant 0 : i32
    return %c0_i32, %arg1 : i32, i32
  }
  func.func @transform_2(%arg0: i32, %arg1: i32) -> (i32, i32) {
    %c0_i32 = arith.constant 0 : i32
    %c0_i32_0 = arith.constant 0 : i32
    return %c0_i32, %arg1 : i32, i32
  }
  func.func @transform_3(%arg0: i32, %arg1: i32) -> (i32, i32) {
    %c0_i32 = arith.constant 0 : i32
    %c0_i32_0 = arith.constant 0 : i32
    return %c0_i32, %arg1 : i32, i32
  }
  func.func @transform_4(%arg0: i32, %arg1: i32) -> (i32, i32) {
    %c0_i32 = arith.constant 0 : i32
    return %arg0, %arg1 : i32, i32
  }
}

module attributes {stable_mosaic.version = 11 : i64} {
  func.func @_mm_affine_kernel(%arg0: i32, %arg1: i32, %arg2: memref<8x128xbf16, #tpu.memory_space<vmem>>, %arg3: memref<128x128xbf16, #tpu.memory_space<vmem>>, %arg4: memref<1x128xf32, #tpu.memory_space<vmem>>, %arg5: memref<1x128xf32, #tpu.memory_space<vmem>>, %arg6: memref<8x128xf32, #tpu.memory_space<vmem>>) attributes {dimension_semantics = [#tpu.dimension_semantics<parallel>, #tpu.dimension_semantics<parallel>], iteration_bounds = array<i64: 1, 1>, scalar_prefetch = 0 : i64, scratch_operands = 0 : i64, tpu.core_type = #tpu.core_type<tc>, window_params = [{transform_indices = @transform_0, window_bounds = array<i64: 8, 128>}, {transform_indices = @transform_1, window_bounds = array<i64: 128, 128>}, {transform_indices = @transform_2, window_bounds = array<i64: 1, 128>}, {transform_indices = @transform_3, window_bounds = array<i64: 1, 128>}, {transform_indices = @transform_4, window_bounds = array<i64: 8, 128>}]} {
    %c0 = arith.constant 0 : index
    %c0_0 = arith.constant 0 : index
    %0 = vector.load %arg2[%c0, %c0_0] : memref<8x128xbf16, #tpu.memory_space<vmem>>, vector<8x128xbf16>
    %c0_1 = arith.constant 0 : index
    %c0_2 = arith.constant 0 : index
    %1 = vector.load %arg3[%c0_1, %c0_2] : memref<128x128xbf16, #tpu.memory_space<vmem>>, vector<128x128xbf16>
    %cst = arith.constant dense<0.000000e+00> : vector<8x128xf32>
    %2 = tpu.matmul %0, %1, %cst {dimension_numbers = #tpu.dot_dimension_numbers<[1], [0], [0], [1], [0, 0, 1, 1], [], []>} : vector<8x128xbf16>, vector<128x128xbf16>, vector<8x128xf32> -> vector<8x128xf32>
    %c0_3 = arith.constant 0 : index
    %c0_4 = arith.constant 0 : index
    %3 = vector.load %arg4[%c0_3, %c0_4] : memref<1x128xf32, #tpu.memory_space<vmem>>, vector<1x128xf32>
    %4 = vector.broadcast %3 : vector<1x128xf32> to vector<8x128xf32>
    %5 = arith.mulf %2, %4 : vector<8x128xf32>
    %c0_5 = arith.constant 0 : index
    %c0_6 = arith.constant 0 : index
    %6 = vector.load %arg5[%c0_5, %c0_6] : memref<1x128xf32, #tpu.memory_space<vmem>>, vector<1x128xf32>
    %7 = vector.broadcast %6 : vector<1x128xf32> to vector<8x128xf32>
    %8 = arith.addf %5, %7 : vector<8x128xf32>
    %cst_7 = arith.constant 0.000000e+00 : f32
    %9 = vector.broadcast %cst_7 : f32 to vector<8x128xf32>
    %10 = arith.maximumf %8, %9 : vector<8x128xf32>
    %c0_8 = arith.constant 0 : index
    %c0_9 = arith.constant 0 : index
    %11 = vector.load %arg6[%c0_8, %c0_9] : memref<8x128xf32, #tpu.memory_space<vmem>>, vector<8x128xf32>
    tpu.vector_store %arg6[%c0_8, %c0_9], %10 {strides = array<i32>} : memref<8x128xf32, #tpu.memory_space<vmem>>, vector<8x128xf32>,
    return
  }
  func.func @transform_0(%arg0: i32, %arg1: i32) -> (i32, i32) {
    %c0_i32 = arith.constant 0 : i32
    %c0_i32_0 = arith.constant 0 : i32
    return %arg0, %c0_i32 : i32, i32
  }
  func.func @transform_1(%arg0: i32, %arg1: i32) -> (i32, i32) {
    %c0_i32 = arith.constant 0 : i32
    %c0_i32_0 = arith.constant 0 : i32
    return %c0_i32, %arg1 : i32, i32
  }
  func.func @transform_2(%arg0: i32, %arg1: i32) -> (i32, i32) {
    %c0_i32 = arith.constant 0 : i32
    %c0_i32_0 = arith.constant 0 : i32
    return %c0_i32, %arg1 : i32, i32
  }
  func.func @transform_3(%arg0: i32, %arg1: i32) -> (i32, i32) {
    %c0_i32 = arith.constant 0 : i32
    %c0_i32_0 = arith.constant 0 : i32
    return %c0_i32, %arg1 : i32, i32
  }
  func.func @transform_4(%arg0: i32, %arg1: i32) -> (i32, i32) {
    %c0_i32 = arith.constant 0 : i32
    return %arg0, %arg1 : i32, i32
  }
}

module attributes {stable_mosaic.version = 11 : i64} {
  func.func @_mm_affine_kernel(%arg0: i32, %arg1: i32, %arg2: memref<8x64xbf16, #tpu.memory_space<vmem>>, %arg3: memref<64x128xbf16, #tpu.memory_space<vmem>>, %arg4: memref<1x128xf32, #tpu.memory_space<vmem>>, %arg5: memref<1x128xf32, #tpu.memory_space<vmem>>, %arg6: memref<8x128xf32, #tpu.memory_space<vmem>>) attributes {dimension_semantics = [#tpu.dimension_semantics<parallel>, #tpu.dimension_semantics<parallel>], iteration_bounds = array<i64: 1, 1>, scalar_prefetch = 0 : i64, scratch_operands = 0 : i64, tpu.core_type = #tpu.core_type<tc>, window_params = [{transform_indices = @transform_0, window_bounds = array<i64: 8, 64>}, {transform_indices = @transform_1, window_bounds = array<i64: 64, 128>}, {transform_indices = @transform_2, window_bounds = array<i64: 1, 128>}, {transform_indices = @transform_3, window_bounds = array<i64: 1, 128>}, {transform_indices = @transform_4, window_bounds = array<i64: 8, 128>}]} {
    %c0 = arith.constant 0 : index
    %c0_0 = arith.constant 0 : index
    %0 = vector.load %arg2[%c0, %c0_0] : memref<8x64xbf16, #tpu.memory_space<vmem>>, vector<8x64xbf16>
    %c0_1 = arith.constant 0 : index
    %c0_2 = arith.constant 0 : index
    %1 = vector.load %arg3[%c0_1, %c0_2] : memref<64x128xbf16, #tpu.memory_space<vmem>>, vector<64x128xbf16>
    %cst = arith.constant dense<0.000000e+00> : vector<8x128xf32>
    %2 = tpu.matmul %0, %1, %cst {dimension_numbers = #tpu.dot_dimension_numbers<[1], [0], [0], [1], [0, 0, 1, 1], [], []>} : vector<8x64xbf16>, vector<64x128xbf16>, vector<8x128xf32> -> vector<8x128xf32>
    %c0_3 = arith.constant 0 : index
    %c0_4 = arith.constant 0 : index
    %3 = vector.load %arg4[%c0_3, %c0_4] : memref<1x128xf32, #tpu.memory_space<vmem>>, vector<1x128xf32>
    %4 = vector.broadcast %3 : vector<1x128xf32> to vector<8x128xf32>
    %5 = arith.mulf %2, %4 : vector<8x128xf32>
    %c0_5 = arith.constant 0 : index
    %c0_6 = arith.constant 0 : index
    %6 = vector.load %arg5[%c0_5, %c0_6] : memref<1x128xf32, #tpu.memory_space<vmem>>, vector<1x128xf32>
    %7 = vector.broadcast %6 : vector<1x128xf32> to vector<8x128xf32>
    %8 = arith.addf %5, %7 : vector<8x128xf32>
    %cst_7 = arith.constant 0.000000e+00 : f32
    %9 = vector.broadcast %cst_7 : f32 to vector<8x128xf32>
    %10 = arith.maximumf %8, %9 : vector<8x128xf32>
    %c0_8 = arith.constant 0 : index
    %c0_9 = arith.constant 0 : index
    %11 = vector.load %arg6[%c0_8, %c0_9] : memref<8x128xf32, #tpu.memory_space<vmem>>, vector<8x128xf32>
    tpu.vector_store %arg6[%c0_8, %c0_9], %10 {strides = array<i32>} : memref<8x128xf32, #tpu.memory_space<vmem>>, vector<8x128xf32>,
    return
  }
  func.func @transform_0(%arg0: i32, %arg1: i32) -> (i32, i32) {
    %c0_i32 = arith.constant 0 : i32
    %c0_i32_0 = arith.constant 0 : i32
    return %arg0, %c0_i32 : i32, i32
  }
  func.func @transform_1(%arg0: i32, %arg1: i32) -> (i32, i32) {
    %c0_i32 = arith.constant 0 : i32
    %c0_i32_0 = arith.constant 0 : i32
    return %c0_i32, %arg1 : i32, i32
  }
  func.func @transform_2(%arg0: i32, %arg1: i32) -> (i32, i32) {
    %c0_i32 = arith.constant 0 : i32
    %c0_i32_0 = arith.constant 0 : i32
    return %c0_i32, %arg1 : i32, i32
  }
  func.func @transform_3(%arg0: i32, %arg1: i32) -> (i32, i32) {
    %c0_i32 = arith.constant 0 : i32
    %c0_i32_0 = arith.constant 0 : i32
    return %c0_i32, %arg1 : i32, i32
  }
  func.func @transform_4(%arg0: i32, %arg1: i32) -> (i32, i32) {
    %c0_i32 = arith.constant 0 : i32
    return %arg0, %arg1 : i32, i32
  }
}

module attributes {stable_mosaic.version = 11 : i64} {
  func.func @_mm_affine_kernel(%arg0: i32, %arg1: i32, %arg2: memref<64x256xbf16, #tpu.memory_space<vmem>>, %arg3: memref<256x128xbf16, #tpu.memory_space<vmem>>, %arg4: memref<1x128xf32, #tpu.memory_space<vmem>>, %arg5: memref<1x128xf32, #tpu.memory_space<vmem>>, %arg6: memref<64x128xf32, #tpu.memory_space<vmem>>) attributes {dimension_semantics = [#tpu.dimension_semantics<parallel>, #tpu.dimension_semantics<parallel>], iteration_bounds = array<i64: 1, 1>, scalar_prefetch = 0 : i64, scratch_operands = 0 : i64, tpu.core_type = #tpu.core_type<tc>, window_params = [{transform_indices = @transform_0, window_bounds = array<i64: 64, 256>}, {transform_indices = @transform_1, window_bounds = array<i64: 256, 128>}, {transform_indices = @transform_2, window_bounds = array<i64: 1, 128>}, {transform_indices = @transform_3, window_bounds = array<i64: 1, 128>}, {transform_indices = @transform_4, window_bounds = array<i64: 64, 128>}]} {
    %c0 = arith.constant 0 : index
    %c0_0 = arith.constant 0 : index
    %0 = vector.load %arg2[%c0, %c0_0] : memref<64x256xbf16, #tpu.memory_space<vmem>>, vector<64x256xbf16>
    %c0_1 = arith.constant 0 : index
    %c0_2 = arith.constant 0 : index
    %1 = vector.load %arg3[%c0_1, %c0_2] : memref<256x128xbf16, #tpu.memory_space<vmem>>, vector<256x128xbf16>
    %cst = arith.constant dense<0.000000e+00> : vector<64x128xf32>
    %2 = tpu.matmul %0, %1, %cst {dimension_numbers = #tpu.dot_dimension_numbers<[1], [0], [0], [1], [0, 0, 1, 1], [], []>} : vector<64x256xbf16>, vector<256x128xbf16>, vector<64x128xf32> -> vector<64x128xf32>
    %c0_3 = arith.constant 0 : index
    %c0_4 = arith.constant 0 : index
    %3 = vector.load %arg4[%c0_3, %c0_4] : memref<1x128xf32, #tpu.memory_space<vmem>>, vector<1x128xf32>
    %4 = vector.broadcast %3 : vector<1x128xf32> to vector<64x128xf32>
    %5 = arith.mulf %2, %4 : vector<64x128xf32>
    %c0_5 = arith.constant 0 : index
    %c0_6 = arith.constant 0 : index
    %6 = vector.load %arg5[%c0_5, %c0_6] : memref<1x128xf32, #tpu.memory_space<vmem>>, vector<1x128xf32>
    %7 = vector.broadcast %6 : vector<1x128xf32> to vector<64x128xf32>
    %8 = arith.addf %5, %7 : vector<64x128xf32>
    %cst_7 = arith.constant 0.000000e+00 : f32
    %9 = vector.broadcast %cst_7 : f32 to vector<64x128xf32>
    %10 = arith.maximumf %8, %9 : vector<64x128xf32>
    %c0_8 = arith.constant 0 : index
    %c0_9 = arith.constant 0 : index
    %11 = vector.load %arg6[%c0_8, %c0_9] : memref<64x128xf32, #tpu.memory_space<vmem>>, vector<64x128xf32>
    tpu.vector_store %arg6[%c0_8, %c0_9], %10 {strides = array<i32>} : memref<64x128xf32, #tpu.memory_space<vmem>>, vector<64x128xf32>,
    return
  }
  func.func @transform_0(%arg0: i32, %arg1: i32) -> (i32, i32) {
    %c0_i32 = arith.constant 0 : i32
    %c0_i32_0 = arith.constant 0 : i32
    return %arg0, %c0_i32 : i32, i32
  }
  func.func @transform_1(%arg0: i32, %arg1: i32) -> (i32, i32) {
    %c0_i32 = arith.constant 0 : i32
    %c0_i32_0 = arith.constant 0 : i32
    return %c0_i32, %arg1 : i32, i32
  }
  func.func @transform_2(%arg0: i32, %arg1: i32) -> (i32, i32) {
    %c0_i32 = arith.constant 0 : i32
    %c0_i32_0 = arith.constant 0 : i32
    return %c0_i32, %arg1 : i32, i32
  }
  func.func @transform_3(%arg0: i32, %arg1: i32) -> (i32, i32) {
    %c0_i32 = arith.constant 0 : i32
    %c0_i32_0 = arith.constant 0 : i32
    return %c0_i32, %arg1 : i32, i32
  }
  func.func @transform_4(%arg0: i32, %arg1: i32) -> (i32, i32) {
    %c0_i32 = arith.constant 0 : i32
    return %arg0, %arg1 : i32, i32
  }
}

module attributes {stable_mosaic.version = 11 : i64} {
  func.func @_mm_affine_kernel(%arg0: i32, %arg1: i32, %arg2: memref<64x128xbf16, #tpu.memory_space<vmem>>, %arg3: memref<128x128xbf16, #tpu.memory_space<vmem>>, %arg4: memref<1x128xf32, #tpu.memory_space<vmem>>, %arg5: memref<1x128xf32, #tpu.memory_space<vmem>>, %arg6: memref<64x128xf32, #tpu.memory_space<vmem>>) attributes {dimension_semantics = [#tpu.dimension_semantics<parallel>, #tpu.dimension_semantics<parallel>], iteration_bounds = array<i64: 1, 1>, scalar_prefetch = 0 : i64, scratch_operands = 0 : i64, tpu.core_type = #tpu.core_type<tc>, window_params = [{transform_indices = @transform_0, window_bounds = array<i64: 64, 128>}, {transform_indices = @transform_1, window_bounds = array<i64: 128, 128>}, {transform_indices = @transform_2, window_bounds = array<i64: 1, 128>}, {transform_indices = @transform_3, window_bounds = array<i64: 1, 128>}, {transform_indices = @transform_4, window_bounds = array<i64: 64, 128>}]} {
    %c0 = arith.constant 0 : index
    %c0_0 = arith.constant 0 : index
    %0 = vector.load %arg2[%c0, %c0_0] : memref<64x128xbf16, #tpu.memory_space<vmem>>, vector<64x128xbf16>
    %c0_1 = arith.constant 0 : index
    %c0_2 = arith.constant 0 : index
    %1 = vector.load %arg3[%c0_1, %c0_2] : memref<128x128xbf16, #tpu.memory_space<vmem>>, vector<128x128xbf16>
    %cst = arith.constant dense<0.000000e+00> : vector<64x128xf32>
    %2 = tpu.matmul %0, %1, %cst {dimension_numbers = #tpu.dot_dimension_numbers<[1], [0], [0], [1], [0, 0, 1, 1], [], []>} : vector<64x128xbf16>, vector<128x128xbf16>, vector<64x128xf32> -> vector<64x128xf32>
    %c0_3 = arith.constant 0 : index
    %c0_4 = arith.constant 0 : index
    %3 = vector.load %arg4[%c0_3, %c0_4] : memref<1x128xf32, #tpu.memory_space<vmem>>, vector<1x128xf32>
    %4 = vector.broadcast %3 : vector<1x128xf32> to vector<64x128xf32>
    %5 = arith.mulf %2, %4 : vector<64x128xf32>
    %c0_5 = arith.constant 0 : index
    %c0_6 = arith.constant 0 : index
    %6 = vector.load %arg5[%c0_5, %c0_6] : memref<1x128xf32, #tpu.memory_space<vmem>>, vector<1x128xf32>
    %7 = vector.broadcast %6 : vector<1x128xf32> to vector<64x128xf32>
    %8 = arith.addf %5, %7 : vector<64x128xf32>
    %cst_7 = arith.constant 0.000000e+00 : f32
    %9 = vector.broadcast %cst_7 : f32 to vector<64x128xf32>
    %10 = arith.maximumf %8, %9 : vector<64x128xf32>
    %c0_8 = arith.constant 0 : index
    %c0_9 = arith.constant 0 : index
    %11 = vector.load %arg6[%c0_8, %c0_9] : memref<64x128xf32, #tpu.memory_space<vmem>>, vector<64x128xf32>
    tpu.vector_store %arg6[%c0_8, %c0_9], %10 {strides = array<i32>} : memref<64x128xf32, #tpu.memory_space<vmem>>, vector<64x128xf32>,
    return
  }
  func.func @transform_0(%arg0: i32, %arg1: i32) -> (i32, i32) {
    %c0_i32 = arith.constant 0 : i32
    %c0_i32_0 = arith.constant 0 : i32
    return %arg0, %c0_i32 : i32, i32
  }
  func.func @transform_1(%arg0: i32, %arg1: i32) -> (i32, i32) {
    %c0_i32 = arith.constant 0 : i32
    %c0_i32_0 = arith.constant 0 : i32
    return %c0_i32, %arg1 : i32, i32
  }
  func.func @transform_2(%arg0: i32, %arg1: i32) -> (i32, i32) {
    %c0_i32 = arith.constant 0 : i32
    %c0_i32_0 = arith.constant 0 : i32
    return %c0_i32, %arg1 : i32, i32
  }
  func.func @transform_3(%arg0: i32, %arg1: i32) -> (i32, i32) {
    %c0_i32 = arith.constant 0 : i32
    %c0_i32_0 = arith.constant 0 : i32
    return %c0_i32, %arg1 : i32, i32
  }
  func.func @transform_4(%arg0: i32, %arg1: i32) -> (i32, i32) {
    %c0_i32 = arith.constant 0 : i32
    return %arg0, %arg1 : i32, i32
  }
}

module attributes {stable_mosaic.version = 11 : i64} {
  func.func @_mm_affine_kernel(%arg0: i32, %arg1: i32, %arg2: memref<64x64xbf16, #tpu.memory_space<vmem>>, %arg3: memref<64x128xbf16, #tpu.memory_space<vmem>>, %arg4: memref<1x128xf32, #tpu.memory_space<vmem>>, %arg5: memref<1x128xf32, #tpu.memory_space<vmem>>, %arg6: memref<64x128xf32, #tpu.memory_space<vmem>>) attributes {dimension_semantics = [#tpu.dimension_semantics<parallel>, #tpu.dimension_semantics<parallel>], iteration_bounds = array<i64: 1, 1>, scalar_prefetch = 0 : i64, scratch_operands = 0 : i64, tpu.core_type = #tpu.core_type<tc>, window_params = [{transform_indices = @transform_0, window_bounds = array<i64: 64, 64>}, {transform_indices = @transform_1, window_bounds = array<i64: 64, 128>}, {transform_indices = @transform_2, window_bounds = array<i64: 1, 128>}, {transform_indices = @transform_3, window_bounds = array<i64: 1, 128>}, {transform_indices = @transform_4, window_bounds = array<i64: 64, 128>}]} {
    %c0 = arith.constant 0 : index
    %c0_0 = arith.constant 0 : index
    %0 = vector.load %arg2[%c0, %c0_0] : memref<64x64xbf16, #tpu.memory_space<vmem>>, vector<64x64xbf16>
    %c0_1 = arith.constant 0 : index
    %c0_2 = arith.constant 0 : index
    %1 = vector.load %arg3[%c0_1, %c0_2] : memref<64x128xbf16, #tpu.memory_space<vmem>>, vector<64x128xbf16>
    %cst = arith.constant dense<0.000000e+00> : vector<64x128xf32>
    %2 = tpu.matmul %0, %1, %cst {dimension_numbers = #tpu.dot_dimension_numbers<[1], [0], [0], [1], [0, 0, 1, 1], [], []>} : vector<64x64xbf16>, vector<64x128xbf16>, vector<64x128xf32> -> vector<64x128xf32>
    %c0_3 = arith.constant 0 : index
    %c0_4 = arith.constant 0 : index
    %3 = vector.load %arg4[%c0_3, %c0_4] : memref<1x128xf32, #tpu.memory_space<vmem>>, vector<1x128xf32>
    %4 = vector.broadcast %3 : vector<1x128xf32> to vector<64x128xf32>
    %5 = arith.mulf %2, %4 : vector<64x128xf32>
    %c0_5 = arith.constant 0 : index
    %c0_6 = arith.constant 0 : index
    %6 = vector.load %arg5[%c0_5, %c0_6] : memref<1x128xf32, #tpu.memory_space<vmem>>, vector<1x128xf32>
    %7 = vector.broadcast %6 : vector<1x128xf32> to vector<64x128xf32>
    %8 = arith.addf %5, %7 : vector<64x128xf32>
    %cst_7 = arith.constant 0.000000e+00 : f32
    %9 = vector.broadcast %cst_7 : f32 to vector<64x128xf32>
    %10 = arith.maximumf %8, %9 : vector<64x128xf32>
    %c0_8 = arith.constant 0 : index
    %c0_9 = arith.constant 0 : index
    %11 = vector.load %arg6[%c0_8, %c0_9] : memref<64x128xf32, #tpu.memory_space<vmem>>, vector<64x128xf32>
    tpu.vector_store %arg6[%c0_8, %c0_9], %10 {strides = array<i32>} : memref<64x128xf32, #tpu.memory_space<vmem>>, vector<64x128xf32>,
    return
  }
  func.func @transform_0(%arg0: i32, %arg1: i32) -> (i32, i32) {
    %c0_i32 = arith.constant 0 : i32
    %c0_i32_0 = arith.constant 0 : i32
    return %arg0, %c0_i32 : i32, i32
  }
  func.func @transform_1(%arg0: i32, %arg1: i32) -> (i32, i32) {
    %c0_i32 = arith.constant 0 : i32
    %c0_i32_0 = arith.constant 0 : i32
    return %c0_i32, %arg1 : i32, i32
  }
  func.func @transform_2(%arg0: i32, %arg1: i32) -> (i32, i32) {
    %c0_i32 = arith.constant 0 : i32
    %c0_i32_0 = arith.constant 0 : i32
    return %c0_i32, %arg1 : i32, i32
  }
  func.func @transform_3(%arg0: i32, %arg1: i32) -> (i32, i32) {
    %c0_i32 = arith.constant 0 : i32
    %c0_i32_0 = arith.constant 0 : i32
    return %c0_i32, %arg1 : i32, i32
  }
  func.func @transform_4(%arg0: i32, %arg1: i32) -> (i32, i32) {
    %c0_i32 = arith.constant 0 : i32
    return %arg0, %arg1 : i32, i32
  }
}

module attributes {stable_mosaic.version = 11 : i64} {
  func.func @_mm_affine_kernel(%arg0: i32, %arg1: i32, %arg2: memref<128x32xbf16, #tpu.memory_space<vmem>>, %arg3: memref<32x128xbf16, #tpu.memory_space<vmem>>, %arg4: memref<1x128xf32, #tpu.memory_space<vmem>>, %arg5: memref<1x128xf32, #tpu.memory_space<vmem>>, %arg6: memref<128x128xf32, #tpu.memory_space<vmem>>) attributes {dimension_semantics = [#tpu.dimension_semantics<parallel>, #tpu.dimension_semantics<parallel>], iteration_bounds = array<i64: 4, 1>, scalar_prefetch = 0 : i64, scratch_operands = 0 : i64, tpu.core_type = #tpu.core_type<tc>, window_params = [{transform_indices = @transform_0, window_bounds = array<i64: 128, 32>}, {transform_indices = @transform_1, window_bounds = array<i64: 32, 128>}, {transform_indices = @transform_2, window_bounds = array<i64: 1, 128>}, {transform_indices = @transform_3, window_bounds = array<i64: 1, 128>}, {transform_indices = @transform_4, window_bounds = array<i64: 128, 128>}]} {
    %c0 = arith.constant 0 : index
    %c0_0 = arith.constant 0 : index
    %0 = vector.load %arg2[%c0, %c0_0] : memref<128x32xbf16, #tpu.memory_space<vmem>>, vector<128x32xbf16>
    %c0_1 = arith.constant 0 : index
    %c0_2 = arith.constant 0 : index
    %1 = vector.load %arg3[%c0_1, %c0_2] : memref<32x128xbf16, #tpu.memory_space<vmem>>, vector<32x128xbf16>
    %cst = arith.constant dense<0.000000e+00> : vector<128x128xf32>
    %2 = tpu.matmul %0, %1, %cst {dimension_numbers = #tpu.dot_dimension_numbers<[1], [0], [0], [1], [0, 0, 1, 1], [], []>} : vector<128x32xbf16>, vector<32x128xbf16>, vector<128x128xf32> -> vector<128x128xf32>
    %c0_3 = arith.constant 0 : index
    %c0_4 = arith.constant 0 : index
    %3 = vector.load %arg4[%c0_3, %c0_4] : memref<1x128xf32, #tpu.memory_space<vmem>>, vector<1x128xf32>
    %4 = vector.broadcast %3 : vector<1x128xf32> to vector<128x128xf32>
    %5 = arith.mulf %2, %4 : vector<128x128xf32>
    %c0_5 = arith.constant 0 : index
    %c0_6 = arith.constant 0 : index
    %6 = vector.load %arg5[%c0_5, %c0_6] : memref<1x128xf32, #tpu.memory_space<vmem>>, vector<1x128xf32>
    %7 = vector.broadcast %6 : vector<1x128xf32> to vector<128x128xf32>
    %8 = arith.addf %5, %7 : vector<128x128xf32>
    %c0_7 = arith.constant 0 : index
    %c0_8 = arith.constant 0 : index
    %9 = vector.load %arg6[%c0_7, %c0_8] : memref<128x128xf32, #tpu.memory_space<vmem>>, vector<128x128xf32>
    tpu.vector_store %arg6[%c0_7, %c0_8], %8 {strides = array<i32>} : memref<128x128xf32, #tpu.memory_space<vmem>>, vector<128x128xf32>,
    return
  }
  func.func @transform_0(%arg0: i32, %arg1: i32) -> (i32, i32) {
    %c0_i32 = arith.constant 0 : i32
    %c0_i32_0 = arith.constant 0 : i32
    return %arg0, %c0_i32 : i32, i32
  }
  func.func @transform_1(%arg0: i32, %arg1: i32) -> (i32, i32) {
    %c0_i32 = arith.constant 0 : i32
    %c0_i32_0 = arith.constant 0 : i32
    return %c0_i32, %arg1 : i32, i32
  }
  func.func @transform_2(%arg0: i32, %arg1: i32) -> (i32, i32) {
    %c0_i32 = arith.constant 0 : i32
    %c0_i32_0 = arith.constant 0 : i32
    return %c0_i32, %arg1 : i32, i32
  }
  func.func @transform_3(%arg0: i32, %arg1: i32) -> (i32, i32) {
    %c0_i32 = arith.constant 0 : i32
    %c0_i32_0 = arith.constant 0 : i32
    return %c0_i32, %arg1 : i32, i32
  }
  func.func @transform_4(%arg0: i32, %arg1: i32) -> (i32, i32) {
    %c0_i32 = arith.constant 0 : i32
    return %arg0, %arg1 : i32, i32
  }
}

module attributes {stable_mosaic.version = 11 : i64} {
  func.func @_mm_affine_kernel(%arg0: i32, %arg1: i32, %arg2: memref<128x432xbf16, #tpu.memory_space<vmem>>, %arg3: memref<432x128xbf16, #tpu.memory_space<vmem>>, %arg4: memref<1x128xf32, #tpu.memory_space<vmem>>, %arg5: memref<1x128xf32, #tpu.memory_space<vmem>>, %arg6: memref<128x128xf32, #tpu.memory_space<vmem>>) attributes {dimension_semantics = [#tpu.dimension_semantics<parallel>, #tpu.dimension_semantics<parallel>], iteration_bounds = array<i64: 4, 1>, scalar_prefetch = 0 : i64, scratch_operands = 0 : i64, tpu.core_type = #tpu.core_type<tc>, window_params = [{transform_indices = @transform_0, window_bounds = array<i64: 128, 432>}, {transform_indices = @transform_1, window_bounds = array<i64: 432, 128>}, {transform_indices = @transform_2, window_bounds = array<i64: 1, 128>}, {transform_indices = @transform_3, window_bounds = array<i64: 1, 128>}, {transform_indices = @transform_4, window_bounds = array<i64: 128, 128>}]} {
    %c0 = arith.constant 0 : index
    %c0_0 = arith.constant 0 : index
    %0 = vector.load %arg2[%c0, %c0_0] : memref<128x432xbf16, #tpu.memory_space<vmem>>, vector<128x432xbf16>
    %c0_1 = arith.constant 0 : index
    %c0_2 = arith.constant 0 : index
    %1 = vector.load %arg3[%c0_1, %c0_2] : memref<432x128xbf16, #tpu.memory_space<vmem>>, vector<432x128xbf16>
    %cst = arith.constant dense<0.000000e+00> : vector<128x128xf32>
    %2 = tpu.matmul %0, %1, %cst {dimension_numbers = #tpu.dot_dimension_numbers<[1], [0], [0], [1], [0, 0, 1, 1], [], []>} : vector<128x432xbf16>, vector<432x128xbf16>, vector<128x128xf32> -> vector<128x128xf32>
    %c0_3 = arith.constant 0 : index
    %c0_4 = arith.constant 0 : index
    %3 = vector.load %arg4[%c0_3, %c0_4] : memref<1x128xf32, #tpu.memory_space<vmem>>, vector<1x128xf32>
    %4 = vector.broadcast %3 : vector<1x128xf32> to vector<128x128xf32>
    %5 = arith.mulf %2, %4 : vector<128x128xf32>
    %c0_5 = arith.constant 0 : index
    %c0_6 = arith.constant 0 : index
    %6 = vector.load %arg5[%c0_5, %c0_6] : memref<1x128xf32, #tpu.memory_space<vmem>>, vector<1x128xf32>
    %7 = vector.broadcast %6 : vector<1x128xf32> to vector<128x128xf32>
    %8 = arith.addf %5, %7 : vector<128x128xf32>
    %cst_7 = arith.constant 0.000000e+00 : f32
    %9 = vector.broadcast %cst_7 : f32 to vector<128x128xf32>
    %10 = arith.maximumf %8, %9 : vector<128x128xf32>
    %c0_8 = arith.constant 0 : index
    %c0_9 = arith.constant 0 : index
    %11 = vector.load %arg6[%c0_8, %c0_9] : memref<128x128xf32, #tpu.memory_space<vmem>>, vector<128x128xf32>
    tpu.vector_store %arg6[%c0_8, %c0_9], %10 {strides = array<i32>} : memref<128x128xf32, #tpu.memory_space<vmem>>, vector<128x128xf32>,
    return
  }
  func.func @transform_0(%arg0: i32, %arg1: i32) -> (i32, i32) {
    %c0_i32 = arith.constant 0 : i32
    %c0_i32_0 = arith.constant 0 : i32
    return %arg0, %c0_i32 : i32, i32
  }
  func.func @transform_1(%arg0: i32, %arg1: i32) -> (i32, i32) {
    %c0_i32 = arith.constant 0 : i32
    %c0_i32_0 = arith.constant 0 : i32
    return %c0_i32, %arg1 : i32, i32
  }
  func.func @transform_2(%arg0: i32, %arg1: i32) -> (i32, i32) {
    %c0_i32 = arith.constant 0 : i32
    %c0_i32_0 = arith.constant 0 : i32
    return %c0_i32, %arg1 : i32, i32
  }
  func.func @transform_3(%arg0: i32, %arg1: i32) -> (i32, i32) {
    %c0_i32 = arith.constant 0 : i32
    %c0_i32_0 = arith.constant 0 : i32
    return %c0_i32, %arg1 : i32, i32
  }
  func.func @transform_4(%arg0: i32, %arg1: i32) -> (i32, i32) {
    %c0_i32 = arith.constant 0 : i32
    return %arg0, %arg1 : i32, i32
  }
}

module attributes {stable_mosaic.version = 11 : i64} {
  func.func @_mm_affine_kernel(%arg0: i32, %arg1: i32, %arg2: memref<64x432xbf16, #tpu.memory_space<vmem>>, %arg3: memref<432x128xbf16, #tpu.memory_space<vmem>>, %arg4: memref<1x128xf32, #tpu.memory_space<vmem>>, %arg5: memref<1x128xf32, #tpu.memory_space<vmem>>, %arg6: memref<64x128xf32, #tpu.memory_space<vmem>>) attributes {dimension_semantics = [#tpu.dimension_semantics<parallel>, #tpu.dimension_semantics<parallel>], iteration_bounds = array<i64: 1, 1>, scalar_prefetch = 0 : i64, scratch_operands = 0 : i64, tpu.core_type = #tpu.core_type<tc>, window_params = [{transform_indices = @transform_0, window_bounds = array<i64: 64, 432>}, {transform_indices = @transform_1, window_bounds = array<i64: 432, 128>}, {transform_indices = @transform_2, window_bounds = array<i64: 1, 128>}, {transform_indices = @transform_3, window_bounds = array<i64: 1, 128>}, {transform_indices = @transform_4, window_bounds = array<i64: 64, 128>}]} {
    %c0 = arith.constant 0 : index
    %c0_0 = arith.constant 0 : index
    %0 = vector.load %arg2[%c0, %c0_0] : memref<64x432xbf16, #tpu.memory_space<vmem>>, vector<64x432xbf16>
    %c0_1 = arith.constant 0 : index
    %c0_2 = arith.constant 0 : index
    %1 = vector.load %arg3[%c0_1, %c0_2] : memref<432x128xbf16, #tpu.memory_space<vmem>>, vector<432x128xbf16>
    %cst = arith.constant dense<0.000000e+00> : vector<64x128xf32>
    %2 = tpu.matmul %0, %1, %cst {dimension_numbers = #tpu.dot_dimension_numbers<[1], [0], [0], [1], [0, 0, 1, 1], [], []>} : vector<64x432xbf16>, vector<432x128xbf16>, vector<64x128xf32> -> vector<64x128xf32>
    %c0_3 = arith.constant 0 : index
    %c0_4 = arith.constant 0 : index
    %3 = vector.load %arg4[%c0_3, %c0_4] : memref<1x128xf32, #tpu.memory_space<vmem>>, vector<1x128xf32>
    %4 = vector.broadcast %3 : vector<1x128xf32> to vector<64x128xf32>
    %5 = arith.mulf %2, %4 : vector<64x128xf32>
    %c0_5 = arith.constant 0 : index
    %c0_6 = arith.constant 0 : index
    %6 = vector.load %arg5[%c0_5, %c0_6] : memref<1x128xf32, #tpu.memory_space<vmem>>, vector<1x128xf32>
    %7 = vector.broadcast %6 : vector<1x128xf32> to vector<64x128xf32>
    %8 = arith.addf %5, %7 : vector<64x128xf32>
    %cst_7 = arith.constant 0.000000e+00 : f32
    %9 = vector.broadcast %cst_7 : f32 to vector<64x128xf32>
    %10 = arith.maximumf %8, %9 : vector<64x128xf32>
    %c0_8 = arith.constant 0 : index
    %c0_9 = arith.constant 0 : index
    %11 = vector.load %arg6[%c0_8, %c0_9] : memref<64x128xf32, #tpu.memory_space<vmem>>, vector<64x128xf32>
    tpu.vector_store %arg6[%c0_8, %c0_9], %10 {strides = array<i32>} : memref<64x128xf32, #tpu.memory_space<vmem>>, vector<64x128xf32>,
    return
  }
  func.func @transform_0(%arg0: i32, %arg1: i32) -> (i32, i32) {
    %c0_i32 = arith.constant 0 : i32
    %c0_i32_0 = arith.constant 0 : i32
    return %arg0, %c0_i32 : i32, i32
  }
  func.func @transform_1(%arg0: i32, %arg1: i32) -> (i32, i32) {
    %c0_i32 = arith.constant 0 : i32
    %c0_i32_0 = arith.constant 0 : i32
    return %c0_i32, %arg1 : i32, i32
  }
  func.func @transform_2(%arg0: i32, %arg1: i32) -> (i32, i32) {
    %c0_i32 = arith.constant 0 : i32
    %c0_i32_0 = arith.constant 0 : i32
    return %c0_i32, %arg1 : i32, i32
  }
  func.func @transform_3(%arg0: i32, %arg1: i32) -> (i32, i32) {
    %c0_i32 = arith.constant 0 : i32
    %c0_i32_0 = arith.constant 0 : i32
    return %c0_i32, %arg1 : i32, i32
  }
  func.func @transform_4(%arg0: i32, %arg1: i32) -> (i32, i32) {
    %c0_i32 = arith.constant 0 : i32
    return %arg0, %arg1 : i32, i32
  }
}

module attributes {stable_mosaic.version = 11 : i64} {
  func.func @_mm_affine_kernel(%arg0: i32, %arg1: i32, %arg2: memref<8x224xbf16, #tpu.memory_space<vmem>>, %arg3: memref<224x128xbf16, #tpu.memory_space<vmem>>, %arg4: memref<1x128xf32, #tpu.memory_space<vmem>>, %arg5: memref<1x128xf32, #tpu.memory_space<vmem>>, %arg6: memref<8x128xf32, #tpu.memory_space<vmem>>) attributes {dimension_semantics = [#tpu.dimension_semantics<parallel>, #tpu.dimension_semantics<parallel>], iteration_bounds = array<i64: 1, 1>, scalar_prefetch = 0 : i64, scratch_operands = 0 : i64, tpu.core_type = #tpu.core_type<tc>, window_params = [{transform_indices = @transform_0, window_bounds = array<i64: 8, 224>}, {transform_indices = @transform_1, window_bounds = array<i64: 224, 128>}, {transform_indices = @transform_2, window_bounds = array<i64: 1, 128>}, {transform_indices = @transform_3, window_bounds = array<i64: 1, 128>}, {transform_indices = @transform_4, window_bounds = array<i64: 8, 128>}]} {
    %c0 = arith.constant 0 : index
    %c0_0 = arith.constant 0 : index
    %0 = vector.load %arg2[%c0, %c0_0] : memref<8x224xbf16, #tpu.memory_space<vmem>>, vector<8x224xbf16>
    %c0_1 = arith.constant 0 : index
    %c0_2 = arith.constant 0 : index
    %1 = vector.load %arg3[%c0_1, %c0_2] : memref<224x128xbf16, #tpu.memory_space<vmem>>, vector<224x128xbf16>
    %cst = arith.constant dense<0.000000e+00> : vector<8x128xf32>
    %2 = tpu.matmul %0, %1, %cst {dimension_numbers = #tpu.dot_dimension_numbers<[1], [0], [0], [1], [0, 0, 1, 1], [], []>} : vector<8x224xbf16>, vector<224x128xbf16>, vector<8x128xf32> -> vector<8x128xf32>
    %c0_3 = arith.constant 0 : index
    %c0_4 = arith.constant 0 : index
    %3 = vector.load %arg4[%c0_3, %c0_4] : memref<1x128xf32, #tpu.memory_space<vmem>>, vector<1x128xf32>
    %4 = vector.broadcast %3 : vector<1x128xf32> to vector<8x128xf32>
    %5 = arith.mulf %2, %4 : vector<8x128xf32>
    %c0_5 = arith.constant 0 : index
    %c0_6 = arith.constant 0 : index
    %6 = vector.load %arg5[%c0_5, %c0_6] : memref<1x128xf32, #tpu.memory_space<vmem>>, vector<1x128xf32>
    %7 = vector.broadcast %6 : vector<1x128xf32> to vector<8x128xf32>
    %8 = arith.addf %5, %7 : vector<8x128xf32>
    %cst_7 = arith.constant 0.000000e+00 : f32
    %9 = vector.broadcast %cst_7 : f32 to vector<8x128xf32>
    %10 = arith.maximumf %8, %9 : vector<8x128xf32>
    %c0_8 = arith.constant 0 : index
    %c0_9 = arith.constant 0 : index
    %11 = vector.load %arg6[%c0_8, %c0_9] : memref<8x128xf32, #tpu.memory_space<vmem>>, vector<8x128xf32>
    tpu.vector_store %arg6[%c0_8, %c0_9], %10 {strides = array<i32>} : memref<8x128xf32, #tpu.memory_space<vmem>>, vector<8x128xf32>,
    return
  }
  func.func @transform_0(%arg0: i32, %arg1: i32) -> (i32, i32) {
    %c0_i32 = arith.constant 0 : i32
    %c0_i32_0 = arith.constant 0 : i32
    return %arg0, %c0_i32 : i32, i32
  }
  func.func @transform_1(%arg0: i32, %arg1: i32) -> (i32, i32) {
    %c0_i32 = arith.constant 0 : i32
    %c0_i32_0 = arith.constant 0 : i32
    return %c0_i32, %arg1 : i32, i32
  }
  func.func @transform_2(%arg0: i32, %arg1: i32) -> (i32, i32) {
    %c0_i32 = arith.constant 0 : i32
    %c0_i32_0 = arith.constant 0 : i32
    return %c0_i32, %arg1 : i32, i32
  }
  func.func @transform_3(%arg0: i32, %arg1: i32) -> (i32, i32) {
    %c0_i32 = arith.constant 0 : i32
    %c0_i32_0 = arith.constant 0 : i32
    return %c0_i32, %arg1 : i32, i32
  }
  func.func @transform_4(%arg0: i32, %arg1: i32) -> (i32, i32) {
    %c0_i32 = arith.constant 0 : i32
    return %arg0, %arg1 : i32, i32
  }
}

module attributes {stable_mosaic.version = 11 : i64} {
  func.func @_mm_affine_kernel(%arg0: i32, %arg1: i32, %arg2: memref<8x128xbf16, #tpu.memory_space<vmem>>, %arg3: memref<128x128xbf16, #tpu.memory_space<vmem>>, %arg4: memref<1x128xf32, #tpu.memory_space<vmem>>, %arg5: memref<1x128xf32, #tpu.memory_space<vmem>>, %arg6: memref<8x128xf32, #tpu.memory_space<vmem>>) attributes {dimension_semantics = [#tpu.dimension_semantics<parallel>, #tpu.dimension_semantics<parallel>], iteration_bounds = array<i64: 1, 1>, scalar_prefetch = 0 : i64, scratch_operands = 0 : i64, tpu.core_type = #tpu.core_type<tc>, window_params = [{transform_indices = @transform_0, window_bounds = array<i64: 8, 128>}, {transform_indices = @transform_1, window_bounds = array<i64: 128, 128>}, {transform_indices = @transform_2, window_bounds = array<i64: 1, 128>}, {transform_indices = @transform_3, window_bounds = array<i64: 1, 128>}, {transform_indices = @transform_4, window_bounds = array<i64: 8, 128>}]} {
    %c0 = arith.constant 0 : index
    %c0_0 = arith.constant 0 : index
    %0 = vector.load %arg2[%c0, %c0_0] : memref<8x128xbf16, #tpu.memory_space<vmem>>, vector<8x128xbf16>
    %c0_1 = arith.constant 0 : index
    %c0_2 = arith.constant 0 : index
    %1 = vector.load %arg3[%c0_1, %c0_2] : memref<128x128xbf16, #tpu.memory_space<vmem>>, vector<128x128xbf16>
    %cst = arith.constant dense<0.000000e+00> : vector<8x128xf32>
    %2 = tpu.matmul %0, %1, %cst {dimension_numbers = #tpu.dot_dimension_numbers<[1], [0], [0], [1], [0, 0, 1, 1], [], []>} : vector<8x128xbf16>, vector<128x128xbf16>, vector<8x128xf32> -> vector<8x128xf32>
    %c0_3 = arith.constant 0 : index
    %c0_4 = arith.constant 0 : index
    %3 = vector.load %arg4[%c0_3, %c0_4] : memref<1x128xf32, #tpu.memory_space<vmem>>, vector<1x128xf32>
    %4 = vector.broadcast %3 : vector<1x128xf32> to vector<8x128xf32>
    %5 = arith.mulf %2, %4 : vector<8x128xf32>
    %c0_5 = arith.constant 0 : index
    %c0_6 = arith.constant 0 : index
    %6 = vector.load %arg5[%c0_5, %c0_6] : memref<1x128xf32, #tpu.memory_space<vmem>>, vector<1x128xf32>
    %7 = vector.broadcast %6 : vector<1x128xf32> to vector<8x128xf32>
    %8 = arith.addf %5, %7 : vector<8x128xf32>
    %cst_7 = arith.constant 0.000000e+00 : f32
    %9 = vector.broadcast %cst_7 : f32 to vector<8x128xf32>
    %10 = arith.maximumf %8, %9 : vector<8x128xf32>
    %c0_8 = arith.constant 0 : index
    %c0_9 = arith.constant 0 : index
    %11 = vector.load %arg6[%c0_8, %c0_9] : memref<8x128xf32, #tpu.memory_space<vmem>>, vector<8x128xf32>
    tpu.vector_store %arg6[%c0_8, %c0_9], %10 {strides = array<i32>} : memref<8x128xf32, #tpu.memory_space<vmem>>, vector<8x128xf32>,
    return
  }
  func.func @transform_0(%arg0: i32, %arg1: i32) -> (i32, i32) {
    %c0_i32 = arith.constant 0 : i32
    %c0_i32_0 = arith.constant 0 : i32
    return %arg0, %c0_i32 : i32, i32
  }
  func.func @transform_1(%arg0: i32, %arg1: i32) -> (i32, i32) {
    %c0_i32 = arith.constant 0 : i32
    %c0_i32_0 = arith.constant 0 : i32
    return %c0_i32, %arg1 : i32, i32
  }
  func.func @transform_2(%arg0: i32, %arg1: i32) -> (i32, i32) {
    %c0_i32 = arith.constant 0 : i32
    %c0_i32_0 = arith.constant 0 : i32
    return %c0_i32, %arg1 : i32, i32
  }
  func.func @transform_3(%arg0: i32, %arg1: i32) -> (i32, i32) {
    %c0_i32 = arith.constant 0 : i32
    %c0_i32_0 = arith.constant 0 : i32
    return %c0_i32, %arg1 : i32, i32
  }
  func.func @transform_4(%arg0: i32, %arg1: i32) -> (i32, i32) {
    %c0_i32 = arith.constant 0 : i32
    return %arg0, %arg1 : i32, i32
  }
}

module attributes {stable_mosaic.version = 11 : i64} {
  func.func @_mm_affine_kernel(%arg0: i32, %arg1: i32, %arg2: memref<8x16xbf16, #tpu.memory_space<vmem>>, %arg3: memref<16x128xbf16, #tpu.memory_space<vmem>>, %arg4: memref<1x128xf32, #tpu.memory_space<vmem>>, %arg5: memref<1x128xf32, #tpu.memory_space<vmem>>, %arg6: memref<8x128xf32, #tpu.memory_space<vmem>>) attributes {dimension_semantics = [#tpu.dimension_semantics<parallel>, #tpu.dimension_semantics<parallel>], iteration_bounds = array<i64: 1, 1>, scalar_prefetch = 0 : i64, scratch_operands = 0 : i64, tpu.core_type = #tpu.core_type<tc>, window_params = [{transform_indices = @transform_0, window_bounds = array<i64: 8, 16>}, {transform_indices = @transform_1, window_bounds = array<i64: 16, 128>}, {transform_indices = @transform_2, window_bounds = array<i64: 1, 128>}, {transform_indices = @transform_3, window_bounds = array<i64: 1, 128>}, {transform_indices = @transform_4, window_bounds = array<i64: 8, 128>}]} {
    %c0 = arith.constant 0 : index
    %c0_0 = arith.constant 0 : index
    %0 = vector.load %arg2[%c0, %c0_0] : memref<8x16xbf16, #tpu.memory_space<vmem>>, vector<8x16xbf16>
    %c0_1 = arith.constant 0 : index
    %c0_2 = arith.constant 0 : index
    %1 = vector.load %arg3[%c0_1, %c0_2] : memref<16x128xbf16, #tpu.memory_space<vmem>>, vector<16x128xbf16>
    %cst = arith.constant dense<0.000000e+00> : vector<8x128xf32>
    %2 = tpu.matmul %0, %1, %cst {dimension_numbers = #tpu.dot_dimension_numbers<[1], [0], [0], [1], [0, 0, 1, 1], [], []>} : vector<8x16xbf16>, vector<16x128xbf16>, vector<8x128xf32> -> vector<8x128xf32>
    %c0_3 = arith.constant 0 : index
    %c0_4 = arith.constant 0 : index
    %3 = vector.load %arg4[%c0_3, %c0_4] : memref<1x128xf32, #tpu.memory_space<vmem>>, vector<1x128xf32>
    %4 = vector.broadcast %3 : vector<1x128xf32> to vector<8x128xf32>
    %5 = arith.mulf %2, %4 : vector<8x128xf32>
    %c0_5 = arith.constant 0 : index
    %c0_6 = arith.constant 0 : index
    %6 = vector.load %arg5[%c0_5, %c0_6] : memref<1x128xf32, #tpu.memory_space<vmem>>, vector<1x128xf32>
    %7 = vector.broadcast %6 : vector<1x128xf32> to vector<8x128xf32>
    %8 = arith.addf %5, %7 : vector<8x128xf32>
    %cst_7 = arith.constant 0.000000e+00 : f32
    %9 = vector.broadcast %cst_7 : f32 to vector<8x128xf32>
    %10 = arith.maximumf %8, %9 : vector<8x128xf32>
    %c0_8 = arith.constant 0 : index
    %c0_9 = arith.constant 0 : index
    %11 = vector.load %arg6[%c0_8, %c0_9] : memref<8x128xf32, #tpu.memory_space<vmem>>, vector<8x128xf32>
    tpu.vector_store %arg6[%c0_8, %c0_9], %10 {strides = array<i32>} : memref<8x128xf32, #tpu.memory_space<vmem>>, vector<8x128xf32>,
    return
  }
  func.func @transform_0(%arg0: i32, %arg1: i32) -> (i32, i32) {
    %c0_i32 = arith.constant 0 : i32
    %c0_i32_0 = arith.constant 0 : i32
    return %arg0, %c0_i32 : i32, i32
  }
  func.func @transform_1(%arg0: i32, %arg1: i32) -> (i32, i32) {
    %c0_i32 = arith.constant 0 : i32
    %c0_i32_0 = arith.constant 0 : i32
    return %c0_i32, %arg1 : i32, i32
  }
  func.func @transform_2(%arg0: i32, %arg1: i32) -> (i32, i32) {
    %c0_i32 = arith.constant 0 : i32
    %c0_i32_0 = arith.constant 0 : i32
    return %c0_i32, %arg1 : i32, i32
  }
  func.func @transform_3(%arg0: i32, %arg1: i32) -> (i32, i32) {
    %c0_i32 = arith.constant 0 : i32
    %c0_i32_0 = arith.constant 0 : i32
    return %c0_i32, %arg1 : i32, i32
  }
  func.func @transform_4(%arg0: i32, %arg1: i32) -> (i32, i32) {
    %c0_i32 = arith.constant 0 : i32
    return %arg0, %arg1 : i32, i32
  }
}

module attributes {stable_mosaic.version = 11 : i64} {
  func.func @_mm_affine_kernel(%arg0: i32, %arg1: i32, %arg2: memref<8x64xbf16, #tpu.memory_space<vmem>>, %arg3: memref<64x128xbf16, #tpu.memory_space<vmem>>, %arg4: memref<1x128xf32, #tpu.memory_space<vmem>>, %arg5: memref<1x128xf32, #tpu.memory_space<vmem>>, %arg6: memref<8x128xf32, #tpu.memory_space<vmem>>) attributes {dimension_semantics = [#tpu.dimension_semantics<parallel>, #tpu.dimension_semantics<parallel>], iteration_bounds = array<i64: 1, 1>, scalar_prefetch = 0 : i64, scratch_operands = 0 : i64, tpu.core_type = #tpu.core_type<tc>, window_params = [{transform_indices = @transform_0, window_bounds = array<i64: 8, 64>}, {transform_indices = @transform_1, window_bounds = array<i64: 64, 128>}, {transform_indices = @transform_2, window_bounds = array<i64: 1, 128>}, {transform_indices = @transform_3, window_bounds = array<i64: 1, 128>}, {transform_indices = @transform_4, window_bounds = array<i64: 8, 128>}]} {
    %c0 = arith.constant 0 : index
    %c0_0 = arith.constant 0 : index
    %0 = vector.load %arg2[%c0, %c0_0] : memref<8x64xbf16, #tpu.memory_space<vmem>>, vector<8x64xbf16>
    %c0_1 = arith.constant 0 : index
    %c0_2 = arith.constant 0 : index
    %1 = vector.load %arg3[%c0_1, %c0_2] : memref<64x128xbf16, #tpu.memory_space<vmem>>, vector<64x128xbf16>
    %cst = arith.constant dense<0.000000e+00> : vector<8x128xf32>
    %2 = tpu.matmul %0, %1, %cst {dimension_numbers = #tpu.dot_dimension_numbers<[1], [0], [0], [1], [0, 0, 1, 1], [], []>} : vector<8x64xbf16>, vector<64x128xbf16>, vector<8x128xf32> -> vector<8x128xf32>
    %c0_3 = arith.constant 0 : index
    %c0_4 = arith.constant 0 : index
    %3 = vector.load %arg4[%c0_3, %c0_4] : memref<1x128xf32, #tpu.memory_space<vmem>>, vector<1x128xf32>
    %4 = vector.broadcast %3 : vector<1x128xf32> to vector<8x128xf32>
    %5 = arith.mulf %2, %4 : vector<8x128xf32>
    %c0_5 = arith.constant 0 : index
    %c0_6 = arith.constant 0 : index
    %6 = vector.load %arg5[%c0_5, %c0_6] : memref<1x128xf32, #tpu.memory_space<vmem>>, vector<1x128xf32>
    %7 = vector.broadcast %6 : vector<1x128xf32> to vector<8x128xf32>
    %8 = arith.addf %5, %7 : vector<8x128xf32>
    %cst_7 = arith.constant 0.000000e+00 : f32
    %9 = vector.broadcast %cst_7 : f32 to vector<8x128xf32>
    %10 = arith.maximumf %8, %9 : vector<8x128xf32>
    %c0_8 = arith.constant 0 : index
    %c0_9 = arith.constant 0 : index
    %11 = vector.load %arg6[%c0_8, %c0_9] : memref<8x128xf32, #tpu.memory_space<vmem>>, vector<8x128xf32>
    tpu.vector_store %arg6[%c0_8, %c0_9], %10 {strides = array<i32>} : memref<8x128xf32, #tpu.memory_space<vmem>>, vector<8x128xf32>,
    return
  }
  func.func @transform_0(%arg0: i32, %arg1: i32) -> (i32, i32) {
    %c0_i32 = arith.constant 0 : i32
    %c0_i32_0 = arith.constant 0 : i32
    return %arg0, %c0_i32 : i32, i32
  }
  func.func @transform_1(%arg0: i32, %arg1: i32) -> (i32, i32) {
    %c0_i32 = arith.constant 0 : i32
    %c0_i32_0 = arith.constant 0 : i32
    return %c0_i32, %arg1 : i32, i32
  }
  func.func @transform_2(%arg0: i32, %arg1: i32) -> (i32, i32) {
    %c0_i32 = arith.constant 0 : i32
    %c0_i32_0 = arith.constant 0 : i32
    return %c0_i32, %arg1 : i32, i32
  }
  func.func @transform_3(%arg0: i32, %arg1: i32) -> (i32, i32) {
    %c0_i32 = arith.constant 0 : i32
    %c0_i32_0 = arith.constant 0 : i32
    return %c0_i32, %arg1 : i32, i32
  }
  func.func @transform_4(%arg0: i32, %arg1: i32) -> (i32, i32) {
    %c0_i32 = arith.constant 0 : i32
    return %arg0, %arg1 : i32, i32
  }
}

module attributes {stable_mosaic.version = 11 : i64} {
  func.func @_mm_affine_kernel(%arg0: i32, %arg1: i32, %arg2: memref<8x32xbf16, #tpu.memory_space<vmem>>, %arg3: memref<32x128xbf16, #tpu.memory_space<vmem>>, %arg4: memref<1x128xf32, #tpu.memory_space<vmem>>, %arg5: memref<1x128xf32, #tpu.memory_space<vmem>>, %arg6: memref<8x128xf32, #tpu.memory_space<vmem>>) attributes {dimension_semantics = [#tpu.dimension_semantics<parallel>, #tpu.dimension_semantics<parallel>], iteration_bounds = array<i64: 1, 1>, scalar_prefetch = 0 : i64, scratch_operands = 0 : i64, tpu.core_type = #tpu.core_type<tc>, window_params = [{transform_indices = @transform_0, window_bounds = array<i64: 8, 32>}, {transform_indices = @transform_1, window_bounds = array<i64: 32, 128>}, {transform_indices = @transform_2, window_bounds = array<i64: 1, 128>}, {transform_indices = @transform_3, window_bounds = array<i64: 1, 128>}, {transform_indices = @transform_4, window_bounds = array<i64: 8, 128>}]} {
    %c0 = arith.constant 0 : index
    %c0_0 = arith.constant 0 : index
    %0 = vector.load %arg2[%c0, %c0_0] : memref<8x32xbf16, #tpu.memory_space<vmem>>, vector<8x32xbf16>
    %c0_1 = arith.constant 0 : index
    %c0_2 = arith.constant 0 : index
    %1 = vector.load %arg3[%c0_1, %c0_2] : memref<32x128xbf16, #tpu.memory_space<vmem>>, vector<32x128xbf16>
    %cst = arith.constant dense<0.000000e+00> : vector<8x128xf32>
    %2 = tpu.matmul %0, %1, %cst {dimension_numbers = #tpu.dot_dimension_numbers<[1], [0], [0], [1], [0, 0, 1, 1], [], []>} : vector<8x32xbf16>, vector<32x128xbf16>, vector<8x128xf32> -> vector<8x128xf32>
    %c0_3 = arith.constant 0 : index
    %c0_4 = arith.constant 0 : index
    %3 = vector.load %arg4[%c0_3, %c0_4] : memref<1x128xf32, #tpu.memory_space<vmem>>, vector<1x128xf32>
    %4 = vector.broadcast %3 : vector<1x128xf32> to vector<8x128xf32>
    %5 = arith.mulf %2, %4 : vector<8x128xf32>
    %c0_5 = arith.constant 0 : index
    %c0_6 = arith.constant 0 : index
    %6 = vector.load %arg5[%c0_5, %c0_6] : memref<1x128xf32, #tpu.memory_space<vmem>>, vector<1x128xf32>
    %7 = vector.broadcast %6 : vector<1x128xf32> to vector<8x128xf32>
    %8 = arith.addf %5, %7 : vector<8x128xf32>
    %cst_7 = arith.constant 0.000000e+00 : f32
    %9 = vector.broadcast %cst_7 : f32 to vector<8x128xf32>
    %10 = arith.maximumf %8, %9 : vector<8x128xf32>
    %c0_8 = arith.constant 0 : index
    %c0_9 = arith.constant 0 : index
    %11 = vector.load %arg6[%c0_8, %c0_9] : memref<8x128xf32, #tpu.memory_space<vmem>>, vector<8x128xf32>
    tpu.vector_store %arg6[%c0_8, %c0_9], %10 {strides = array<i32>} : memref<8x128xf32, #tpu.memory_space<vmem>>, vector<8x128xf32>,
    return
  }
  func.func @transform_0(%arg0: i32, %arg1: i32) -> (i32, i32) {
    %c0_i32 = arith.constant 0 : i32
    %c0_i32_0 = arith.constant 0 : i32
    return %arg0, %c0_i32 : i32, i32
  }
  func.func @transform_1(%arg0: i32, %arg1: i32) -> (i32, i32) {
    %c0_i32 = arith.constant 0 : i32
    %c0_i32_0 = arith.constant 0 : i32
    return %c0_i32, %arg1 : i32, i32
  }
  func.func @transform_2(%arg0: i32, %arg1: i32) -> (i32, i32) {
    %c0_i32 = arith.constant 0 : i32
    %c0_i32_0 = arith.constant 0 : i32
    return %c0_i32, %arg1 : i32, i32
  }
  func.func @transform_3(%arg0: i32, %arg1: i32) -> (i32, i32) {
    %c0_i32 = arith.constant 0 : i32
    %c0_i32_0 = arith.constant 0 : i32
    return %c0_i32, %arg1 : i32, i32
  }
  func.func @transform_4(%arg0: i32, %arg1: i32) -> (i32, i32) {
    %c0_i32 = arith.constant 0 : i32
    return %arg0, %arg1 : i32, i32
  }
}

module attributes {stable_mosaic.version = 11 : i64} {
  func.func @_mm_affine_kernel(%arg0: i32, %arg1: i32, %arg2: memref<64x16xbf16, #tpu.memory_space<vmem>>, %arg3: memref<16x128xbf16, #tpu.memory_space<vmem>>, %arg4: memref<1x128xf32, #tpu.memory_space<vmem>>, %arg5: memref<1x128xf32, #tpu.memory_space<vmem>>, %arg6: memref<64x128xf32, #tpu.memory_space<vmem>>) attributes {dimension_semantics = [#tpu.dimension_semantics<parallel>, #tpu.dimension_semantics<parallel>], iteration_bounds = array<i64: 1, 1>, scalar_prefetch = 0 : i64, scratch_operands = 0 : i64, tpu.core_type = #tpu.core_type<tc>, window_params = [{transform_indices = @transform_0, window_bounds = array<i64: 64, 16>}, {transform_indices = @transform_1, window_bounds = array<i64: 16, 128>}, {transform_indices = @transform_2, window_bounds = array<i64: 1, 128>}, {transform_indices = @transform_3, window_bounds = array<i64: 1, 128>}, {transform_indices = @transform_4, window_bounds = array<i64: 64, 128>}]} {
    %c0 = arith.constant 0 : index
    %c0_0 = arith.constant 0 : index
    %0 = vector.load %arg2[%c0, %c0_0] : memref<64x16xbf16, #tpu.memory_space<vmem>>, vector<64x16xbf16>
    %c0_1 = arith.constant 0 : index
    %c0_2 = arith.constant 0 : index
    %1 = vector.load %arg3[%c0_1, %c0_2] : memref<16x128xbf16, #tpu.memory_space<vmem>>, vector<16x128xbf16>
    %cst = arith.constant dense<0.000000e+00> : vector<64x128xf32>
    %2 = tpu.matmul %0, %1, %cst {dimension_numbers = #tpu.dot_dimension_numbers<[1], [0], [0], [1], [0, 0, 1, 1], [], []>} : vector<64x16xbf16>, vector<16x128xbf16>, vector<64x128xf32> -> vector<64x128xf32>
    %c0_3 = arith.constant 0 : index
    %c0_4 = arith.constant 0 : index
    %3 = vector.load %arg4[%c0_3, %c0_4] : memref<1x128xf32, #tpu.memory_space<vmem>>, vector<1x128xf32>
    %4 = vector.broadcast %3 : vector<1x128xf32> to vector<64x128xf32>
    %5 = arith.mulf %2, %4 : vector<64x128xf32>
    %c0_5 = arith.constant 0 : index
    %c0_6 = arith.constant 0 : index
    %6 = vector.load %arg5[%c0_5, %c0_6] : memref<1x128xf32, #tpu.memory_space<vmem>>, vector<1x128xf32>
    %7 = vector.broadcast %6 : vector<1x128xf32> to vector<64x128xf32>
    %8 = arith.addf %5, %7 : vector<64x128xf32>
    %cst_7 = arith.constant 0.000000e+00 : f32
    %9 = vector.broadcast %cst_7 : f32 to vector<64x128xf32>
    %10 = arith.maximumf %8, %9 : vector<64x128xf32>
    %c0_8 = arith.constant 0 : index
    %c0_9 = arith.constant 0 : index
    %11 = vector.load %arg6[%c0_8, %c0_9] : memref<64x128xf32, #tpu.memory_space<vmem>>, vector<64x128xf32>
    tpu.vector_store %arg6[%c0_8, %c0_9], %10 {strides = array<i32>} : memref<64x128xf32, #tpu.memory_space<vmem>>, vector<64x128xf32>,
    return
  }
  func.func @transform_0(%arg0: i32, %arg1: i32) -> (i32, i32) {
    %c0_i32 = arith.constant 0 : i32
    %c0_i32_0 = arith.constant 0 : i32
    return %arg0, %c0_i32 : i32, i32
  }
  func.func @transform_1(%arg0: i32, %arg1: i32) -> (i32, i32) {
    %c0_i32 = arith.constant 0 : i32
    %c0_i32_0 = arith.constant 0 : i32
    return %c0_i32, %arg1 : i32, i32
  }
  func.func @transform_2(%arg0: i32, %arg1: i32) -> (i32, i32) {
    %c0_i32 = arith.constant 0 : i32
    %c0_i32_0 = arith.constant 0 : i32
    return %c0_i32, %arg1 : i32, i32
  }
  func.func @transform_3(%arg0: i32, %arg1: i32) -> (i32, i32) {
    %c0_i32 = arith.constant 0 : i32
    %c0_i32_0 = arith.constant 0 : i32
    return %c0_i32, %arg1 : i32, i32
  }
  func.func @transform_4(%arg0: i32, %arg1: i32) -> (i32, i32) {
    %c0_i32 = arith.constant 0 : i32
    return %arg0, %arg1 : i32, i32
  }
}

module attributes {stable_mosaic.version = 11 : i64} {
  func.func @_mm_affine_kernel(%arg0: i32, %arg1: i32, %arg2: memref<128x16xbf16, #tpu.memory_space<vmem>>, %arg3: memref<16x128xbf16, #tpu.memory_space<vmem>>, %arg4: memref<1x128xf32, #tpu.memory_space<vmem>>, %arg5: memref<1x128xf32, #tpu.memory_space<vmem>>, %arg6: memref<128x128xf32, #tpu.memory_space<vmem>>) attributes {dimension_semantics = [#tpu.dimension_semantics<parallel>, #tpu.dimension_semantics<parallel>], iteration_bounds = array<i64: 4, 1>, scalar_prefetch = 0 : i64, scratch_operands = 0 : i64, tpu.core_type = #tpu.core_type<tc>, window_params = [{transform_indices = @transform_0, window_bounds = array<i64: 128, 16>}, {transform_indices = @transform_1, window_bounds = array<i64: 16, 128>}, {transform_indices = @transform_2, window_bounds = array<i64: 1, 128>}, {transform_indices = @transform_3, window_bounds = array<i64: 1, 128>}, {transform_indices = @transform_4, window_bounds = array<i64: 128, 128>}]} {
    %c0 = arith.constant 0 : index
    %c0_0 = arith.constant 0 : index
    %0 = vector.load %arg2[%c0, %c0_0] : memref<128x16xbf16, #tpu.memory_space<vmem>>, vector<128x16xbf16>
    %c0_1 = arith.constant 0 : index
    %c0_2 = arith.constant 0 : index
    %1 = vector.load %arg3[%c0_1, %c0_2] : memref<16x128xbf16, #tpu.memory_space<vmem>>, vector<16x128xbf16>
    %cst = arith.constant dense<0.000000e+00> : vector<128x128xf32>
    %2 = tpu.matmul %0, %1, %cst {dimension_numbers = #tpu.dot_dimension_numbers<[1], [0], [0], [1], [0, 0, 1, 1], [], []>} : vector<128x16xbf16>, vector<16x128xbf16>, vector<128x128xf32> -> vector<128x128xf32>
    %c0_3 = arith.constant 0 : index
    %c0_4 = arith.constant 0 : index
    %3 = vector.load %arg4[%c0_3, %c0_4] : memref<1x128xf32, #tpu.memory_space<vmem>>, vector<1x128xf32>
    %4 = vector.broadcast %3 : vector<1x128xf32> to vector<128x128xf32>
    %5 = arith.mulf %2, %4 : vector<128x128xf32>
    %c0_5 = arith.constant 0 : index
    %c0_6 = arith.constant 0 : index
    %6 = vector.load %arg5[%c0_5, %c0_6] : memref<1x128xf32, #tpu.memory_space<vmem>>, vector<1x128xf32>
    %7 = vector.broadcast %6 : vector<1x128xf32> to vector<128x128xf32>
    %8 = arith.addf %5, %7 : vector<128x128xf32>
    %c0_7 = arith.constant 0 : index
    %c0_8 = arith.constant 0 : index
    %9 = vector.load %arg6[%c0_7, %c0_8] : memref<128x128xf32, #tpu.memory_space<vmem>>, vector<128x128xf32>
    tpu.vector_store %arg6[%c0_7, %c0_8], %8 {strides = array<i32>} : memref<128x128xf32, #tpu.memory_space<vmem>>, vector<128x128xf32>,
    return
  }
  func.func @transform_0(%arg0: i32, %arg1: i32) -> (i32, i32) {
    %c0_i32 = arith.constant 0 : i32
    %c0_i32_0 = arith.constant 0 : i32
    return %arg0, %c0_i32 : i32, i32
  }
  func.func @transform_1(%arg0: i32, %arg1: i32) -> (i32, i32) {
    %c0_i32 = arith.constant 0 : i32
    %c0_i32_0 = arith.constant 0 : i32
    return %c0_i32, %arg1 : i32, i32
  }
  func.func @transform_2(%arg0: i32, %arg1: i32) -> (i32, i32) {
    %c0_i32 = arith.constant 0 : i32
    %c0_i32_0 = arith.constant 0 : i32
    return %c0_i32, %arg1 : i32, i32
  }
  func.func @transform_3(%arg0: i32, %arg1: i32) -> (i32, i32) {
    %c0_i32 = arith.constant 0 : i32
    %c0_i32_0 = arith.constant 0 : i32
    return %c0_i32, %arg1 : i32, i32
  }
  func.func @transform_4(%arg0: i32, %arg1: i32) -> (i32, i32) {
    %c0_i32 = arith.constant 0 : i32
    return %arg0, %arg1 : i32, i32
  }
}

</mosaic_0001>

<bundles_post_ra>
// kernel: _lambda_.107
= control target key start
LH: loop header
LB: loop body
LE: loop exit
PB: predicated region body
PF: predicated region fallthrough
CT: control target
= control target key end

     0   :  { %s752_s15 = smov 0   ;;  %s754_s16 = smov 0   ;;  %s863_s0 = inlined_call_operand.vmem [shape: bf16[512,32], index: 0, kind: input, shape index: {}]   ;;  %s864_s1 = inlined_call_operand.vmem [shape: bf16[32,128], index: 1, kind: input, shape index: {}]   ;;  %s865_s2 = inlined_call_operand.vmem [shape: f32[1,128], index: 2, kind: input, shape index: {}]   ;;  %s866_s3 = inlined_call_operand.vmem [shape: f32[1,128], index: 3, kind: input, shape index: {}]   ;;  %s867_s4 = inlined_call_operand.vmem [shape: f32[512,128], index: 4, kind: output, shape index: {}]  }
   0x1   :  { %s756_s17 = smov 0  }
   0x2 LB: > { %s26_s18 = sadd.s32 1, %s721_s16  ;;  %p606_p0 = scmp.ge.s32.totalorder %s725_s17, 1  ;;  %s725_s17 = sphi %s756_s17, %s14_s17   ;;  %s721_s16 = sphi %s754_s16, %s869_s16   ;;  %s717_s15 = sphi %s752_s15, %s868_s15  }
   0x3   : > { %p28_p1 = scmp.ge.s32.totalorder %s26_s18, 4  ;;  %p202_p2 = scmp.lt.s32.totalorder %s725_s17, 5 }
   0x5   : > { %s871_s18 = smov (%p28_p1, %s26_s18), 0  ;;  %p203_p3 = pnand %p606_p0, %p202_p2 }
   0x6   : > { %s607_s21 = sshll.u32 (!%p203_p3), %s717_s15, 4 }
   0x7   : > { %206 = sbr.rel (%p203_p3) target bundleno = 185 (0xb9), region = 36  ;;  %p242_p4 = scmp.lt.s32.totalorder (!%p203_p3), %s607_s21, 63 }
   0xc   : > { %v670_v0 = vld [vmem:[%s864_s1 + $0x8] sm:$0xff]  ;;  %v669_v1 = vld [vmem:[%s864_s1] sm:$0xff]  ;;  %s873_s21 = smov (!%p242_p4, %s607_s21), 63  ;;  %vm339_vm0 = vcmask 261120  }
   0xd   : > { %370 = vmatpush.bf16.msra.mxu0 %v670_v0  ;;  %671 = vmatpush.bf16.msra.mxu1 %v670_v0  ;;  %s608_s24 = sshll.u32 %s873_s21, 2  ;;  %v793_v10 = vld [vmem:[%s865_s2] ss:$0 sm:$0xff]  ;;  %s610_s6 = sshll.u32 %s873_s21, 3 }
   0xe   : > { %672 = vmatpush.bf16.msra.mxu2 %v670_v0  ;;  %673 = vmatpush.bf16.msra.mxu3 %v670_v0  ;;  %s245_s27 = scalar_lea.vmem %s863_s0, %s608_s24  ;;  %v798_v11 = vld [vmem:[%s866_s3] ss:$0 sm:$0xff]  ;;  %s808_s9 = scalar_lea.vmem %s867_s4, %s610_s6 }
   0xf   : > { %v661_v2 = vld [vmem:[%s245_s27] sm:$0xff]  ;;  %v663_v3 = vld [vmem:[%s245_s27 + $0x10] sm:$0xff]  ;;  %v662_v6 = vld [vmem:[%s245_s27 + $0x8] sm:$0xff] }
  0x10   : > { %v665_v4 = vld [vmem:[%s245_s27 + $0x20] sm:$0xff]  ;;  %v667_v5 = vld [vmem:[%s245_s27 + $0x30] sm:$0xff]  ;;  %v664_v7 = vld [vmem:[%s245_s27 + $0x18] sm:$0xff] }
  0x11   : > { %371 = vmatpush.bf16.msra.mxu0 %v669_v1  ;;  %674 = vmatpush.bf16.msra.mxu1 %v669_v1  ;;  %v666_v8 = vld [vmem:[%s245_s27 + $0x28] sm:$0xff]  ;;  %v668_v9 = vld [vmem:[%s245_s27 + $0x38] sm:$0xff] }
  0x12   : > { %675 = vmatpush.bf16.msra.mxu2 %v669_v1  ;;  %676 = vmatpush.bf16.msra.mxu3 %v669_v1 }
  0x14   : > { %651 = vmatmul.msk.bf16.vlgmr.msra.gmra.mxu0 %vm339_vm0, %v661_v2  ;;  %653 = vmatmul.msk.bf16.vlgmr.msra.gmra.mxu1 %vm339_vm0, %v663_v3 }
  0x15   : > { %655 = vmatmul.msk.bf16.vlgmr.msra.gmra.mxu2 %vm339_vm0, %v665_v4  ;;  %657 = vmatmul.msk.bf16.vlgmr.msra.gmra.mxu3 %vm339_vm0, %v667_v5 }
  0x24   : > { %652 = vmatmul.msk.bf16.gmra.mxu0 %vm339_vm0, %v662_v6  ;;  %654 = vmatmul.msk.bf16.gmra.mxu1 %vm339_vm0, %v664_v7 }
  0x25   : > { %656 = vmatmul.msk.bf16.gmra.mxu2 %vm339_vm0, %v666_v8  ;;  %658 = vmatmul.msk.bf16.gmra.mxu3 %vm339_vm0, %v668_v9 }
  0x91   : > { %v373_v12 = vpop.f32.mrf.mxu0  ;;  %v383_v13 = vpop.f32.mrf.mxu1 }
  0x92   : > { %v417_v14 = vmul.f32 %v793_v10, %v373_v12  ;;  %v421_v15 = vmul.f32 %v793_v10, %v383_v13 }
  0x94   : > { %v437_v16 = vadd.f32 %v798_v11, %v417_v14  ;;  %v441_v17 = vadd.f32 %v798_v11, %v421_v15 }
  0x96   : > { %v453_v18 = vmax.f32 %v437_v16, 0.0  ;;  %v457_v19 = vmax.f32 %v441_v17, 0.0 }
  0x98   : > { %469 = vst [vmem:[%s808_s9] sm:$0xff] %v453_v18  ;;  %v393_v20 = vpop.f32.mrf.mxu2  ;;  %v403_v21 = vpop.f32.mrf.mxu3 }
  0x99   : > { %473 = vst [vmem:[%s808_s9 + $0x20] sm:$0xff] %v457_v19  ;;  %v425_v22 = vmul.f32 %v793_v10, %v393_v20  ;;  %v429_v23 = vmul.f32 %v793_v10, %v403_v21  ;;  %v375_v24 = vpop.f32.mrf.mxu0  ;;  %v385_v25 = vpop.f32.mrf.mxu1 }
  0x9a   : > { %v418_v26 = vmul.f32 %v793_v10, %v375_v24  ;;  %v422_v27 = vmul.f32 %v793_v10, %v385_v25 }
  0x9b   : > { %v445_v28 = vadd.f32 %v798_v11, %v425_v22  ;;  %v449_v29 = vadd.f32 %v798_v11, %v429_v23 }
  0x9c   : > { %v438_v30 = vadd.f32 %v798_v11, %v418_v26  ;;  %v442_v31 = vadd.f32 %v798_v11, %v422_v27 }
  0x9d   : > { %v461_v32 = vmax.f32 %v445_v28, 0.0  ;;  %v465_v33 = vmax.f32 %v449_v29, 0.0 }
  0x9e   : > { %v454_v34 = vmax.f32 %v438_v30, 0.0  ;;  %v458_v35 = vmax.f32 %v442_v31, 0.0 }
  0x9f   : > { %477 = vst [vmem:[%s808_s9 + $0x40] sm:$0xff] %v461_v32 }
  0xa0   : > { %481 = vst [vmem:[%s808_s9 + $0x60] sm:$0xff] %v465_v33  ;;  %v395_v36 = vpop.f32.mrf.mxu2  ;;  %v405_v37 = vpop.f32.mrf.mxu3 }
  0xa1   : > { %470 = vst [vmem:[%s808_s9 + $0x8] sm:$0xff] %v454_v34  ;;  %v426_v38 = vmul.f32 %v793_v10, %v395_v36  ;;  %v430_v39 = vmul.f32 %v793_v10, %v405_v37  ;;  %v378_v40 = vpop.f32.mrf.mxu0  ;;  %v388_v41 = vpop.f32.mrf.mxu1 }
  0xa2   : > { %474 = vst [vmem:[%s808_s9 + $0x28] sm:$0xff] %v458_v35  ;;  %v419_v42 = vmul.f32 %v793_v10, %v378_v40  ;;  %v423_v43 = vmul.f32 %v793_v10, %v388_v41 }
  0xa3   : > { %v446_v44 = vadd.f32 %v798_v11, %v426_v38  ;;  %v450_v45 = vadd.f32 %v798_v11, %v430_v39 }
  0xa4   : > { %v439_v46 = vadd.f32 %v798_v11, %v419_v42  ;;  %v443_v47 = vadd.f32 %v798_v11, %v423_v43 }
  0xa5   : > { %v462_v48 = vmax.f32 %v446_v44, 0.0  ;;  %v466_v49 = vmax.f32 %v450_v45, 0.0 }
  0xa6   : > { %v455_v50 = vmax.f32 %v439_v46, 0.0  ;;  %v459_v51 = vmax.f32 %v443_v47, 0.0 }
  0xa7   : > { %478 = vst [vmem:[%s808_s9 + $0x48] sm:$0xff] %v462_v48 }
  0xa8   : > { %482 = vst [vmem:[%s808_s9 + $0x68] sm:$0xff] %v466_v49  ;;  %v398_v52 = vpop.f32.mrf.mxu2  ;;  %v408_v53 = vpop.f32.mrf.mxu3 }
  0xa9   : > { %471 = vst [vmem:[%s808_s9 + $0x10] sm:$0xff] %v455_v50  ;;  %v427_v54 = vmul.f32 %v793_v10, %v398_v52  ;;  %v431_v55 = vmul.f32 %v793_v10, %v408_v53  ;;  %v380_v56 = vpop.f32.mrf.mxu0  ;;  %v390_v57 = vpop.f32.mrf.mxu1 }
  0xaa   : > { %475 = vst [vmem:[%s808_s9 + $0x30] sm:$0xff] %v459_v51  ;;  %v420_v58 = vmul.f32 %v793_v10, %v380_v56  ;;  %v424_v59 = vmul.f32 %v793_v10, %v390_v57 }
  0xab   : > { %v447_v60 = vadd.f32 %v798_v11, %v427_v54  ;;  %v451_v61 = vadd.f32 %v798_v11, %v431_v55 }
  0xac   : > { %v440_v62 = vadd.f32 %v798_v11, %v420_v58  ;;  %v444_v63 = vadd.f32 %v798_v11, %v424_v59 }
  0xad   : > { %v463_v0 = vmax.f32 %v447_v60, 0.0  ;;  %v467_v1 = vmax.f32 %v451_v61, 0.0 }
  0xae   : > { %v456_v2 = vmax.f32 %v440_v62, 0.0  ;;  %v460_v3 = vmax.f32 %v444_v63, 0.0 }
  0xaf   : > { %479 = vst [vmem:[%s808_s9 + $0x50] sm:$0xff] %v463_v0 }
  0xb0   : > { %483 = vst [vmem:[%s808_s9 + $0x70] sm:$0xff] %v467_v1  ;;  %v400_v4 = vpop.f32.mrf.mxu2  ;;  %v410_v5 = vpop.f32.mrf.mxu3 }
  0xb1   : > { %472 = vst [vmem:[%s808_s9 + $0x18] sm:$0xff] %v456_v2  ;;  %v428_v6 = vmul.f32 %v793_v10, %v400_v4  ;;  %v432_v7 = vmul.f32 %v793_v10, %v410_v5 }
  0xb2   : > { %476 = vst [vmem:[%s808_s9 + $0x38] sm:$0xff] %v460_v3 }
  0xb3   : > { %v448_v8 = vadd.f32 %v798_v11, %v428_v6  ;;  %v452_v9 = vadd.f32 %v798_v11, %v432_v7 }
  0xb5   : > { %v464_v12 = vmax.f32 %v448_v8, 0.0  ;;  %v468_v13 = vmax.f32 %v452_v9, 0.0 }
  0xb7   : > { %480 = vst [vmem:[%s808_s9 + $0x58] sm:$0xff] %v464_v12 }
  0xb8   : > { %484 = vst [vmem:[%s808_s9 + $0x78] sm:$0xff] %v468_v13 }
  0xb9 PF: > { %s14_s17 = sadd.s32 1, %s725_s17   ;;  %s868_s15 = smov %s721_s16 }
  0xba   : > { %p11_p5 = scmp.ge.s32.totalorder %s14_s17, 6   ;;  %s869_s16 = smov %s871_s18 }
  0xbc   :  { %13 = sbr.rel (!%p11_p5) target bundleno = 2 (0x2), region = 75 }

// kernel: _lambda_.108
= control target key start
LH: loop header
LB: loop body
LE: loop exit
PB: predicated region body
PF: predicated region fallthrough
CT: control target
= control target key end

     0   :  { %s816_s15 = smov 0   ;;  %s818_s16 = smov 0   ;;  %s939_s0 = inlined_call_operand.vmem [shape: bf16[512,96], index: 0, kind: input, shape index: {}]   ;;  %s940_s1 = inlined_call_operand.vmem [shape: bf16[96,128], index: 1, kind: input, shape index: {}]   ;;  %s941_s2 = inlined_call_operand.vmem [shape: f32[1,128], index: 2, kind: input, shape index: {}]   ;;  %s942_s3 = inlined_call_operand.vmem [shape: f32[1,128], index: 3, kind: input, shape index: {}]   ;;  %s943_s4 = inlined_call_operand.vmem [shape: f32[512,128], index: 4, kind: output, shape index: {}]  }
   0x1   :  { %s820_s17 = smov 0  }
   0x2 LB: > { %s26_s18 = sadd.s32 1, %s785_s16  ;;  %p638_p0 = scmp.ge.s32.totalorder %s789_s17, 1  ;;  %s789_s17 = sphi %s820_s17, %s14_s17   ;;  %s785_s16 = sphi %s818_s16, %s945_s16   ;;  %s781_s15 = sphi %s816_s15, %s944_s15  }
   0x3   : > { %p28_p1 = scmp.ge.s32.totalorder %s26_s18, 4  ;;  %p202_p2 = scmp.lt.s32.totalorder %s789_s17, 5 }
   0x5   : > { %s947_s18 = smov (%p28_p1, %s26_s18), 0  ;;  %p203_p3 = pnand %p638_p0, %p202_p2 }
   0x6   : > { %s639_s23 = sshll.u32 (!%p203_p3), %s781_s15, 4 }
   0x7   : > { %206 = sbr.rel (%p203_p3) target bundleno = 201 (0xc9), region = 36  ;;  %p242_p4 = scmp.lt.s32.totalorder (!%p203_p3), %s639_s23, 63 }
   0xc   : > { %v722_v0 = vld [vmem:[%s940_s1 + $0x28] sm:$0xff]  ;;  %v721_v1 = vld [vmem:[%s940_s1 + $0x20] sm:$0xff]  ;;  %v720_v2 = vld [vmem:[%s940_s1 + $0x18] sm:$0xff]  ;;  %s949_s23 = smov (!%p242_p4, %s639_s23), 63  ;;  %vm371_vm0 = vcmask 785408  }
   0xd   : > { %398 = vmatpush.bf16.msra.mxu0 %v722_v0  ;;  %723 = vmatpush.bf16.msra.mxu1 %v722_v0  ;;  %v719_v3 = vld [vmem:[%s940_s1 + $0x10] sm:$0xff]  ;;  %v718_v4 = vld [vmem:[%s940_s1 + $0x8] sm:$0xff]  ;;  %s640_s30 = sshll.u32 %s949_s23, 2  ;;  %v717_v5 = vld [vmem:[%s940_s1] sm:$0xff]  ;;  %s642_s14 = sshll.u32 %s949_s23, 3 }
   0xe   : > { %724 = vmatpush.bf16.msra.mxu2 %v722_v0  ;;  %725 = vmatpush.bf16.msra.mxu3 %v722_v0  ;;  %s245_s9 = scalar_lea.vmem %s939_s0, %s640_s30  ;;  %v869_v14 = vld [vmem:[%s941_s2] ss:$0 sm:$0xff]  ;;  %s884_s20 = scalar_lea.vmem %s943_s4, %s642_s14 }
   0xf   : > { %v709_v6 = vld [vmem:[%s245_s9] sm:$0xff]  ;;  %v711_v7 = vld [vmem:[%s245_s9 + $0x10] sm:$0xff]  ;;  %v710_v10 = vld [vmem:[%s245_s9 + $0x8] sm:$0xff] }
  0x10   : > { %v713_v8 = vld [vmem:[%s245_s9 + $0x20] sm:$0xff]  ;;  %v715_v9 = vld [vmem:[%s245_s9 + $0x30] sm:$0xff]  ;;  %v712_v11 = vld [vmem:[%s245_s9 + $0x18] sm:$0xff] }
  0x11   : > { %399 = vmatpush.bf16.msra.mxu0 %v721_v1  ;;  %726 = vmatpush.bf16.msra.mxu1 %v721_v1  ;;  %v714_v12 = vld [vmem:[%s245_s9 + $0x28] sm:$0xff]  ;;  %v716_v13 = vld [vmem:[%s245_s9 + $0x38] sm:$0xff]  ;;  %v874_v15 = vld [vmem:[%s942_s3] ss:$0 sm:$0xff] }
  0x12   : > { %727 = vmatpush.bf16.msra.mxu2 %v721_v1  ;;  %728 = vmatpush.bf16.msra.mxu3 %v721_v1 }
  0x15   : > { %400 = vmatpush.bf16.msra.mxu0 %v720_v2  ;;  %729 = vmatpush.bf16.msra.mxu1 %v720_v2 }
  0x16   : > { %730 = vmatpush.bf16.msra.mxu2 %v720_v2  ;;  %731 = vmatpush.bf16.msra.mxu3 %v720_v2 }
  0x19   : > { %401 = vmatpush.bf16.msra.mxu0 %v719_v3  ;;  %732 = vmatpush.bf16.msra.mxu1 %v719_v3 }
  0x1a   : > { %733 = vmatpush.bf16.msra.mxu2 %v719_v3  ;;  %734 = vmatpush.bf16.msra.mxu3 %v719_v3 }
  0x1d   : > { %402 = vmatpush.bf16.msra.mxu0 %v718_v4  ;;  %735 = vmatpush.bf16.msra.mxu1 %v718_v4 }
  0x1e   : > { %736 = vmatpush.bf16.msra.mxu2 %v718_v4  ;;  %737 = vmatpush.bf16.msra.mxu3 %v718_v4 }
  0x21   : > { %403 = vmatpush.bf16.msra.mxu0 %v717_v5  ;;  %738 = vmatpush.bf16.msra.mxu1 %v717_v5 }
  0x22   : > { %739 = vmatpush.bf16.msra.mxu2 %v717_v5  ;;  %740 = vmatpush.bf16.msra.mxu3 %v717_v5 }
  0x24   : > { %699 = vmatmul.msk.bf16.vlgmr.msra.gmra.mxu0 %vm371_vm0, %v709_v6  ;;  %701 = vmatmul.msk.bf16.vlgmr.msra.gmra.mxu1 %vm371_vm0, %v711_v7 }
  0x25   : > { %703 = vmatmul.msk.bf16.vlgmr.msra.gmra.mxu2 %vm371_vm0, %v713_v8  ;;  %705 = vmatmul.msk.bf16.vlgmr.msra.gmra.mxu3 %vm371_vm0, %v715_v9 }
  0x34   : > { %700 = vmatmul.msk.bf16.gmra.mxu0 %vm371_vm0, %v710_v10  ;;  %702 = vmatmul.msk.bf16.gmra.mxu1 %vm371_vm0, %v712_v11 }
  0x35   : > { %704 = vmatmul.msk.bf16.gmra.mxu2 %vm371_vm0, %v714_v12  ;;  %706 = vmatmul.msk.bf16.gmra.mxu3 %vm371_vm0, %v716_v13 }
  0xa1   : > { %v405_v16 = vpop.f32.mrf.mxu0  ;;  %v415_v17 = vpop.f32.mrf.mxu1 }
  0xa2   : > { %v449_v18 = vmul.f32 %v869_v14, %v405_v16  ;;  %v453_v19 = vmul.f32 %v869_v14, %v415_v17 }
  0xa4   : > { %v469_v20 = vadd.f32 %v874_v15, %v449_v18  ;;  %v473_v21 = vadd.f32 %v874_v15, %v453_v19 }
  0xa6   : > { %v485_v22 = vmax.f32 %v469_v20, 0.0  ;;  %v489_v23 = vmax.f32 %v473_v21, 0.0 }
  0xa8   : > { %501 = vst [vmem:[%s884_s20] sm:$0xff] %v485_v22  ;;  %v425_v24 = vpop.f32.mrf.mxu2  ;;  %v435_v25 = vpop.f32.mrf.mxu3 }
  0xa9   : > { %505 = vst [vmem:[%s884_s20 + $0x20] sm:$0xff] %v489_v23  ;;  %v457_v26 = vmul.f32 %v869_v14, %v425_v24  ;;  %v461_v27 = vmul.f32 %v869_v14, %v435_v25  ;;  %v407_v28 = vpop.f32.mrf.mxu0  ;;  %v417_v29 = vpop.f32.mrf.mxu1 }
  0xaa   : > { %v450_v30 = vmul.f32 %v869_v14, %v407_v28  ;;  %v454_v31 = vmul.f32 %v869_v14, %v417_v29 }
  0xab   : > { %v477_v32 = vadd.f32 %v874_v15, %v457_v26  ;;  %v481_v33 = vadd.f32 %v874_v15, %v461_v27 }
  0xac   : > { %v470_v34 = vadd.f32 %v874_v15, %v450_v30  ;;  %v474_v35 = vadd.f32 %v874_v15, %v454_v31 }
  0xad   : > { %v493_v36 = vmax.f32 %v477_v32, 0.0  ;;  %v497_v37 = vmax.f32 %v481_v33, 0.0 }
  0xae   : > { %v486_v38 = vmax.f32 %v470_v34, 0.0  ;;  %v490_v39 = vmax.f32 %v474_v35, 0.0 }
  0xaf   : > { %509 = vst [vmem:[%s884_s20 + $0x40] sm:$0xff] %v493_v36 }
  0xb0   : > { %513 = vst [vmem:[%s884_s20 + $0x60] sm:$0xff] %v497_v37  ;;  %v427_v40 = vpop.f32.mrf.mxu2  ;;  %v437_v41 = vpop.f32.mrf.mxu3 }
  0xb1   : > { %502 = vst [vmem:[%s884_s20 + $0x8] sm:$0xff] %v486_v38  ;;  %v458_v42 = vmul.f32 %v869_v14, %v427_v40  ;;  %v462_v43 = vmul.f32 %v869_v14, %v437_v41  ;;  %v410_v44 = vpop.f32.mrf.mxu0  ;;  %v420_v45 = vpop.f32.mrf.mxu1 }
  0xb2   : > { %506 = vst [vmem:[%s884_s20 + $0x28] sm:$0xff] %v490_v39  ;;  %v451_v46 = vmul.f32 %v869_v14, %v410_v44  ;;  %v455_v47 = vmul.f32 %v869_v14, %v420_v45 }
  0xb3   : > { %v478_v48 = vadd.f32 %v874_v15, %v458_v42  ;;  %v482_v49 = vadd.f32 %v874_v15, %v462_v43 }
  0xb4   : > { %v471_v50 = vadd.f32 %v874_v15, %v451_v46  ;;  %v475_v51 = vadd.f32 %v874_v15, %v455_v47 }
  0xb5   : > { %v494_v52 = vmax.f32 %v478_v48, 0.0  ;;  %v498_v53 = vmax.f32 %v482_v49, 0.0 }
  0xb6   : > { %v487_v54 = vmax.f32 %v471_v50, 0.0  ;;  %v491_v55 = vmax.f32 %v475_v51, 0.0 }
  0xb7   : > { %510 = vst [vmem:[%s884_s20 + $0x48] sm:$0xff] %v494_v52 }
  0xb8   : > { %514 = vst [vmem:[%s884_s20 + $0x68] sm:$0xff] %v498_v53  ;;  %v430_v56 = vpop.f32.mrf.mxu2  ;;  %v440_v57 = vpop.f32.mrf.mxu3 }
  0xb9   : > { %503 = vst [vmem:[%s884_s20 + $0x10] sm:$0xff] %v487_v54  ;;  %v459_v58 = vmul.f32 %v869_v14, %v430_v56  ;;  %v463_v59 = vmul.f32 %v869_v14, %v440_v57  ;;  %v412_v60 = vpop.f32.mrf.mxu0  ;;  %v422_v61 = vpop.f32.mrf.mxu1 }
  0xba   : > { %507 = vst [vmem:[%s884_s20 + $0x30] sm:$0xff] %v491_v55  ;;  %v452_v62 = vmul.f32 %v869_v14, %v412_v60  ;;  %v456_v63 = vmul.f32 %v869_v14, %v422_v61 }
  0xbb   : > { %v479_v0 = vadd.f32 %v874_v15, %v459_v58  ;;  %v483_v1 = vadd.f32 %v874_v15, %v463_v59 }
  0xbc   : > { %v472_v2 = vadd.f32 %v874_v15, %v452_v62  ;;  %v476_v3 = vadd.f32 %v874_v15, %v456_v63 }
  0xbd   : > { %v495_v4 = vmax.f32 %v479_v0, 0.0  ;;  %v499_v5 = vmax.f32 %v483_v1, 0.0 }
  0xbe   : > { %v488_v6 = vmax.f32 %v472_v2, 0.0  ;;  %v492_v7 = vmax.f32 %v476_v3, 0.0 }
  0xbf   : > { %511 = vst [vmem:[%s884_s20 + $0x50] sm:$0xff] %v495_v4 }
  0xc0   : > { %515 = vst [vmem:[%s884_s20 + $0x70] sm:$0xff] %v499_v5  ;;  %v432_v8 = vpop.f32.mrf.mxu2  ;;  %v442_v9 = vpop.f32.mrf.mxu3 }
  0xc1   : > { %504 = vst [vmem:[%s884_s20 + $0x18] sm:$0xff] %v488_v6  ;;  %v460_v10 = vmul.f32 %v869_v14, %v432_v8  ;;  %v464_v11 = vmul.f32 %v869_v14, %v442_v9 }
  0xc2   : > { %508 = vst [vmem:[%s884_s20 + $0x38] sm:$0xff] %v492_v7 }
  0xc3   : > { %v480_v12 = vadd.f32 %v874_v15, %v460_v10  ;;  %v484_v13 = vadd.f32 %v874_v15, %v464_v11 }
  0xc5   : > { %v496_v16 = vmax.f32 %v480_v12, 0.0  ;;  %v500_v17 = vmax.f32 %v484_v13, 0.0 }
  0xc7   : > { %512 = vst [vmem:[%s884_s20 + $0x58] sm:$0xff] %v496_v16 }
  0xc8   : > { %516 = vst [vmem:[%s884_s20 + $0x78] sm:$0xff] %v500_v17 }
  0xc9 PF: > { %s14_s17 = sadd.s32 1, %s789_s17   ;;  %s944_s15 = smov %s785_s16 }
  0xca   : > { %p11_p5 = scmp.ge.s32.totalorder %s14_s17, 6   ;;  %s945_s16 = smov %s947_s18 }
  0xcc   :  { %13 = sbr.rel (!%p11_p5) target bundleno = 2 (0x2), region = 75 }

// kernel: _lambda_.109
= control target key start
LH: loop header
LB: loop body
LE: loop exit
PB: predicated region body
PF: predicated region fallthrough
CT: control target
= control target key end

     0   :  { %s3909_s15 = smov 0   ;;  %s3911_s16 = smov 0   ;;  %s4711_s0 = inlined_call_operand.vmem [shape: bf16[512,1728], index: 0, kind: input, shape index: {}]   ;;  %s4712_s1 = inlined_call_operand.vmem [shape: bf16[1728,128], index: 1, kind: input, shape index: {}]   ;;  %s4713_s2 = inlined_call_operand.vmem [shape: f32[1,128], index: 2, kind: input, shape index: {}]   ;;  %s4714_s3 = inlined_call_operand.vmem [shape: f32[1,128], index: 3, kind: input, shape index: {}]   ;;  %s4715_s4 = inlined_call_operand.vmem [shape: f32[512,128], index: 4, kind: output, shape index: {}]  }
   0x1   :  { %s3913_s17 = smov 0  }
   0x2 LB: > { %s26_s18 = sadd.s32 1, %s3878_s16  ;;  %p2702_p0 = scmp.ge.s32.totalorder %s3882_s17, 1  ;;  %s3882_s17 = sphi %s3913_s17, %s14_s17   ;;  %s3878_s16 = sphi %s3911_s16, %s4717_s16   ;;  %s3874_s15 = sphi %s3909_s15, %s4716_s15  }
   0x3   : > { %p28_p1 = scmp.ge.s32.totalorder %s26_s18, 4  ;;  %p203_p2 = scmp.lt.s32.totalorder %s3882_s17, 5 }
   0x5   : > { %s4719_s18 = smov (%p28_p1, %s26_s18), 0  ;;  %p204_p3 = pnand %p2702_p0, %p203_p2 }
   0x6   : > { %s2703_s5 = sshll.u32 (!%p204_p3), %s3874_s15, 4 }
   0x7   : > { %207 = sbr.rel (%p204_p3) target bundleno = 631 (0x277), region = 36  ;;  %p244_p4 = scmp.lt.s32.totalorder (!%p204_p3), %s2703_s5, 63 }
   0xc   : > { %v3716_v0 = vld [vmem:[%s4712_s1 + $0x38] sm:$0xff]  ;;  %v3715_v2 = vld [vmem:[%s4712_s1 + $0x30] sm:$0xff]  ;;  %v3714_v4 = vld [vmem:[%s4712_s1 + $0x28] sm:$0xff]  ;;  %s4721_s5 = smov (!%p244_p4, %s2703_s5), 63  ;;  %vm1798_vm0 = vcmask 523264  }
   0xd   : > { %v3724_v1 = vld [vmem:[%s4712_s1 + $0x78] sm:$0xff]  ;;  %3817 = vmatpush.bf16.msra.mxu2 %v3716_v0  ;;  %v3723_v3 = vld [vmem:[%s4712_s1 + $0x70] sm:$0xff]  ;;  %1823 = vmatpush.bf16.msra.mxu0 %v3716_v0  ;;  %v3722_v5 = vld [vmem:[%s4712_s1 + $0x68] sm:$0xff]  ;;  %s3833_s21 = smul.u32 56, %s4721_s5  ;;  %s2706_s6 = sshll.u32 %s4721_s5, 3 }
   0xe   : > { %3825 = vmatpush.bf16.msra.mxu3 %v3724_v1  ;;  %1872 = vmatpush.bf16.msra.mxu1 %v3724_v1  ;;  %v3713_v6 = vld [vmem:[%s4712_s1 + $0x20] sm:$0xff]  ;;  %v3712_v8 = vld [vmem:[%s4712_s1 + $0x18] sm:$0xff]  ;;  %v3711_v10 = vld [vmem:[%s4712_s1 + $0x10] sm:$0xff]  ;;  %s4640_s9 = scalar_lea.vmem %s4715_s4, %s2706_s6 }
   0xf   : > { %v3721_v7 = vld [vmem:[%s4712_s1 + $0x60] sm:$0xff]  ;;  %v3720_v9 = vld [vmem:[%s4712_s1 + $0x58] sm:$0xff]  ;;  %v3719_v11 = vld [vmem:[%s4712_s1 + $0x50] sm:$0xff]  ;;  %s3978_s28 = scalar_lea.vmem %s4711_s0, %s3833_s21 }
  0x10   : > { %v3710_v12 = vld [vmem:[%s4712_s1 + $0x8] sm:$0xff]  ;;  %v3709_v14 = vld [vmem:[%s4712_s1] sm:$0xff]  ;;  %v3660_v17 = vld [vmem:[%s3978_s28 + $0x1f4] sm:$0xf0] }
  0x11   : > { %3818 = vmatpush.bf16.msra.mxu2 %v3715_v2  ;;  %1824 = vmatpush.bf16.msra.mxu0 %v3715_v2  ;;  %v3718_v13 = vld [vmem:[%s4712_s1 + $0x48] sm:$0xff]  ;;  %v3717_v15 = vld [vmem:[%s4712_s1 + $0x40] sm:$0xff]  ;;  %v2935_v19 = vld [vmem:[%s3978_s28 + $0x1f8] sm:$0xf0] }
  0x12   : > { %3826 = vmatpush.bf16.msra.mxu3 %v3723_v3  ;;  %1873 = vmatpush.bf16.msra.mxu1 %v3723_v3  ;;  %v2933_v16 = vld [vmem:[%s3978_s28 + $0x1c0] sm:$0xf]  ;;  %v3653_v18 = vld [vmem:[%s3978_s28 + $0x1c4] sm:$0xf]  ;;  %v3604_v21 = vld [vmem:[%s3978_s28 + $0x34] sm:$0xf0] }
  0x13   : > { %v2709_v20 = vld [vmem:[%s3978_s28] sm:$0xf]  ;;  %v3597_v22 = vld [vmem:[%s3978_s28 + $0x4] sm:$0xf]  ;;  %v2711_v23 = vld [vmem:[%s3978_s28 + $0x38] sm:$0xf0]  ;;  %v2934_v26 = vor.u32 %v3660_v17, %v2933_v16  ;;  %v2938_v27 = vor.u32 %v3653_v18, %v2935_v19 }
  0x14   : > { %v3732_v24 = vld [vmem:[%s4712_s1 + $0xb8] sm:$0xff]  ;;  %v2710_v28 = vor.u32 %v3604_v21, %v2709_v20  ;;  %v2714_v29 = vor.u32 %v3597_v22, %v2711_v23  ;;  %v3731_v32 = vld [vmem:[%s4712_s1 + $0xb0] sm:$0xff]  ;;  %v3730_v36 = vld [vmem:[%s4712_s1 + $0xa8] sm:$0xff] }
  0x15   : > { %3819 = vmatpush.bf16.msra.mxu2 %v3714_v4  ;;  %1825 = vmatpush.bf16.msra.mxu0 %v3714_v4  ;;  %v3740_v25 = vld [vmem:[%s4712_s1 + $0xf8] sm:$0xff]  ;;  %v3739_v33 = vld [vmem:[%s4712_s1 + $0xf0] sm:$0xff]  ;;  %v3738_v37 = vld [vmem:[%s4712_s1 + $0xe8] sm:$0xff] }
  0x16   : > { %3827 = vmatpush.bf16.msra.mxu3 %v3722_v5  ;;  %1874 = vmatpush.bf16.msra.mxu1 %v3722_v5  ;;  %v3748_v30 = vld [vmem:[%s4712_s1 + $0x138] sm:$0xff]  ;;  %v3747_v34 = vld [vmem:[%s4712_s1 + $0x130] sm:$0xff]  ;;  %v3746_v38 = vld [vmem:[%s4712_s1 + $0x128] sm:$0xff] }
  0x17   : > { %v3756_v31 = vld [vmem:[%s4712_s1 + $0x178] sm:$0xff]  ;;  %v3755_v35 = vld [vmem:[%s4712_s1 + $0x170] sm:$0xff]  ;;  %v3754_v39 = vld [vmem:[%s4712_s1 + $0x168] sm:$0xff] }
  0x18   : > { %v2989_v40 = vld [vmem:[%s3978_s28 + $0x230] sm:$0xf]  ;;  %v3729_v41 = vld [vmem:[%s4712_s1 + $0xa0] sm:$0xff]  ;;  %v3674_v43 = vld [vmem:[%s3978_s28 + $0x264] sm:$0xf0] }
  0x19   : > { %3820 = vmatpush.bf16.msra.mxu2 %v3713_v6  ;;  %1826 = vmatpush.bf16.msra.mxu0 %v3713_v6  ;;  %v3737_v42 = vld [vmem:[%s4712_s1 + $0xe0] sm:$0xff]  ;;  %v3667_v44 = vld [vmem:[%s3978_s28 + $0x234] sm:$0xf]  ;;  %v2991_v45 = vld [vmem:[%s3978_s28 + $0x268] sm:$0xf0]  ;;  %v2990_v54 = vor.u32 %v3674_v43, %v2989_v40 }
  0x1a   : > { %3828 = vmatpush.bf16.msra.mxu3 %v3721_v7  ;;  %1875 = vmatpush.bf16.msra.mxu1 %v3721_v7  ;;  %v2765_v46 = vld [vmem:[%s3978_s28 + $0x70] sm:$0xf]  ;;  %v3618_v47 = vld [vmem:[%s3978_s28 + $0xa4] sm:$0xf0]  ;;  %v3611_v48 = vld [vmem:[%s3978_s28 + $0x74] sm:$0xf]  ;;  %v2994_v55 = vor.u32 %v3667_v44, %v2991_v45 }
  0x1b   : > { %v2767_v49 = vld [vmem:[%s3978_s28 + $0xa8] sm:$0xf0]  ;;  %v3745_v50 = vld [vmem:[%s4712_s1 + $0x120] sm:$0xff]  ;;  %v3728_v52 = vld [vmem:[%s4712_s1 + $0x98] sm:$0xff]  ;;  %v2766_v56 = vor.u32 %v3618_v47, %v2765_v46 }
  0x1c   : > { %v3753_v51 = vld [vmem:[%s4712_s1 + $0x160] sm:$0xff]  ;;  %v3736_v53 = vld [vmem:[%s4712_s1 + $0xd8] sm:$0xff]  ;;  %v2770_v57 = vor.u32 %v3611_v48, %v2767_v49  ;;  %v3727_v60 = vld [vmem:[%s4712_s1 + $0x90] sm:$0xff] }
  0x1d   : > { %3821 = vmatpush.bf16.msra.mxu2 %v3712_v8  ;;  %1827 = vmatpush.bf16.msra.mxu0 %v3712_v8  ;;  %v3744_v58 = vld [vmem:[%s4712_s1 + $0x118] sm:$0xff]  ;;  %v3735_v61 = vld [vmem:[%s4712_s1 + $0xd0] sm:$0xff]  ;;  %v3726_v0 = vld [vmem:[%s4712_s1 + $0x88] sm:$0xff] }
  0x1e   : > { %3829 = vmatpush.bf16.msra.mxu3 %v3720_v9  ;;  %1876 = vmatpush.bf16.msra.mxu1 %v3720_v9  ;;  %v3752_v59 = vld [vmem:[%s4712_s1 + $0x158] sm:$0xff]  ;;  %v3743_v62 = vld [vmem:[%s4712_s1 + $0x110] sm:$0xff]  ;;  %v3734_v1 = vld [vmem:[%s4712_s1 + $0xc8] sm:$0xff] }
  0x1f   : > { %v3751_v63 = vld [vmem:[%s4712_s1 + $0x150] sm:$0xff]  ;;  %v3742_v2 = vld [vmem:[%s4712_s1 + $0x108] sm:$0xff]  ;;  %v3725_v4 = vld [vmem:[%s4712_s1 + $0x80] sm:$0xff] }
  0x20   : > { %v3750_v3 = vld [vmem:[%s4712_s1 + $0x148] sm:$0xff]  ;;  %v3733_v5 = vld [vmem:[%s4712_s1 + $0xc0] sm:$0xff]  ;;  %v3688_v7 = vld [vmem:[%s3978_s28 + $0x2d4] sm:$0xf0] }
  0x21   : > { %3822 = vmatpush.bf16.msra.mxu2 %v3711_v10  ;;  %1828 = vmatpush.bf16.msra.mxu0 %v3711_v10  ;;  %v3045_v6 = vld [vmem:[%s3978_s28 + $0x2a0] sm:$0xf]  ;;  %v3681_v8 = vld [vmem:[%s3978_s28 + $0x2a4] sm:$0xf]  ;;  %v3047_v9 = vld [vmem:[%s3978_s28 + $0x2d8] sm:$0xf0] }
  0x22   : > { %3830 = vmatpush.bf16.msra.mxu3 %v3719_v11  ;;  %1877 = vmatpush.bf16.msra.mxu1 %v3719_v11  ;;  %v2821_v10 = vld [vmem:[%s3978_s28 + $0xe0] sm:$0xf]  ;;  %v3632_v11 = vld [vmem:[%s3978_s28 + $0x114] sm:$0xf0]  ;;  %v3050_v16 = vor.u32 %v3681_v8, %v3047_v9  ;;  %v2717_v40 = vld [vmem:[%s3978_s28 + $0x8] sm:$0xf] }
  0x23   : > { %v2822_v17 = vor.u32 %v3632_v11, %v2821_v10  ;;  %v3749_v19 = vld [vmem:[%s4712_s1 + $0x140] sm:$0xff]  ;;  %v3764_v20 = vld [vmem:[%s4712_s1 + $0x1b8] sm:$0xff]  ;;  %v2725_v44 = vld [vmem:[%s3978_s28 + $0x10] sm:$0xf] }
  0x24   : > { %v3772_v21 = vld [vmem:[%s4712_s1 + $0x1f8] sm:$0xff]  ;;  %v2719_v43 = vld [vmem:[%s3978_s28 + $0x40] sm:$0xf0]  ;;  %v3606_v45 = vld [vmem:[%s3978_s28 + $0x44] sm:$0xf0] }
  0x25   : > { %3823 = vmatpush.bf16.msra.mxu2 %v3710_v12  ;;  %1829 = vmatpush.bf16.msra.mxu0 %v3710_v12  ;;  %v3625_v12 = vld [vmem:[%s3978_s28 + $0xe4] sm:$0xf]  ;;  %v3780_v22 = vld [vmem:[%s4712_s1 + $0x238] sm:$0xff]  ;;  %v3599_v46 = vld [vmem:[%s3978_s28 + $0x14] sm:$0xf] }
  0x26   : > { %3831 = vmatpush.bf16.msra.mxu3 %v3718_v13  ;;  %1878 = vmatpush.bf16.msra.mxu1 %v3718_v13  ;;  %v2823_v13 = vld [vmem:[%s3978_s28 + $0x118] sm:$0xf0]  ;;  %v2727_v47 = vld [vmem:[%s3978_s28 + $0x48] sm:$0xf0]  ;;  %v2829_v8 = vld [vmem:[%s3978_s28 + $0xe8] sm:$0xf] }
  0x27   : > { %v2826_v18 = vor.u32 %v3625_v12, %v2823_v13  ;;  %v3788_v23 = vld [vmem:[%s4712_s1 + $0x278] sm:$0xff]  ;;  %v3633_v9 = vld [vmem:[%s3978_s28 + $0x11c] sm:$0xf0]  ;;  %v3626_v10 = vld [vmem:[%s3978_s28 + $0xec] sm:$0xf] }
  0x28   : > { %v2831_v11 = vld [vmem:[%s3978_s28 + $0x120] sm:$0xf0]  ;;  %v2837_v12 = vld [vmem:[%s3978_s28 + $0xf0] sm:$0xf]  ;;  %v3634_v13 = vld [vmem:[%s3978_s28 + $0x124] sm:$0xf0] }
  0x29   : > { %3824 = vmatpush.bf16.msra.mxu2 %v3709_v14  ;;  %1830 = vmatpush.bf16.msra.mxu0 %v3709_v14  ;;  %v3741_v14 = vld [vmem:[%s4712_s1 + $0x100] sm:$0xff] }
  0x2a   : > { %3832 = vmatpush.bf16.msra.mxu3 %v3717_v15  ;;  %1879 = vmatpush.bf16.msra.mxu1 %v3717_v15  ;;  %v3046_v15 = vor.u32 %v3688_v7, %v3045_v6  ;;  %v3777_v6 = vld [vmem:[%s4712_s1 + $0x220] sm:$0xff] }
  0x2b   : > { %v3785_v7 = vld [vmem:[%s4712_s1 + $0x260] sm:$0xff] }
  0x2c   : > { %1851 = vmatmul.bf16.vlgmr.msra.gmra.mxu2 %v2934_v26  ;;  %1831 = vmatmul.bf16.vlgmr.msra.gmra.mxu0 %v2710_v28  ;;  %v3695_v26 = vld [vmem:[%s3978_s28 + $0x314] sm:$0xf]  ;;  %v2877_v28 = vld [vmem:[%s3978_s28 + $0x150] sm:$0xf] }
  0x2d   : > { %1921 = vmatpush.bf16.msrb.mxu2 %v3732_v24  ;;  %1900 = vmatmul.bf16.vlgmr.msra.gmra.mxu3 %v2938_v27  ;;  %v3101_v24 = vld [vmem:[%s3978_s28 + $0x310] sm:$0xf]  ;;  %v3103_v27 = vld [vmem:[%s3978_s28 + $0x348] sm:$0xf0] }
  0x2e   : > { %1970 = vmatpush.bf16.msrb.mxu3 %v3740_v25  ;;  %1880 = vmatmul.bf16.vlgmr.msra.gmra.mxu1 %v2714_v29  ;;  %v3702_v25 = vld [vmem:[%s3978_s28 + $0x344] sm:$0xf0] }
  0x2f   : > { %2019 = vmatpush.bf16.msrb.mxu0 %v3748_v30  ;;  %2068 = vmatpush.bf16.msrb.mxu1 %v3756_v31  ;;  %v3646_v29 = vld [vmem:[%s3978_s28 + $0x184] sm:$0xf0]  ;;  %v3639_v30 = vld [vmem:[%s3978_s28 + $0x154] sm:$0xf]  ;;  %v2879_v31 = vld [vmem:[%s3978_s28 + $0x188] sm:$0xf0] }
  0x31   : > { %1922 = vmatpush.bf16.msrb.mxu2 %v3731_v32  ;;  %v3102_v32 = vor.u32 %v3702_v25, %v3101_v24  ;;  %v3647_v24 = vld [vmem:[%s3978_s28 + $0x18c] sm:$0xf0]  ;;  %v3640_v25 = vld [vmem:[%s3978_s28 + $0x15c] sm:$0xf] }
  0x32   : > { %1971 = vmatpush.bf16.msrb.mxu3 %v3739_v33  ;;  %v3106_v33 = vor.u32 %v3695_v26, %v3103_v27  ;;  %v2887_v26 = vld [vmem:[%s3978_s28 + $0x190] sm:$0xf0]  ;;  %v2893_v27 = vld [vmem:[%s3978_s28 + $0x160] sm:$0xf] }
  0x33   : > { %2020 = vmatpush.bf16.msrb.mxu0 %v3747_v34  ;;  %2069 = vmatpush.bf16.msrb.mxu1 %v3755_v35  ;;  %v2878_v34 = vor.u32 %v3646_v29, %v2877_v28  ;;  %v2882_v35 = vor.u32 %v3639_v30, %v2879_v31  ;;  %v3648_v28 = vld [vmem:[%s3978_s28 + $0x194] sm:$0xf0]  ;;  %v3641_v29 = vld [vmem:[%s3978_s28 + $0x164] sm:$0xf]  ;;  %v2895_v30 = vld [vmem:[%s3978_s28 + $0x198] sm:$0xf0] }
  0x35   : > { %1923 = vmatpush.bf16.msrb.mxu2 %v3730_v36  ;;  %v3763_v36 = vld [vmem:[%s4712_s1 + $0x1b0] sm:$0xff] }
  0x36   : > { %1972 = vmatpush.bf16.msrb.mxu3 %v3738_v37  ;;  %v3771_v37 = vld [vmem:[%s4712_s1 + $0x1f0] sm:$0xff] }
  0x37   : > { %2021 = vmatpush.bf16.msrb.mxu0 %v3746_v38  ;;  %2070 = vmatpush.bf16.msrb.mxu1 %v3754_v39  ;;  %v3779_v38 = vld [vmem:[%s4712_s1 + $0x230] sm:$0xff] }
  0x38   : > { %v3787_v39 = vld [vmem:[%s4712_s1 + $0x270] sm:$0xff] }
  0x39   : > { %1924 = vmatpush.bf16.msrb.mxu2 %v3729_v41  ;;  %v3605_v41 = vld [vmem:[%s3978_s28 + $0x3c] sm:$0xf0] }
  0x3a   : > { %1973 = vmatpush.bf16.msrb.mxu3 %v3737_v42  ;;  %v3598_v42 = vld [vmem:[%s3978_s28 + $0xc] sm:$0xf]  ;;  %v2718_v48 = vor.u32 %v3605_v41, %v2717_v40  ;;  %v3661_v40 = vld [vmem:[%s3978_s28 + $0x1fc] sm:$0xf0] }
  0x3b   : > { %2022 = vmatpush.bf16.msrb.mxu0 %v3745_v50  ;;  %2071 = vmatpush.bf16.msrb.mxu1 %v3753_v51  ;;  %v2722_v49 = vor.u32 %v3598_v42, %v2719_v43  ;;  %v2726_v50 = vor.u32 %v3606_v45, %v2725_v44  ;;  %v2730_v51 = vor.u32 %v3599_v46, %v2727_v47  ;;  %v3654_v41 = vld [vmem:[%s3978_s28 + $0x1cc] sm:$0xf]  ;;  %v2943_v42 = vld [vmem:[%s3978_s28 + $0x200] sm:$0xf0]  ;;  %v2949_v43 = vld [vmem:[%s3978_s28 + $0x1d0] sm:$0xf] }
  0x3c   : > { %1856 = vmatmul.bf16.gmra.mxu2 %v2990_v54  ;;  %1836 = vmatmul.bf16.gmra.mxu0 %v2766_v56  ;;  %v3778_v54 = vld [vmem:[%s4712_s1 + $0x228] sm:$0xff]  ;;  %v2773_v56 = vld [vmem:[%s3978_s28 + $0x78] sm:$0xf]  ;;  %v3655_v45 = vld [vmem:[%s3978_s28 + $0x1d4] sm:$0xf] }
  0x3d   : > { %1925 = vmatpush.bf16.msrb.mxu2 %v3728_v52  ;;  %1905 = vmatmul.bf16.gmra.mxu3 %v2994_v55  ;;  %v3762_v52 = vld [vmem:[%s4712_s1 + $0x1a8] sm:$0xff] }
  0x3e   : > { %1974 = vmatpush.bf16.msrb.mxu3 %v3736_v53  ;;  %1885 = vmatmul.bf16.gmra.mxu1 %v2770_v57  ;;  %v3770_v53 = vld [vmem:[%s4712_s1 + $0x1e8] sm:$0xff]  ;;  %v3619_v57 = vld [vmem:[%s3978_s28 + $0xac] sm:$0xf0] }
  0x3f   : > { %2023 = vmatpush.bf16.msrb.mxu0 %v3744_v58  ;;  %2072 = vmatpush.bf16.msrb.mxu1 %v3752_v59  ;;  %v3786_v55 = vld [vmem:[%s4712_s1 + $0x268] sm:$0xff]  ;;  %v3612_v58 = vld [vmem:[%s3978_s28 + $0x7c] sm:$0xf]  ;;  %v2775_v59 = vld [vmem:[%s3978_s28 + $0xb0] sm:$0xf0] }
  0x40   : > { %v3662_v44 = vld [vmem:[%s3978_s28 + $0x204] sm:$0xf0]  ;;  %v2951_v46 = vld [vmem:[%s3978_s28 + $0x208] sm:$0xf0] }
  0x41   : > { %1926 = vmatpush.bf16.msrb.mxu2 %v3727_v60  ;;  %v2781_v60 = vld [vmem:[%s3978_s28 + $0x80] sm:$0xf] }
  0x42   : > { %1975 = vmatpush.bf16.msrb.mxu3 %v3735_v61  ;;  %v3620_v61 = vld [vmem:[%s3978_s28 + $0xb4] sm:$0xf0] }
  0x43   : > { %2024 = vmatpush.bf16.msrb.mxu0 %v3743_v62  ;;  %2073 = vmatpush.bf16.msrb.mxu1 %v3751_v63  ;;  %v3613_v62 = vld [vmem:[%s3978_s28 + $0x84] sm:$0xf]  ;;  %v2783_v63 = vld [vmem:[%s3978_s28 + $0xb8] sm:$0xf0] }
  0x45   : > { %1927 = vmatpush.bf16.msrb.mxu2 %v3726_v0  ;;  %v2774_v0 = vor.u32 %v3619_v57, %v2773_v56  ;;  %v3766_v56 = vld [vmem:[%s4712_s1 + $0x1c8] sm:$0xff] }
  0x46   : > { %1976 = vmatpush.bf16.msrb.mxu3 %v3734_v1  ;;  %v2778_v1 = vor.u32 %v3612_v58, %v2775_v59 }
  0x47   : > { %2025 = vmatpush.bf16.msrb.mxu0 %v3742_v2  ;;  %2074 = vmatpush.bf16.msrb.mxu1 %v3750_v3  ;;  %v2782_v2 = vor.u32 %v3620_v61, %v2781_v60  ;;  %v2786_v3 = vor.u32 %v3613_v62, %v2783_v63  ;;  %v3774_v63 = vld [vmem:[%s4712_s1 + $0x208] sm:$0xff] }
  0x49   : > { %1928 = vmatpush.bf16.msrb.mxu2 %v3725_v4  ;;  %v3761_v4 = vld [vmem:[%s4712_s1 + $0x1a0] sm:$0xff] }
  0x4a   : > { %1977 = vmatpush.bf16.msrb.mxu3 %v3733_v5  ;;  %v3769_v5 = vld [vmem:[%s4712_s1 + $0x1e0] sm:$0xff] }
  0x4b   : > { %2026 = vmatpush.bf16.msrb.mxu0 %v3741_v14  ;;  %2075 = vmatpush.bf16.msrb.mxu1 %v3749_v19  ;;  %v3627_v14 = vld [vmem:[%s3978_s28 + $0xf4] sm:$0xf] }
  0x4c   : > { %1861 = vmatmul.bf16.gmra.mxu2 %v3046_v15  ;;  %1841 = vmatmul.bf16.gmra.mxu0 %v2822_v17  ;;  %v2839_v15 = vld [vmem:[%s3978_s28 + $0x128] sm:$0xf0]  ;;  %v2834_v17 = vor.u32 %v3626_v10, %v2831_v11 }
  0x4d   : > { %1910 = vmatmul.bf16.gmra.mxu3 %v3050_v16  ;;  %2117 = vmatpush.bf16.msra.mxu2 %v3764_v20  ;;  %v2830_v16 = vor.u32 %v3633_v9, %v2829_v8  ;;  %v2842_v19 = vor.u32 %v3627_v14, %v2839_v15  ;;  %v3760_v20 = vld [vmem:[%s4712_s1 + $0x198] sm:$0xff] }
  0x4e   : > { %1890 = vmatmul.bf16.gmra.mxu1 %v2826_v18  ;;  %2166 = vmatpush.bf16.msra.mxu3 %v3772_v21  ;;  %v2838_v18 = vor.u32 %v3634_v13, %v2837_v12  ;;  %v3768_v21 = vld [vmem:[%s4712_s1 + $0x1d8] sm:$0xff]  ;;  %v3782_v13 = vld [vmem:[%s4712_s1 + $0x248] sm:$0xff] }
  0x4f   : > { %2215 = vmatpush.bf16.msra.mxu0 %v3780_v22  ;;  %2264 = vmatpush.bf16.msra.mxu1 %v3788_v23  ;;  %v3776_v22 = vld [vmem:[%s4712_s1 + $0x218] sm:$0xff] }
  0x50   : > { %v2885_v23 = vld [vmem:[%s3978_s28 + $0x158] sm:$0xf] }
  0x51   : > { %2118 = vmatpush.bf16.msra.mxu2 %v3763_v36  ;;  %v2886_v31 = vor.u32 %v3647_v24, %v2885_v23  ;;  %v3759_v36 = vld [vmem:[%s4712_s1 + $0x190] sm:$0xff] }
  0x52   : > { %2167 = vmatpush.bf16.msra.mxu3 %v3771_v37  ;;  %v3767_v37 = vld [vmem:[%s4712_s1 + $0x1d0] sm:$0xff] }
  0x53   : > { %2216 = vmatpush.bf16.msra.mxu0 %v3779_v38  ;;  %2265 = vmatpush.bf16.msra.mxu1 %v3787_v39  ;;  %v3775_v38 = vld [vmem:[%s4712_s1 + $0x210] sm:$0xff]  ;;  %v2941_v39 = vld [vmem:[%s3978_s28 + $0x1c8] sm:$0xf] }
  0x54   : > { %v2942_v47 = vor.u32 %v3661_v40, %v2941_v39 }
  0x55   : > { %2119 = vmatpush.bf16.msra.mxu2 %v3762_v52 }
  0x56   : > { %2168 = vmatpush.bf16.msra.mxu3 %v3770_v53 }
  0x57   : > { %2217 = vmatpush.bf16.msra.mxu0 %v3778_v54  ;;  %2266 = vmatpush.bf16.msra.mxu1 %v3786_v55  ;;  %v3758_v55 = vld [vmem:[%s4712_s1 + $0x188] sm:$0xff] }
  0x59   : > { %2120 = vmatpush.bf16.msra.mxu2 %v3761_v4  ;;  %v3005_v4 = vld [vmem:[%s3978_s28 + $0x240] sm:$0xf] }
  0x5a   : > { %2169 = vmatpush.bf16.msra.mxu3 %v3769_v5  ;;  %v3676_v5 = vld [vmem:[%s3978_s28 + $0x274] sm:$0xf0] }
  0x5b   : > { %2218 = vmatpush.bf16.msra.mxu0 %v3777_v6  ;;  %2267 = vmatpush.bf16.msra.mxu1 %v3785_v7  ;;  %v3669_v6 = vld [vmem:[%s3978_s28 + $0x244] sm:$0xf]  ;;  %v3007_v7 = vld [vmem:[%s3978_s28 + $0x278] sm:$0xf0]  ;;  %v3006_v14 = vor.u32 %v3676_v5, %v3005_v4 }
  0x5c   : > { %1866 = vmatmul.bf16.gmra.mxu2 %v3102_v32  ;;  %1846 = vmatmul.bf16.gmra.mxu0 %v2878_v34  ;;  %v2890_v32 = vor.u32 %v3640_v25, %v2887_v26  ;;  %v2894_v34 = vor.u32 %v3648_v28, %v2893_v27  ;;  %v3010_v15 = vor.u32 %v3669_v6, %v3007_v7  ;;  %v3773_v27 = vld [vmem:[%s4712_s1 + $0x200] sm:$0xff]  ;;  %v3053_v28 = vld [vmem:[%s3978_s28 + $0x2a8] sm:$0xf] }
  0x5d   : > { %1915 = vmatmul.bf16.gmra.mxu3 %v3106_v33  ;;  %2121 = vmatpush.bf16.msra.mxu2 %v3760_v20  ;;  %v3784_v33 = vld [vmem:[%s4712_s1 + $0x258] sm:$0xff]  ;;  %v3765_v20 = vld [vmem:[%s4712_s1 + $0x1c0] sm:$0xff] }
  0x5e   : > { %1895 = vmatmul.bf16.gmra.mxu1 %v2882_v35  ;;  %2170 = vmatpush.bf16.msra.mxu3 %v3768_v21  ;;  %v2898_v35 = vor.u32 %v3641_v29, %v2895_v30  ;;  %v3689_v29 = vld [vmem:[%s3978_s28 + $0x2dc] sm:$0xf0]  ;;  %v3682_v30 = vld [vmem:[%s3978_s28 + $0x2ac] sm:$0xf] }
  0x5f   : > { %2219 = vmatpush.bf16.msra.mxu0 %v3776_v22  ;;  %2268 = vmatpush.bf16.msra.mxu1 %v3784_v33  ;;  %v3690_v33 = vld [vmem:[%s3978_s28 + $0x2e4] sm:$0xf0]  ;;  %v3054_v39 = vor.u32 %v3689_v29, %v3053_v28  ;;  %v3811_v28 = vld [vmem:[%s4712_s1 + $0x330] sm:$0xff]  ;;  %v3600_v29 = vld [vmem:[%s3978_s28 + $0x1c] sm:$0xf] }
  0x61   : > { %2122 = vmatpush.bf16.msra.mxu2 %v3759_v36 }
  0x62   : > { %2171 = vmatpush.bf16.msra.mxu3 %v3767_v37 }
  0x63   : > { %2220 = vmatpush.bf16.msra.mxu0 %v3775_v38 }
  0x65   : > { %2123 = vmatpush.bf16.msra.mxu2 %v3758_v55 }
  0x66   : > { %2172 = vmatpush.bf16.msra.mxu3 %v3766_v56  ;;  %v3109_v56 = vld [vmem:[%s3978_s28 + $0x318] sm:$0xf] }
  0x67   : > { %2221 = vmatpush.bf16.msra.mxu0 %v3774_v63  ;;  %v3117_v63 = vld [vmem:[%s3978_s28 + $0x320] sm:$0xf] }
  0x6a   : > { %2173 = vmatpush.bf16.msra.mxu3 %v3765_v20 }
  0x6b   : > { %2222 = vmatpush.bf16.msra.mxu0 %v3773_v27  ;;  %v3607_v27 = vld [vmem:[%s3978_s28 + $0x4c] sm:$0xf0] }
  0x6c   : > { %1929 = vmatmul.bf16.vlgmr.msrb.gmra.mxu2 %v2718_v48  ;;  %2027 = vmatmul.bf16.vlgmr.msrb.gmra.mxu0 %v2726_v50  ;;  %v2946_v48 = vor.u32 %v3654_v41, %v2943_v42  ;;  %v2950_v50 = vor.u32 %v3662_v44, %v2949_v43  ;;  %v3781_v41 = vld [vmem:[%s4712_s1 + $0x240] sm:$0xff] }
  0x6d   : > { %1978 = vmatmul.bf16.vlgmr.msrb.gmra.mxu3 %v2722_v49  ;;  %v3783_v49 = vld [vmem:[%s4712_s1 + $0x250] sm:$0xff] }
  0x6e   : > { %2076 = vmatmul.bf16.vlgmr.msrb.gmra.mxu1 %v2730_v51  ;;  %v2954_v51 = vor.u32 %v3655_v45, %v2951_v46 }
  0x6f   : > { %2269 = vmatpush.bf16.msra.mxu1 %v3783_v49 }
  0x73   : > { %2270 = vmatpush.bf16.msra.mxu1 %v3782_v13 }
  0x77   : > { %2271 = vmatpush.bf16.msra.mxu1 %v3781_v41 }
  0x7c   : > { %1934 = vmatmul.bf16.gmra.mxu2 %v2774_v0  ;;  %2032 = vmatmul.bf16.gmra.mxu0 %v2782_v2  ;;  %v2997_v0 = vld [vmem:[%s3978_s28 + $0x238] sm:$0xf]  ;;  %v3668_v2 = vld [vmem:[%s3978_s28 + $0x23c] sm:$0xf] }
  0x7d   : > { %1983 = vmatmul.bf16.gmra.mxu3 %v2778_v1  ;;  %v3675_v1 = vld [vmem:[%s3978_s28 + $0x26c] sm:$0xf0] }
  0x7e   : > { %2081 = vmatmul.bf16.gmra.mxu1 %v2786_v3  ;;  %v2999_v3 = vld [vmem:[%s3978_s28 + $0x270] sm:$0xf0]  ;;  %v2998_v11 = vor.u32 %v3675_v1, %v2997_v0  ;;  %v3704_v0 = vld [vmem:[%s3978_s28 + $0x354] sm:$0xf0]  ;;  %v3697_v1 = vld [vmem:[%s3978_s28 + $0x324] sm:$0xf] }
  0x7f   : > { %v3002_v12 = vor.u32 %v3668_v2, %v2999_v3  ;;  %v3119_v2 = vld [vmem:[%s3978_s28 + $0x358] sm:$0xf0] }
  0x8c   : > { %1939 = vmatmul.bf16.gmra.mxu2 %v2830_v16  ;;  %2037 = vmatmul.bf16.gmra.mxu0 %v2838_v18 }
  0x8d   : > { %1988 = vmatmul.bf16.gmra.mxu3 %v2834_v17 }
  0x8e   : > { %2086 = vmatmul.bf16.gmra.mxu1 %v2842_v19  ;;  %v3757_v19 = vld [vmem:[%s4712_s1 + $0x180] sm:$0xff] }
  0x8f   : > { %2124 = vmatpush.bf16.msra.mxu2 %v3757_v19 }
  0x9c   : > { %1944 = vmatmul.bf16.gmra.mxu2 %v2886_v31  ;;  %2042 = vmatmul.bf16.gmra.mxu0 %v2894_v34  ;;  %v3055_v31 = vld [vmem:[%s3978_s28 + $0x2e0] sm:$0xf0]  ;;  %v3683_v34 = vld [vmem:[%s3978_s28 + $0x2b4] sm:$0xf] }
  0x9d   : > { %1993 = vmatmul.bf16.gmra.mxu3 %v2890_v32  ;;  %v3061_v32 = vld [vmem:[%s3978_s28 + $0x2b0] sm:$0xf]  ;;  %v3058_v40 = vor.u32 %v3682_v30, %v3055_v31  ;;  %v2735_v30 = vld [vmem:[%s3978_s28 + $0x50] sm:$0xf0]  ;;  %v2741_v31 = vld [vmem:[%s3978_s28 + $0x20] sm:$0xf] }
  0x9e   : > { %2091 = vmatmul.bf16.gmra.mxu1 %v2898_v35  ;;  %v3063_v35 = vld [vmem:[%s3978_s28 + $0x2e8] sm:$0xf0]  ;;  %v3062_v42 = vor.u32 %v3690_v33, %v3061_v32  ;;  %v3608_v32 = vld [vmem:[%s3978_s28 + $0x54] sm:$0xf0]  ;;  %v3601_v33 = vld [vmem:[%s3978_s28 + $0x24] sm:$0xf] }
  0x9f   : > { %v3066_v43 = vor.u32 %v3683_v34, %v3063_v35  ;;  %v2743_v34 = vld [vmem:[%s3978_s28 + $0x58] sm:$0xf0]  ;;  %v2742_v41 = vor.u32 %v3608_v32, %v2741_v31 }
  0xa9   : > { %v1832_v52 = vpop.f32.mrf.mxu0 }
  0xab   : > { %v1881_v53 = vpop.f32.mrf.mxu1 }
  0xac   : > { %v4226_v54 = vadd.f32 %v1881_v53, %v1832_v52  ;;  %1949 = vmatmul.bf16.gmra.mxu2 %v2942_v47  ;;  %2047 = vmatmul.bf16.gmra.mxu0 %v2950_v50  ;;  %v3796_v47 = vld [vmem:[%s4712_s1 + $0x2b8] sm:$0xff] }
  0xad   : > { %1998 = vmatmul.bf16.gmra.mxu3 %v2946_v48  ;;  %v3804_v48 = vld [vmem:[%s4712_s1 + $0x2f8] sm:$0xff]  ;;  %2313 = vmatpush.bf16.msrb.mxu2 %v3796_v47  ;;  %v3802_v47 = vld [vmem:[%s4712_s1 + $0x2e8] sm:$0xff] }
  0xae   : > { %2096 = vmatmul.bf16.gmra.mxu1 %v2954_v51  ;;  %2362 = vmatpush.bf16.msrb.mxu3 %v3804_v48 }
  0xaf   : > { %v1852_v57 = vpop.f32.mrf.mxu2 }
  0xb0   : > { %v1901_v58 = vpop.f32.mrf.mxu3 }
  0xb1   : > { %v4234_v59 = vadd.f32 %v1901_v58, %v1852_v57  ;;  %v1834_v60 = vpop.f32.mrf.mxu0  ;;  %v3703_v57 = vld [vmem:[%s3978_s28 + $0x34c] sm:$0xf0]  ;;  %v3812_v58 = vld [vmem:[%s4712_s1 + $0x338] sm:$0xff] }
  0xb2   : > { %2411 = vmatpush.bf16.msrb.mxu0 %v3812_v58  ;;  %v3110_v6 = vor.u32 %v3703_v57, %v3109_v56  ;;  %v2789_v58 = vld [vmem:[%s3978_s28 + $0x88] sm:$0xf] }
  0xb3   : > { %v1883_v61 = vpop.f32.mrf.mxu1 }
  0xb4   : > { %v4236_v62 = vadd.f32 %v1883_v61, %v1834_v60  ;;  %v3696_v60 = vld [vmem:[%s3978_s28 + $0x31c] sm:$0xf]  ;;  %v3111_v61 = vld [vmem:[%s3978_s28 + $0x350] sm:$0xf0] }
  0xb5   : > { %v3114_v7 = vor.u32 %v3696_v60, %v3111_v61  ;;  %v3621_v60 = vld [vmem:[%s3978_s28 + $0xbc] sm:$0xf0]  ;;  %v3810_v61 = vld [vmem:[%s4712_s1 + $0x328] sm:$0xff] }
  0xb6   : > { %2412 = vmatpush.bf16.msrb.mxu0 %v3811_v28 }
  0xb7   : > { %v1854_v8 = vpop.f32.mrf.mxu2 }
  0xb8   : > { %v1903_v9 = vpop.f32.mrf.mxu3 }
  0xb9   : > { %v4249_v10 = vadd.f32 %v1903_v9, %v1854_v8  ;;  %v1837_v16 = vpop.f32.mrf.mxu0  ;;  %v3118_v8 = vor.u32 %v3704_v0, %v3117_v63  ;;  %v3122_v9 = vor.u32 %v3697_v1, %v3119_v2  ;;  %v3614_v63 = vld [vmem:[%s3978_s28 + $0x8c] sm:$0xf]  ;;  %v2791_v0 = vld [vmem:[%s3978_s28 + $0xc0] sm:$0xf0]  ;;  %v2797_v1 = vld [vmem:[%s3978_s28 + $0x90] sm:$0xf] }
  0xba   : > { %v3622_v2 = vld [vmem:[%s3978_s28 + $0xc4] sm:$0xf0]  ;;  %2413 = vmatpush.bf16.msrb.mxu0 %v3810_v61  ;;  %v3792_v61 = vld [vmem:[%s4712_s1 + $0x298] sm:$0xff] }
  0xbb   : > { %v1886_v17 = vpop.f32.mrf.mxu1 }
  0xbc   : > { %v4254_v18 = vadd.f32 %v1886_v17, %v1837_v16  ;;  %1954 = vmatmul.bf16.gmra.mxu2 %v2998_v11  ;;  %2052 = vmatmul.bf16.gmra.mxu0 %v3006_v14  ;;  %v3816_v14 = vld [vmem:[%s4712_s1 + $0x358] sm:$0xff]  ;;  %v3803_v16 = vld [vmem:[%s4712_s1 + $0x2f0] sm:$0xff] }
  0xbd   : > { %2003 = vmatmul.bf16.gmra.mxu3 %v3002_v12  ;;  %2464 = vmatpush.bf16.msrb.mxu1 %v3816_v14 }
  0xbe   : > { %2101 = vmatmul.bf16.gmra.mxu1 %v3010_v15  ;;  %v3795_v15 = vld [vmem:[%s4712_s1 + $0x2b0] sm:$0xff]  ;;  %2363 = vmatpush.bf16.msrb.mxu3 %v3803_v16 }
  0xbf   : > { %v1857_v21 = vpop.f32.mrf.mxu2  ;;  %2314 = vmatpush.bf16.msrb.mxu2 %v3795_v15 }
  0xc0   : > { %v1906_v22 = vpop.f32.mrf.mxu3 }
  0xc1   : > { %v4262_v23 = vadd.f32 %v1906_v22, %v1857_v21  ;;  %v1839_v24 = vpop.f32.mrf.mxu0 }
  0xc2   : > { %2364 = vmatpush.bf16.msrb.mxu3 %v3802_v47 }
  0xc3   : > { %v1888_v25 = vpop.f32.mrf.mxu1 }
  0xc4   : > { %v4264_v26 = vadd.f32 %v1888_v25, %v1839_v24  ;;  %v2733_v25 = vld [vmem:[%s3978_s28 + $0x18] sm:$0xf] }
  0xc7   : > { %v1859_v36 = vpop.f32.mrf.mxu2 }
  0xc8   : > { %v1908_v37 = vpop.f32.mrf.mxu3 }
  0xc9   : > { %v4277_v38 = vadd.f32 %v1908_v37, %v1859_v36  ;;  %v1842_v44 = vpop.f32.mrf.mxu0 }
  0xcb   : > { %v1891_v45 = vpop.f32.mrf.mxu1 }
  0xcc   : > { %v4282_v46 = vadd.f32 %v1891_v45, %v1842_v44  ;;  %1959 = vmatmul.bf16.gmra.mxu2 %v3054_v39  ;;  %2057 = vmatmul.bf16.gmra.mxu0 %v3062_v42  ;;  %v2734_v39 = vor.u32 %v3607_v27, %v2733_v25  ;;  %v2746_v42 = vor.u32 %v3601_v33, %v2743_v34  ;;  %v3794_v45 = vld [vmem:[%s4712_s1 + $0x2a8] sm:$0xff]  ;;  %v2845_v34 = vld [vmem:[%s3978_s28 + $0xf8] sm:$0xf] }
  0xcd   : > { %2008 = vmatmul.bf16.gmra.mxu3 %v3058_v40  ;;  %v2738_v40 = vor.u32 %v3600_v29, %v2735_v30  ;;  %2315 = vmatpush.bf16.msrb.mxu2 %v3794_v45 }
  0xce   : > { %2106 = vmatmul.bf16.gmra.mxu1 %v3066_v43 }
  0xcf   : > { %v1862_v49 = vpop.f32.mrf.mxu2 }
  0xd0   : > { %v1911_v50 = vpop.f32.mrf.mxu3 }
  0xd1   : > { %v4290_v51 = vadd.f32 %v1911_v50, %v1862_v49  ;;  %v1844_v52 = vpop.f32.mrf.mxu0 }
  0xd3   : > { %v1893_v53 = vpop.f32.mrf.mxu1 }
  0xd4   : > { %v4292_v55 = vadd.f32 %v1893_v53, %v1844_v52 }
  0xd7   : > { %v1864_v3 = vpop.f32.mrf.mxu2 }
  0xd8   : > { %v1913_v4 = vpop.f32.mrf.mxu3 }
  0xd9   : > { %v4305_v5 = vadd.f32 %v1913_v4, %v1864_v3  ;;  %v1847_v11 = vpop.f32.mrf.mxu0  ;;  %v3615_v3 = vld [vmem:[%s3978_s28 + $0x94] sm:$0xf]  ;;  %v2799_v4 = vld [vmem:[%s3978_s28 + $0xc8] sm:$0xf0] }
  0xda   : > { %v2802_v14 = vor.u32 %v3615_v3, %v2799_v4 }
  0xdb   : > { %v1896_v12 = vpop.f32.mrf.mxu1 }
  0xdc   : > { %v4307_v13 = vadd.f32 %v1896_v12, %v1847_v11  ;;  %1964 = vmatmul.bf16.gmra.mxu2 %v3110_v6  ;;  %2062 = vmatmul.bf16.gmra.mxu0 %v3118_v8  ;;  %v2794_v11 = vor.u32 %v3614_v63, %v2791_v0  ;;  %v2798_v12 = vor.u32 %v3622_v2, %v2797_v1 }
  0xdd   : > { %2013 = vmatmul.bf16.gmra.mxu3 %v3114_v7 }
  0xde   : > { %2111 = vmatmul.bf16.gmra.mxu1 %v3122_v9  ;;  %v2790_v9 = vor.u32 %v3621_v60, %v2789_v58 }
  0xdf   : > { %v1867_v17 = vpop.f32.mrf.mxu2 }
  0xe0   : > { %v1916_v19 = vpop.f32.mrf.mxu3 }
  0xe1   : > { %v4318_v20 = vadd.f32 %v1916_v19, %v1867_v17  ;;  %v1849_v21 = vpop.f32.mrf.mxu0 }
  0xe3   : > { %v1898_v22 = vpop.f32.mrf.mxu1 }
  0xe4   : > { %v4320_v24 = vadd.f32 %v1898_v22, %v1849_v21  ;;  %v3815_v21 = vld [vmem:[%s4712_s1 + $0x350] sm:$0xff]  ;;  %v3793_v22 = vld [vmem:[%s4712_s1 + $0x2a0] sm:$0xff] }
  0xe5   : > { %2465 = vmatpush.bf16.msrb.mxu1 %v3815_v21  ;;  %2316 = vmatpush.bf16.msrb.mxu2 %v3793_v22 }
  0xe7   : > { %v1869_v35 = vpop.f32.mrf.mxu2 }
  0xe8   : > { %v1918_v36 = vpop.f32.mrf.mxu3 }
  0xe9   : > { %v4333_v37 = vadd.f32 %v1918_v36, %v1869_v35  ;;  %v2028_v43 = vpop.f32.mrf.mxu0  ;;  %v3635_v35 = vld [vmem:[%s3978_s28 + $0x12c] sm:$0xf0]  ;;  %v3809_v36 = vld [vmem:[%s4712_s1 + $0x320] sm:$0xff]  ;;  %2317 = vmatpush.bf16.msrb.mxu2 %v3792_v61 }
  0xea   : > { %2414 = vmatpush.bf16.msrb.mxu0 %v3809_v36  ;;  %v3791_v36 = vld [vmem:[%s4712_s1 + $0x290] sm:$0xff] }
  0xeb   : > { %v2077_v44 = vpop.f32.mrf.mxu1 }
  0xec   : > { %2125 = vmatmul.bf16.vlgmr.msra.gmra.mxu2 %v2734_v39  ;;  %2223 = vmatmul.bf16.vlgmr.msra.gmra.mxu0 %v2742_v41  ;;  %v3628_v39 = vld [vmem:[%s3978_s28 + $0xfc] sm:$0xf]  ;;  %v2853_v41 = vld [vmem:[%s3978_s28 + $0x100] sm:$0xf] }
  0xed   : > { %2174 = vmatmul.bf16.vlgmr.msra.gmra.mxu3 %v2738_v40  ;;  %v2847_v40 = vld [vmem:[%s3978_s28 + $0x130] sm:$0xf0]  ;;  %2318 = vmatpush.bf16.msrb.mxu2 %v3791_v36 }
  0xee   : > { %2272 = vmatmul.bf16.vlgmr.msra.gmra.mxu1 %v2746_v42  ;;  %v3636_v42 = vld [vmem:[%s3978_s28 + $0x134] sm:$0xf0] }
  0xef   : > { %v1930_v48 = vpop.f32.mrf.mxu2 }
  0xf0   : > { %v1979_v49 = vpop.f32.mrf.mxu3  ;;  %v1931_v50 = vadd.f32 %v1930_v48, %v4226_v54 }
  0xf1   : > { %v2030_v53 = vpop.f32.mrf.mxu0 }
  0xf2   : > { %v1980_v52 = vadd.f32 %v1979_v49, %v1931_v50  ;;  %v2846_v49 = vor.u32 %v3635_v35, %v2845_v34  ;;  %v2850_v50 = vor.u32 %v3628_v39, %v2847_v40  ;;  %v3814_v35 = vld [vmem:[%s4712_s1 + $0x348] sm:$0xff] }
  0xf3   : > { %v2079_v56 = vpop.f32.mrf.mxu1  ;;  %2466 = vmatpush.bf16.msrb.mxu1 %v3814_v35 }
  0xf4   : > { %v2029_v57 = vadd.f32 %v2028_v43, %v1980_v52  ;;  %v3629_v43 = vld [vmem:[%s3978_s28 + $0x104] sm:$0xf]  ;;  %v2854_v52 = vor.u32 %v3636_v42, %v2853_v41 }
  0xf6   : > { %v4353_v6 = vadd.f32 %v2077_v44, %v2029_v57  ;;  %v2855_v44 = vld [vmem:[%s3978_s28 + $0x138] sm:$0xf0] }
  0xf7   : > { %v1932_v54 = vpop.f32.mrf.mxu2 }
  0xf8   : > { %v1981_v7 = vpop.f32.mrf.mxu3  ;;  %v1933_v8 = vadd.f32 %v1932_v54, %v4236_v62  ;;  %v3801_v62 = vld [vmem:[%s4712_s1 + $0x2e0] sm:$0xff] }
  0xf9   : > { %v2033_v16 = vpop.f32.mrf.mxu0  ;;  %2365 = vmatpush.bf16.msrb.mxu3 %v3801_v62 }
  0xfa   : > { %v1982_v15 = vadd.f32 %v1981_v7, %v1933_v8  ;;  %v2901_v8 = vld [vmem:[%s3978_s28 + $0x168] sm:$0xf] }
  0xfb   : > { %v2082_v17 = vpop.f32.mrf.mxu1 }
  0xfc   : > { %v2031_v19 = vadd.f32 %v2030_v53, %v1982_v15  ;;  %2130 = vmatmul.bf16.gmra.mxu2 %v2790_v9  ;;  %2228 = vmatmul.bf16.gmra.mxu0 %v2798_v12  ;;  %v2858_v53 = vor.u32 %v3629_v43, %v2855_v44  ;;  %v3649_v9 = vld [vmem:[%s3978_s28 + $0x19c] sm:$0xf0]  ;;  %v3642_v12 = vld [vmem:[%s3978_s28 + $0x16c] sm:$0xf]  ;;  %v2909_v15 = vld [vmem:[%s3978_s28 + $0x170] sm:$0xf] }
  0xfd   : > { %2179 = vmatmul.bf16.gmra.mxu3 %v2794_v11  ;;  %v3808_v11 = vld [vmem:[%s4712_s1 + $0x318] sm:$0xff] }
  0xfe   : > { %2277 = vmatmul.bf16.gmra.mxu1 %v2802_v14  ;;  %v4365_v25 = vadd.f32 %v2079_v56, %v2031_v19  ;;  %v2903_v14 = vld [vmem:[%s3978_s28 + $0x1a0] sm:$0xf0]  ;;  %v2911_v19 = vld [vmem:[%s3978_s28 + $0x1a8] sm:$0xf0]  ;;  %2415 = vmatpush.bf16.msrb.mxu0 %v3808_v11 }
  0xff   : > { %v1935_v27 = vpop.f32.mrf.mxu2  ;;  %v3790_v11 = vld [vmem:[%s4712_s1 + $0x288] sm:$0xff] }
 0x100   : > { %v1984_v28 = vpop.f32.mrf.mxu3  ;;  %v1936_v29 = vadd.f32 %v1935_v27, %v4254_v18  ;;  %v2902_v27 = vor.u32 %v3649_v9, %v2901_v8  ;;  %2319 = vmatpush.bf16.msrb.mxu2 %v3790_v11 }
 0x101   : > { %v2035_v31 = vpop.f32.mrf.mxu0 }
 0x102   : > { %v1985_v30 = vadd.f32 %v1984_v28, %v1936_v29  ;;  %v2906_v28 = vor.u32 %v3642_v12, %v2903_v14 }
 0x103   : > { %v2084_v32 = vpop.f32.mrf.mxu1 }
 0x104   : > { %v2034_v33 = vadd.f32 %v2033_v16, %v1985_v30  ;;  %v3650_v16 = vld [vmem:[%s3978_s28 + $0x1a4] sm:$0xf0] }
 0x105   : > { %v2910_v29 = vor.u32 %v3650_v16, %v2909_v15 }
 0x106   : > { %v4379_v45 = vadd.f32 %v2082_v17, %v2034_v33  ;;  %v3643_v17 = vld [vmem:[%s3978_s28 + $0x174] sm:$0xf] }
 0x107   : > { %v1937_v18 = vpop.f32.mrf.mxu2  ;;  %v2914_v30 = vor.u32 %v3643_v17, %v2911_v19 }
 0x108   : > { %v1986_v47 = vpop.f32.mrf.mxu3  ;;  %v1938_v48 = vadd.f32 %v1937_v18, %v4264_v26  ;;  %v3800_v26 = vld [vmem:[%s4712_s1 + $0x2d8] sm:$0xff] }
 0x109   : > { %v2038_v57 = vpop.f32.mrf.mxu0  ;;  %2366 = vmatpush.bf16.msrb.mxu3 %v3800_v26 }
 0x10a   : > { %v1987_v56 = vadd.f32 %v1986_v47, %v1938_v48  ;;  %v2957_v48 = vld [vmem:[%s3978_s28 + $0x1d8] sm:$0xf] }
 0x10b   : > { %v2087_v58 = vpop.f32.mrf.mxu1 }
 0x10c   : > { %v2036_v60 = vadd.f32 %v2035_v31, %v1987_v56  ;;  %2135 = vmatmul.bf16.gmra.mxu2 %v2846_v49  ;;  %2233 = vmatmul.bf16.gmra.mxu0 %v2854_v52  ;;  %v3663_v49 = vld [vmem:[%s3978_s28 + $0x20c] sm:$0xf0]  ;;  %v3656_v52 = vld [vmem:[%s3978_s28 + $0x1dc] sm:$0xf]  ;;  %v2965_v56 = vld [vmem:[%s3978_s28 + $0x1e0] sm:$0xf] }
 0x10d   : > { %2184 = vmatmul.bf16.gmra.mxu3 %v2850_v50  ;;  %v3807_v50 = vld [vmem:[%s4712_s1 + $0x310] sm:$0xff] }
 0x10e   : > { %2282 = vmatmul.bf16.gmra.mxu1 %v2858_v53  ;;  %v4388_v63 = vadd.f32 %v2084_v32, %v2036_v60  ;;  %v2959_v53 = vld [vmem:[%s3978_s28 + $0x210] sm:$0xf0]  ;;  %v2967_v60 = vld [vmem:[%s3978_s28 + $0x218] sm:$0xf0]  ;;  %2416 = vmatpush.bf16.msrb.mxu0 %v3807_v50  ;;  %v3789_v50 = vld [vmem:[%s4712_s1 + $0x280] sm:$0xff] }
 0x10f   : > { %v1940_v0 = vpop.f32.mrf.mxu2  ;;  %2320 = vmatpush.bf16.msrb.mxu2 %v3789_v50 }
 0x110   : > { %v1989_v1 = vpop.f32.mrf.mxu3  ;;  %v1941_v2 = vadd.f32 %v1940_v0, %v4282_v46 }
 0x111   : > { %v2040_v4 = vpop.f32.mrf.mxu0 }
 0x112   : > { %v1990_v3 = vadd.f32 %v1989_v1, %v1941_v2  ;;  %v2958_v1 = vor.u32 %v3663_v49, %v2957_v48  ;;  %v2962_v2 = vor.u32 %v3656_v52, %v2959_v53  ;;  %v3813_v49 = vld [vmem:[%s4712_s1 + $0x340] sm:$0xff] }
 0x113   : > { %v2089_v54 = vpop.f32.mrf.mxu1  ;;  %2467 = vmatpush.bf16.msrb.mxu1 %v3813_v49 }
 0x114   : > { %v2039_v7 = vadd.f32 %v2038_v57, %v1990_v3  ;;  %v3664_v57 = vld [vmem:[%s3978_s28 + $0x214] sm:$0xf0] }
 0x115   : > { %v2966_v3 = vor.u32 %v3664_v57, %v2965_v56 }
 0x116   : > { %v4402_v21 = vadd.f32 %v2087_v58, %v2039_v7  ;;  %v3657_v58 = vld [vmem:[%s3978_s28 + $0x1e4] sm:$0xf] }
 0x117   : > { %v1942_v46 = vpop.f32.mrf.mxu2 }
 0x118   : > { %v1991_v22 = vpop.f32.mrf.mxu3  ;;  %v1943_v62 = vadd.f32 %v1942_v46, %v4292_v55  ;;  %v3799_v55 = vld [vmem:[%s4712_s1 + $0x2d0] sm:$0xff] }
 0x119   : > { %v2043_v32 = vpop.f32.mrf.mxu0  ;;  %2367 = vmatpush.bf16.msrb.mxu3 %v3799_v55 }
 0x11a   : > { %v1992_v31 = vadd.f32 %v1991_v22, %v1943_v62  ;;  %v3013_v62 = vld [vmem:[%s3978_s28 + $0x248] sm:$0xf] }
 0x11b   : > { %v2092_v33 = vpop.f32.mrf.mxu1 }
 0x11c   : > { %v2041_v34 = vadd.f32 %v2040_v4, %v1992_v31  ;;  %2140 = vmatmul.bf16.gmra.mxu2 %v2902_v27  ;;  %2238 = vmatmul.bf16.gmra.mxu0 %v2910_v29  ;;  %v2970_v4 = vor.u32 %v3657_v58, %v2967_v60  ;;  %v3677_v27 = vld [vmem:[%s3978_s28 + $0x27c] sm:$0xf0]  ;;  %v3670_v29 = vld [vmem:[%s3978_s28 + $0x24c] sm:$0xf]  ;;  %v3021_v31 = vld [vmem:[%s3978_s28 + $0x250] sm:$0xf] }
 0x11d   : > { %2189 = vmatmul.bf16.gmra.mxu3 %v2906_v28  ;;  %v3806_v28 = vld [vmem:[%s4712_s1 + $0x308] sm:$0xff] }
 0x11e   : > { %2287 = vmatmul.bf16.gmra.mxu1 %v2914_v30  ;;  %v4414_v39 = vadd.f32 %v2089_v54, %v2041_v34  ;;  %v3015_v30 = vld [vmem:[%s3978_s28 + $0x280] sm:$0xf0]  ;;  %v3023_v34 = vld [vmem:[%s3978_s28 + $0x288] sm:$0xf0]  ;;  %2417 = vmatpush.bf16.msrb.mxu0 %v3806_v28 }
 0x11f   : > { %v1945_v40 = vpop.f32.mrf.mxu2 }
 0x120   : > { %v1994_v41 = vpop.f32.mrf.mxu3  ;;  %v1946_v42 = vadd.f32 %v1945_v40, %v4307_v13  ;;  %v3014_v40 = vor.u32 %v3677_v27, %v3013_v62 }
 0x121   : > { %v2045_v44 = vpop.f32.mrf.mxu0 }
 0x122   : > { %v1995_v43 = vadd.f32 %v1994_v41, %v1946_v42  ;;  %v3018_v41 = vor.u32 %v3670_v29, %v3015_v30 }
 0x123   : > { %v2094_v18 = vpop.f32.mrf.mxu1 }
 0x124   : > { %v2044_v47 = vadd.f32 %v2043_v32, %v1995_v43  ;;  %v3678_v32 = vld [vmem:[%s3978_s28 + $0x284] sm:$0xf0] }
 0x125   : > { %v3022_v42 = vor.u32 %v3678_v32, %v3021_v31 }
 0x126   : > { %v4428_v61 = vadd.f32 %v2092_v33, %v2044_v47  ;;  %v3671_v33 = vld [vmem:[%s3978_s28 + $0x254] sm:$0xf] }
 0x127   : > { %v1947_v13 = vpop.f32.mrf.mxu2  ;;  %v3026_v43 = vor.u32 %v3671_v33, %v3023_v34 }
 0x128   : > { %v1996_v26 = vpop.f32.mrf.mxu3  ;;  %v1948_v0 = vadd.f32 %v1947_v13, %v4320_v24  ;;  %v3798_v24 = vld [vmem:[%s4712_s1 + $0x2c8] sm:$0xff] }
 0x129   : > { %v2048_v7 = vpop.f32.mrf.mxu0  ;;  %2368 = vmatpush.bf16.msrb.mxu3 %v3798_v24 }
 0x12a   : > { %v1997_v54 = vadd.f32 %v1996_v26, %v1948_v0  ;;  %v3069_v0 = vld [vmem:[%s3978_s28 + $0x2b8] sm:$0xf] }
 0x12b   : > { %v2097_v8 = vpop.f32.mrf.mxu1 }
 0x12c   : > { %v2046_v9 = vadd.f32 %v2045_v44, %v1997_v54  ;;  %2145 = vmatmul.bf16.gmra.mxu2 %v2958_v1  ;;  %2243 = vmatmul.bf16.gmra.mxu0 %v2966_v3  ;;  %v3691_v1 = vld [vmem:[%s3978_s28 + $0x2ec] sm:$0xf0]  ;;  %v3684_v3 = vld [vmem:[%s3978_s28 + $0x2bc] sm:$0xf]  ;;  %v3077_v54 = vld [vmem:[%s3978_s28 + $0x2c0] sm:$0xf] }
 0x12d   : > { %2194 = vmatmul.bf16.gmra.mxu3 %v2962_v2  ;;  %v3805_v2 = vld [vmem:[%s4712_s1 + $0x300] sm:$0xff] }
 0x12e   : > { %2292 = vmatmul.bf16.gmra.mxu1 %v2970_v4  ;;  %v4437_v12 = vadd.f32 %v2094_v18, %v2046_v9  ;;  %v3071_v4 = vld [vmem:[%s3978_s28 + $0x2f0] sm:$0xf0]  ;;  %v3079_v9 = vld [vmem:[%s3978_s28 + $0x2f8] sm:$0xf0]  ;;  %2418 = vmatpush.bf16.msrb.mxu0 %v3805_v2 }
 0x12f   : > { %v1950_v14 = vpop.f32.mrf.mxu2 }
 0x130   : > { %v1999_v15 = vpop.f32.mrf.mxu3  ;;  %v1951_v16 = vadd.f32 %v1950_v14, %v4234_v59 }
 0x131   : > { %v2050_v19 = vpop.f32.mrf.mxu0 }
 0x132   : > { %v2000_v17 = vadd.f32 %v1999_v15, %v1951_v16  ;;  %v3070_v15 = vor.u32 %v3691_v1, %v3069_v0  ;;  %v3074_v16 = vor.u32 %v3684_v3, %v3071_v4 }
 0x133   : > { %v2099_v46 = vpop.f32.mrf.mxu1 }
 0x134   : > { %v2049_v22 = vadd.f32 %v2048_v7, %v2000_v17  ;;  %v3692_v7 = vld [vmem:[%s3978_s28 + $0x2f4] sm:$0xf0] }
 0x135   : > { %v3078_v17 = vor.u32 %v3692_v7, %v3077_v54  ;;  %v2749_v54 = vld [vmem:[%s3978_s28 + $0x28] sm:$0xf]  ;;  %v3609_v7 = vld [vmem:[%s3978_s28 + $0x5c] sm:$0xf0] }
 0x136   : > { %v4451_v35 = vadd.f32 %v2097_v8, %v2049_v22  ;;  %v3685_v8 = vld [vmem:[%s3978_s28 + $0x2c4] sm:$0xf] }
 0x137   : > { %v1952_v59 = vpop.f32.mrf.mxu2 }
 0x138   : > { %v2001_v36 = vpop.f32.mrf.mxu3  ;;  %v1953_v55 = vadd.f32 %v1952_v59, %v4249_v10  ;;  %v3797_v10 = vld [vmem:[%s4712_s1 + $0x2c0] sm:$0xff]  ;;  %v3125_v59 = vld [vmem:[%s3978_s28 + $0x328] sm:$0xf] }
 0x139   : > { %v2053_v18 = vpop.f32.mrf.mxu0  ;;  %2369 = vmatpush.bf16.msrb.mxu3 %v3797_v10 }
 0x13a   : > { %v2002_v44 = vadd.f32 %v2001_v36, %v1953_v55  ;;  %v3705_v36 = vld [vmem:[%s3978_s28 + $0x35c] sm:$0xf0]  ;;  %v3698_v55 = vld [vmem:[%s3978_s28 + $0x32c] sm:$0xf] }
 0x13b   : > { %v2102_v47 = vpop.f32.mrf.mxu1  ;;  %v3126_v50 = vor.u32 %v3705_v36, %v3125_v59 }
 0x13c   : > { %v2051_v48 = vadd.f32 %v2050_v19, %v2002_v44  ;;  %2150 = vmatmul.bf16.gmra.mxu2 %v3014_v40  ;;  %2248 = vmatmul.bf16.gmra.mxu0 %v3022_v42  ;;  %v3082_v19 = vor.u32 %v3685_v8, %v3079_v9  ;;  %v3127_v40 = vld [vmem:[%s3978_s28 + $0x360] sm:$0xf0]  ;;  %v3706_v42 = vld [vmem:[%s3978_s28 + $0x364] sm:$0xf0]  ;;  %v3135_v44 = vld [vmem:[%s3978_s28 + $0x368] sm:$0xf0] }
 0x13d   : > { %2199 = vmatmul.bf16.gmra.mxu3 %v3018_v41  ;;  %v3133_v41 = vld [vmem:[%s3978_s28 + $0x330] sm:$0xf]  ;;  %v3602_v8 = vld [vmem:[%s3978_s28 + $0x2c] sm:$0xf]  ;;  %v2751_v9 = vld [vmem:[%s3978_s28 + $0x60] sm:$0xf0] }
 0x13e   : > { %2297 = vmatmul.bf16.gmra.mxu1 %v3026_v43  ;;  %v4463_v52 = vadd.f32 %v2099_v46, %v2051_v48  ;;  %v3699_v43 = vld [vmem:[%s3978_s28 + $0x334] sm:$0xf]  ;;  %v3134_v10 = vor.u32 %v3706_v42, %v3133_v41  ;;  %v2805_v41 = vld [vmem:[%s3978_s28 + $0x98] sm:$0xf]  ;;  %v3623_v42 = vld [vmem:[%s3978_s28 + $0xcc] sm:$0xf0] }
 0x13f   : > { %v1955_v53 = vpop.f32.mrf.mxu2 }
 0x140   : > { %v2004_v56 = vpop.f32.mrf.mxu3  ;;  %v1956_v57 = vadd.f32 %v1955_v53, %v4262_v23  ;;  %v3138_v53 = vor.u32 %v3699_v43, %v3135_v44  ;;  %v3616_v43 = vld [vmem:[%s3978_s28 + $0x9c] sm:$0xf]  ;;  %v2807_v44 = vld [vmem:[%s3978_s28 + $0xd0] sm:$0xf0] }
 0x141   : > { %v2055_v60 = vpop.f32.mrf.mxu0 }
 0x142   : > { %v2005_v58 = vadd.f32 %v2004_v56, %v1956_v57 }
 0x143   : > { %v2104_v13 = vpop.f32.mrf.mxu1 }
 0x144   : > { %v2054_v26 = vadd.f32 %v2053_v18, %v2005_v58 }
 0x146   : > { %v4477_v11 = vadd.f32 %v2102_v47, %v2054_v26 }
 0x147   : > { %v1957_v23 = vpop.f32.mrf.mxu2 }
 0x148   : > { %v2006_v24 = vpop.f32.mrf.mxu3  ;;  %v1958_v14 = vadd.f32 %v1957_v23, %v4277_v38  ;;  %v2757_v23 = vld [vmem:[%s3978_s28 + $0x30] sm:$0xf] }
 0x149   : > { %v2058_v22 = vpop.f32.mrf.mxu0 }
 0x14a   : > { %v2007_v46 = vadd.f32 %v2006_v24, %v1958_v14  ;;  %v3610_v24 = vld [vmem:[%s3978_s28 + $0x64] sm:$0xf0]  ;;  %v3603_v14 = vld [vmem:[%s3978_s28 + $0x34] sm:$0xf] }
 0x14b   : > { %v2107_v62 = vpop.f32.mrf.mxu1 }
 0x14c   : > { %v2056_v27 = vadd.f32 %v2055_v60, %v2007_v46  ;;  %2155 = vmatmul.bf16.gmra.mxu2 %v3070_v15  ;;  %2253 = vmatmul.bf16.gmra.mxu0 %v3078_v17  ;;  %v2759_v15 = vld [vmem:[%s3978_s28 + $0x68] sm:$0xf0] }
 0x14d   : > { %2204 = vmatmul.bf16.gmra.mxu3 %v3074_v16 }
 0x14e   : > { %2302 = vmatmul.bf16.gmra.mxu1 %v3082_v19  ;;  %v4480_v38 = vadd.f32 %v2104_v13, %v2056_v27  ;;  %v2762_v27 = vor.u32 %v3603_v14, %v2759_v15  ;;  %v3630_v14 = vld [vmem:[%s3978_s28 + $0x10c] sm:$0xf]  ;;  %v2863_v15 = vld [vmem:[%s3978_s28 + $0x140] sm:$0xf0] }
 0x14f   : > { %v1960_v28 = vpop.f32.mrf.mxu2 }
 0x150   : > { %v2009_v29 = vpop.f32.mrf.mxu3  ;;  %v1961_v30 = vadd.f32 %v1960_v28, %v4290_v51  ;;  %v3130_v51 = vor.u32 %v3698_v55, %v3127_v40 }
 0x151   : > { %v2060_v32 = vpop.f32.mrf.mxu0 }
 0x152   : > { %v2010_v31 = vadd.f32 %v2009_v29, %v1961_v30 }
 0x153   : > { %v2109_v33 = vpop.f32.mrf.mxu1 }
 0x154   : > { %v2059_v34 = vadd.f32 %v2058_v22, %v2010_v31  ;;  %v2750_v22 = vor.u32 %v3609_v7, %v2749_v54 }
 0x156   : > { %v4491_v18 = vadd.f32 %v2107_v62, %v2059_v34  ;;  %v2758_v62 = vor.u32 %v3610_v24, %v2757_v23  ;;  %v2861_v23 = vld [vmem:[%s3978_s28 + $0x108] sm:$0xf]  ;;  %v3637_v24 = vld [vmem:[%s3978_s28 + $0x13c] sm:$0xf0] }
 0x157   : > { %v1962_v47 = vpop.f32.mrf.mxu2 }
 0x158   : > { %v2011_v48 = vpop.f32.mrf.mxu3  ;;  %v1963_v49 = vadd.f32 %v1962_v47, %v4305_v5  ;;  %v2813_v47 = vld [vmem:[%s3978_s28 + $0xa0] sm:$0xf] }
 0x159   : > { %v2063_v57 = vpop.f32.mrf.mxu0 }
 0x15a   : > { %v2012_v56 = vadd.f32 %v2011_v48, %v1963_v49  ;;  %v3624_v48 = vld [vmem:[%s3978_s28 + $0xd4] sm:$0xf0]  ;;  %v3617_v49 = vld [vmem:[%s3978_s28 + $0xa4] sm:$0xf] }
 0x15b   : > { %v2112_v58 = vpop.f32.mrf.mxu1 }
 0x15c   : > { %v2061_v60 = vadd.f32 %v2060_v32, %v2012_v56  ;;  %2160 = vmatmul.bf16.gmra.mxu2 %v3126_v50  ;;  %2258 = vmatmul.bf16.gmra.mxu0 %v3134_v10  ;;  %v2815_v50 = vld [vmem:[%s3978_s28 + $0xd8] sm:$0xf0] }
 0x15d   : > { %2209 = vmatmul.bf16.gmra.mxu3 %v3130_v51 }
 0x15e   : > { %2307 = vmatmul.bf16.gmra.mxu1 %v3138_v53  ;;  %v4494_v5 = vadd.f32 %v2109_v33, %v2061_v60  ;;  %v2818_v60 = vor.u32 %v3617_v49, %v2815_v50  ;;  %v3644_v49 = vld [vmem:[%s3978_s28 + $0x17c] sm:$0xf]  ;;  %v2919_v50 = vld [vmem:[%s3978_s28 + $0x1b0] sm:$0xf0] }
 0x15f   : > { %v1965_v13 = vpop.f32.mrf.mxu2 }
 0x160   : > { %v2014_v26 = vpop.f32.mrf.mxu3  ;;  %v1966_v0 = vadd.f32 %v1965_v13, %v4318_v20  ;;  %v2754_v20 = vor.u32 %v3602_v8, %v2751_v9 }
 0x161   : > { %v2065_v2 = vpop.f32.mrf.mxu0 }
 0x162   : > { %v2015_v1 = vadd.f32 %v2014_v26, %v1966_v0 }
 0x163   : > { %v2114_v3 = vpop.f32.mrf.mxu1 }
 0x164   : > { %v2064_v4 = vadd.f32 %v2063_v57, %v2015_v1  ;;  %v2806_v57 = vor.u32 %v3623_v42, %v2805_v41 }
 0x166   : > { %v4505_v16 = vadd.f32 %v2112_v58, %v2064_v4  ;;  %v2814_v58 = vor.u32 %v3624_v48, %v2813_v47  ;;  %v2917_v47 = vld [vmem:[%s3978_s28 + $0x178] sm:$0xf]  ;;  %v3651_v48 = vld [vmem:[%s3978_s28 + $0x1ac] sm:$0xf0] }
 0x167   : > { %v1967_v17 = vpop.f32.mrf.mxu2 }
 0x168   : > { %v2016_v19 = vpop.f32.mrf.mxu3  ;;  %v1968_v46 = vadd.f32 %v1967_v17, %v4333_v37  ;;  %v2869_v17 = vld [vmem:[%s3978_s28 + $0x110] sm:$0xf] }
 0x169   : > { %v2224_v29 = vpop.f32.mrf.mxu0 }
 0x16a   : > { %v2017_v28 = vadd.f32 %v2016_v19, %v1968_v46  ;;  %v3638_v19 = vld [vmem:[%s3978_s28 + $0x144] sm:$0xf0]  ;;  %v3631_v46 = vld [vmem:[%s3978_s28 + $0x114] sm:$0xf] }
 0x16b   : > { %v2273_v30 = vpop.f32.mrf.mxu1 }
 0x16c   : > { %v2066_v31 = vadd.f32 %v2065_v2, %v2017_v28  ;;  %2321 = vmatmul.bf16.vlgmr.msrb.gmra.mxu2 %v2750_v22  ;;  %2419 = vmatmul.bf16.vlgmr.msrb.gmra.mxu0 %v2758_v62  ;;  %v2871_v22 = vld [vmem:[%s3978_s28 + $0x148] sm:$0xf0] }
 0x16d   : > { %2370 = vmatmul.bf16.vlgmr.msrb.gmra.mxu3 %v2754_v20 }
 0x16e   : > { %3587 = vmatmul.msk.bf16.vlgmr.msrb.gmra.mxu1 %vm1798_vm0, %v2762_v27  ;;  %v4509_v37 = vadd.f32 %v2114_v3, %v2066_v31  ;;  %v2874_v31 = vor.u32 %v3631_v46, %v2871_v22  ;;  %v3658_v46 = vld [vmem:[%s3978_s28 + $0x1ec] sm:$0xf]  ;;  %v2975_v22 = vld [vmem:[%s3978_s28 + $0x220] sm:$0xf0] }
 0x16f   : > { %v2126_v32 = vpop.f32.mrf.mxu2 }
 0x170   : > { %v2175_v33 = vpop.f32.mrf.mxu3  ;;  %v2127_v34 = vadd.f32 %v2126_v32, %v4353_v6  ;;  %v2810_v6 = vor.u32 %v3616_v43, %v2807_v44 }
 0x171   : > { %v2226_v36 = vpop.f32.mrf.mxu0 }
 0x172   : > { %v2176_v59 = vadd.f32 %v2175_v33, %v2127_v34 }
 0x173   : > { %v2275_v55 = vpop.f32.mrf.mxu1 }
 0x174   : > { %v2225_v40 = vadd.f32 %v2224_v29, %v2176_v59  ;;  %v2862_v29 = vor.u32 %v3637_v24, %v2861_v23 }
 0x176   : > { %v4520_v51 = vadd.f32 %v2273_v30, %v2225_v40  ;;  %v2870_v30 = vor.u32 %v3638_v19, %v2869_v17  ;;  %v2973_v17 = vld [vmem:[%s3978_s28 + $0x1e8] sm:$0xf]  ;;  %v3665_v19 = vld [vmem:[%s3978_s28 + $0x21c] sm:$0xf0] }
 0x177   : > { %v2128_v10 = vpop.f32.mrf.mxu2 }
 0x178   : > { %v2177_v53 = vpop.f32.mrf.mxu3  ;;  %v2129_v56 = vadd.f32 %v2128_v10, %v4365_v25  ;;  %v2925_v10 = vld [vmem:[%s3978_s28 + $0x180] sm:$0xf] }
 0x179   : > { %v2229_v26 = vpop.f32.mrf.mxu0 }
 0x17a   : > { %v2178_v13 = vadd.f32 %v2177_v53, %v2129_v56  ;;  %v3652_v53 = vld [vmem:[%s3978_s28 + $0x1b4] sm:$0xf0]  ;;  %v3645_v56 = vld [vmem:[%s3978_s28 + $0x184] sm:$0xf] }
 0x17b   : > { %v2278_v0 = vpop.f32.mrf.mxu1 }
 0x17c   : > { %v2227_v1 = vadd.f32 %v2226_v36, %v2178_v13  ;;  %2326 = vmatmul.bf16.gmra.mxu2 %v2806_v57  ;;  %2424 = vmatmul.bf16.gmra.mxu0 %v2814_v58  ;;  %v2927_v57 = vld [vmem:[%s3978_s28 + $0x1b8] sm:$0xf0] }
 0x17d   : > { %2375 = vmatmul.bf16.gmra.mxu3 %v2810_v6 }
 0x17e   : > { %3588 = vmatmul.msk.bf16.gmra.mxu1 %vm1798_vm0, %v2818_v60  ;;  %v4524_v25 = vadd.f32 %v2275_v55, %v2227_v1  ;;  %v2930_v1 = vor.u32 %v3645_v56, %v2927_v57  ;;  %v3672_v56 = vld [vmem:[%s3978_s28 + $0x25c] sm:$0xf]  ;;  %v3031_v57 = vld [vmem:[%s3978_s28 + $0x290] sm:$0xf0] }
 0x17f   : > { %v2131_v2 = vpop.f32.mrf.mxu2 }
 0x180   : > { %v2180_v3 = vpop.f32.mrf.mxu3  ;;  %v2132_v4 = vadd.f32 %v2131_v2, %v4379_v45  ;;  %v2866_v45 = vor.u32 %v3630_v14, %v2863_v15 }
 0x181   : > { %v2231_v7 = vpop.f32.mrf.mxu0 }
 0x182   : > { %v2181_v54 = vadd.f32 %v2180_v3, %v2132_v4 }
 0x183   : > { %v2280_v8 = vpop.f32.mrf.mxu1 }
 0x184   : > { %v2230_v9 = vadd.f32 %v2229_v26, %v2181_v54  ;;  %v2918_v26 = vor.u32 %v3651_v48, %v2917_v47 }
 0x186   : > { %v4535_v20 = vadd.f32 %v2278_v0, %v2230_v9  ;;  %v2926_v0 = vor.u32 %v3652_v53, %v2925_v10  ;;  %v3029_v10 = vld [vmem:[%s3978_s28 + $0x258] sm:$0xf]  ;;  %v3679_v53 = vld [vmem:[%s3978_s28 + $0x28c] sm:$0xf0] }
 0x187   : > { %v2133_v62 = vpop.f32.mrf.mxu2 }
 0x188   : > { %v2182_v27 = vpop.f32.mrf.mxu3  ;;  %v2134_v28 = vadd.f32 %v2133_v62, %v4388_v63  ;;  %v2981_v62 = vld [vmem:[%s3978_s28 + $0x1f0] sm:$0xf] }
 0x189   : > { %v2234_v33 = vpop.f32.mrf.mxu0 }
 0x18a   : > { %v2183_v32 = vadd.f32 %v2182_v27, %v2134_v28  ;;  %v3666_v27 = vld [vmem:[%s3978_s28 + $0x224] sm:$0xf0]  ;;  %v3659_v28 = vld [vmem:[%s3978_s28 + $0x1f4] sm:$0xf] }
 0x18b   : > { %v2283_v34 = vpop.f32.mrf.mxu1 }
 0x18c   : > { %v2232_v59 = vadd.f32 %v2231_v7, %v2183_v32  ;;  %2331 = vmatmul.bf16.gmra.mxu2 %v2862_v29  ;;  %2429 = vmatmul.bf16.gmra.mxu0 %v2870_v30  ;;  %v2983_v29 = vld [vmem:[%s3978_s28 + $0x228] sm:$0xf0] }
 0x18d   : > { %2380 = vmatmul.bf16.gmra.mxu3 %v2866_v45 }
 0x18e   : > { %3589 = vmatmul.msk.bf16.gmra.mxu1 %vm1798_vm0, %v2874_v31  ;;  %v4539_v63 = vadd.f32 %v2280_v8, %v2232_v59  ;;  %v2986_v59 = vor.u32 %v3659_v28, %v2983_v29  ;;  %v3686_v28 = vld [vmem:[%s3978_s28 + $0x2cc] sm:$0xf]  ;;  %v3087_v29 = vld [vmem:[%s3978_s28 + $0x300] sm:$0xf0] }
 0x18f   : > { %v2136_v36 = vpop.f32.mrf.mxu2 }
 0x190   : > { %v2185_v55 = vpop.f32.mrf.mxu3  ;;  %v2137_v40 = vadd.f32 %v2136_v36, %v4402_v21  ;;  %v2922_v21 = vor.u32 %v3644_v49, %v2919_v50 }
 0x191   : > { %v2236_v42 = vpop.f32.mrf.mxu0 }
 0x192   : > { %v2186_v41 = vadd.f32 %v2185_v55, %v2137_v40 }
 0x193   : > { %v2285_v43 = vpop.f32.mrf.mxu1 }
 0x194   : > { %v2235_v44 = vadd.f32 %v2234_v33, %v2186_v41  ;;  %v2974_v33 = vor.u32 %v3665_v19, %v2973_v17 }
 0x196   : > { %v4550_v6 = vadd.f32 %v2283_v34, %v2235_v44  ;;  %v2982_v34 = vor.u32 %v3666_v27, %v2981_v62  ;;  %v3085_v62 = vld [vmem:[%s3978_s28 + $0x2c8] sm:$0xf]  ;;  %v3693_v27 = vld [vmem:[%s3978_s28 + $0x2fc] sm:$0xf0] }
 0x197   : > { %v2138_v58 = vpop.f32.mrf.mxu2 }
 0x198   : > { %v2187_v60 = vpop.f32.mrf.mxu3  ;;  %v2139_v13 = vadd.f32 %v2138_v58, %v4414_v39  ;;  %v3037_v58 = vld [vmem:[%s3978_s28 + $0x260] sm:$0xf] }
 0x199   : > { %v2239_v3 = vpop.f32.mrf.mxu0 }
 0x19a   : > { %v2188_v2 = vadd.f32 %v2187_v60, %v2139_v13  ;;  %v3680_v60 = vld [vmem:[%s3978_s28 + $0x294] sm:$0xf0]  ;;  %v3673_v13 = vld [vmem:[%s3978_s28 + $0x264] sm:$0xf] }
 0x19b   : > { %v2288_v4 = vpop.f32.mrf.mxu1 }
 0x19c   : > { %v2237_v54 = vadd.f32 %v2236_v42, %v2188_v2  ;;  %2336 = vmatmul.bf16.gmra.mxu2 %v2918_v26  ;;  %2434 = vmatmul.bf16.gmra.mxu0 %v2926_v0  ;;  %v3039_v26 = vld [vmem:[%s3978_s28 + $0x298] sm:$0xf0] }
 0x19d   : > { %2385 = vmatmul.bf16.gmra.mxu3 %v2922_v21 }
 0x19e   : > { %3590 = vmatmul.msk.bf16.gmra.mxu1 %vm1798_vm0, %v2930_v1  ;;  %v4554_v39 = vadd.f32 %v2285_v43, %v2237_v54  ;;  %v3042_v54 = vor.u32 %v3673_v13, %v3039_v26  ;;  %v3700_v13 = vld [vmem:[%s3978_s28 + $0x33c] sm:$0xf]  ;;  %v3143_v26 = vld [vmem:[%s3978_s28 + $0x370] sm:$0xf0] }
 0x19f   : > { %v2141_v7 = vpop.f32.mrf.mxu2 }
 0x1a0   : > { %v2190_v8 = vpop.f32.mrf.mxu3  ;;  %v2142_v9 = vadd.f32 %v2141_v7, %v4428_v61  ;;  %v2978_v61 = vor.u32 %v3658_v46, %v2975_v22 }
 0x1a1   : > { %v2241_v24 = vpop.f32.mrf.mxu0 }
 0x1a2   : > { %v2191_v23 = vadd.f32 %v2190_v8, %v2142_v9 }
 0x1a3   : > { %v2290_v14 = vpop.f32.mrf.mxu1 }
 0x1a4   : > { %v2240_v15 = vadd.f32 %v2239_v3, %v2191_v23  ;;  %v3030_v3 = vor.u32 %v3679_v53, %v3029_v10 }
 0x1a6   : > { %v4565_v45 = vadd.f32 %v2288_v4, %v2240_v15  ;;  %v3038_v4 = vor.u32 %v3680_v60, %v3037_v58  ;;  %v3141_v58 = vld [vmem:[%s3978_s28 + $0x338] sm:$0xf]  ;;  %v3707_v60 = vld [vmem:[%s3978_s28 + $0x36c] sm:$0xf0] }
 0x1a7   : > { %v2143_v30 = vpop.f32.mrf.mxu2 }
 0x1a8   : > { %v2192_v31 = vpop.f32.mrf.mxu3  ;;  %v2144_v32 = vadd.f32 %v2143_v30, %v4437_v12  ;;  %v3093_v30 = vld [vmem:[%s3978_s28 + $0x2d0] sm:$0xf] }
 0x1a9   : > { %v2244_v55 = vpop.f32.mrf.mxu0 }
 0x1aa   : > { %v2193_v36 = vadd.f32 %v2192_v31, %v2144_v32  ;;  %v3694_v31 = vld [vmem:[%s3978_s28 + $0x304] sm:$0xf0]  ;;  %v3687_v32 = vld [vmem:[%s3978_s28 + $0x2d4] sm:$0xf] }
 0x1ab   : > { %v2293_v40 = vpop.f32.mrf.mxu1 }
 0x1ac   : > { %v2242_v41 = vadd.f32 %v2241_v24, %v2193_v36  ;;  %2341 = vmatmul.bf16.gmra.mxu2 %v2974_v33  ;;  %2439 = vmatmul.bf16.gmra.mxu0 %v2982_v34  ;;  %v3095_v33 = vld [vmem:[%s3978_s28 + $0x308] sm:$0xf0] }
 0x1ad   : > { %2390 = vmatmul.bf16.gmra.mxu3 %v2978_v61 }
 0x1ae   : > { %3591 = vmatmul.msk.bf16.gmra.mxu1 %vm1798_vm0, %v2986_v59  ;;  %v4569_v12 = vadd.f32 %v2290_v14, %v2242_v41  ;;  %v3098_v41 = vor.u32 %v3687_v32, %v3095_v33 }
 0x1af   : > { %v2146_v42 = vpop.f32.mrf.mxu2 }
 0x1b0   : > { %v2195_v43 = vpop.f32.mrf.mxu3  ;;  %v2147_v44 = vadd.f32 %v2146_v42, %v4451_v35  ;;  %v3034_v35 = vor.u32 %v3672_v56, %v3031_v57 }
 0x1b1   : > { %v2246_v48 = vpop.f32.mrf.mxu0 }
 0x1b2   : > { %v2196_v47 = vadd.f32 %v2195_v43, %v2147_v44 }
 0x1b3   : > { %v2295_v49 = vpop.f32.mrf.mxu1 }
 0x1b4   : > { %v2245_v50 = vadd.f32 %v2244_v55, %v2196_v47  ;;  %v3086_v55 = vor.u32 %v3693_v27, %v3085_v62 }
 0x1b6   : > { %v4580_v21 = vadd.f32 %v2293_v40, %v2245_v50  ;;  %v3094_v40 = vor.u32 %v3694_v31, %v3093_v30 }
 0x1b7   : > { %v2148_v0 = vpop.f32.mrf.mxu2 }
 0x1b8   : > { %v2197_v1 = vpop.f32.mrf.mxu3  ;;  %v2149_v2 = vadd.f32 %v2148_v0, %v4463_v52  ;;  %v3149_v0 = vld [vmem:[%s3978_s28 + $0x340] sm:$0xf] }
 0x1b9   : > { %v2249_v8 = vpop.f32.mrf.mxu0 }
 0x1ba   : > { %v2198_v7 = vadd.f32 %v2197_v1, %v2149_v2  ;;  %v3708_v1 = vld [vmem:[%s3978_s28 + $0x374] sm:$0xf0]  ;;  %v3701_v2 = vld [vmem:[%s3978_s28 + $0x344] sm:$0xf] }
 0x1bb   : > { %v2298_v9 = vpop.f32.mrf.mxu1 }
 0x1bc   : > { %v2247_v23 = vadd.f32 %v2246_v48, %v2198_v7  ;;  %2346 = vmatmul.bf16.gmra.mxu2 %v3030_v3  ;;  %2444 = vmatmul.bf16.gmra.mxu0 %v3038_v4  ;;  %v3151_v3 = vld [vmem:[%s3978_s28 + $0x378] sm:$0xf0] }
 0x1bd   : > { %2395 = vmatmul.bf16.gmra.mxu3 %v3034_v35 }
 0x1be   : > { %3592 = vmatmul.msk.bf16.gmra.mxu1 %vm1798_vm0, %v3042_v54  ;;  %v4584_v52 = vadd.f32 %v2295_v49, %v2247_v23  ;;  %v3154_v23 = vor.u32 %v3701_v2, %v3151_v3 }
 0x1bf   : > { %v2151_v24 = vpop.f32.mrf.mxu2 }
 0x1c0   : > { %v2200_v14 = vpop.f32.mrf.mxu3  ;;  %v2152_v15 = vadd.f32 %v2151_v24, %v4477_v11  ;;  %v3090_v11 = vor.u32 %v3686_v28, %v3087_v29 }
 0x1c1   : > { %v2251_v19 = vpop.f32.mrf.mxu0 }
 0x1c2   : > { %v2201_v17 = vadd.f32 %v2200_v14, %v2152_v15 }
 0x1c3   : > { %v2300_v46 = vpop.f32.mrf.mxu1 }
 0x1c4   : > { %v2250_v22 = vadd.f32 %v2249_v8, %v2201_v17  ;;  %v3142_v8 = vor.u32 %v3707_v60, %v3141_v58 }
 0x1c6   : > { %v4595_v61 = vadd.f32 %v2298_v9, %v2250_v22  ;;  %v3150_v9 = vor.u32 %v3708_v1, %v3149_v0 }
 0x1c7   : > { %v2153_v34 = vpop.f32.mrf.mxu2 }
 0x1c8   : > { %v2202_v59 = vpop.f32.mrf.mxu3  ;;  %v2154_v36 = vadd.f32 %v2153_v34, %v4480_v38 }
 0x1c9   : > { %v2254_v43 = vpop.f32.mrf.mxu0 }
 0x1ca   : > { %v2203_v42 = vadd.f32 %v2202_v59, %v2154_v36 }
 0x1cb   : > { %v2303_v44 = vpop.f32.mrf.mxu1 }
 0x1cc   : > { %v2252_v47 = vadd.f32 %v2251_v19, %v2203_v42  ;;  %2351 = vmatmul.bf16.gmra.mxu2 %v3086_v55  ;;  %2449 = vmatmul.bf16.gmra.mxu0 %v3094_v40 }
 0x1cd   : > { %2400 = vmatmul.bf16.gmra.mxu3 %v3090_v11 }
 0x1ce   : > { %3593 = vmatmul.msk.bf16.gmra.mxu1 %vm1798_vm0, %v3098_v41  ;;  %v4599_v38 = vadd.f32 %v2300_v46, %v2252_v47 }
 0x1cf   : > { %v2156_v48 = vpop.f32.mrf.mxu2 }
 0x1d0   : > { %v2205_v49 = vpop.f32.mrf.mxu3  ;;  %v2157_v50 = vadd.f32 %v2156_v48, %v4491_v18  ;;  %v3146_v18 = vor.u32 %v3700_v13, %v3143_v26  ;;  %v4626_v48 = vld [vmem:[%s4713_s2] ss:$0 sm:$0xff] }
 0x1d1   : > { %v2256_v53 = vpop.f32.mrf.mxu0 }
 0x1d2   : > { %v2206_v10 = vadd.f32 %v2205_v49, %v2157_v50  ;;  %v4631_v49 = vld [vmem:[%s4714_s3] ss:$0 sm:$0xff] }
 0x1d3   : > { %v2305_v56 = vpop.f32.mrf.mxu1 }
 0x1d4   : > { %v2255_v57 = vadd.f32 %v2254_v43, %v2206_v10 }
 0x1d6   : > { %v4610_v35 = vadd.f32 %v2303_v44, %v2255_v57 }
 0x1d7   : > { %v2158_v4 = vpop.f32.mrf.mxu2 }
 0x1d8   : > { %v2207_v54 = vpop.f32.mrf.mxu3  ;;  %v2159_v7 = vadd.f32 %v2158_v4, %v4494_v5 }
 0x1d9   : > { %v2259_v14 = vpop.f32.mrf.mxu0 }
 0x1da   : > { %v2208_v24 = vadd.f32 %v2207_v54, %v2159_v7 }
 0x1db   : > { %v2308_v15 = vpop.f32.mrf.mxu1 }
 0x1dc   : > { %v2257_v17 = vadd.f32 %v2256_v53, %v2208_v24  ;;  %2356 = vmatmul.bf16.gmra.mxu2 %v3142_v8  ;;  %2454 = vmatmul.bf16.gmra.mxu0 %v3150_v9 }
 0x1dd   : > { %2405 = vmatmul.bf16.gmra.mxu3 %v3146_v18 }
 0x1de   : > { %3594 = vmatmul.msk.bf16.gmra.mxu1 %vm1798_vm0, %v3154_v23  ;;  %v4614_v19 = vadd.f32 %v2305_v56, %v2257_v17 }
 0x1df   : > { %v2161_v46 = vpop.f32.mrf.mxu2 }
 0x1e0   : > { %v2210_v22 = vpop.f32.mrf.mxu3  ;;  %v2162_v62 = vadd.f32 %v2161_v46, %v4505_v16 }
 0x1e1   : > { %v2261_v27 = vpop.f32.mrf.mxu0 }
 0x1e2   : > { %v2211_v5 = vadd.f32 %v2210_v22, %v2162_v62 }
 0x1e3   : > { %v2310_v28 = vpop.f32.mrf.mxu1 }
 0x1e4   : > { %v2260_v29 = vadd.f32 %v2259_v14, %v2211_v5 }
 0x1e6   : > { %v4617_v30 = vadd.f32 %v2308_v15, %v2260_v29 }
 0x1e7   : > { %v2163_v31 = vpop.f32.mrf.mxu2 }
 0x1e8   : > { %v2212_v32 = vpop.f32.mrf.mxu3  ;;  %v2164_v33 = vadd.f32 %v2163_v31, %v4509_v37 }
 0x1e9   : > { %v2420_v59 = vpop.f32.mrf.mxu0 }
 0x1ea   : > { %v2213_v34 = vadd.f32 %v2212_v32, %v2164_v33 }
 0x1eb   : > { %v2469_v36 = vpop.f32.mrf.mxu1 }
 0x1ec   : > { %v2262_v55 = vadd.f32 %v2261_v27, %v2213_v34 }
 0x1ee   : > { %v4620_v11 = vadd.f32 %v2310_v28, %v2262_v55 }
 0x1ef   : > { %v2322_v40 = vpop.f32.mrf.mxu2 }
 0x1f0   : > { %v2371_v41 = vpop.f32.mrf.mxu3  ;;  %v2323_v16 = vadd.f32 %v2322_v40, %v4520_v51 }
 0x1f1   : > { %v2422_v43 = vpop.f32.mrf.mxu0 }
 0x1f2   : > { %v2372_v42 = vadd.f32 %v2371_v41, %v2323_v16 }
 0x1f3   : > { %v2471_v44 = vpop.f32.mrf.mxu1 }
 0x1f4   : > { %v2421_v47 = vadd.f32 %v2420_v59, %v2372_v42 }
 0x1f6   : > { %v2470_v37 = vadd.f32 %v2469_v36, %v2421_v47 }
 0x1f7   : > { %v2324_v50 = vpop.f32.mrf.mxu2 }
 0x1f8   : > { %v2373_v10 = vpop.f32.mrf.mxu3  ;;  %v2513_v51 = vmul.f32 %v4626_v48, %v2470_v37  ;;  %v2325_v53 = vadd.f32 %v2324_v50, %v4524_v25 }
 0x1f9   : > { %v2425_v58 = vpop.f32.mrf.mxu0 }
 0x1fa   : > { %v2533_v56 = vadd.f32 %v4631_v49, %v2513_v51  ;;  %v2374_v57 = vadd.f32 %v2373_v10, %v2325_v53 }
 0x1fb   : > { %v2474_v60 = vpop.f32.mrf.mxu1 }
 0x1fc   : > { %v2549_v13 = vmax.f32 %v2533_v56, 0.0  ;;  %v2423_v26 = vadd.f32 %v2422_v43, %v2374_v57 }
 0x1fe   : > { %2565 = vst [vmem:[%s4640_s9] sm:$0xff] %v2549_v13  ;;  %v2472_v0 = vadd.f32 %v2471_v44, %v2423_v26 }
 0x1ff   : > { %v2327_v1 = vpop.f32.mrf.mxu2 }
 0x200   : > { %v2376_v2 = vpop.f32.mrf.mxu3  ;;  %v2514_v25 = vmul.f32 %v4626_v48, %v2472_v0  ;;  %v2328_v3 = vadd.f32 %v2327_v1, %v4535_v20 }
 0x201   : > { %v2427_v7 = vpop.f32.mrf.mxu0 }
 0x202   : > { %v2534_v4 = vadd.f32 %v4631_v49, %v2514_v25  ;;  %v2377_v54 = vadd.f32 %v2376_v2, %v2328_v3 }
 0x203   : > { %v2476_v8 = vpop.f32.mrf.mxu1 }
 0x204   : > { %v2550_v18 = vmax.f32 %v2534_v4, 0.0  ;;  %v2426_v9 = vadd.f32 %v2425_v58, %v2377_v54 }
 0x206   : > { %2566 = vst [vmem:[%s4640_s9 + $0x8] sm:$0xff] %v2550_v18  ;;  %v2475_v23 = vadd.f32 %v2474_v60, %v2426_v9 }
 0x207   : > { %v2329_v24 = vpop.f32.mrf.mxu2 }
 0x208   : > { %v2378_v14 = vpop.f32.mrf.mxu3  ;;  %v2515_v15 = vmul.f32 %v4626_v48, %v2475_v23  ;;  %v2330_v17 = vadd.f32 %v2329_v24, %v4539_v63 }
 0x209   : > { %v2430_v20 = vpop.f32.mrf.mxu0 }
 0x20a   : > { %v2535_v46 = vadd.f32 %v4631_v49, %v2515_v15  ;;  %v2379_v22 = vadd.f32 %v2378_v14, %v2330_v17 }
 0x20b   : > { %v2479_v62 = vpop.f32.mrf.mxu1 }
 0x20c   : > { %v2551_v5 = vmax.f32 %v2535_v46, 0.0  ;;  %v2428_v27 = vadd.f32 %v2427_v7, %v2379_v22 }
 0x20e   : > { %2567 = vst [vmem:[%s4640_s9 + $0x10] sm:$0xff] %v2551_v5  ;;  %v2477_v28 = vadd.f32 %v2476_v8, %v2428_v27 }
 0x20f   : > { %v2332_v29 = vpop.f32.mrf.mxu2 }
 0x210   : > { %v2381_v31 = vpop.f32.mrf.mxu3  ;;  %v2516_v32 = vmul.f32 %v4626_v48, %v2477_v28  ;;  %v2333_v33 = vadd.f32 %v2332_v29, %v4550_v6 }
 0x211   : > { %v2432_v63 = vpop.f32.mrf.mxu0 }
 0x212   : > { %v2536_v34 = vadd.f32 %v4631_v49, %v2516_v32  ;;  %v2382_v59 = vadd.f32 %v2381_v31, %v2333_v33 }
 0x213   : > { %v2481_v36 = vpop.f32.mrf.mxu1 }
 0x214   : > { %v2552_v55 = vmax.f32 %v2536_v34, 0.0  ;;  %v2431_v40 = vadd.f32 %v2430_v20, %v2382_v59 }
 0x216   : > { %2568 = vst [vmem:[%s4640_s9 + $0x18] sm:$0xff] %v2552_v55  ;;  %v2480_v41 = vadd.f32 %v2479_v62, %v2431_v40 }
 0x217   : > { %v2334_v16 = vpop.f32.mrf.mxu2 }
 0x218   : > { %v2383_v42 = vpop.f32.mrf.mxu3  ;;  %v2517_v43 = vmul.f32 %v4626_v48, %v2480_v41  ;;  %v2335_v44 = vadd.f32 %v2334_v16, %v4554_v39 }
 0x219   : > { %v2435_v6 = vpop.f32.mrf.mxu0 }
 0x21a   : > { %v2537_v47 = vadd.f32 %v4631_v49, %v2517_v43  ;;  %v2384_v37 = vadd.f32 %v2383_v42, %v2335_v44 }
 0x21b   : > { %v2484_v50 = vpop.f32.mrf.mxu1 }
 0x21c   : > { %v2553_v10 = vmax.f32 %v2537_v47, 0.0  ;;  %v2433_v51 = vadd.f32 %v2432_v63, %v2384_v37 }
 0x21e   : > { %2569 = vst [vmem:[%s4640_s9 + $0x20] sm:$0xff] %v2553_v10  ;;  %v2482_v53 = vadd.f32 %v2481_v36, %v2433_v51 }
 0x21f   : > { %v2337_v56 = vpop.f32.mrf.mxu2 }
 0x220   : > { %v2386_v57 = vpop.f32.mrf.mxu3  ;;  %v2518_v58 = vmul.f32 %v4626_v48, %v2482_v53  ;;  %v2338_v60 = vadd.f32 %v2337_v56, %v4565_v45 }
 0x221   : > { %v2437_v39 = vpop.f32.mrf.mxu0 }
 0x222   : > { %v2538_v13 = vadd.f32 %v4631_v49, %v2518_v58  ;;  %v2387_v26 = vadd.f32 %v2386_v57, %v2338_v60 }
 0x223   : > { %v2486_v0 = vpop.f32.mrf.mxu1 }
 0x224   : > { %v2554_v1 = vmax.f32 %v2538_v13, 0.0  ;;  %v2436_v2 = vadd.f32 %v2435_v6, %v2387_v26 }
 0x226   : > { %2570 = vst [vmem:[%s4640_s9 + $0x28] sm:$0xff] %v2554_v1  ;;  %v2485_v25 = vadd.f32 %v2484_v50, %v2436_v2 }
 0x227   : > { %v2339_v3 = vpop.f32.mrf.mxu2 }
 0x228   : > { %v2388_v4 = vpop.f32.mrf.mxu3  ;;  %v2519_v54 = vmul.f32 %v4626_v48, %v2485_v25  ;;  %v2340_v7 = vadd.f32 %v2339_v3, %v4569_v12 }
 0x229   : > { %v2440_v45 = vpop.f32.mrf.mxu0 }
 0x22a   : > { %v2539_v8 = vadd.f32 %v4631_v49, %v2519_v54  ;;  %v2389_v18 = vadd.f32 %v2388_v4, %v2340_v7 }
 0x22b   : > { %v2489_v9 = vpop.f32.mrf.mxu1 }
 0x22c   : > { %v2555_v23 = vmax.f32 %v2539_v8, 0.0  ;;  %v2438_v24 = vadd.f32 %v2437_v39, %v2389_v18 }
 0x22e   : > { %2571 = vst [vmem:[%s4640_s9 + $0x30] sm:$0xff] %v2555_v23  ;;  %v2487_v14 = vadd.f32 %v2486_v0, %v2438_v24 }
 0x22f   : > { %v2342_v15 = vpop.f32.mrf.mxu2 }
 0x230   : > { %v2391_v17 = vpop.f32.mrf.mxu3  ;;  %v2520_v46 = vmul.f32 %v4626_v48, %v2487_v14  ;;  %v2343_v22 = vadd.f32 %v2342_v15, %v4580_v21 }
 0x231   : > { %v2442_v12 = vpop.f32.mrf.mxu0 }
 0x232   : > { %v2540_v20 = vadd.f32 %v4631_v49, %v2520_v46  ;;  %v2392_v62 = vadd.f32 %v2391_v17, %v2343_v22 }
 0x233   : > { %v2491_v5 = vpop.f32.mrf.mxu1 }
 0x234   : > { %v2556_v27 = vmax.f32 %v2540_v20, 0.0  ;;  %v2441_v28 = vadd.f32 %v2440_v45, %v2392_v62 }
 0x236   : > { %2572 = vst [vmem:[%s4640_s9 + $0x38] sm:$0xff] %v2556_v27  ;;  %v2490_v29 = vadd.f32 %v2489_v9, %v2441_v28 }
 0x237   : > { %v2344_v31 = vpop.f32.mrf.mxu2 }
 0x238   : > { %v2393_v32 = vpop.f32.mrf.mxu3  ;;  %v2521_v33 = vmul.f32 %v4626_v48, %v2490_v29  ;;  %v2345_v34 = vadd.f32 %v2344_v31, %v4584_v52 }
 0x239   : > { %v2445_v21 = vpop.f32.mrf.mxu0 }
 0x23a   : > { %v2541_v59 = vadd.f32 %v4631_v49, %v2521_v33  ;;  %v2394_v63 = vadd.f32 %v2393_v32, %v2345_v34 }
 0x23b   : > { %v2494_v36 = vpop.f32.mrf.mxu1 }
 0x23c   : > { %v2557_v55 = vmax.f32 %v2541_v59, 0.0  ;;  %v2443_v40 = vadd.f32 %v2442_v12, %v2394_v63 }
 0x23e   : > { %2573 = vst [vmem:[%s4640_s9 + $0x40] sm:$0xff] %v2557_v55  ;;  %v2492_v41 = vadd.f32 %v2491_v5, %v2443_v40 }
 0x23f   : > { %v2347_v16 = vpop.f32.mrf.mxu2 }
 0x240   : > { %v2396_v42 = vpop.f32.mrf.mxu3  ;;  %v2522_v43 = vmul.f32 %v4626_v48, %v2492_v41  ;;  %v2348_v44 = vadd.f32 %v2347_v16, %v4595_v61 }
 0x241   : > { %v2447_v52 = vpop.f32.mrf.mxu0 }
 0x242   : > { %v2542_v47 = vadd.f32 %v4631_v49, %v2522_v43  ;;  %v2397_v37 = vadd.f32 %v2396_v42, %v2348_v44 }
 0x243   : > { %v2496_v10 = vpop.f32.mrf.mxu1 }
 0x244   : > { %v2558_v6 = vmax.f32 %v2542_v47, 0.0  ;;  %v2446_v50 = vadd.f32 %v2445_v21, %v2397_v37 }
 0x246   : > { %2574 = vst [vmem:[%s4640_s9 + $0x48] sm:$0xff] %v2558_v6  ;;  %v2495_v51 = vadd.f32 %v2494_v36, %v2446_v50 }
 0x247   : > { %v2349_v53 = vpop.f32.mrf.mxu2 }
 0x248   : > { %v2398_v56 = vpop.f32.mrf.mxu3  ;;  %v2523_v57 = vmul.f32 %v4626_v48, %v2495_v51  ;;  %v2350_v58 = vadd.f32 %v2349_v53, %v4599_v38 }
 0x249   : > { %v2450_v39 = vpop.f32.mrf.mxu0 }
 0x24a   : > { %v2543_v60 = vadd.f32 %v4631_v49, %v2523_v57  ;;  %v2399_v61 = vadd.f32 %v2398_v56, %v2350_v58 }
 0x24b   : > { %v2499_v1 = vpop.f32.mrf.mxu1 }
 0x24c   : > { %v2559_v13 = vmax.f32 %v2543_v60, 0.0  ;;  %v2448_v26 = vadd.f32 %v2447_v52, %v2399_v61 }
 0x24e   : > { %2575 = vst [vmem:[%s4640_s9 + $0x50] sm:$0xff] %v2559_v13  ;;  %v2497_v0 = vadd.f32 %v2496_v10, %v2448_v26 }
 0x24f   : > { %v2352_v2 = vpop.f32.mrf.mxu2 }
 0x250   : > { %v2401_v25 = vpop.f32.mrf.mxu3  ;;  %v2524_v3 = vmul.f32 %v4626_v48, %v2497_v0  ;;  %v2353_v4 = vadd.f32 %v2352_v2, %v4610_v35 }
 0x251   : > { %v2452_v45 = vpop.f32.mrf.mxu0 }
 0x252   : > { %v2544_v54 = vadd.f32 %v4631_v49, %v2524_v3  ;;  %v2402_v38 = vadd.f32 %v2401_v25, %v2353_v4 }
 0x253   : > { %v2501_v15 = vpop.f32.mrf.mxu1 }
 0x254   : > { %v2560_v7 = vmax.f32 %v2544_v54, 0.0  ;;  %v2451_v8 = vadd.f32 %v2450_v39, %v2402_v38 }
 0x256   : > { %2576 = vst [vmem:[%s4640_s9 + $0x58] sm:$0xff] %v2560_v7  ;;  %v2500_v18 = vadd.f32 %v2499_v1, %v2451_v8 }
 0x257   : > { %v2354_v9 = vpop.f32.mrf.mxu2 }
 0x258   : > { %v2403_v23 = vpop.f32.mrf.mxu3  ;;  %v2525_v24 = vmul.f32 %v4626_v48, %v2500_v18  ;;  %v2355_v14 = vadd.f32 %v2354_v9, %v4614_v19 }
 0x259   : > { %v2455_v28 = vpop.f32.mrf.mxu0 }
 0x25a   : > { %v2545_v17 = vadd.f32 %v4631_v49, %v2525_v24  ;;  %v2404_v35 = vadd.f32 %v2403_v23, %v2355_v14 }
 0x25b   : > { %v2504_v19 = vpop.f32.mrf.mxu1 }
 0x25c   : > { %v2561_v46 = vmax.f32 %v2545_v17, 0.0  ;;  %v2453_v22 = vadd.f32 %v2452_v45, %v2404_v35 }
 0x25e   : > { %2577 = vst [vmem:[%s4640_s9 + $0x60] sm:$0xff] %v2561_v46  ;;  %v2502_v20 = vadd.f32 %v2501_v15, %v2453_v22 }
 0x25f   : > { %v2357_v62 = vpop.f32.mrf.mxu2 }
 0x260   : > { %v2406_v12 = vpop.f32.mrf.mxu3  ;;  %v2526_v5 = vmul.f32 %v4626_v48, %v2502_v20  ;;  %v2358_v27 = vadd.f32 %v2357_v62, %v4617_v30 }
 0x261   : > { %v2457_v40 = vpop.f32.mrf.mxu0 }
 0x262   : > { %v2546_v29 = vadd.f32 %v4631_v49, %v2526_v5  ;;  %v2407_v31 = vadd.f32 %v2406_v12, %v2358_v27 }
 0x263   : > { %v2506_v42 = vpop.f32.mrf.mxu1 }
 0x264   : > { %v2562_v32 = vmax.f32 %v2546_v29, 0.0  ;;  %v2456_v33 = vadd.f32 %v2455_v28, %v2407_v31 }
 0x266   : > { %2578 = vst [vmem:[%s4640_s9 + $0x68] sm:$0xff] %v2562_v32  ;;  %v2505_v34 = vadd.f32 %v2504_v19, %v2456_v33 }
 0x267   : > { %v2359_v59 = vpop.f32.mrf.mxu2 }
 0x268   : > { %v2527_v63 = vmul.f32 %v4626_v48, %v2505_v34  ;;  %v2360_v21 = vadd.f32 %v2359_v59, %v4620_v11  ;;  %v2408_v36 = vpop.f32.mrf.mxu3 }
 0x26a   : > { %v2547_v55 = vadd.f32 %v4631_v49, %v2527_v63  ;;  %v2409_v30 = vadd.f32 %v2408_v36, %v2360_v21 }
 0x26c   : > { %v2563_v41 = vmax.f32 %v2547_v55, 0.0  ;;  %v2458_v16 = vadd.f32 %v2457_v40, %v2409_v30 }
 0x26e   : > { %2579 = vst [vmem:[%s4640_s9 + $0x70] sm:$0xff] %v2563_v41  ;;  %v2507_v43 = vadd.f32 %v2506_v42, %v2458_v16 }
 0x270   : > { %v2528_v44 = vmul.f32 %v4626_v48, %v2507_v43 }
 0x272   : > { %v2548_v47 = vadd.f32 %v4631_v49, %v2528_v44 }
 0x274   : > { %v2564_v37 = vmax.f32 %v2548_v47, 0.0 }
 0x276   : > { %2580 = vst [vmem:[%s4640_s9 + $0x78] sm:$0xff] %v2564_v37 }
 0x277 PF: > { %s14_s17 = sadd.s32 1, %s3882_s17   ;;  %s4716_s15 = smov %s3878_s16 }
 0x278   : > { %p11_p5 = scmp.ge.s32.totalorder %s14_s17, 6   ;;  %s4717_s16 = smov %s4719_s18 }
 0x27a   :  { %13 = sbr.rel (!%p11_p5) target bundleno = 2 (0x2), region = 75 }

// kernel: _lambda_.111
= control target key start
LH: loop header
LB: loop body
LE: loop exit
PB: predicated region body
PF: predicated region fallthrough
CT: control target
= control target key end

     0   :  { %vm146_vm0 = vcmask 261120   ;;  %s771_s1 = inlined_call_operand.vmem [shape: bf16[32,128], index: 1, kind: input, shape index: {}]   ;;  %s772_s0 = inlined_call_operand.vmem [shape: bf16[256,32], index: 0, kind: input, shape index: {}]   ;;  %s773_s2 = inlined_call_operand.vmem [shape: f32[1,128], index: 2, kind: input, shape index: {}]   ;;  %s774_s3 = inlined_call_operand.vmem [shape: f32[1,128], index: 3, kind: input, shape index: {}]   ;;  %s775_s4 = inlined_call_operand.vmem [shape: f32[256,128], index: 4, kind: output, shape index: {}]  }
   0x1   :  { %v497_v0 = vld [vmem:[%s771_s1 + $0x8] sm:$0xff]  ;;  %v496_v1 = vld [vmem:[%s771_s1] sm:$0xff]  ;;  %v482_v10 = vld [vmem:[%s772_s0 + $0x10] sm:$0xff] }
   0x2   :  { %201 = vmatpush.bf16.msra.mxu0 %v497_v0  ;;  %498 = vmatpush.bf16.msra.mxu1 %v497_v0  ;;  %v480_v2 = vld [vmem:[%s772_s0] sm:$0xff]  ;;  %v481_v6 = vld [vmem:[%s772_s0 + $0x8] sm:$0xff]  ;;  %v486_v11 = vld [vmem:[%s772_s0 + $0x30] sm:$0xff] }
   0x3   :  { %499 = vmatpush.bf16.msra.mxu2 %v497_v0  ;;  %500 = vmatpush.bf16.msra.mxu3 %v497_v0  ;;  %v484_v3 = vld [vmem:[%s772_s0 + $0x20] sm:$0xff]  ;;  %v485_v7 = vld [vmem:[%s772_s0 + $0x28] sm:$0xff]  ;;  %v490_v12 = vld [vmem:[%s772_s0 + $0x50] sm:$0xff] }
   0x4   :  { %v488_v4 = vld [vmem:[%s772_s0 + $0x40] sm:$0xff]  ;;  %v489_v8 = vld [vmem:[%s772_s0 + $0x48] sm:$0xff]  ;;  %v494_v13 = vld [vmem:[%s772_s0 + $0x70] sm:$0xff] }
   0x5   :  { %v492_v5 = vld [vmem:[%s772_s0 + $0x60] sm:$0xff]  ;;  %v493_v9 = vld [vmem:[%s772_s0 + $0x68] sm:$0xff]  ;;  %v483_v14 = vld [vmem:[%s772_s0 + $0x18] sm:$0xff] }
   0x6   :  { %202 = vmatpush.bf16.msra.mxu0 %v496_v1  ;;  %501 = vmatpush.bf16.msra.mxu1 %v496_v1  ;;  %v487_v15 = vld [vmem:[%s772_s0 + $0x38] sm:$0xff]  ;;  %v604_v18 = vld [vmem:[%s773_s2] ss:$0 sm:$0xff] }
   0x7   :  { %502 = vmatpush.bf16.msra.mxu2 %v496_v1  ;;  %503 = vmatpush.bf16.msra.mxu3 %v496_v1  ;;  %v491_v16 = vld [vmem:[%s772_s0 + $0x58] sm:$0xff]  ;;  %v609_v19 = vld [vmem:[%s774_s3] ss:$0 sm:$0xff] }
   0x8   :  { %v495_v17 = vld [vmem:[%s772_s0 + $0x78] sm:$0xff] }
   0x9   :  { %464 = vmatmul.msk.bf16.vlgmr.msra.gmra.mxu0 %vm146_vm0, %v480_v2  ;;  %468 = vmatmul.msk.bf16.vlgmr.msra.gmra.mxu1 %vm146_vm0, %v484_v3 }
   0xa   :  { %472 = vmatmul.msk.bf16.vlgmr.msra.gmra.mxu2 %vm146_vm0, %v488_v4  ;;  %476 = vmatmul.msk.bf16.vlgmr.msra.gmra.mxu3 %vm146_vm0, %v492_v5 }
  0x19   :  { %465 = vmatmul.msk.bf16.gmra.mxu0 %vm146_vm0, %v481_v6  ;;  %469 = vmatmul.msk.bf16.gmra.mxu1 %vm146_vm0, %v485_v7 }
  0x1a   :  { %473 = vmatmul.msk.bf16.gmra.mxu2 %vm146_vm0, %v489_v8  ;;  %477 = vmatmul.msk.bf16.gmra.mxu3 %vm146_vm0, %v493_v9 }
  0x29   :  { %466 = vmatmul.msk.bf16.gmra.mxu0 %vm146_vm0, %v482_v10  ;;  %470 = vmatmul.msk.bf16.gmra.mxu1 %vm146_vm0, %v486_v11 }
  0x2a   :  { %474 = vmatmul.msk.bf16.gmra.mxu2 %vm146_vm0, %v490_v12  ;;  %478 = vmatmul.msk.bf16.gmra.mxu3 %vm146_vm0, %v494_v13 }
  0x39   :  { %467 = vmatmul.msk.bf16.gmra.mxu0 %vm146_vm0, %v483_v14  ;;  %471 = vmatmul.msk.bf16.gmra.mxu1 %vm146_vm0, %v487_v15 }
  0x3a   :  { %475 = vmatmul.msk.bf16.gmra.mxu2 %vm146_vm0, %v491_v16  ;;  %479 = vmatmul.msk.bf16.gmra.mxu3 %vm146_vm0, %v495_v17 }
  0x86   :  { %v204_v20 = vpop.f32.mrf.mxu0  ;;  %v224_v21 = vpop.f32.mrf.mxu1 }
  0x87   :  { %v288_v22 = vmul.f32 %v604_v18, %v204_v20  ;;  %v296_v23 = vmul.f32 %v604_v18, %v224_v21 }
  0x89   :  { %v324_v24 = vadd.f32 %v609_v19, %v288_v22  ;;  %v332_v25 = vadd.f32 %v609_v19, %v296_v23 }
  0x8b   :  { %356 = vst [vmem:[%s775_s4] sm:$0xff] %v324_v24 }
  0x8c   :  { %364 = vst [vmem:[%s775_s4 + $0x40] sm:$0xff] %v332_v25 }
  0x8d   :  { %v244_v26 = vpop.f32.mrf.mxu2  ;;  %v264_v27 = vpop.f32.mrf.mxu3 }
  0x8e   :  { %v304_v28 = vmul.f32 %v604_v18, %v244_v26  ;;  %v312_v29 = vmul.f32 %v604_v18, %v264_v27  ;;  %v206_v30 = vpop.f32.mrf.mxu0  ;;  %v226_v31 = vpop.f32.mrf.mxu1 }
  0x8f   :  { %v289_v32 = vmul.f32 %v604_v18, %v206_v30  ;;  %v297_v33 = vmul.f32 %v604_v18, %v226_v31 }
  0x90   :  { %v340_v34 = vadd.f32 %v609_v19, %v304_v28  ;;  %v348_v35 = vadd.f32 %v609_v19, %v312_v29 }
  0x91   :  { %v325_v36 = vadd.f32 %v609_v19, %v289_v32  ;;  %v333_v37 = vadd.f32 %v609_v19, %v297_v33 }
  0x92   :  { %372 = vst [vmem:[%s775_s4 + $0x80] sm:$0xff] %v340_v34 }
  0x93   :  { %380 = vst [vmem:[%s775_s4 + $0xc0] sm:$0xff] %v348_v35 }
  0x94   :  { %357 = vst [vmem:[%s775_s4 + $0x8] sm:$0xff] %v325_v36 }
  0x95   :  { %365 = vst [vmem:[%s775_s4 + $0x48] sm:$0xff] %v333_v37  ;;  %v246_v38 = vpop.f32.mrf.mxu2  ;;  %v266_v39 = vpop.f32.mrf.mxu3 }
  0x96   :  { %v305_v40 = vmul.f32 %v604_v18, %v246_v38  ;;  %v313_v41 = vmul.f32 %v604_v18, %v266_v39  ;;  %v209_v42 = vpop.f32.mrf.mxu0  ;;  %v229_v43 = vpop.f32.mrf.mxu1 }
  0x97   :  { %v290_v44 = vmul.f32 %v604_v18, %v209_v42  ;;  %v298_v45 = vmul.f32 %v604_v18, %v229_v43 }
  0x98   :  { %v341_v46 = vadd.f32 %v609_v19, %v305_v40  ;;  %v349_v47 = vadd.f32 %v609_v19, %v313_v41 }
  0x99   :  { %v326_v48 = vadd.f32 %v609_v19, %v290_v44  ;;  %v334_v49 = vadd.f32 %v609_v19, %v298_v45 }
  0x9a   :  { %373 = vst [vmem:[%s775_s4 + $0x88] sm:$0xff] %v341_v46 }
  0x9b   :  { %381 = vst [vmem:[%s775_s4 + $0xc8] sm:$0xff] %v349_v47 }
  0x9c   :  { %358 = vst [vmem:[%s775_s4 + $0x10] sm:$0xff] %v326_v48 }
  0x9d   :  { %366 = vst [vmem:[%s775_s4 + $0x50] sm:$0xff] %v334_v49  ;;  %v249_v50 = vpop.f32.mrf.mxu2  ;;  %v269_v51 = vpop.f32.mrf.mxu3 }
  0x9e   :  { %v306_v52 = vmul.f32 %v604_v18, %v249_v50  ;;  %v314_v53 = vmul.f32 %v604_v18, %v269_v51  ;;  %v211_v54 = vpop.f32.mrf.mxu0  ;;  %v231_v55 = vpop.f32.mrf.mxu1 }
  0x9f   :  { %v291_v56 = vmul.f32 %v604_v18, %v211_v54  ;;  %v299_v57 = vmul.f32 %v604_v18, %v231_v55 }
  0xa0   :  { %v342_v58 = vadd.f32 %v609_v19, %v306_v52  ;;  %v350_v59 = vadd.f32 %v609_v19, %v314_v53 }
  0xa1   :  { %v327_v60 = vadd.f32 %v609_v19, %v291_v56  ;;  %v335_v61 = vadd.f32 %v609_v19, %v299_v57 }
  0xa2   :  { %374 = vst [vmem:[%s775_s4 + $0x90] sm:$0xff] %v342_v58 }
  0xa3   :  { %382 = vst [vmem:[%s775_s4 + $0xd0] sm:$0xff] %v350_v59 }
  0xa4   :  { %359 = vst [vmem:[%s775_s4 + $0x18] sm:$0xff] %v327_v60 }
  0xa5   :  { %367 = vst [vmem:[%s775_s4 + $0x58] sm:$0xff] %v335_v61  ;;  %v251_v62 = vpop.f32.mrf.mxu2  ;;  %v271_v63 = vpop.f32.mrf.mxu3 }
  0xa6   :  { %v307_v0 = vmul.f32 %v604_v18, %v251_v62  ;;  %v315_v1 = vmul.f32 %v604_v18, %v271_v63  ;;  %v214_v2 = vpop.f32.mrf.mxu0  ;;  %v234_v3 = vpop.f32.mrf.mxu1 }
  0xa7   :  { %v292_v4 = vmul.f32 %v604_v18, %v214_v2  ;;  %v300_v5 = vmul.f32 %v604_v18, %v234_v3 }
  0xa8   :  { %v343_v6 = vadd.f32 %v609_v19, %v307_v0  ;;  %v351_v7 = vadd.f32 %v609_v19, %v315_v1 }
  0xa9   :  { %v328_v8 = vadd.f32 %v609_v19, %v292_v4  ;;  %v336_v9 = vadd.f32 %v609_v19, %v300_v5 }
  0xaa   :  { %375 = vst [vmem:[%s775_s4 + $0x98] sm:$0xff] %v343_v6 }
  0xab   :  { %383 = vst [vmem:[%s775_s4 + $0xd8] sm:$0xff] %v351_v7 }
  0xac   :  { %360 = vst [vmem:[%s775_s4 + $0x20] sm:$0xff] %v328_v8 }
  0xad   :  { %368 = vst [vmem:[%s775_s4 + $0x60] sm:$0xff] %v336_v9  ;;  %v254_v10 = vpop.f32.mrf.mxu2  ;;  %v274_v11 = vpop.f32.mrf.mxu3 }
  0xae   :  { %v308_v12 = vmul.f32 %v604_v18, %v254_v10  ;;  %v316_v13 = vmul.f32 %v604_v18, %v274_v11  ;;  %v216_v14 = vpop.f32.mrf.mxu0  ;;  %v236_v15 = vpop.f32.mrf.mxu1 }
  0xaf   :  { %v293_v16 = vmul.f32 %v604_v18, %v216_v14  ;;  %v301_v17 = vmul.f32 %v604_v18, %v236_v15 }
  0xb0   :  { %v344_v20 = vadd.f32 %v609_v19, %v308_v12  ;;  %v352_v21 = vadd.f32 %v609_v19, %v316_v13 }
  0xb1   :  { %v329_v22 = vadd.f32 %v609_v19, %v293_v16  ;;  %v337_v23 = vadd.f32 %v609_v19, %v301_v17 }
  0xb2   :  { %376 = vst [vmem:[%s775_s4 + $0xa0] sm:$0xff] %v344_v20 }
  0xb3   :  { %384 = vst [vmem:[%s775_s4 + $0xe0] sm:$0xff] %v352_v21 }
  0xb4   :  { %361 = vst [vmem:[%s775_s4 + $0x28] sm:$0xff] %v329_v22 }
  0xb5   :  { %369 = vst [vmem:[%s775_s4 + $0x68] sm:$0xff] %v337_v23  ;;  %v256_v24 = vpop.f32.mrf.mxu2  ;;  %v276_v25 = vpop.f32.mrf.mxu3 }
  0xb6   :  { %v309_v26 = vmul.f32 %v604_v18, %v256_v24  ;;  %v317_v27 = vmul.f32 %v604_v18, %v276_v25  ;;  %v219_v28 = vpop.f32.mrf.mxu0  ;;  %v239_v29 = vpop.f32.mrf.mxu1 }
  0xb7   :  { %v294_v30 = vmul.f32 %v604_v18, %v219_v28  ;;  %v302_v31 = vmul.f32 %v604_v18, %v239_v29 }
  0xb8   :  { %v345_v32 = vadd.f32 %v609_v19, %v309_v26  ;;  %v353_v33 = vadd.f32 %v609_v19, %v317_v27 }
  0xb9   :  { %v330_v34 = vadd.f32 %v609_v19, %v294_v30  ;;  %v338_v35 = vadd.f32 %v609_v19, %v302_v31 }
  0xba   :  { %377 = vst [vmem:[%s775_s4 + $0xa8] sm:$0xff] %v345_v32 }
  0xbb   :  { %385 = vst [vmem:[%s775_s4 + $0xe8] sm:$0xff] %v353_v33 }
  0xbc   :  { %362 = vst [vmem:[%s775_s4 + $0x30] sm:$0xff] %v330_v34 }
  0xbd   :  { %370 = vst [vmem:[%s775_s4 + $0x70] sm:$0xff] %v338_v35  ;;  %v259_v36 = vpop.f32.mrf.mxu2  ;;  %v279_v37 = vpop.f32.mrf.mxu3 }
  0xbe   :  { %v310_v38 = vmul.f32 %v604_v18, %v259_v36  ;;  %v318_v39 = vmul.f32 %v604_v18, %v279_v37  ;;  %v221_v40 = vpop.f32.mrf.mxu0  ;;  %v241_v41 = vpop.f32.mrf.mxu1 }
  0xbf   :  { %v295_v42 = vmul.f32 %v604_v18, %v221_v40  ;;  %v303_v43 = vmul.f32 %v604_v18, %v241_v41 }
  0xc0   :  { %v346_v44 = vadd.f32 %v609_v19, %v310_v38  ;;  %v354_v45 = vadd.f32 %v609_v19, %v318_v39 }
  0xc1   :  { %v331_v46 = vadd.f32 %v609_v19, %v295_v42  ;;  %v339_v47 = vadd.f32 %v609_v19, %v303_v43 }
  0xc2   :  { %378 = vst [vmem:[%s775_s4 + $0xb0] sm:$0xff] %v346_v44 }
  0xc3   :  { %386 = vst [vmem:[%s775_s4 + $0xf0] sm:$0xff] %v354_v45 }
  0xc4   :  { %363 = vst [vmem:[%s775_s4 + $0x38] sm:$0xff] %v331_v46 }
  0xc5   :  { %371 = vst [vmem:[%s775_s4 + $0x78] sm:$0xff] %v339_v47  ;;  %v261_v48 = vpop.f32.mrf.mxu2  ;;  %v281_v49 = vpop.f32.mrf.mxu3 }
  0xc6   :  { %v311_v50 = vmul.f32 %v604_v18, %v261_v48  ;;  %v319_v51 = vmul.f32 %v604_v18, %v281_v49 }
  0xc8   :  { %v347_v52 = vadd.f32 %v609_v19, %v311_v50  ;;  %v355_v53 = vadd.f32 %v609_v19, %v319_v51 }
  0xca   :  { %379 = vst [vmem:[%s775_s4 + $0xb8] sm:$0xff] %v347_v52 }
  0xcb   :  { %387 = vst [vmem:[%s775_s4 + $0xf8] sm:$0xff] %v355_v53 }

// kernel: _lambda_.112
= control target key start
LH: loop header
LB: loop body
LE: loop exit
PB: predicated region body
PF: predicated region fallthrough
CT: control target
= control target key end

     0   :  { %vm90_vm0 = vcmask 261120   ;;  %s425_s1 = inlined_call_operand.vmem [shape: bf16[32,128], index: 1, kind: input, shape index: {}]   ;;  %s426_s0 = inlined_call_operand.vmem [shape: bf16[128,32], index: 0, kind: input, shape index: {}]   ;;  %s427_s2 = inlined_call_operand.vmem [shape: f32[1,128], index: 2, kind: input, shape index: {}]   ;;  %s428_s3 = inlined_call_operand.vmem [shape: f32[1,128], index: 3, kind: input, shape index: {}]   ;;  %s429_s4 = inlined_call_operand.vmem [shape: f32[128,128], index: 4, kind: output, shape index: {}]  }
   0x1   :  { %v281_v0 = vld [vmem:[%s425_s1 + $0x8] sm:$0xff]  ;;  %v280_v1 = vld [vmem:[%s425_s1] sm:$0xff]  ;;  %v274_v3 = vld [vmem:[%s426_s0 + $0x10] sm:$0xff] }
   0x2   :  { %121 = vmatpush.bf16.msra.mxu0 %v281_v0  ;;  %282 = vmatpush.bf16.msra.mxu1 %v281_v0  ;;  %v272_v2 = vld [vmem:[%s426_s0] sm:$0xff]  ;;  %v278_v5 = vld [vmem:[%s426_s0 + $0x30] sm:$0xff]  ;;  %v273_v6 = vld [vmem:[%s426_s0 + $0x8] sm:$0xff] }
   0x3   :  { %283 = vmatpush.bf16.msra.mxu2 %v281_v0  ;;  %284 = vmatpush.bf16.msra.mxu3 %v281_v0  ;;  %v276_v4 = vld [vmem:[%s426_s0 + $0x20] sm:$0xff]  ;;  %v275_v7 = vld [vmem:[%s426_s0 + $0x18] sm:$0xff]  ;;  %v277_v8 = vld [vmem:[%s426_s0 + $0x28] sm:$0xff] }
   0x4   :  { %v279_v9 = vld [vmem:[%s426_s0 + $0x38] sm:$0xff]  ;;  %v288_v10 = vld [vmem:[%s427_s2] ss:$0 sm:$0xff] }
   0x5   :  { %v359_v11 = vld [vmem:[%s428_s3] ss:$0 sm:$0xff] }
   0x6   :  { %122 = vmatpush.bf16.msra.mxu0 %v280_v1  ;;  %285 = vmatpush.bf16.msra.mxu1 %v280_v1 }
   0x7   :  { %286 = vmatpush.bf16.msra.mxu2 %v280_v1  ;;  %287 = vmatpush.bf16.msra.mxu3 %v280_v1 }
   0x9   :  { %264 = vmatmul.msk.bf16.vlgmr.msra.gmra.mxu0 %vm90_vm0, %v272_v2  ;;  %266 = vmatmul.msk.bf16.vlgmr.msra.gmra.mxu1 %vm90_vm0, %v274_v3 }
   0xa   :  { %268 = vmatmul.msk.bf16.vlgmr.msra.gmra.mxu2 %vm90_vm0, %v276_v4  ;;  %270 = vmatmul.msk.bf16.vlgmr.msra.gmra.mxu3 %vm90_vm0, %v278_v5 }
  0x19   :  { %265 = vmatmul.msk.bf16.gmra.mxu0 %vm90_vm0, %v273_v6  ;;  %267 = vmatmul.msk.bf16.gmra.mxu1 %vm90_vm0, %v275_v7 }
  0x1a   :  { %269 = vmatmul.msk.bf16.gmra.mxu2 %vm90_vm0, %v277_v8  ;;  %271 = vmatmul.msk.bf16.gmra.mxu3 %vm90_vm0, %v279_v9 }
  0x86   :  { %v124_v12 = vpop.f32.mrf.mxu0  ;;  %v134_v13 = vpop.f32.mrf.mxu1 }
  0x87   :  { %v168_v14 = vmul.f32 %v288_v10, %v124_v12  ;;  %v172_v15 = vmul.f32 %v288_v10, %v134_v13 }
  0x89   :  { %v188_v16 = vadd.f32 %v359_v11, %v168_v14  ;;  %v192_v17 = vadd.f32 %v359_v11, %v172_v15 }
  0x8b   :  { %204 = vst [vmem:[%s429_s4] sm:$0xff] %v188_v16 }
  0x8c   :  { %208 = vst [vmem:[%s429_s4 + $0x20] sm:$0xff] %v192_v17 }
  0x8d   :  { %v144_v18 = vpop.f32.mrf.mxu2  ;;  %v154_v19 = vpop.f32.mrf.mxu3 }
  0x8e   :  { %v176_v20 = vmul.f32 %v288_v10, %v144_v18  ;;  %v180_v21 = vmul.f32 %v288_v10, %v154_v19  ;;  %v126_v22 = vpop.f32.mrf.mxu0  ;;  %v136_v23 = vpop.f32.mrf.mxu1 }
  0x8f   :  { %v169_v24 = vmul.f32 %v288_v10, %v126_v22  ;;  %v173_v25 = vmul.f32 %v288_v10, %v136_v23 }
  0x90   :  { %v196_v26 = vadd.f32 %v359_v11, %v176_v20  ;;  %v200_v27 = vadd.f32 %v359_v11, %v180_v21 }
  0x91   :  { %v189_v28 = vadd.f32 %v359_v11, %v169_v24  ;;  %v193_v29 = vadd.f32 %v359_v11, %v173_v25 }
  0x92   :  { %212 = vst [vmem:[%s429_s4 + $0x40] sm:$0xff] %v196_v26 }
  0x93   :  { %216 = vst [vmem:[%s429_s4 + $0x60] sm:$0xff] %v200_v27 }
  0x94   :  { %205 = vst [vmem:[%s429_s4 + $0x8] sm:$0xff] %v189_v28 }
  0x95   :  { %209 = vst [vmem:[%s429_s4 + $0x28] sm:$0xff] %v193_v29  ;;  %v146_v30 = vpop.f32.mrf.mxu2  ;;  %v156_v31 = vpop.f32.mrf.mxu3 }
  0x96   :  { %v177_v32 = vmul.f32 %v288_v10, %v146_v30  ;;  %v181_v33 = vmul.f32 %v288_v10, %v156_v31  ;;  %v129_v34 = vpop.f32.mrf.mxu0  ;;  %v139_v35 = vpop.f32.mrf.mxu1 }
  0x97   :  { %v170_v36 = vmul.f32 %v288_v10, %v129_v34  ;;  %v174_v37 = vmul.f32 %v288_v10, %v139_v35 }
  0x98   :  { %v197_v38 = vadd.f32 %v359_v11, %v177_v32  ;;  %v201_v39 = vadd.f32 %v359_v11, %v181_v33 }
  0x99   :  { %v190_v40 = vadd.f32 %v359_v11, %v170_v36  ;;  %v194_v41 = vadd.f32 %v359_v11, %v174_v37 }
  0x9a   :  { %213 = vst [vmem:[%s429_s4 + $0x48] sm:$0xff] %v197_v38 }
  0x9b   :  { %217 = vst [vmem:[%s429_s4 + $0x68] sm:$0xff] %v201_v39 }
  0x9c   :  { %206 = vst [vmem:[%s429_s4 + $0x10] sm:$0xff] %v190_v40 }
  0x9d   :  { %210 = vst [vmem:[%s429_s4 + $0x30] sm:$0xff] %v194_v41  ;;  %v149_v42 = vpop.f32.mrf.mxu2  ;;  %v159_v43 = vpop.f32.mrf.mxu3 }
  0x9e   :  { %v178_v44 = vmul.f32 %v288_v10, %v149_v42  ;;  %v182_v45 = vmul.f32 %v288_v10, %v159_v43  ;;  %v131_v46 = vpop.f32.mrf.mxu0  ;;  %v141_v47 = vpop.f32.mrf.mxu1 }
  0x9f   :  { %v171_v48 = vmul.f32 %v288_v10, %v131_v46  ;;  %v175_v49 = vmul.f32 %v288_v10, %v141_v47 }
  0xa0   :  { %v198_v50 = vadd.f32 %v359_v11, %v178_v44  ;;  %v202_v51 = vadd.f32 %v359_v11, %v182_v45 }
  0xa1   :  { %v191_v52 = vadd.f32 %v359_v11, %v171_v48  ;;  %v195_v53 = vadd.f32 %v359_v11, %v175_v49 }
  0xa2   :  { %214 = vst [vmem:[%s429_s4 + $0x50] sm:$0xff] %v198_v50 }
  0xa3   :  { %218 = vst [vmem:[%s429_s4 + $0x70] sm:$0xff] %v202_v51 }
  0xa4   :  { %207 = vst [vmem:[%s429_s4 + $0x18] sm:$0xff] %v191_v52 }
  0xa5   :  { %211 = vst [vmem:[%s429_s4 + $0x38] sm:$0xff] %v195_v53  ;;  %v151_v54 = vpop.f32.mrf.mxu2  ;;  %v161_v55 = vpop.f32.mrf.mxu3 }
  0xa6   :  { %v179_v56 = vmul.f32 %v288_v10, %v151_v54  ;;  %v183_v57 = vmul.f32 %v288_v10, %v161_v55 }
  0xa8   :  { %v199_v58 = vadd.f32 %v359_v11, %v179_v56  ;;  %v203_v59 = vadd.f32 %v359_v11, %v183_v57 }
  0xaa   :  { %215 = vst [vmem:[%s429_s4 + $0x58] sm:$0xff] %v199_v58 }
  0xab   :  { %219 = vst [vmem:[%s429_s4 + $0x78] sm:$0xff] %v203_v59 }

// kernel: _lambda_.113
= control target key start
LH: loop header
LB: loop body
LE: loop exit
PB: predicated region body
PF: predicated region fallthrough
CT: control target
= control target key end

     0   :  { %vm82_vm0 = vcmask 130048   ;;  %s406_s1 = inlined_call_operand.vmem [shape: bf16[16,128], index: 1, kind: input, shape index: {}]   ;;  %s407_s0 = inlined_call_operand.vmem [shape: bf16[128,16], index: 0, kind: input, shape index: {}]   ;;  %s408_s2 = inlined_call_operand.vmem [shape: f32[1,128], index: 2, kind: input, shape index: {}]   ;;  %s409_s3 = inlined_call_operand.vmem [shape: f32[1,128], index: 3, kind: input, shape index: {}]   ;;  %s410_s4 = inlined_call_operand.vmem [shape: f32[128,128], index: 4, kind: output, shape index: {}]  }
   0x1   :  { %v268_v0 = vld [vmem:[%s406_s1] sm:$0xff]  ;;  %v262_v2 = vld [vmem:[%s407_s0 + $0x10] sm:$0xff]  ;;  %v261_v5 = vld [vmem:[%s407_s0 + $0x8] sm:$0xff] }
   0x2   :  { %v260_v1 = vld [vmem:[%s407_s0] sm:$0xff]  ;;  %114 = vmatpush.bf16.msra.mxu0 %v268_v0  ;;  %269 = vmatpush.bf16.msra.mxu1 %v268_v0  ;;  %v266_v4 = vld [vmem:[%s407_s0 + $0x30] sm:$0xff]  ;;  %v263_v6 = vld [vmem:[%s407_s0 + $0x18] sm:$0xff] }
   0x3   :  { %v264_v3 = vld [vmem:[%s407_s0 + $0x20] sm:$0xff]  ;;  %270 = vmatpush.bf16.msra.mxu2 %v268_v0  ;;  %271 = vmatpush.bf16.msra.mxu3 %v268_v0  ;;  %v265_v7 = vld [vmem:[%s407_s0 + $0x28] sm:$0xff]  ;;  %v267_v8 = vld [vmem:[%s407_s0 + $0x38] sm:$0xff] }
   0x4   :  { %v272_v9 = vld [vmem:[%s408_s2] ss:$0 sm:$0xff] }
   0x5   :  { %252 = vmatmul.msk.bf16.vlgmr.msra.gmra.mxu0 %vm82_vm0, %v260_v1  ;;  %254 = vmatmul.msk.bf16.vlgmr.msra.gmra.mxu1 %vm82_vm0, %v262_v2  ;;  %v340_v10 = vld [vmem:[%s409_s3] ss:$0 sm:$0xff] }
   0x6   :  { %256 = vmatmul.msk.bf16.vlgmr.msra.gmra.mxu2 %vm82_vm0, %v264_v3  ;;  %258 = vmatmul.msk.bf16.vlgmr.msra.gmra.mxu3 %vm82_vm0, %v266_v4 }
  0x15   :  { %253 = vmatmul.msk.bf16.gmra.mxu0 %vm82_vm0, %v261_v5  ;;  %255 = vmatmul.msk.bf16.gmra.mxu1 %vm82_vm0, %v263_v6 }
  0x16   :  { %257 = vmatmul.msk.bf16.gmra.mxu2 %vm82_vm0, %v265_v7  ;;  %259 = vmatmul.msk.bf16.gmra.mxu3 %vm82_vm0, %v267_v8 }
  0x82   :  { %v116_v11 = vpop.f32.mrf.mxu0  ;;  %v126_v12 = vpop.f32.mrf.mxu1 }
  0x83   :  { %v160_v13 = vmul.f32 %v272_v9, %v116_v11  ;;  %v164_v14 = vmul.f32 %v272_v9, %v126_v12 }
  0x85   :  { %v180_v15 = vadd.f32 %v340_v10, %v160_v13  ;;  %v184_v16 = vadd.f32 %v340_v10, %v164_v14 }
  0x87   :  { %196 = vst [vmem:[%s410_s4] sm:$0xff] %v180_v15 }
  0x88   :  { %200 = vst [vmem:[%s410_s4 + $0x20] sm:$0xff] %v184_v16 }
  0x89   :  { %v136_v17 = vpop.f32.mrf.mxu2  ;;  %v146_v18 = vpop.f32.mrf.mxu3 }
  0x8a   :  { %v168_v19 = vmul.f32 %v272_v9, %v136_v17  ;;  %v172_v20 = vmul.f32 %v272_v9, %v146_v18  ;;  %v118_v21 = vpop.f32.mrf.mxu0  ;;  %v128_v22 = vpop.f32.mrf.mxu1 }
  0x8b   :  { %v161_v23 = vmul.f32 %v272_v9, %v118_v21  ;;  %v165_v24 = vmul.f32 %v272_v9, %v128_v22 }
  0x8c   :  { %v188_v25 = vadd.f32 %v340_v10, %v168_v19  ;;  %v192_v26 = vadd.f32 %v340_v10, %v172_v20 }
  0x8d   :  { %v181_v27 = vadd.f32 %v340_v10, %v161_v23  ;;  %v185_v28 = vadd.f32 %v340_v10, %v165_v24 }
  0x8e   :  { %204 = vst [vmem:[%s410_s4 + $0x40] sm:$0xff] %v188_v25 }
  0x8f   :  { %208 = vst [vmem:[%s410_s4 + $0x60] sm:$0xff] %v192_v26 }
  0x90   :  { %197 = vst [vmem:[%s410_s4 + $0x8] sm:$0xff] %v181_v27 }
  0x91   :  { %201 = vst [vmem:[%s410_s4 + $0x28] sm:$0xff] %v185_v28  ;;  %v138_v29 = vpop.f32.mrf.mxu2  ;;  %v148_v30 = vpop.f32.mrf.mxu3 }
  0x92   :  { %v169_v31 = vmul.f32 %v272_v9, %v138_v29  ;;  %v173_v32 = vmul.f32 %v272_v9, %v148_v30  ;;  %v121_v33 = vpop.f32.mrf.mxu0  ;;  %v131_v34 = vpop.f32.mrf.mxu1 }
  0x93   :  { %v162_v35 = vmul.f32 %v272_v9, %v121_v33  ;;  %v166_v36 = vmul.f32 %v272_v9, %v131_v34 }
  0x94   :  { %v189_v37 = vadd.f32 %v340_v10, %v169_v31  ;;  %v193_v38 = vadd.f32 %v340_v10, %v173_v32 }
  0x95   :  { %v182_v39 = vadd.f32 %v340_v10, %v162_v35  ;;  %v186_v40 = vadd.f32 %v340_v10, %v166_v36 }
  0x96   :  { %205 = vst [vmem:[%s410_s4 + $0x48] sm:$0xff] %v189_v37 }
  0x97   :  { %209 = vst [vmem:[%s410_s4 + $0x68] sm:$0xff] %v193_v38 }
  0x98   :  { %198 = vst [vmem:[%s410_s4 + $0x10] sm:$0xff] %v182_v39 }
  0x99   :  { %202 = vst [vmem:[%s410_s4 + $0x30] sm:$0xff] %v186_v40  ;;  %v141_v41 = vpop.f32.mrf.mxu2  ;;  %v151_v42 = vpop.f32.mrf.mxu3 }
  0x9a   :  { %v170_v43 = vmul.f32 %v272_v9, %v141_v41  ;;  %v174_v44 = vmul.f32 %v272_v9, %v151_v42  ;;  %v123_v45 = vpop.f32.mrf.mxu0  ;;  %v133_v46 = vpop.f32.mrf.mxu1 }
  0x9b   :  { %v163_v47 = vmul.f32 %v272_v9, %v123_v45  ;;  %v167_v48 = vmul.f32 %v272_v9, %v133_v46 }
  0x9c   :  { %v190_v49 = vadd.f32 %v340_v10, %v170_v43  ;;  %v194_v50 = vadd.f32 %v340_v10, %v174_v44 }
  0x9d   :  { %v183_v51 = vadd.f32 %v340_v10, %v163_v47  ;;  %v187_v52 = vadd.f32 %v340_v10, %v167_v48 }
  0x9e   :  { %206 = vst [vmem:[%s410_s4 + $0x50] sm:$0xff] %v190_v49 }
  0x9f   :  { %210 = vst [vmem:[%s410_s4 + $0x70] sm:$0xff] %v194_v50 }
  0xa0   :  { %199 = vst [vmem:[%s410_s4 + $0x18] sm:$0xff] %v183_v51 }
  0xa1   :  { %203 = vst [vmem:[%s410_s4 + $0x38] sm:$0xff] %v187_v52  ;;  %v143_v53 = vpop.f32.mrf.mxu2  ;;  %v153_v54 = vpop.f32.mrf.mxu3 }
  0xa2   :  { %v171_v55 = vmul.f32 %v272_v9, %v143_v53  ;;  %v175_v56 = vmul.f32 %v272_v9, %v153_v54 }
  0xa4   :  { %v191_v57 = vadd.f32 %v340_v10, %v171_v55  ;;  %v195_v58 = vadd.f32 %v340_v10, %v175_v56 }
  0xa6   :  { %207 = vst [vmem:[%s410_s4 + $0x58] sm:$0xff] %v191_v57 }
  0xa7   :  { %211 = vst [vmem:[%s410_s4 + $0x78] sm:$0xff] %v195_v58 }

// kernel: _lambda_.114
= control target key start
LH: loop header
LB: loop body
LE: loop exit
PB: predicated region body
PF: predicated region fallthrough
CT: control target
= control target key end

     0   :  { %vm62_vm0 = vcmask 261120   ;;  %s255_s1 = inlined_call_operand.vmem [shape: bf16[32,128], index: 1, kind: input, shape index: {}]   ;;  %s256_s2 = inlined_call_operand.vmem [shape: f32[1,128], index: 2, kind: input, shape index: {}]   ;;  %s257_s3 = inlined_call_operand.vmem [shape: f32[1,128], index: 3, kind: input, shape index: {}]   ;;  %s258_s0 = inlined_call_operand.vmem [shape: bf16[64,32], index: 0, kind: input, shape index: {}]   ;;  %s259_s4 = inlined_call_operand.vmem [shape: f32[64,128], index: 4, kind: output, shape index: {}]  }
   0x1   :  { %v173_v0 = vld [vmem:[%s255_s1 + $0x8] sm:$0xff]  ;;  %v172_v1 = vld [vmem:[%s255_s1] sm:$0xff]  ;;  %v170_v4 = vld [vmem:[%s258_s0 + $0x10] sm:$0xff] }
   0x2   :  { %81 = vmatpush.bf16.msra.mxu0 %v173_v0  ;;  %174 = vmatpush.bf16.msra.mxu1 %v173_v0  ;;  %v168_v2 = vld [vmem:[%s258_s0] sm:$0xff]  ;;  %v169_v3 = vld [vmem:[%s258_s0 + $0x8] sm:$0xff]  ;;  %v171_v5 = vld [vmem:[%s258_s0 + $0x18] sm:$0xff] }
   0x3   :  { %175 = vmatpush.bf16.msra.mxu2 %v173_v0  ;;  %176 = vmatpush.bf16.msra.mxu3 %v173_v0  ;;  %v180_v6 = vld [vmem:[%s256_s2] ss:$0 sm:$0xff] }
   0x4   :  { %v181_v7 = vld [vmem:[%s257_s3] ss:$0 sm:$0xff] }
   0x6   :  { %82 = vmatpush.bf16.msra.mxu0 %v172_v1  ;;  %177 = vmatpush.bf16.msra.mxu1 %v172_v1 }
   0x7   :  { %178 = vmatpush.bf16.msra.mxu2 %v172_v1  ;;  %179 = vmatpush.bf16.msra.mxu3 %v172_v1 }
   0x9   :  { %164 = vmatmul.msk.bf16.vlgmr.msra.gmra.mxu0 %vm62_vm0, %v168_v2  ;;  %165 = vmatmul.msk.bf16.vlgmr.msra.gmra.mxu1 %vm62_vm0, %v169_v3 }
   0xa   :  { %166 = vmatmul.msk.bf16.vlgmr.msra.gmra.mxu2 %vm62_vm0, %v170_v4  ;;  %167 = vmatmul.msk.bf16.vlgmr.msra.gmra.mxu3 %vm62_vm0, %v171_v5 }
  0x86   :  { %v84_v8 = vpop.f32.mrf.mxu0  ;;  %v89_v9 = vpop.f32.mrf.mxu1 }
  0x87   :  { %v108_v10 = vmul.f32 %v180_v6, %v84_v8  ;;  %v110_v11 = vmul.f32 %v180_v6, %v89_v9 }
  0x89   :  { %v120_v12 = vadd.f32 %v181_v7, %v108_v10  ;;  %v122_v13 = vadd.f32 %v181_v7, %v110_v11 }
  0x8b   :  { %128 = vst [vmem:[%s259_s4] sm:$0xff] %v120_v12 }
  0x8c   :  { %130 = vst [vmem:[%s259_s4 + $0x10] sm:$0xff] %v122_v13 }
  0x8d   :  { %v94_v14 = vpop.f32.mrf.mxu2  ;;  %v99_v15 = vpop.f32.mrf.mxu3 }
  0x8e   :  { %v112_v16 = vmul.f32 %v180_v6, %v94_v14  ;;  %v114_v17 = vmul.f32 %v180_v6, %v99_v15  ;;  %v86_v18 = vpop.f32.mrf.mxu0  ;;  %v91_v19 = vpop.f32.mrf.mxu1 }
  0x8f   :  { %v109_v20 = vmul.f32 %v180_v6, %v86_v18  ;;  %v111_v21 = vmul.f32 %v180_v6, %v91_v19 }
  0x90   :  { %v124_v22 = vadd.f32 %v181_v7, %v112_v16  ;;  %v126_v23 = vadd.f32 %v181_v7, %v114_v17 }
  0x91   :  { %v121_v24 = vadd.f32 %v181_v7, %v109_v20  ;;  %v123_v25 = vadd.f32 %v181_v7, %v111_v21 }
  0x92   :  { %132 = vst [vmem:[%s259_s4 + $0x20] sm:$0xff] %v124_v22 }
  0x93   :  { %134 = vst [vmem:[%s259_s4 + $0x30] sm:$0xff] %v126_v23 }
  0x94   :  { %129 = vst [vmem:[%s259_s4 + $0x8] sm:$0xff] %v121_v24 }
  0x95   :  { %131 = vst [vmem:[%s259_s4 + $0x18] sm:$0xff] %v123_v25  ;;  %v96_v26 = vpop.f32.mrf.mxu2  ;;  %v101_v27 = vpop.f32.mrf.mxu3 }
  0x96   :  { %v113_v28 = vmul.f32 %v180_v6, %v96_v26  ;;  %v115_v29 = vmul.f32 %v180_v6, %v101_v27 }
  0x98   :  { %v125_v30 = vadd.f32 %v181_v7, %v113_v28  ;;  %v127_v31 = vadd.f32 %v181_v7, %v115_v29 }
  0x9a   :  { %133 = vst [vmem:[%s259_s4 + $0x28] sm:$0xff] %v125_v30 }
  0x9b   :  { %135 = vst [vmem:[%s259_s4 + $0x38] sm:$0xff] %v127_v31 }

// kernel: _lambda_.116
= control target key start
LH: loop header
LB: loop body
LE: loop exit
PB: predicated region body
PF: predicated region fallthrough
CT: control target
= control target key end

     0   :  { %vm54_vm0 = vcmask 130048   ;;  %s236_s1 = inlined_call_operand.vmem [shape: bf16[16,128], index: 1, kind: input, shape index: {}]   ;;  %s237_s0 = inlined_call_operand.vmem [shape: bf16[64,16], index: 0, kind: input, shape index: {}]   ;;  %s238_s2 = inlined_call_operand.vmem [shape: f32[1,128], index: 2, kind: input, shape index: {}]   ;;  %s239_s3 = inlined_call_operand.vmem [shape: f32[1,128], index: 3, kind: input, shape index: {}]   ;;  %s240_s4 = inlined_call_operand.vmem [shape: f32[64,128], index: 4, kind: output, shape index: {}]  }
   0x1   :  { %v160_v0 = vld [vmem:[%s236_s1] sm:$0xff]  ;;  %v157_v2 = vld [vmem:[%s237_s0 + $0x8] sm:$0xff]  ;;  %v158_v3 = vld [vmem:[%s237_s0 + $0x10] sm:$0xff] }
   0x2   :  { %v156_v1 = vld [vmem:[%s237_s0] sm:$0xff]  ;;  %74 = vmatpush.bf16.msra.mxu0 %v160_v0  ;;  %161 = vmatpush.bf16.msra.mxu1 %v160_v0  ;;  %v159_v4 = vld [vmem:[%s237_s0 + $0x18] sm:$0xff] }
   0x3   :  { %162 = vmatpush.bf16.msra.mxu2 %v160_v0  ;;  %163 = vmatpush.bf16.msra.mxu3 %v160_v0  ;;  %v164_v5 = vld [vmem:[%s238_s2] ss:$0 sm:$0xff] }
   0x4   :  { %v165_v6 = vld [vmem:[%s239_s3] ss:$0 sm:$0xff] }
   0x5   :  { %152 = vmatmul.msk.bf16.vlgmr.msra.gmra.mxu0 %vm54_vm0, %v156_v1  ;;  %153 = vmatmul.msk.bf16.vlgmr.msra.gmra.mxu1 %vm54_vm0, %v157_v2 }
   0x6   :  { %154 = vmatmul.msk.bf16.vlgmr.msra.gmra.mxu2 %vm54_vm0, %v158_v3  ;;  %155 = vmatmul.msk.bf16.vlgmr.msra.gmra.mxu3 %vm54_vm0, %v159_v4 }
  0x82   :  { %v76_v7 = vpop.f32.mrf.mxu0  ;;  %v81_v8 = vpop.f32.mrf.mxu1 }
  0x83   :  { %v100_v9 = vmul.f32 %v164_v5, %v76_v7  ;;  %v102_v10 = vmul.f32 %v164_v5, %v81_v8 }
  0x85   :  { %v112_v11 = vadd.f32 %v165_v6, %v100_v9  ;;  %v114_v12 = vadd.f32 %v165_v6, %v102_v10 }
  0x87   :  { %120 = vst [vmem:[%s240_s4] sm:$0xff] %v112_v11 }
  0x88   :  { %122 = vst [vmem:[%s240_s4 + $0x10] sm:$0xff] %v114_v12 }
  0x89   :  { %v86_v13 = vpop.f32.mrf.mxu2  ;;  %v91_v14 = vpop.f32.mrf.mxu3 }
  0x8a   :  { %v104_v15 = vmul.f32 %v164_v5, %v86_v13  ;;  %v106_v16 = vmul.f32 %v164_v5, %v91_v14  ;;  %v78_v17 = vpop.f32.mrf.mxu0  ;;  %v83_v18 = vpop.f32.mrf.mxu1 }
  0x8b   :  { %v101_v19 = vmul.f32 %v164_v5, %v78_v17  ;;  %v103_v20 = vmul.f32 %v164_v5, %v83_v18 }
  0x8c   :  { %v116_v21 = vadd.f32 %v165_v6, %v104_v15  ;;  %v118_v22 = vadd.f32 %v165_v6, %v106_v16 }
  0x8d   :  { %v113_v23 = vadd.f32 %v165_v6, %v101_v19  ;;  %v115_v24 = vadd.f32 %v165_v6, %v103_v20 }
  0x8e   :  { %124 = vst [vmem:[%s240_s4 + $0x20] sm:$0xff] %v116_v21 }
  0x8f   :  { %126 = vst [vmem:[%s240_s4 + $0x30] sm:$0xff] %v118_v22 }
  0x90   :  { %121 = vst [vmem:[%s240_s4 + $0x8] sm:$0xff] %v113_v23 }
  0x91   :  { %123 = vst [vmem:[%s240_s4 + $0x18] sm:$0xff] %v115_v24  ;;  %v88_v25 = vpop.f32.mrf.mxu2  ;;  %v93_v26 = vpop.f32.mrf.mxu3 }
  0x92   :  { %v105_v27 = vmul.f32 %v164_v5, %v88_v25  ;;  %v107_v28 = vmul.f32 %v164_v5, %v93_v26 }
  0x94   :  { %v117_v29 = vadd.f32 %v165_v6, %v105_v27  ;;  %v119_v30 = vadd.f32 %v165_v6, %v107_v28 }
  0x96   :  { %125 = vst [vmem:[%s240_s4 + $0x28] sm:$0xff] %v117_v29 }
  0x97   :  { %127 = vst [vmem:[%s240_s4 + $0x38] sm:$0xff] %v119_v30 }

// kernel: _lambda_.119
= control target key start
LH: loop header
LB: loop body
LE: loop exit
PB: predicated region body
PF: predicated region fallthrough
CT: control target
= control target key end

     0   :  { %vm62_vm0 = vcmask 261120   ;;  %s263_s1 = inlined_call_operand.vmem [shape: bf16[32,128], index: 1, kind: input, shape index: {}]   ;;  %s264_s2 = inlined_call_operand.vmem [shape: f32[1,128], index: 2, kind: input, shape index: {}]   ;;  %s265_s3 = inlined_call_operand.vmem [shape: f32[1,128], index: 3, kind: input, shape index: {}]   ;;  %s266_s0 = inlined_call_operand.vmem [shape: bf16[64,32], index: 0, kind: input, shape index: {}]   ;;  %s267_s4 = inlined_call_operand.vmem [shape: f32[64,128], index: 4, kind: output, shape index: {}]  }
   0x1   :  { %v181_v0 = vld [vmem:[%s263_s1 + $0x8] sm:$0xff]  ;;  %v180_v1 = vld [vmem:[%s263_s1] sm:$0xff]  ;;  %v178_v4 = vld [vmem:[%s266_s0 + $0x10] sm:$0xff] }
   0x2   :  { %81 = vmatpush.bf16.msra.mxu0 %v181_v0  ;;  %182 = vmatpush.bf16.msra.mxu1 %v181_v0  ;;  %v176_v2 = vld [vmem:[%s266_s0] sm:$0xff]  ;;  %v177_v3 = vld [vmem:[%s266_s0 + $0x8] sm:$0xff]  ;;  %v179_v5 = vld [vmem:[%s266_s0 + $0x18] sm:$0xff] }
   0x3   :  { %183 = vmatpush.bf16.msra.mxu2 %v181_v0  ;;  %184 = vmatpush.bf16.msra.mxu3 %v181_v0  ;;  %v188_v6 = vld [vmem:[%s264_s2] ss:$0 sm:$0xff] }
   0x4   :  { %v189_v7 = vld [vmem:[%s265_s3] ss:$0 sm:$0xff] }
   0x6   :  { %82 = vmatpush.bf16.msra.mxu0 %v180_v1  ;;  %185 = vmatpush.bf16.msra.mxu1 %v180_v1 }
   0x7   :  { %186 = vmatpush.bf16.msra.mxu2 %v180_v1  ;;  %187 = vmatpush.bf16.msra.mxu3 %v180_v1 }
   0x9   :  { %172 = vmatmul.msk.bf16.vlgmr.msra.gmra.mxu0 %vm62_vm0, %v176_v2  ;;  %173 = vmatmul.msk.bf16.vlgmr.msra.gmra.mxu1 %vm62_vm0, %v177_v3 }
   0xa   :  { %174 = vmatmul.msk.bf16.vlgmr.msra.gmra.mxu2 %vm62_vm0, %v178_v4  ;;  %175 = vmatmul.msk.bf16.vlgmr.msra.gmra.mxu3 %vm62_vm0, %v179_v5 }
  0x86   :  { %v84_v8 = vpop.f32.mrf.mxu0  ;;  %v89_v9 = vpop.f32.mrf.mxu1 }
  0x87   :  { %v108_v10 = vmul.f32 %v188_v6, %v84_v8  ;;  %v110_v11 = vmul.f32 %v188_v6, %v89_v9 }
  0x89   :  { %v120_v12 = vadd.f32 %v189_v7, %v108_v10  ;;  %v122_v13 = vadd.f32 %v189_v7, %v110_v11 }
  0x8b   :  { %v128_v14 = vmax.f32 %v120_v12, 0.0  ;;  %v130_v15 = vmax.f32 %v122_v13, 0.0 }
  0x8d   :  { %136 = vst [vmem:[%s267_s4] sm:$0xff] %v128_v14  ;;  %v94_v16 = vpop.f32.mrf.mxu2  ;;  %v99_v17 = vpop.f32.mrf.mxu3 }
  0x8e   :  { %138 = vst [vmem:[%s267_s4 + $0x10] sm:$0xff] %v130_v15  ;;  %v112_v18 = vmul.f32 %v188_v6, %v94_v16  ;;  %v114_v19 = vmul.f32 %v188_v6, %v99_v17  ;;  %v86_v20 = vpop.f32.mrf.mxu0  ;;  %v91_v21 = vpop.f32.mrf.mxu1 }
  0x8f   :  { %v109_v22 = vmul.f32 %v188_v6, %v86_v20  ;;  %v111_v23 = vmul.f32 %v188_v6, %v91_v21 }
  0x90   :  { %v124_v24 = vadd.f32 %v189_v7, %v112_v18  ;;  %v126_v25 = vadd.f32 %v189_v7, %v114_v19 }
  0x91   :  { %v121_v26 = vadd.f32 %v189_v7, %v109_v22  ;;  %v123_v27 = vadd.f32 %v189_v7, %v111_v23 }
  0x92   :  { %v132_v28 = vmax.f32 %v124_v24, 0.0  ;;  %v134_v29 = vmax.f32 %v126_v25, 0.0 }
  0x93   :  { %v129_v30 = vmax.f32 %v121_v26, 0.0  ;;  %v131_v31 = vmax.f32 %v123_v27, 0.0 }
  0x94   :  { %140 = vst [vmem:[%s267_s4 + $0x20] sm:$0xff] %v132_v28 }
  0x95   :  { %142 = vst [vmem:[%s267_s4 + $0x30] sm:$0xff] %v134_v29  ;;  %v96_v32 = vpop.f32.mrf.mxu2  ;;  %v101_v33 = vpop.f32.mrf.mxu3 }
  0x96   :  { %137 = vst [vmem:[%s267_s4 + $0x8] sm:$0xff] %v129_v30  ;;  %v113_v34 = vmul.f32 %v188_v6, %v96_v32  ;;  %v115_v35 = vmul.f32 %v188_v6, %v101_v33 }
  0x97   :  { %139 = vst [vmem:[%s267_s4 + $0x18] sm:$0xff] %v131_v31 }
  0x98   :  { %v125_v36 = vadd.f32 %v189_v7, %v113_v34  ;;  %v127_v37 = vadd.f32 %v189_v7, %v115_v35 }
  0x9a   :  { %v133_v38 = vmax.f32 %v125_v36, 0.0  ;;  %v135_v39 = vmax.f32 %v127_v37, 0.0 }
  0x9c   :  { %141 = vst [vmem:[%s267_s4 + $0x28] sm:$0xff] %v133_v38 }
  0x9d   :  { %143 = vst [vmem:[%s267_s4 + $0x38] sm:$0xff] %v135_v39 }

// kernel: _lambda_.123
= control target key start
LH: loop header
LB: loop body
LE: loop exit
PB: predicated region body
PF: predicated region fallthrough
CT: control target
= control target key end

     0   :  { %9 = vsyncpa [#allocation3], 0  ;;  %s212_s18 = smov [#allocation2]   ;;  %s213_s20 = smov 64   ;;  %s285_s0 = inlined_call_operand.vmem [shape: bf16[64,16], index: 0, kind: input, shape index: {}]   ;;  %s286_s1 = inlined_call_operand.hbm [shape: bf16[16,128], index: 1, kind: input, shape index: {}]   ;;  %s287_s2 = inlined_call_operand.vmem [shape: f32[1,128], index: 2, kind: input, shape index: {}]   ;;  %s288_s3 = inlined_call_operand.vmem [shape: f32[1,128], index: 3, kind: input, shape index: {}]   ;;  %s289_s4 = inlined_call_operand.vmem [shape: f32[64,128], index: 4, kind: output, shape index: {}]  }
   0x1   :  { %s16_s17 = sshll.u32 %s286_s1, 4  ;;  %s18_s19 = sshll.u32 %s212_s18, 4  ;;  %s17_s17 = int_to_ptr.hbm [resolvable:$true] %s16_s17  ;;  %s19_s19 = int_to_ptr.vmem [resolvable:$true] %s18_s19 }
   0x2   :  { %s214_s21 = smov 4  }
   0x3   :  { %24 = dma.hbm_to_vmem [thread:$0]  %s17_s17, 128, %s19_s19, [#allocation3], %s213_s20, %s213_s20, %s214_s21  }
   0x4   :  { %210 = dma.done.wait [#allocation3], 128  }
   0x5   :  { %211 = vsyncadd [#allocation3], 4294967168  ;;  %v177_v0 = vld [vmem:[#allocation2] sm:$0xff]  ;;  %v174_v2 = vld [vmem:[%s285_s0 + $0x8] sm:$0xff]  ;;  %vm70_vm0 = vcmask 130048  }
   0x6   :  { %v173_v1 = vld [vmem:[%s285_s0] sm:$0xff]  ;;  %90 = vmatpush.bf16.msra.mxu0 %v177_v0  ;;  %178 = vmatpush.bf16.msra.mxu1 %v177_v0  ;;  %v175_v3 = vld [vmem:[%s285_s0 + $0x10] sm:$0xff]  ;;  %v176_v4 = vld [vmem:[%s285_s0 + $0x18] sm:$0xff] }
   0x7   :  { %179 = vmatpush.bf16.msra.mxu2 %v177_v0  ;;  %180 = vmatpush.bf16.msra.mxu3 %v177_v0  ;;  %v184_v5 = vld [vmem:[%s287_s2] ss:$0 sm:$0xff] }
   0x8   :  { %v185_v6 = vld [vmem:[%s288_s3] ss:$0 sm:$0xff] }
   0x9   :  { %169 = vmatmul.msk.bf16.vlgmr.msra.gmra.mxu0 %vm70_vm0, %v173_v1  ;;  %170 = vmatmul.msk.bf16.vlgmr.msra.gmra.mxu1 %vm70_vm0, %v174_v2 }
   0xa   :  { %171 = vmatmul.msk.bf16.vlgmr.msra.gmra.mxu2 %vm70_vm0, %v175_v3  ;;  %172 = vmatmul.msk.bf16.vlgmr.msra.gmra.mxu3 %vm70_vm0, %v176_v4 }
  0x86   :  { %v92_v7 = vpop.f32.mrf.mxu0  ;;  %v97_v8 = vpop.f32.mrf.mxu1 }
  0x87   :  { %v116_v9 = vmul.f32 %v184_v5, %v92_v7  ;;  %v118_v10 = vmul.f32 %v184_v5, %v97_v8 }
  0x89   :  { %v128_v11 = vadd.f32 %v185_v6, %v116_v9  ;;  %v130_v12 = vadd.f32 %v185_v6, %v118_v10 }
  0x8b   :  { %136 = vst [vmem:[%s289_s4] sm:$0xff] %v128_v11 }
  0x8c   :  { %138 = vst [vmem:[%s289_s4 + $0x10] sm:$0xff] %v130_v12 }
  0x8d   :  { %v102_v13 = vpop.f32.mrf.mxu2  ;;  %v107_v14 = vpop.f32.mrf.mxu3 }
  0x8e   :  { %v120_v15 = vmul.f32 %v184_v5, %v102_v13  ;;  %v122_v16 = vmul.f32 %v184_v5, %v107_v14  ;;  %v94_v17 = vpop.f32.mrf.mxu0  ;;  %v99_v18 = vpop.f32.mrf.mxu1 }
  0x8f   :  { %v117_v19 = vmul.f32 %v184_v5, %v94_v17  ;;  %v119_v20 = vmul.f32 %v184_v5, %v99_v18 }
  0x90   :  { %v132_v21 = vadd.f32 %v185_v6, %v120_v15  ;;  %v134_v22 = vadd.f32 %v185_v6, %v122_v16 }
  0x91   :  { %v129_v23 = vadd.f32 %v185_v6, %v117_v19  ;;  %v131_v24 = vadd.f32 %v185_v6, %v119_v20 }
  0x92   :  { %140 = vst [vmem:[%s289_s4 + $0x20] sm:$0xff] %v132_v21 }
  0x93   :  { %142 = vst [vmem:[%s289_s4 + $0x30] sm:$0xff] %v134_v22 }
  0x94   :  { %137 = vst [vmem:[%s289_s4 + $0x8] sm:$0xff] %v129_v23 }
  0x95   :  { %139 = vst [vmem:[%s289_s4 + $0x18] sm:$0xff] %v131_v24  ;;  %v104_v25 = vpop.f32.mrf.mxu2  ;;  %v109_v26 = vpop.f32.mrf.mxu3 }
  0x96   :  { %v121_v27 = vmul.f32 %v184_v5, %v104_v25  ;;  %v123_v28 = vmul.f32 %v184_v5, %v109_v26 }
  0x98   :  { %v133_v29 = vadd.f32 %v185_v6, %v121_v27  ;;  %v135_v30 = vadd.f32 %v185_v6, %v123_v28 }
  0x9a   :  { %141 = vst [vmem:[%s289_s4 + $0x28] sm:$0xff] %v133_v29 }
  0x9b   :  { %143 = vst [vmem:[%s289_s4 + $0x38] sm:$0xff] %v135_v30 }
  0x9c   :  { %148 = vsyncpa [#allocation3], 1 }

// kernel: _lambda_.135
= control target key start
LH: loop header
LB: loop body
LE: loop exit
PB: predicated region body
PF: predicated region fallthrough
CT: control target
= control target key end

     0   :  { %vm48_vm0 = vcmask 261120   ;;  %s179_s1 = inlined_call_operand.vmem [shape: bf16[32,128], index: 1, kind: input, shape index: {}]   ;;  %s180_s2 = inlined_call_operand.vmem [shape: f32[1,128], index: 2, kind: input, shape index: {}]   ;;  %s181_s3 = inlined_call_operand.vmem [shape: f32[1,128], index: 3, kind: input, shape index: {}]   ;;  %s182_s0 = inlined_call_operand.vmem [shape: bf16[32,32], index: 0, kind: input, shape index: {}]   ;;  %s183_s4 = inlined_call_operand.vmem [shape: f32[32,128], index: 4, kind: output, shape index: {}]  }
   0x1   :  { %v119_v0 = vld [vmem:[%s179_s1 + $0x8] sm:$0xff]  ;;  %v118_v1 = vld [vmem:[%s179_s1] sm:$0xff] }
   0x2   :  { %61 = vmatpush.bf16.msra.mxu0 %v119_v0  ;;  %120 = vmatpush.bf16.msra.mxu1 %v119_v0  ;;  %v116_v2 = vld [vmem:[%s182_s0] sm:$0xff]  ;;  %v117_v3 = vld [vmem:[%s182_s0 + $0x8] sm:$0xff] }
   0x3   :  { %v122_v4 = vld [vmem:[%s180_s2] ss:$0 sm:$0xff] }
   0x4   :  { %v123_v5 = vld [vmem:[%s181_s3] ss:$0 sm:$0xff] }
   0x6   :  { %62 = vmatpush.bf16.msra.mxu0 %v118_v1  ;;  %121 = vmatpush.bf16.msra.mxu1 %v118_v1 }
   0x9   :  { %114 = vmatmul.msk.bf16.vlgmr.msra.gmra.mxu0 %vm48_vm0, %v116_v2  ;;  %115 = vmatmul.msk.bf16.vlgmr.msra.gmra.mxu1 %vm48_vm0, %v117_v3 }
  0x86   :  { %v64_v6 = vpop.f32.mrf.mxu0  ;;  %v69_v7 = vpop.f32.mrf.mxu1 }
  0x87   :  { %v78_v8 = vmul.f32 %v122_v4, %v64_v6  ;;  %v80_v9 = vmul.f32 %v122_v4, %v69_v7 }
  0x89   :  { %v86_v10 = vadd.f32 %v123_v5, %v78_v8  ;;  %v88_v11 = vadd.f32 %v123_v5, %v80_v9 }
  0x8b   :  { %90 = vst [vmem:[%s183_s4] sm:$0xff] %v86_v10 }
  0x8c   :  { %92 = vst [vmem:[%s183_s4 + $0x10] sm:$0xff] %v88_v11 }
  0x8e   :  { %v66_v12 = vpop.f32.mrf.mxu0  ;;  %v71_v13 = vpop.f32.mrf.mxu1 }
  0x8f   :  { %v79_v14 = vmul.f32 %v122_v4, %v66_v12  ;;  %v81_v15 = vmul.f32 %v122_v4, %v71_v13 }
  0x91   :  { %v87_v16 = vadd.f32 %v123_v5, %v79_v14  ;;  %v89_v17 = vadd.f32 %v123_v5, %v81_v15 }
  0x93   :  { %91 = vst [vmem:[%s183_s4 + $0x8] sm:$0xff] %v87_v16 }
  0x94   :  { %93 = vst [vmem:[%s183_s4 + $0x18] sm:$0xff] %v89_v17 }

// kernel: _lambda_.136
= control target key start
LH: loop header
LB: loop body
LE: loop exit
PB: predicated region body
PF: predicated region fallthrough
CT: control target
= control target key end

     0   :  { %vm41_vm0 = vcmask 261120   ;;  %s141_s1 = inlined_call_operand.vmem [shape: bf16[32,128], index: 1, kind: input, shape index: {}]   ;;  %s142_s2 = inlined_call_operand.vmem [shape: f32[1,128], index: 2, kind: input, shape index: {}]   ;;  %s143_s3 = inlined_call_operand.vmem [shape: f32[1,128], index: 3, kind: input, shape index: {}]   ;;  %s144_s0 = inlined_call_operand.vmem [shape: bf16[16,32], index: 0, kind: input, shape index: {}]   ;;  %s145_s4 = inlined_call_operand.vmem [shape: f32[16,128], index: 4, kind: output, shape index: {}]  }
   0x1   :  { %v92_v0 = vld [vmem:[%s141_s1 + $0x8] sm:$0xff]  ;;  %v91_v1 = vld [vmem:[%s141_s1] sm:$0xff] }
   0x2   :  { %51 = vmatpush.bf16.msra.mxu0 %v92_v0  ;;  %v90_v2 = vld [vmem:[%s144_s0] sm:$0xff] }
   0x3   :  { %v93_v3 = vld [vmem:[%s142_s2] ss:$0 sm:$0xff] }
   0x4   :  { %v94_v4 = vld [vmem:[%s143_s3] ss:$0 sm:$0xff] }
   0x6   :  { %52 = vmatpush.bf16.msra.mxu0 %v91_v1 }
   0x9   :  { %89 = vmatmul.msk.bf16.vlgmr.msra.gmra.mxu0 %vm41_vm0, %v90_v2 }
  0x86   :  { %v54_v5 = vpop.f32.mrf.mxu0 }
  0x87   :  { %v63_v6 = vmul.f32 %v93_v3, %v54_v5 }
  0x89   :  { %v69_v7 = vadd.f32 %v94_v4, %v63_v6 }
  0x8b   :  { %71 = vst [vmem:[%s145_s4] sm:$0xff] %v69_v7 }
  0x8e   :  { %v56_v8 = vpop.f32.mrf.mxu0 }
  0x8f   :  { %v64_v9 = vmul.f32 %v93_v3, %v56_v8 }
  0x91   :  { %v70_v10 = vadd.f32 %v94_v4, %v64_v9 }
  0x93   :  { %72 = vst [vmem:[%s145_s4 + $0x8] sm:$0xff] %v70_v10 }

// kernel: _lambda_.138
= control target key start
LH: loop header
LB: loop body
LE: loop exit
PB: predicated region body
PF: predicated region fallthrough
CT: control target
= control target key end

     0   :  { %vm35_vm0 = vcmask 261120   ;;  %s123_s1 = inlined_call_operand.vmem [shape: bf16[32,128], index: 1, kind: input, shape index: {}]   ;;  %s124_s2 = inlined_call_operand.vmem [shape: f32[1,128], index: 2, kind: input, shape index: {}]   ;;  %s125_s3 = inlined_call_operand.vmem [shape: f32[1,128], index: 3, kind: input, shape index: {}]   ;;  %s126_s0 = inlined_call_operand.vmem [shape: bf16[8,32], index: 0, kind: input, shape index: {}]   ;;  %s127_s4 = inlined_call_operand.vmem [shape: f32[8,128], index: 4, kind: output, shape index: {}]  }
   0x1   :  { %v77_v0 = vld [vmem:[%s123_s1 + $0x8] sm:$0xff]  ;;  %v76_v1 = vld [vmem:[%s123_s1] sm:$0xff] }
   0x2   :  { %45 = vmatpush.bf16.msra.mxu0 %v77_v0  ;;  %v18_v2 = vld [vmem:[%s126_s0] sm:$0xf] }
   0x3   :  { %v78_v3 = vld [vmem:[%s124_s2] ss:$0 sm:$0xff] }
   0x4   :  { %v79_v4 = vld [vmem:[%s125_s3] ss:$0 sm:$0xff] }
   0x6   :  { %46 = vmatpush.bf16.msra.mxu0 %v76_v1 }
   0x9   :  { %75 = vmatmul.msk.bf16.vlgmr.msra.gmra.mxu0 %vm35_vm0, %v18_v2 }
  0x86   :  { %v48_v5 = vpop.f32.mrf.mxu0 }
  0x87   :  { %v56_v6 = vmul.f32 %v78_v3, %v48_v5 }
  0x89   :  { %v61_v7 = vadd.f32 %v79_v4, %v56_v6 }
  0x8b   :  { %62 = vst [vmem:[%s127_s4] sm:$0xff] %v61_v7 }
  0x8e   :  { %v50_v8 = vpop.f32.mrf.mxu0 }

// kernel: _lambda_.137
= control target key start
LH: loop header
LB: loop body
LE: loop exit
PB: predicated region body
PF: predicated region fallthrough
CT: control target
= control target key end

     0   :  { %9 = vsyncpa [#allocation3], 0  ;;  %s128_s18 = smov [#allocation2]   ;;  %s129_s20 = smov 64   ;;  %s174_s0 = inlined_call_operand.vmem [shape: bf16[16,16], index: 0, kind: input, shape index: {}]   ;;  %s175_s1 = inlined_call_operand.hbm [shape: bf16[16,128], index: 1, kind: input, shape index: {}]   ;;  %s176_s2 = inlined_call_operand.vmem [shape: f32[1,128], index: 2, kind: input, shape index: {}]   ;;  %s177_s3 = inlined_call_operand.vmem [shape: f32[1,128], index: 3, kind: input, shape index: {}]   ;;  %s178_s4 = inlined_call_operand.vmem [shape: f32[16,128], index: 4, kind: output, shape index: {}]  }
   0x1   :  { %s16_s17 = sshll.u32 %s175_s1, 4  ;;  %s18_s19 = sshll.u32 %s128_s18, 4  ;;  %s17_s17 = int_to_ptr.hbm [resolvable:$true] %s16_s17  ;;  %s19_s19 = int_to_ptr.vmem [resolvable:$true] %s18_s19 }
   0x2   :  { %s130_s21 = smov 4  }
   0x3   :  { %24 = dma.hbm_to_vmem [thread:$0]  %s17_s17, 128, %s19_s19, [#allocation3], %s129_s20, %s129_s20, %s130_s21  }
   0x4   :  { %126 = dma.done.wait [#allocation3], 128  }
   0x5   :  { %127 = vsyncadd [#allocation3], 4294967168  ;;  %v96_v0 = vld [vmem:[#allocation2] sm:$0xff]  ;;  %vm49_vm0 = vcmask 130048  }
   0x6   :  { %v95_v1 = vld [vmem:[%s174_s0] sm:$0xff]  ;;  %60 = vmatpush.bf16.msra.mxu0 %v96_v0 }
   0x7   :  { %v100_v2 = vld [vmem:[%s176_s2] ss:$0 sm:$0xff] }
   0x8   :  { %v101_v3 = vld [vmem:[%s177_s3] ss:$0 sm:$0xff] }
   0x9   :  { %94 = vmatmul.msk.bf16.vlgmr.msra.gmra.mxu0 %vm49_vm0, %v95_v1 }
  0x86   :  { %v62_v4 = vpop.f32.mrf.mxu0 }
  0x87   :  { %v71_v5 = vmul.f32 %v100_v2, %v62_v4 }
  0x89   :  { %v77_v6 = vadd.f32 %v101_v3, %v71_v5 }
  0x8b   :  { %79 = vst [vmem:[%s178_s4] sm:$0xff] %v77_v6 }
  0x8e   :  { %v64_v7 = vpop.f32.mrf.mxu0 }
  0x8f   :  { %v72_v8 = vmul.f32 %v100_v2, %v64_v7 }
  0x91   :  { %v78_v9 = vadd.f32 %v101_v3, %v72_v8 }
  0x93   :  { %80 = vst [vmem:[%s178_s4 + $0x8] sm:$0xff] %v78_v9 }
  0x94   :  { %85 = vsyncpa [#allocation3], 1 }

// kernel: _lambda_.140
= control target key start
LH: loop header
LB: loop body
LE: loop exit
PB: predicated region body
PF: predicated region fallthrough
CT: control target
= control target key end

     0   :  { %9 = vsyncpa [#allocation3], 0  ;;  %s113_s18 = smov [#allocation2]   ;;  %s114_s20 = smov 64   ;;  %s156_s0 = inlined_call_operand.vmem [shape: bf16[8,16], index: 0, kind: input, shape index: {}]   ;;  %s157_s1 = inlined_call_operand.hbm [shape: bf16[16,128], index: 1, kind: input, shape index: {}]   ;;  %s158_s2 = inlined_call_operand.vmem [shape: f32[1,128], index: 2, kind: input, shape index: {}]   ;;  %s159_s3 = inlined_call_operand.vmem [shape: f32[1,128], index: 3, kind: input, shape index: {}]   ;;  %s160_s4 = inlined_call_operand.vmem [shape: f32[8,128], index: 4, kind: output, shape index: {}]  }
   0x1   :  { %s16_s17 = sshll.u32 %s157_s1, 4  ;;  %s18_s19 = sshll.u32 %s113_s18, 4  ;;  %s17_s17 = int_to_ptr.hbm [resolvable:$true] %s16_s17  ;;  %s19_s19 = int_to_ptr.vmem [resolvable:$true] %s18_s19 }
   0x2   :  { %s115_s21 = smov 4  }
   0x3   :  { %24 = dma.hbm_to_vmem [thread:$0]  %s17_s17, 128, %s19_s19, [#allocation3], %s114_s20, %s114_s20, %s115_s21  }
   0x4   :  { %111 = dma.done.wait [#allocation3], 128  }
   0x5   :  { %112 = vsyncadd [#allocation3], 4294967168  ;;  %v81_v0 = vld [vmem:[#allocation2] sm:$0xff]  ;;  %vm43_vm0 = vcmask 130048  }
   0x6   :  { %54 = vmatpush.bf16.msra.mxu0 %v81_v0  ;;  %v34_v1 = vld [vmem:[%s156_s0] sm:$0xf] }
   0x7   :  { %v85_v2 = vld [vmem:[%s158_s2] ss:$0 sm:$0xff] }
   0x8   :  { %v86_v3 = vld [vmem:[%s159_s3] ss:$0 sm:$0xff] }
   0x9   :  { %80 = vmatmul.msk.bf16.vlgmr.msra.gmra.mxu0 %vm43_vm0, %v34_v1 }
  0x86   :  { %v56_v4 = vpop.f32.mrf.mxu0 }
  0x87   :  { %v64_v5 = vmul.f32 %v85_v2, %v56_v4 }
  0x89   :  { %v69_v6 = vadd.f32 %v86_v3, %v64_v5 }
  0x8b   :  { %70 = vst [vmem:[%s160_s4] sm:$0xff] %v69_v6 }
  0x8e   :  { %v58_v7 = vpop.f32.mrf.mxu0 }
  0x8f   :  { %75 = vsyncpa [#allocation3], 1 }

// kernel: _lambda_.143
= control target key start
LH: loop header
LB: loop body
LE: loop exit
PB: predicated region body
PF: predicated region fallthrough
CT: control target
= control target key end

     0   :  { %9 = vsyncpa [#allocation3], 0  ;;  %s149_s18 = smov [#allocation2]   ;;  %s199_s0 = inlined_call_operand.vmem [shape: bf16[8,64], index: 0, kind: input, shape index: {}]   ;;  %s200_s1 = inlined_call_operand.vmem [shape: bf16[64,128], index: 1, kind: input, shape index: {}]   ;;  %s201_s2 = inlined_call_operand.hbm [shape: f32[1,128], index: 2, kind: input, shape index: {}]   ;;  %s202_s3 = inlined_call_operand.vmem [shape: f32[1,128], index: 3, kind: input, shape index: {}]   ;;  %s203_s4 = inlined_call_operand.vmem [shape: f32[8,128], index: 4, kind: output, shape index: {}]  }
   0x1   :  { %s19_s17 = sshll.u32 %s201_s2, 4  ;;  %s21_s19 = sshll.u32 %s149_s18, 4  ;;  %s20_s17 = int_to_ptr.hbm [resolvable:$true] %s19_s17  ;;  %s22_s19 = int_to_ptr.vmem [resolvable:$true] %s21_s19 }
   0x2   :  { %24 = dma.hbm_to_vmem [thread:$0]  %s20_s17, 16, %s22_s19, [#allocation3]  }
   0x3   :  { %147 = dma.done.wait [#allocation3], 16  }
   0x4   :  { %148 = vsyncadd [#allocation3], 4294967280  ;;  %v119_v0 = vld [vmem:[%s200_s1 + $0x18] sm:$0xff]  ;;  %v118_v1 = vld [vmem:[%s200_s1 + $0x10] sm:$0xff]  ;;  %vm65_vm0 = vcmask 523264  }
   0x5   :  { %73 = vmatpush.bf16.msra.mxu0 %v119_v0  ;;  %v117_v2 = vld [vmem:[%s200_s1 + $0x8] sm:$0xff]  ;;  %v116_v3 = vld [vmem:[%s200_s1] sm:$0xff] }
   0x6   :  { %v32_v4 = vld [vmem:[%s199_s0] sm:$0xf] }
   0x7   :  { %v121_v5 = vld [vmem:[#allocation2] ss:$0 sm:$0xff] }
   0x8   :  { %v122_v6 = vld [vmem:[%s202_s3] ss:$0 sm:$0xff] }
   0x9   :  { %74 = vmatpush.bf16.msra.mxu0 %v118_v1 }
   0xd   :  { %75 = vmatpush.bf16.msra.mxu0 %v117_v2 }
  0x11   :  { %76 = vmatpush.bf16.msra.mxu0 %v116_v3 }
  0x14   :  { %115 = vmatmul.msk.bf16.vlgmr.msra.gmra.mxu0 %vm65_vm0, %v32_v4 }
  0x91   :  { %v78_v7 = vpop.f32.mrf.mxu0 }
  0x92   :  { %v86_v8 = vmul.f32 %v121_v5, %v78_v7 }
  0x94   :  { %v91_v9 = vadd.f32 %v122_v6, %v86_v8 }
  0x96   :  { %v92_v10 = vmax.f32 %v91_v9, 0.0 }
  0x98   :  { %93 = vst [vmem:[%s203_s4] sm:$0xff] %v92_v10 }
  0x99   :  { %v80_v11 = vpop.f32.mrf.mxu0 }
  0x9a   :  { %98 = vsyncpa [#allocation3], 1 }

// kernel: _lambda_.144
= control target key start
LH: loop header
LB: loop body
LE: loop exit
PB: predicated region body
PF: predicated region fallthrough
CT: control target
= control target key end

     0   :  { %9 = vsyncpa [#allocation3], 0  ;;  %s135_s18 = smov [#allocation2]   ;;  %s182_s0 = inlined_call_operand.vmem [shape: bf16[8,48], index: 0, kind: input, shape index: {}]   ;;  %s183_s1 = inlined_call_operand.vmem [shape: bf16[48,128], index: 1, kind: input, shape index: {}]   ;;  %s184_s2 = inlined_call_operand.hbm [shape: f32[1,128], index: 2, kind: input, shape index: {}]   ;;  %s185_s3 = inlined_call_operand.vmem [shape: f32[1,128], index: 3, kind: input, shape index: {}]   ;;  %s186_s4 = inlined_call_operand.vmem [shape: f32[8,128], index: 4, kind: output, shape index: {}]  }
   0x1   :  { %s19_s17 = sshll.u32 %s184_s2, 4  ;;  %s21_s19 = sshll.u32 %s135_s18, 4  ;;  %s20_s17 = int_to_ptr.hbm [resolvable:$true] %s19_s17  ;;  %s22_s19 = int_to_ptr.vmem [resolvable:$true] %s21_s19 }
   0x2   :  { %24 = dma.hbm_to_vmem [thread:$0]  %s20_s17, 16, %s22_s19, [#allocation3]  }
   0x3   :  { %133 = dma.done.wait [#allocation3], 16  }
   0x4   :  { %134 = vsyncadd [#allocation3], 4294967280  ;;  %v105_v0 = vld [vmem:[%s183_s1 + $0x10] sm:$0xff]  ;;  %v104_v1 = vld [vmem:[%s183_s1 + $0x8] sm:$0xff]  ;;  %vm57_vm0 = vcmask 392192  }
   0x5   :  { %66 = vmatpush.bf16.msra.mxu0 %v105_v0  ;;  %v103_v2 = vld [vmem:[%s183_s1] sm:$0xff] }
   0x6   :  { %v32_v3 = vld [vmem:[%s182_s0] sm:$0xf] }
   0x7   :  { %v107_v4 = vld [vmem:[#allocation2] ss:$0 sm:$0xff] }
   0x8   :  { %v108_v5 = vld [vmem:[%s185_s3] ss:$0 sm:$0xff] }
   0x9   :  { %67 = vmatpush.bf16.msra.mxu0 %v104_v1 }
   0xd   :  { %68 = vmatpush.bf16.msra.mxu0 %v103_v2 }
  0x10   :  { %102 = vmatmul.msk.bf16.vlgmr.msra.gmra.mxu0 %vm57_vm0, %v32_v3 }
  0x8d   :  { %v70_v6 = vpop.f32.mrf.mxu0 }
  0x8e   :  { %v78_v7 = vmul.f32 %v107_v4, %v70_v6 }
  0x90   :  { %v83_v8 = vadd.f32 %v108_v5, %v78_v7 }
  0x92   :  { %84 = vst [vmem:[%s186_s4] sm:$0xff] %v83_v8 }
  0x95   :  { %v72_v9 = vpop.f32.mrf.mxu0 }
  0x96   :  { %89 = vsyncpa [#allocation3], 1 }

// kernel: _lambda_.157
= control target key start
LH: loop header
LB: loop body
LE: loop exit
PB: predicated region body
PF: predicated region fallthrough
CT: control target
= control target key end

     0   :  { %vm27_vm0 = vcmask 130048   ;;  %s107_s1 = inlined_call_operand.vmem [shape: bf16[16,128], index: 1, kind: input, shape index: {}]   ;;  %s108_s0 = inlined_call_operand.vmem [shape: bf16[8,16], index: 0, kind: input, shape index: {}]   ;;  %s109_s2 = inlined_call_operand.vmem [shape: f32[1,128], index: 2, kind: input, shape index: {}]   ;;  %s110_s3 = inlined_call_operand.vmem [shape: f32[1,128], index: 3, kind: input, shape index: {}]   ;;  %s111_s4 = inlined_call_operand.vmem [shape: f32[8,128], index: 4, kind: output, shape index: {}]  }
   0x1   :  { %v64_v0 = vld [vmem:[%s107_s1] sm:$0xff] }
   0x2   :  { %38 = vmatpush.bf16.msra.mxu0 %v64_v0  ;;  %v18_v1 = vld [vmem:[%s108_s0] sm:$0xf] }
   0x3   :  { %v65_v2 = vld [vmem:[%s109_s2] ss:$0 sm:$0xff] }
   0x4   :  { %v66_v3 = vld [vmem:[%s110_s3] ss:$0 sm:$0xff] }
   0x5   :  { %63 = vmatmul.msk.bf16.vlgmr.msra.gmra.mxu0 %vm27_vm0, %v18_v1 }
  0x82   :  { %v40_v4 = vpop.f32.mrf.mxu0 }
  0x83   :  { %v48_v5 = vmul.f32 %v65_v2, %v40_v4 }
  0x85   :  { %v53_v6 = vadd.f32 %v66_v3, %v48_v5 }
  0x87   :  { %54 = vst [vmem:[%s111_s4] sm:$0xff] %v53_v6 }
  0x8a   :  { %v42_v7 = vpop.f32.mrf.mxu0 }

// kernel: _lambda_.161
= control target key start
LH: loop header
LB: loop body
LE: loop exit
PB: predicated region body
PF: predicated region fallthrough
CT: control target
= control target key end

     0   :  { %9 = vsyncpa [#allocation3], 0  ;;  %s319_s18 = smov [#allocation2]   ;;  %s405_s0 = inlined_call_operand.vmem [shape: bf16[8,256], index: 0, kind: input, shape index: {}]   ;;  %s406_s1 = inlined_call_operand.vmem [shape: bf16[256,128], index: 1, kind: input, shape index: {}]   ;;  %s407_s2 = inlined_call_operand.vmem [shape: f32[1,128], index: 2, kind: input, shape index: {}]   ;;  %s408_s3 = inlined_call_operand.hbm [shape: f32[1,128], index: 3, kind: input, shape index: {}]   ;;  %s409_s4 = inlined_call_operand.vmem [shape: f32[8,128], index: 4, kind: output, shape index: {}]  }
   0x1   :  { %s21_s17 = sshll.u32 %s408_s3, 4  ;;  %s23_s19 = sshll.u32 %s319_s18, 4  ;;  %s22_s17 = int_to_ptr.hbm [resolvable:$true] %s21_s17  ;;  %s24_s19 = int_to_ptr.vmem [resolvable:$true] %s23_s19 }
   0x2   :  { %26 = dma.hbm_to_vmem [thread:$0]  %s22_s17, 16, %s24_s19, [#allocation3]  }
   0x3   :  { %317 = dma.done.wait [#allocation3], 16  }
   0x4   :  { %318 = vsyncadd [#allocation3], 4294967280  ;;  %v281_v0 = vld [vmem:[%s406_s1 + $0x38] sm:$0xff]  ;;  %v280_v2 = vld [vmem:[%s406_s1 + $0x30] sm:$0xff] }
   0x5   :  { %v289_v1 = vld [vmem:[%s406_s1 + $0x78] sm:$0xff]  ;;  %167 = vmatpush.bf16.msra.mxu0 %v281_v0  ;;  %v288_v3 = vld [vmem:[%s406_s1 + $0x70] sm:$0xff]  ;;  %v279_v4 = vld [vmem:[%s406_s1 + $0x28] sm:$0xff] }
   0x6   :  { %180 = vmatpush.bf16.msra.mxu1 %v289_v1  ;;  %v287_v5 = vld [vmem:[%s406_s1 + $0x68] sm:$0xff]  ;;  %v278_v6 = vld [vmem:[%s406_s1 + $0x20] sm:$0xff]  ;;  %v277_v8 = vld [vmem:[%s406_s1 + $0x18] sm:$0xff] }
   0x7   :  { %v286_v7 = vld [vmem:[%s406_s1 + $0x60] sm:$0xff]  ;;  %v285_v9 = vld [vmem:[%s406_s1 + $0x58] sm:$0xff]  ;;  %v276_v10 = vld [vmem:[%s406_s1 + $0x10] sm:$0xff] }
   0x8   :  { %v284_v11 = vld [vmem:[%s406_s1 + $0x50] sm:$0xff]  ;;  %v275_v12 = vld [vmem:[%s406_s1 + $0x8] sm:$0xff]  ;;  %v31_v14 = vld [vmem:[%s405_s0] sm:$0xff] }
   0x9   :  { %168 = vmatpush.bf16.msra.mxu0 %v280_v2  ;;  %v283_v13 = vld [vmem:[%s406_s1 + $0x48] sm:$0xff]  ;;  %v65_v15 = vunpack.c.l.b16 %v31_v14  ;;  %v66_v16 = vunpack.c.h.b16 %v31_v14  ;;  %v274_v17 = vld [vmem:[%s406_s1] sm:$0xff] }
   0xa   :  { %181 = vmatpush.bf16.msra.mxu1 %v288_v3  ;;  %v282_v18 = vld [vmem:[%s406_s1 + $0x40] sm:$0xff] }
   0xb   :  { %v67_v19 = vpack.c.b16 %v65_v15, %v65_v15  ;;  %v68_v20 = vpack.c.b16 %v66_v16, %v66_v16  ;;  %v291_v21 = vld [vmem:[%s407_s2] ss:$0 sm:$0xff] }
   0xc   :  { %v292_v25 = vld [vmem:[#allocation2] ss:$0 sm:$0xff] }
   0xd   :  { %169 = vmatpush.bf16.msra.mxu0 %v279_v4 }
   0xe   :  { %182 = vmatpush.bf16.msra.mxu1 %v287_v5 }
  0x11   :  { %170 = vmatpush.bf16.msra.mxu0 %v278_v6 }
  0x12   :  { %183 = vmatpush.bf16.msra.mxu1 %v286_v7 }
  0x15   :  { %171 = vmatpush.bf16.msra.mxu0 %v277_v8 }
  0x16   :  { %184 = vmatpush.bf16.msra.mxu1 %v285_v9 }
  0x19   :  { %172 = vmatpush.bf16.msra.mxu0 %v276_v10 }
  0x1a   :  { %185 = vmatpush.bf16.msra.mxu1 %v284_v11 }
  0x1d   :  { %173 = vmatpush.bf16.msra.mxu0 %v275_v12 }
  0x1e   :  { %186 = vmatpush.bf16.msra.mxu1 %v283_v13 }
  0x21   :  { %174 = vmatpush.bf16.msra.mxu0 %v274_v17 }
  0x22   :  { %187 = vmatpush.bf16.msra.mxu1 %v282_v18 }
  0x24   :  { %175 = vmatmul.bf16.vlgmr.msra.gmra.mxu0 %v67_v19 }
  0x25   :  { %188 = vmatmul.bf16.vlgmr.msra.gmra.mxu1 %v68_v20 }
  0xa1   :  { %v176_v22 = vpop.f32.mrf.mxu0 }
  0xa2   :  { %v189_v23 = vpop.f32.mrf.mxu1 }
  0xa3   :  { %v190_v24 = vadd.f32 %v189_v23, %v176_v22 }
  0xa5   :  { %v197_v26 = vmul.f32 %v291_v21, %v190_v24 }
  0xa7   :  { %v202_v27 = vadd.f32 %v292_v25, %v197_v26 }
  0xa9   :  { %v203_v28 = vmax.f32 %v202_v27, 0.0  ;;  %v178_v29 = vpop.f32.mrf.mxu0 }
  0xaa   :  { %v191_v30 = vpop.f32.mrf.mxu1 }
  0xab   :  { %204 = vst [vmem:[%s409_s4] sm:$0xff] %v203_v28 }
  0xac   :  { %209 = vsyncpa [#allocation3], 1 }

// kernel: _lambda_.165
= control target key start
LH: loop header
LB: loop body
LE: loop exit
PB: predicated region body
PF: predicated region fallthrough
CT: control target
= control target key end

     0   :  { %9 = vsyncpa [#allocation3], 0  ;;  %s561_s18 = smov [#allocation2]   ;;  %s698_s0 = inlined_call_operand.vmem [shape: bf16[8,512], index: 0, kind: input, shape index: {}]   ;;  %s699_s1 = inlined_call_operand.vmem [shape: bf16[512,128], index: 1, kind: input, shape index: {}]   ;;  %s700_s2 = inlined_call_operand.vmem [shape: f32[1,128], index: 2, kind: input, shape index: {}]   ;;  %s701_s3 = inlined_call_operand.hbm [shape: f32[1,128], index: 3, kind: input, shape index: {}]   ;;  %s702_s4 = inlined_call_operand.vmem [shape: f32[8,128], index: 4, kind: output, shape index: {}]  }
   0x1   :  { %s21_s17 = sshll.u32 %s701_s3, 4  ;;  %s23_s19 = sshll.u32 %s561_s18, 4  ;;  %s22_s17 = int_to_ptr.hbm [resolvable:$true] %s21_s17  ;;  %s24_s19 = int_to_ptr.vmem [resolvable:$true] %s23_s19 }
   0x2   :  { %26 = dma.hbm_to_vmem [thread:$0]  %s22_s17, 16, %s24_s19, [#allocation3]  }
   0x3   :  { %559 = dma.done.wait [#allocation3], 16  }
   0x4   :  { %560 = vsyncadd [#allocation3], 4294967280  ;;  %v507_v0 = vld [vmem:[%s699_s1 + $0x38] sm:$0xff]  ;;  %v506_v4 = vld [vmem:[%s699_s1 + $0x30] sm:$0xff] }
   0x5   :  { %v515_v1 = vld [vmem:[%s699_s1 + $0x78] sm:$0xff]  ;;  %303 = vmatpush.bf16.msra.mxu0 %v507_v0  ;;  %v514_v5 = vld [vmem:[%s699_s1 + $0x70] sm:$0xff]  ;;  %v505_v8 = vld [vmem:[%s699_s1 + $0x28] sm:$0xff] }
   0x6   :  { %v523_v2 = vld [vmem:[%s699_s1 + $0xb8] sm:$0xff]  ;;  %316 = vmatpush.bf16.msra.mxu1 %v515_v1  ;;  %v522_v6 = vld [vmem:[%s699_s1 + $0xb0] sm:$0xff]  ;;  %v513_v9 = vld [vmem:[%s699_s1 + $0x68] sm:$0xff] }
   0x7   :  { %v531_v3 = vld [vmem:[%s699_s1 + $0xf8] sm:$0xff]  ;;  %329 = vmatpush.bf16.msra.mxu2 %v523_v2  ;;  %v530_v7 = vld [vmem:[%s699_s1 + $0xf0] sm:$0xff]  ;;  %v521_v10 = vld [vmem:[%s699_s1 + $0xa8] sm:$0xff] }
   0x8   :  { %342 = vmatpush.bf16.msra.mxu3 %v531_v3  ;;  %v529_v11 = vld [vmem:[%s699_s1 + $0xe8] sm:$0xff]  ;;  %v504_v12 = vld [vmem:[%s699_s1 + $0x20] sm:$0xff]  ;;  %v503_v16 = vld [vmem:[%s699_s1 + $0x18] sm:$0xff] }
   0x9   :  { %304 = vmatpush.bf16.msra.mxu0 %v506_v4  ;;  %v512_v13 = vld [vmem:[%s699_s1 + $0x60] sm:$0xff]  ;;  %v511_v17 = vld [vmem:[%s699_s1 + $0x58] sm:$0xff]  ;;  %v502_v20 = vld [vmem:[%s699_s1 + $0x10] sm:$0xff] }
   0xa   :  { %317 = vmatpush.bf16.msra.mxu1 %v514_v5  ;;  %v520_v14 = vld [vmem:[%s699_s1 + $0xa0] sm:$0xff]  ;;  %v519_v18 = vld [vmem:[%s699_s1 + $0x98] sm:$0xff]  ;;  %v510_v21 = vld [vmem:[%s699_s1 + $0x50] sm:$0xff] }
   0xb   :  { %330 = vmatpush.bf16.msra.mxu2 %v522_v6  ;;  %v528_v15 = vld [vmem:[%s699_s1 + $0xe0] sm:$0xff]  ;;  %v527_v19 = vld [vmem:[%s699_s1 + $0xd8] sm:$0xff]  ;;  %v518_v22 = vld [vmem:[%s699_s1 + $0x90] sm:$0xff] }
   0xc   :  { %343 = vmatpush.bf16.msra.mxu3 %v530_v7  ;;  %v526_v23 = vld [vmem:[%s699_s1 + $0xd0] sm:$0xff]  ;;  %v501_v24 = vld [vmem:[%s699_s1 + $0x8] sm:$0xff]  ;;  %v31_v26 = vld [vmem:[%s698_s0] sm:$0xff] }
   0xd   :  { %305 = vmatpush.bf16.msra.mxu0 %v505_v8  ;;  %v509_v25 = vld [vmem:[%s699_s1 + $0x48] sm:$0xff]  ;;  %v99_v30 = vunpack.c.l.b16 %v31_v26  ;;  %v100_v31 = vunpack.c.h.b16 %v31_v26  ;;  %v500_v32 = vld [vmem:[%s699_s1] sm:$0xff] }
   0xe   :  { %318 = vmatpush.bf16.msra.mxu1 %v513_v9  ;;  %v517_v27 = vld [vmem:[%s699_s1 + $0x88] sm:$0xff]  ;;  %v508_v33 = vld [vmem:[%s699_s1 + $0x40] sm:$0xff] }
   0xf   :  { %331 = vmatpush.bf16.msra.mxu2 %v521_v10  ;;  %v525_v28 = vld [vmem:[%s699_s1 + $0xc8] sm:$0xff]  ;;  %v516_v36 = vld [vmem:[%s699_s1 + $0x80] sm:$0xff]  ;;  %v103_v38 = vpack.c.b16 %v99_v30, %v99_v30  ;;  %v104_v39 = vpack.c.b16 %v100_v31, %v100_v31 }
  0x10   :  { %344 = vmatpush.bf16.msra.mxu3 %v529_v11  ;;  %v32_v29 = vld [vmem:[%s698_s0 + $0x8] sm:$0xff]  ;;  %v524_v37 = vld [vmem:[%s699_s1 + $0xc0] sm:$0xff] }
  0x11   :  { %306 = vmatpush.bf16.msra.mxu0 %v504_v12  ;;  %v101_v34 = vunpack.c.l.b16 %v32_v29  ;;  %v102_v35 = vunpack.c.h.b16 %v32_v29  ;;  %v533_v48 = vld [vmem:[%s700_s2] ss:$0 sm:$0xff] }
  0x12   :  { %319 = vmatpush.bf16.msra.mxu1 %v512_v13  ;;  %v534_v52 = vld [vmem:[#allocation2] ss:$0 sm:$0xff] }
  0x13   :  { %332 = vmatpush.bf16.msra.mxu2 %v520_v14  ;;  %v105_v40 = vpack.c.b16 %v101_v34, %v101_v34  ;;  %v106_v41 = vpack.c.b16 %v102_v35, %v102_v35 }
  0x14   :  { %345 = vmatpush.bf16.msra.mxu3 %v528_v15 }
  0x15   :  { %307 = vmatpush.bf16.msra.mxu0 %v503_v16 }
  0x16   :  { %320 = vmatpush.bf16.msra.mxu1 %v511_v17 }
  0x17   :  { %333 = vmatpush.bf16.msra.mxu2 %v519_v18 }
  0x18   :  { %346 = vmatpush.bf16.msra.mxu3 %v527_v19 }
  0x19   :  { %308 = vmatpush.bf16.msra.mxu0 %v502_v20 }
  0x1a   :  { %321 = vmatpush.bf16.msra.mxu1 %v510_v21 }
  0x1b   :  { %334 = vmatpush.bf16.msra.mxu2 %v518_v22 }
  0x1c   :  { %347 = vmatpush.bf16.msra.mxu3 %v526_v23 }
  0x1d   :  { %309 = vmatpush.bf16.msra.mxu0 %v501_v24 }
  0x1e   :  { %322 = vmatpush.bf16.msra.mxu1 %v509_v25 }
  0x1f   :  { %335 = vmatpush.bf16.msra.mxu2 %v517_v27 }
  0x20   :  { %348 = vmatpush.bf16.msra.mxu3 %v525_v28 }
  0x21   :  { %310 = vmatpush.bf16.msra.mxu0 %v500_v32 }
  0x22   :  { %323 = vmatpush.bf16.msra.mxu1 %v508_v33 }
  0x23   :  { %336 = vmatpush.bf16.msra.mxu2 %v516_v36 }
  0x24   :  { %349 = vmatpush.bf16.msra.mxu3 %v524_v37  ;;  %311 = vmatmul.bf16.vlgmr.msra.gmra.mxu0 %v103_v38 }
  0x25   :  { %324 = vmatmul.bf16.vlgmr.msra.gmra.mxu1 %v104_v39 }
  0x26   :  { %337 = vmatmul.bf16.vlgmr.msra.gmra.mxu2 %v105_v40 }
  0x27   :  { %350 = vmatmul.bf16.vlgmr.msra.gmra.mxu3 %v106_v41 }
  0xa1   :  { %v312_v42 = vpop.f32.mrf.mxu0 }
  0xa2   :  { %v325_v43 = vpop.f32.mrf.mxu1 }
  0xa3   :  { %v326_v44 = vadd.f32 %v325_v43, %v312_v42 }
  0xa9   :  { %v338_v45 = vpop.f32.mrf.mxu2  ;;  %v314_v49 = vpop.f32.mrf.mxu0 }
  0xaa   :  { %v351_v46 = vpop.f32.mrf.mxu3  ;;  %v339_v47 = vadd.f32 %v338_v45, %v326_v44  ;;  %v327_v50 = vpop.f32.mrf.mxu1 }
  0xac   :  { %v352_v51 = vadd.f32 %v351_v46, %v339_v47 }
  0xae   :  { %v359_v53 = vmul.f32 %v533_v48, %v352_v51 }
  0xb0   :  { %v364_v54 = vadd.f32 %v534_v52, %v359_v53 }
  0xb1   :  { %v340_v55 = vpop.f32.mrf.mxu2 }
  0xb2   :  { %v353_v56 = vpop.f32.mrf.mxu3  ;;  %v365_v57 = vmax.f32 %v364_v54, 0.0 }
  0xb4   :  { %366 = vst [vmem:[%s702_s4] sm:$0xff] %v365_v57 }
  0xb5   :  { %371 = vsyncpa [#allocation3], 1 }

// kernel: _lambda_.159
= control target key start
LH: loop header
LB: loop body
LE: loop exit
PB: predicated region body
PF: predicated region fallthrough
CT: control target
= control target key end

     0   :  { %9 = vsyncpa [#allocation3], 0  ;;  %s195_s18 = smov [#allocation2]   ;;  %s257_s0 = inlined_call_operand.vmem [shape: bf16[8,128], index: 0, kind: input, shape index: {}]   ;;  %s258_s1 = inlined_call_operand.vmem [shape: bf16[128,128], index: 1, kind: input, shape index: {}]   ;;  %s259_s2 = inlined_call_operand.vmem [shape: f32[1,128], index: 2, kind: input, shape index: {}]   ;;  %s260_s3 = inlined_call_operand.hbm [shape: f32[1,128], index: 3, kind: input, shape index: {}]   ;;  %s261_s4 = inlined_call_operand.vmem [shape: f32[8,128], index: 4, kind: output, shape index: {}]  }
   0x1   :  { %s21_s17 = sshll.u32 %s260_s3, 4  ;;  %s23_s19 = sshll.u32 %s195_s18, 4  ;;  %s22_s17 = int_to_ptr.hbm [resolvable:$true] %s21_s17  ;;  %s24_s19 = int_to_ptr.vmem [resolvable:$true] %s23_s19 }
   0x2   :  { %26 = dma.hbm_to_vmem [thread:$0]  %s22_s17, 16, %s24_s19, [#allocation3]  }
   0x3   :  { %193 = dma.done.wait [#allocation3], 16  }
   0x4   :  { %194 = vsyncadd [#allocation3], 4294967280  ;;  %v165_v0 = vld [vmem:[%s258_s1 + $0x38] sm:$0xff]  ;;  %v164_v1 = vld [vmem:[%s258_s1 + $0x30] sm:$0xff] }
   0x5   :  { %96 = vmatpush.bf16.msra.mxu0 %v165_v0  ;;  %v163_v2 = vld [vmem:[%s258_s1 + $0x28] sm:$0xff]  ;;  %v162_v3 = vld [vmem:[%s258_s1 + $0x20] sm:$0xff]  ;;  %v161_v4 = vld [vmem:[%s258_s1 + $0x18] sm:$0xff] }
   0x6   :  { %v160_v5 = vld [vmem:[%s258_s1 + $0x10] sm:$0xff]  ;;  %v159_v6 = vld [vmem:[%s258_s1 + $0x8] sm:$0xff]  ;;  %v158_v7 = vld [vmem:[%s258_s1] sm:$0xff] }
   0x7   :  { %v31_v8 = vld [vmem:[%s257_s0] sm:$0xf] }
   0x8   :  { %v167_v9 = vld [vmem:[%s259_s2] ss:$0 sm:$0xff] }
   0x9   :  { %97 = vmatpush.bf16.msra.mxu0 %v164_v1  ;;  %v168_v10 = vld [vmem:[#allocation2] ss:$0 sm:$0xff] }
   0xd   :  { %98 = vmatpush.bf16.msra.mxu0 %v163_v2 }
  0x11   :  { %99 = vmatpush.bf16.msra.mxu0 %v162_v3 }
  0x15   :  { %100 = vmatpush.bf16.msra.mxu0 %v161_v4 }
  0x19   :  { %101 = vmatpush.bf16.msra.mxu0 %v160_v5 }
  0x1d   :  { %102 = vmatpush.bf16.msra.mxu0 %v159_v6 }
  0x21   :  { %103 = vmatpush.bf16.msra.mxu0 %v158_v7 }
  0x24   :  { %104 = vmatmul.bf16.vlgmr.msra.gmra.mxu0 %v31_v8 }
  0xa1   :  { %v105_v11 = vpop.f32.mrf.mxu0 }
  0xa2   :  { %v113_v12 = vmul.f32 %v167_v9, %v105_v11 }
  0xa4   :  { %v118_v13 = vadd.f32 %v168_v10, %v113_v12 }
  0xa6   :  { %v119_v14 = vmax.f32 %v118_v13, 0.0 }
  0xa8   :  { %120 = vst [vmem:[%s261_s4] sm:$0xff] %v119_v14 }
  0xa9   :  { %v107_v15 = vpop.f32.mrf.mxu0 }
  0xaa   :  { %125 = vsyncpa [#allocation3], 1 }

// kernel: _lambda_.158
= control target key start
LH: loop header
LB: loop body
LE: loop exit
PB: predicated region body
PF: predicated region fallthrough
CT: control target
= control target key end

     0   :  { %9 = vsyncpa [#allocation3], 0  ;;  %s149_s18 = smov [#allocation2]   ;;  %s199_s0 = inlined_call_operand.vmem [shape: bf16[8,64], index: 0, kind: input, shape index: {}]   ;;  %s200_s1 = inlined_call_operand.vmem [shape: bf16[64,128], index: 1, kind: input, shape index: {}]   ;;  %s201_s2 = inlined_call_operand.vmem [shape: f32[1,128], index: 2, kind: input, shape index: {}]   ;;  %s202_s3 = inlined_call_operand.hbm [shape: f32[1,128], index: 3, kind: input, shape index: {}]   ;;  %s203_s4 = inlined_call_operand.vmem [shape: f32[8,128], index: 4, kind: output, shape index: {}]  }
   0x1   :  { %s21_s17 = sshll.u32 %s202_s3, 4  ;;  %s23_s19 = sshll.u32 %s149_s18, 4  ;;  %s22_s17 = int_to_ptr.hbm [resolvable:$true] %s21_s17  ;;  %s24_s19 = int_to_ptr.vmem [resolvable:$true] %s23_s19 }
   0x2   :  { %26 = dma.hbm_to_vmem [thread:$0]  %s22_s17, 16, %s24_s19, [#allocation3]  }
   0x3   :  { %147 = dma.done.wait [#allocation3], 16  }
   0x4   :  { %148 = vsyncadd [#allocation3], 4294967280  ;;  %v119_v0 = vld [vmem:[%s200_s1 + $0x18] sm:$0xff]  ;;  %v118_v1 = vld [vmem:[%s200_s1 + $0x10] sm:$0xff]  ;;  %vm65_vm0 = vcmask 523264  }
   0x5   :  { %73 = vmatpush.bf16.msra.mxu0 %v119_v0  ;;  %v117_v2 = vld [vmem:[%s200_s1 + $0x8] sm:$0xff]  ;;  %v116_v3 = vld [vmem:[%s200_s1] sm:$0xff] }
   0x6   :  { %v32_v4 = vld [vmem:[%s199_s0] sm:$0xf] }
   0x7   :  { %v121_v5 = vld [vmem:[%s201_s2] ss:$0 sm:$0xff] }
   0x8   :  { %v122_v6 = vld [vmem:[#allocation2] ss:$0 sm:$0xff] }
   0x9   :  { %74 = vmatpush.bf16.msra.mxu0 %v118_v1 }
   0xd   :  { %75 = vmatpush.bf16.msra.mxu0 %v117_v2 }
  0x11   :  { %76 = vmatpush.bf16.msra.mxu0 %v116_v3 }
  0x14   :  { %115 = vmatmul.msk.bf16.vlgmr.msra.gmra.mxu0 %vm65_vm0, %v32_v4 }
  0x91   :  { %v78_v7 = vpop.f32.mrf.mxu0 }
  0x92   :  { %v86_v8 = vmul.f32 %v121_v5, %v78_v7 }
  0x94   :  { %v91_v9 = vadd.f32 %v122_v6, %v86_v8 }
  0x96   :  { %v92_v10 = vmax.f32 %v91_v9, 0.0 }
  0x98   :  { %93 = vst [vmem:[%s203_s4] sm:$0xff] %v92_v10 }
  0x99   :  { %v80_v11 = vpop.f32.mrf.mxu0 }
  0x9a   :  { %98 = vsyncpa [#allocation3], 1 }

// kernel: _lambda_.173
= control target key start
LH: loop header
LB: loop body
LE: loop exit
PB: predicated region body
PF: predicated region fallthrough
CT: control target
= control target key end

     0   :  { %s584_s1 = inlined_call_operand.vmem [shape: bf16[256,128], index: 1, kind: input, shape index: {}]   ;;  %s585_s0 = inlined_call_operand.vmem [shape: bf16[64,256], index: 0, kind: input, shape index: {}]   ;;  %s586_s2 = inlined_call_operand.vmem [shape: f32[1,128], index: 2, kind: input, shape index: {}]   ;;  %s587_s3 = inlined_call_operand.vmem [shape: f32[1,128], index: 3, kind: input, shape index: {}]   ;;  %s588_s4 = inlined_call_operand.vmem [shape: f32[64,128], index: 4, kind: output, shape index: {}]  }
   0x1   :  { %v406_v0 = vld [vmem:[%s584_s1 + $0x38] sm:$0xff]  ;;  %v405_v2 = vld [vmem:[%s584_s1 + $0x30] sm:$0xff]  ;;  %v404_v4 = vld [vmem:[%s584_s1 + $0x28] sm:$0xff] }
   0x2   :  { %v414_v1 = vld [vmem:[%s584_s1 + $0x78] sm:$0xff]  ;;  %193 = vmatpush.bf16.msra.mxu0 %v406_v0  ;;  %415 = vmatpush.bf16.msra.mxu2 %v406_v0  ;;  %v413_v3 = vld [vmem:[%s584_s1 + $0x70] sm:$0xff]  ;;  %v412_v5 = vld [vmem:[%s584_s1 + $0x68] sm:$0xff] }
   0x3   :  { %222 = vmatpush.bf16.msra.mxu1 %v414_v1  ;;  %423 = vmatpush.bf16.msra.mxu3 %v414_v1  ;;  %v403_v6 = vld [vmem:[%s584_s1 + $0x20] sm:$0xff]  ;;  %v402_v8 = vld [vmem:[%s584_s1 + $0x18] sm:$0xff]  ;;  %v401_v10 = vld [vmem:[%s584_s1 + $0x10] sm:$0xff] }
   0x4   :  { %v411_v7 = vld [vmem:[%s584_s1 + $0x60] sm:$0xff]  ;;  %v410_v9 = vld [vmem:[%s584_s1 + $0x58] sm:$0xff]  ;;  %v409_v11 = vld [vmem:[%s584_s1 + $0x50] sm:$0xff] }
   0x5   :  { %v400_v12 = vld [vmem:[%s584_s1 + $0x8] sm:$0xff]  ;;  %v399_v14 = vld [vmem:[%s584_s1] sm:$0xff]  ;;  %v305_v28 = vld [vmem:[%s585_s0 + $0x10] sm:$0xf] }
   0x6   :  { %194 = vmatpush.bf16.msra.mxu0 %v405_v2  ;;  %416 = vmatpush.bf16.msra.mxu2 %v405_v2  ;;  %v408_v13 = vld [vmem:[%s584_s1 + $0x48] sm:$0xff]  ;;  %v407_v15 = vld [vmem:[%s584_s1 + $0x40] sm:$0xff]  ;;  %v394_v29 = vld [vmem:[%s585_s0 + $0x14] sm:$0xf0] }
   0x7   :  { %223 = vmatpush.bf16.msra.mxu1 %v413_v3  ;;  %424 = vmatpush.bf16.msra.mxu3 %v413_v3  ;;  %v297_v16 = vld [vmem:[%s585_s0] sm:$0xf]  ;;  %v392_v17 = vld [vmem:[%s585_s0 + $0x4] sm:$0xf0]  ;;  %v391_v20 = vld [vmem:[%s585_s0 + $0x4] sm:$0xf]  ;;  %v306_v36 = vor.u32 %v394_v29, %v305_v28 }
   0x8   :  { %v313_v18 = vld [vmem:[%s585_s0 + $0x20] sm:$0xf]  ;;  %v396_v19 = vld [vmem:[%s585_s0 + $0x24] sm:$0xf0]  ;;  %v299_v21 = vld [vmem:[%s585_s0 + $0x8] sm:$0xf0]  ;;  %v298_v24 = vor.u32 %v392_v17, %v297_v16 }
   0x9   :  { %v395_v22 = vld [vmem:[%s585_s0 + $0x24] sm:$0xf]  ;;  %v315_v23 = vld [vmem:[%s585_s0 + $0x28] sm:$0xf0]  ;;  %v314_v25 = vor.u32 %v396_v19, %v313_v18  ;;  %v302_v26 = vor.u32 %v391_v20, %v299_v21  ;;  %v321_v30 = vld [vmem:[%s585_s0 + $0x30] sm:$0xf] }
   0xa   :  { %195 = vmatpush.bf16.msra.mxu0 %v404_v4  ;;  %417 = vmatpush.bf16.msra.mxu2 %v404_v4  ;;  %v318_v27 = vor.u32 %v395_v22, %v315_v23  ;;  %v398_v31 = vld [vmem:[%s585_s0 + $0x34] sm:$0xf0]  ;;  %v393_v32 = vld [vmem:[%s585_s0 + $0x14] sm:$0xf]  ;;  %v307_v33 = vld [vmem:[%s585_s0 + $0x18] sm:$0xf0] }
   0xb   :  { %224 = vmatpush.bf16.msra.mxu1 %v412_v5  ;;  %425 = vmatpush.bf16.msra.mxu3 %v412_v5  ;;  %v397_v34 = vld [vmem:[%s585_s0 + $0x34] sm:$0xf]  ;;  %v323_v35 = vld [vmem:[%s585_s0 + $0x38] sm:$0xf0]  ;;  %v322_v37 = vor.u32 %v398_v31, %v321_v30  ;;  %v310_v38 = vor.u32 %v393_v32, %v307_v33  ;;  %v431_v41 = vld [vmem:[%s586_s2] ss:$0 sm:$0xff] }
   0xc   :  { %v326_v39 = vor.u32 %v397_v34, %v323_v35  ;;  %v432_v44 = vld [vmem:[%s587_s3] ss:$0 sm:$0xff] }
   0xe   :  { %196 = vmatpush.bf16.msra.mxu0 %v403_v6  ;;  %418 = vmatpush.bf16.msra.mxu2 %v403_v6 }
   0xf   :  { %225 = vmatpush.bf16.msra.mxu1 %v411_v7  ;;  %426 = vmatpush.bf16.msra.mxu3 %v411_v7 }
  0x12   :  { %197 = vmatpush.bf16.msra.mxu0 %v402_v8  ;;  %419 = vmatpush.bf16.msra.mxu2 %v402_v8 }
  0x13   :  { %226 = vmatpush.bf16.msra.mxu1 %v410_v9  ;;  %427 = vmatpush.bf16.msra.mxu3 %v410_v9 }
  0x16   :  { %198 = vmatpush.bf16.msra.mxu0 %v401_v10  ;;  %420 = vmatpush.bf16.msra.mxu2 %v401_v10 }
  0x17   :  { %227 = vmatpush.bf16.msra.mxu1 %v409_v11  ;;  %428 = vmatpush.bf16.msra.mxu3 %v409_v11 }
  0x1a   :  { %199 = vmatpush.bf16.msra.mxu0 %v400_v12  ;;  %421 = vmatpush.bf16.msra.mxu2 %v400_v12 }
  0x1b   :  { %228 = vmatpush.bf16.msra.mxu1 %v408_v13  ;;  %429 = vmatpush.bf16.msra.mxu3 %v408_v13 }
  0x1e   :  { %200 = vmatpush.bf16.msra.mxu0 %v399_v14  ;;  %422 = vmatpush.bf16.msra.mxu2 %v399_v14 }
  0x1f   :  { %229 = vmatpush.bf16.msra.mxu1 %v407_v15  ;;  %430 = vmatpush.bf16.msra.mxu3 %v407_v15 }
  0x21   :  { %201 = vmatmul.bf16.vlgmr.msra.gmra.mxu0 %v298_v24  ;;  %211 = vmatmul.bf16.vlgmr.msra.gmra.mxu2 %v314_v25 }
  0x22   :  { %230 = vmatmul.bf16.vlgmr.msra.gmra.mxu1 %v302_v26  ;;  %240 = vmatmul.bf16.vlgmr.msra.gmra.mxu3 %v318_v27 }
  0x31   :  { %206 = vmatmul.bf16.gmra.mxu0 %v306_v36  ;;  %216 = vmatmul.bf16.gmra.mxu2 %v322_v37 }
  0x32   :  { %235 = vmatmul.bf16.gmra.mxu1 %v310_v38  ;;  %245 = vmatmul.bf16.gmra.mxu3 %v326_v39 }
  0x9e   :  { %v202_v40 = vpop.f32.mrf.mxu0 }
  0x9f   :  { %v231_v42 = vpop.f32.mrf.mxu1 }
  0xa0   :  { %v232_v43 = vadd.f32 %v231_v42, %v202_v40 }
  0xa2   :  { %v255_v45 = vmul.f32 %v431_v41, %v232_v43 }
  0xa4   :  { %v267_v46 = vadd.f32 %v432_v44, %v255_v45  ;;  %v212_v47 = vpop.f32.mrf.mxu2 }
  0xa5   :  { %v241_v48 = vpop.f32.mrf.mxu3 }
  0xa6   :  { %v275_v49 = vmax.f32 %v267_v46, 0.0  ;;  %v242_v50 = vadd.f32 %v241_v48, %v212_v47  ;;  %v204_v51 = vpop.f32.mrf.mxu0 }
  0xa7   :  { %v233_v52 = vpop.f32.mrf.mxu1 }
  0xa8   :  { %283 = vst [vmem:[%s588_s4] sm:$0xff] %v275_v49  ;;  %v259_v53 = vmul.f32 %v431_v41, %v242_v50  ;;  %v234_v54 = vadd.f32 %v233_v52, %v204_v51 }
  0xaa   :  { %v271_v55 = vadd.f32 %v432_v44, %v259_v53  ;;  %v256_v56 = vmul.f32 %v431_v41, %v234_v54 }
  0xac   :  { %v279_v57 = vmax.f32 %v271_v55, 0.0  ;;  %v268_v58 = vadd.f32 %v432_v44, %v256_v56  ;;  %v214_v59 = vpop.f32.mrf.mxu2 }
  0xad   :  { %v243_v60 = vpop.f32.mrf.mxu3 }
  0xae   :  { %287 = vst [vmem:[%s588_s4 + $0x20] sm:$0xff] %v279_v57  ;;  %v276_v61 = vmax.f32 %v268_v58, 0.0  ;;  %v244_v62 = vadd.f32 %v243_v60, %v214_v59  ;;  %v207_v63 = vpop.f32.mrf.mxu0 }
  0xaf   :  { %v236_v0 = vpop.f32.mrf.mxu1 }
  0xb0   :  { %284 = vst [vmem:[%s588_s4 + $0x8] sm:$0xff] %v276_v61  ;;  %v260_v1 = vmul.f32 %v431_v41, %v244_v62  ;;  %v237_v2 = vadd.f32 %v236_v0, %v207_v63 }
  0xb2   :  { %v272_v3 = vadd.f32 %v432_v44, %v260_v1  ;;  %v257_v4 = vmul.f32 %v431_v41, %v237_v2 }
  0xb4   :  { %v280_v5 = vmax.f32 %v272_v3, 0.0  ;;  %v269_v6 = vadd.f32 %v432_v44, %v257_v4  ;;  %v217_v7 = vpop.f32.mrf.mxu2 }
  0xb5   :  { %v246_v8 = vpop.f32.mrf.mxu3 }
  0xb6   :  { %288 = vst [vmem:[%s588_s4 + $0x28] sm:$0xff] %v280_v5  ;;  %v277_v9 = vmax.f32 %v269_v6, 0.0  ;;  %v247_v10 = vadd.f32 %v246_v8, %v217_v7  ;;  %v209_v11 = vpop.f32.mrf.mxu0 }
  0xb7   :  { %v238_v12 = vpop.f32.mrf.mxu1 }
  0xb8   :  { %285 = vst [vmem:[%s588_s4 + $0x10] sm:$0xff] %v277_v9  ;;  %v261_v13 = vmul.f32 %v431_v41, %v247_v10  ;;  %v239_v14 = vadd.f32 %v238_v12, %v209_v11 }
  0xba   :  { %v273_v15 = vadd.f32 %v432_v44, %v261_v13  ;;  %v258_v16 = vmul.f32 %v431_v41, %v239_v14 }
  0xbc   :  { %v281_v17 = vmax.f32 %v273_v15, 0.0  ;;  %v270_v18 = vadd.f32 %v432_v44, %v258_v16  ;;  %v219_v19 = vpop.f32.mrf.mxu2 }
  0xbd   :  { %v248_v20 = vpop.f32.mrf.mxu3 }
  0xbe   :  { %289 = vst [vmem:[%s588_s4 + $0x30] sm:$0xff] %v281_v17  ;;  %v278_v21 = vmax.f32 %v270_v18, 0.0  ;;  %v249_v22 = vadd.f32 %v248_v20, %v219_v19 }
  0xc0   :  { %286 = vst [vmem:[%s588_s4 + $0x18] sm:$0xff] %v278_v21  ;;  %v262_v23 = vmul.f32 %v431_v41, %v249_v22 }
  0xc2   :  { %v274_v24 = vadd.f32 %v432_v44, %v262_v23 }
  0xc4   :  { %v282_v25 = vmax.f32 %v274_v24, 0.0 }
  0xc6   :  { %290 = vst [vmem:[%s588_s4 + $0x38] sm:$0xff] %v282_v25 }

// kernel: _lambda_.169
= control target key start
LH: loop header
LB: loop body
LE: loop exit
PB: predicated region body
PF: predicated region fallthrough
CT: control target
= control target key end

     0   :  { %s363_s1 = inlined_call_operand.vmem [shape: bf16[128,128], index: 1, kind: input, shape index: {}]   ;;  %s364_s2 = inlined_call_operand.vmem [shape: f32[1,128], index: 2, kind: input, shape index: {}]   ;;  %s365_s3 = inlined_call_operand.vmem [shape: f32[1,128], index: 3, kind: input, shape index: {}]   ;;  %s366_s0 = inlined_call_operand.vmem [shape: bf16[64,128], index: 0, kind: input, shape index: {}]   ;;  %s367_s4 = inlined_call_operand.vmem [shape: f32[64,128], index: 4, kind: output, shape index: {}]  }
   0x1   :  { %v245_v0 = vld [vmem:[%s363_s1 + $0x38] sm:$0xff]  ;;  %v244_v1 = vld [vmem:[%s363_s1 + $0x30] sm:$0xff]  ;;  %v243_v2 = vld [vmem:[%s363_s1 + $0x28] sm:$0xff] }
   0x2   :  { %113 = vmatpush.bf16.msra.mxu0 %v245_v0  ;;  %246 = vmatpush.bf16.msra.mxu1 %v245_v0  ;;  %v242_v3 = vld [vmem:[%s363_s1 + $0x20] sm:$0xff]  ;;  %v241_v4 = vld [vmem:[%s363_s1 + $0x18] sm:$0xff]  ;;  %v240_v5 = vld [vmem:[%s363_s1 + $0x10] sm:$0xff] }
   0x3   :  { %247 = vmatpush.bf16.msra.mxu2 %v245_v0  ;;  %248 = vmatpush.bf16.msra.mxu3 %v245_v0  ;;  %v239_v6 = vld [vmem:[%s363_s1 + $0x8] sm:$0xff]  ;;  %v238_v7 = vld [vmem:[%s363_s1] sm:$0xff]  ;;  %v236_v10 = vld [vmem:[%s366_s0 + $0x10] sm:$0xff] }
   0x4   :  { %v234_v8 = vld [vmem:[%s366_s0] sm:$0xff]  ;;  %v235_v9 = vld [vmem:[%s366_s0 + $0x8] sm:$0xff]  ;;  %v237_v11 = vld [vmem:[%s366_s0 + $0x18] sm:$0xff] }
   0x5   :  { %v270_v12 = vld [vmem:[%s364_s2] ss:$0 sm:$0xff] }
   0x6   :  { %114 = vmatpush.bf16.msra.mxu0 %v244_v1  ;;  %249 = vmatpush.bf16.msra.mxu1 %v244_v1  ;;  %v271_v13 = vld [vmem:[%s365_s3] ss:$0 sm:$0xff] }
   0x7   :  { %250 = vmatpush.bf16.msra.mxu2 %v244_v1  ;;  %251 = vmatpush.bf16.msra.mxu3 %v244_v1 }
   0xa   :  { %115 = vmatpush.bf16.msra.mxu0 %v243_v2  ;;  %252 = vmatpush.bf16.msra.mxu1 %v243_v2 }
   0xb   :  { %253 = vmatpush.bf16.msra.mxu2 %v243_v2  ;;  %254 = vmatpush.bf16.msra.mxu3 %v243_v2 }
   0xe   :  { %116 = vmatpush.bf16.msra.mxu0 %v242_v3  ;;  %255 = vmatpush.bf16.msra.mxu1 %v242_v3 }
   0xf   :  { %256 = vmatpush.bf16.msra.mxu2 %v242_v3  ;;  %257 = vmatpush.bf16.msra.mxu3 %v242_v3 }
  0x12   :  { %117 = vmatpush.bf16.msra.mxu0 %v241_v4  ;;  %258 = vmatpush.bf16.msra.mxu1 %v241_v4 }
  0x13   :  { %259 = vmatpush.bf16.msra.mxu2 %v241_v4  ;;  %260 = vmatpush.bf16.msra.mxu3 %v241_v4 }
  0x16   :  { %118 = vmatpush.bf16.msra.mxu0 %v240_v5  ;;  %261 = vmatpush.bf16.msra.mxu1 %v240_v5 }
  0x17   :  { %262 = vmatpush.bf16.msra.mxu2 %v240_v5  ;;  %263 = vmatpush.bf16.msra.mxu3 %v240_v5 }
  0x1a   :  { %119 = vmatpush.bf16.msra.mxu0 %v239_v6  ;;  %264 = vmatpush.bf16.msra.mxu1 %v239_v6 }
  0x1b   :  { %265 = vmatpush.bf16.msra.mxu2 %v239_v6  ;;  %266 = vmatpush.bf16.msra.mxu3 %v239_v6 }
  0x1e   :  { %120 = vmatpush.bf16.msra.mxu0 %v238_v7  ;;  %267 = vmatpush.bf16.msra.mxu1 %v238_v7 }
  0x1f   :  { %268 = vmatpush.bf16.msra.mxu2 %v238_v7  ;;  %269 = vmatpush.bf16.msra.mxu3 %v238_v7 }
  0x21   :  { %121 = vmatmul.bf16.vlgmr.msra.gmra.mxu0 %v234_v8  ;;  %126 = vmatmul.bf16.vlgmr.msra.gmra.mxu1 %v235_v9 }
  0x22   :  { %131 = vmatmul.bf16.vlgmr.msra.gmra.mxu2 %v236_v10  ;;  %136 = vmatmul.bf16.vlgmr.msra.gmra.mxu3 %v237_v11 }
  0x9e   :  { %v122_v14 = vpop.f32.mrf.mxu0  ;;  %v127_v15 = vpop.f32.mrf.mxu1 }
  0x9f   :  { %v146_v16 = vmul.f32 %v270_v12, %v122_v14  ;;  %v148_v17 = vmul.f32 %v270_v12, %v127_v15 }
  0xa1   :  { %v158_v18 = vadd.f32 %v271_v13, %v146_v16  ;;  %v160_v19 = vadd.f32 %v271_v13, %v148_v17 }
  0xa3   :  { %v166_v20 = vmax.f32 %v158_v18, 0.0  ;;  %v168_v21 = vmax.f32 %v160_v19, 0.0 }
  0xa5   :  { %174 = vst [vmem:[%s367_s4] sm:$0xff] %v166_v20  ;;  %v132_v22 = vpop.f32.mrf.mxu2  ;;  %v137_v23 = vpop.f32.mrf.mxu3 }
  0xa6   :  { %176 = vst [vmem:[%s367_s4 + $0x10] sm:$0xff] %v168_v21  ;;  %v150_v24 = vmul.f32 %v270_v12, %v132_v22  ;;  %v152_v25 = vmul.f32 %v270_v12, %v137_v23  ;;  %v124_v26 = vpop.f32.mrf.mxu0  ;;  %v129_v27 = vpop.f32.mrf.mxu1 }
  0xa7   :  { %v147_v28 = vmul.f32 %v270_v12, %v124_v26  ;;  %v149_v29 = vmul.f32 %v270_v12, %v129_v27 }
  0xa8   :  { %v162_v30 = vadd.f32 %v271_v13, %v150_v24  ;;  %v164_v31 = vadd.f32 %v271_v13, %v152_v25 }
  0xa9   :  { %v159_v32 = vadd.f32 %v271_v13, %v147_v28  ;;  %v161_v33 = vadd.f32 %v271_v13, %v149_v29 }
  0xaa   :  { %v170_v34 = vmax.f32 %v162_v30, 0.0  ;;  %v172_v35 = vmax.f32 %v164_v31, 0.0 }
  0xab   :  { %v167_v36 = vmax.f32 %v159_v32, 0.0  ;;  %v169_v37 = vmax.f32 %v161_v33, 0.0 }
  0xac   :  { %178 = vst [vmem:[%s367_s4 + $0x20] sm:$0xff] %v170_v34 }
  0xad   :  { %180 = vst [vmem:[%s367_s4 + $0x30] sm:$0xff] %v172_v35  ;;  %v134_v38 = vpop.f32.mrf.mxu2  ;;  %v139_v39 = vpop.f32.mrf.mxu3 }
  0xae   :  { %175 = vst [vmem:[%s367_s4 + $0x8] sm:$0xff] %v167_v36  ;;  %v151_v40 = vmul.f32 %v270_v12, %v134_v38  ;;  %v153_v41 = vmul.f32 %v270_v12, %v139_v39 }
  0xaf   :  { %177 = vst [vmem:[%s367_s4 + $0x18] sm:$0xff] %v169_v37 }
  0xb0   :  { %v163_v42 = vadd.f32 %v271_v13, %v151_v40  ;;  %v165_v43 = vadd.f32 %v271_v13, %v153_v41 }
  0xb2   :  { %v171_v44 = vmax.f32 %v163_v42, 0.0  ;;  %v173_v45 = vmax.f32 %v165_v43, 0.0 }
  0xb4   :  { %179 = vst [vmem:[%s367_s4 + $0x28] sm:$0xff] %v171_v44 }
  0xb5   :  { %181 = vst [vmem:[%s367_s4 + $0x38] sm:$0xff] %v173_v45 }

// kernel: _lambda_.167
= control target key start
LH: loop header
LB: loop body
LE: loop exit
PB: predicated region body
PF: predicated region fallthrough
CT: control target
= control target key end

     0   :  { %vm78_vm0 = vcmask 523264   ;;  %s301_s1 = inlined_call_operand.vmem [shape: bf16[64,128], index: 1, kind: input, shape index: {}]   ;;  %s302_s2 = inlined_call_operand.vmem [shape: f32[1,128], index: 2, kind: input, shape index: {}]   ;;  %s303_s3 = inlined_call_operand.vmem [shape: f32[1,128], index: 3, kind: input, shape index: {}]   ;;  %s304_s0 = inlined_call_operand.vmem [shape: bf16[64,64], index: 0, kind: input, shape index: {}]   ;;  %s305_s4 = inlined_call_operand.vmem [shape: f32[64,128], index: 4, kind: output, shape index: {}]  }
   0x1   :  { %v207_v0 = vld [vmem:[%s301_s1 + $0x18] sm:$0xff]  ;;  %v206_v1 = vld [vmem:[%s301_s1 + $0x10] sm:$0xff]  ;;  %v205_v2 = vld [vmem:[%s301_s1 + $0x8] sm:$0xff] }
   0x2   :  { %95 = vmatpush.bf16.msra.mxu0 %v207_v0  ;;  %208 = vmatpush.bf16.msra.mxu1 %v207_v0  ;;  %v204_v3 = vld [vmem:[%s301_s1] sm:$0xff]  ;;  %v201_v5 = vld [vmem:[%s304_s0 + $0x8] sm:$0xff]  ;;  %v202_v6 = vld [vmem:[%s304_s0 + $0x10] sm:$0xff] }
   0x3   :  { %209 = vmatpush.bf16.msra.mxu2 %v207_v0  ;;  %210 = vmatpush.bf16.msra.mxu3 %v207_v0  ;;  %v200_v4 = vld [vmem:[%s304_s0] sm:$0xff]  ;;  %v203_v7 = vld [vmem:[%s304_s0 + $0x18] sm:$0xff] }
   0x4   :  { %v220_v8 = vld [vmem:[%s302_s2] ss:$0 sm:$0xff] }
   0x5   :  { %v221_v9 = vld [vmem:[%s303_s3] ss:$0 sm:$0xff] }
   0x6   :  { %96 = vmatpush.bf16.msra.mxu0 %v206_v1  ;;  %211 = vmatpush.bf16.msra.mxu1 %v206_v1 }
   0x7   :  { %212 = vmatpush.bf16.msra.mxu2 %v206_v1  ;;  %213 = vmatpush.bf16.msra.mxu3 %v206_v1 }
   0xa   :  { %97 = vmatpush.bf16.msra.mxu0 %v205_v2  ;;  %214 = vmatpush.bf16.msra.mxu1 %v205_v2 }
   0xb   :  { %215 = vmatpush.bf16.msra.mxu2 %v205_v2  ;;  %216 = vmatpush.bf16.msra.mxu3 %v205_v2 }
   0xe   :  { %98 = vmatpush.bf16.msra.mxu0 %v204_v3  ;;  %217 = vmatpush.bf16.msra.mxu1 %v204_v3 }
   0xf   :  { %218 = vmatpush.bf16.msra.mxu2 %v204_v3  ;;  %219 = vmatpush.bf16.msra.mxu3 %v204_v3 }
  0x11   :  { %196 = vmatmul.msk.bf16.vlgmr.msra.gmra.mxu0 %vm78_vm0, %v200_v4  ;;  %197 = vmatmul.msk.bf16.vlgmr.msra.gmra.mxu1 %vm78_vm0, %v201_v5 }
  0x12   :  { %198 = vmatmul.msk.bf16.vlgmr.msra.gmra.mxu2 %vm78_vm0, %v202_v6  ;;  %199 = vmatmul.msk.bf16.vlgmr.msra.gmra.mxu3 %vm78_vm0, %v203_v7 }
  0x8e   :  { %v100_v10 = vpop.f32.mrf.mxu0  ;;  %v105_v11 = vpop.f32.mrf.mxu1 }
  0x8f   :  { %v124_v12 = vmul.f32 %v220_v8, %v100_v10  ;;  %v126_v13 = vmul.f32 %v220_v8, %v105_v11 }
  0x91   :  { %v136_v14 = vadd.f32 %v221_v9, %v124_v12  ;;  %v138_v15 = vadd.f32 %v221_v9, %v126_v13 }
  0x93   :  { %v144_v16 = vmax.f32 %v136_v14, 0.0  ;;  %v146_v17 = vmax.f32 %v138_v15, 0.0 }
  0x95   :  { %152 = vst [vmem:[%s305_s4] sm:$0xff] %v144_v16  ;;  %v110_v18 = vpop.f32.mrf.mxu2  ;;  %v115_v19 = vpop.f32.mrf.mxu3 }
  0x96   :  { %154 = vst [vmem:[%s305_s4 + $0x10] sm:$0xff] %v146_v17  ;;  %v128_v20 = vmul.f32 %v220_v8, %v110_v18  ;;  %v130_v21 = vmul.f32 %v220_v8, %v115_v19  ;;  %v102_v22 = vpop.f32.mrf.mxu0  ;;  %v107_v23 = vpop.f32.mrf.mxu1 }
  0x97   :  { %v125_v24 = vmul.f32 %v220_v8, %v102_v22  ;;  %v127_v25 = vmul.f32 %v220_v8, %v107_v23 }
  0x98   :  { %v140_v26 = vadd.f32 %v221_v9, %v128_v20  ;;  %v142_v27 = vadd.f32 %v221_v9, %v130_v21 }
  0x99   :  { %v137_v28 = vadd.f32 %v221_v9, %v125_v24  ;;  %v139_v29 = vadd.f32 %v221_v9, %v127_v25 }
  0x9a   :  { %v148_v30 = vmax.f32 %v140_v26, 0.0  ;;  %v150_v31 = vmax.f32 %v142_v27, 0.0 }
  0x9b   :  { %v145_v32 = vmax.f32 %v137_v28, 0.0  ;;  %v147_v33 = vmax.f32 %v139_v29, 0.0 }
  0x9c   :  { %156 = vst [vmem:[%s305_s4 + $0x20] sm:$0xff] %v148_v30 }
  0x9d   :  { %158 = vst [vmem:[%s305_s4 + $0x30] sm:$0xff] %v150_v31  ;;  %v112_v34 = vpop.f32.mrf.mxu2  ;;  %v117_v35 = vpop.f32.mrf.mxu3 }
  0x9e   :  { %153 = vst [vmem:[%s305_s4 + $0x8] sm:$0xff] %v145_v32  ;;  %v129_v36 = vmul.f32 %v220_v8, %v112_v34  ;;  %v131_v37 = vmul.f32 %v220_v8, %v117_v35 }
  0x9f   :  { %155 = vst [vmem:[%s305_s4 + $0x18] sm:$0xff] %v147_v33 }
  0xa0   :  { %v141_v38 = vadd.f32 %v221_v9, %v129_v36  ;;  %v143_v39 = vadd.f32 %v221_v9, %v131_v37 }
  0xa2   :  { %v149_v40 = vmax.f32 %v141_v38, 0.0  ;;  %v151_v41 = vmax.f32 %v143_v39, 0.0 }
  0xa4   :  { %157 = vst [vmem:[%s305_s4 + $0x28] sm:$0xff] %v149_v40 }
  0xa5   :  { %159 = vst [vmem:[%s305_s4 + $0x38] sm:$0xff] %v151_v41 }

// kernel: _lambda_.174
= control target key start
LH: loop header
LB: loop body
LE: loop exit
PB: predicated region body
PF: predicated region fallthrough
CT: control target
= control target key end

     0   :  { %s736_s15 = smov 0   ;;  %s738_s16 = smov 0   ;;  %s847_s0 = inlined_call_operand.vmem [shape: bf16[512,32], index: 0, kind: input, shape index: {}]   ;;  %s848_s1 = inlined_call_operand.vmem [shape: bf16[32,128], index: 1, kind: input, shape index: {}]   ;;  %s849_s2 = inlined_call_operand.vmem [shape: f32[1,128], index: 2, kind: input, shape index: {}]   ;;  %s850_s3 = inlined_call_operand.vmem [shape: f32[1,128], index: 3, kind: input, shape index: {}]   ;;  %s851_s4 = inlined_call_operand.vmem [shape: f32[512,128], index: 4, kind: output, shape index: {}]  }
   0x1   :  { %s740_s17 = smov 0  }
   0x2 LB: > { %s26_s18 = sadd.s32 1, %s705_s16  ;;  %p590_p0 = scmp.ge.s32.totalorder %s709_s17, 1  ;;  %s709_s17 = sphi %s740_s17, %s14_s17   ;;  %s705_s16 = sphi %s738_s16, %s853_s16   ;;  %s701_s15 = sphi %s736_s15, %s852_s15  }
   0x3   : > { %p28_p1 = scmp.ge.s32.totalorder %s26_s18, 4  ;;  %p202_p2 = scmp.lt.s32.totalorder %s709_s17, 5 }
   0x5   : > { %s855_s18 = smov (%p28_p1, %s26_s18), 0  ;;  %p203_p3 = pnand %p590_p0, %p202_p2 }
   0x6   : > { %s591_s21 = sshll.u32 (!%p203_p3), %s701_s15, 4 }
   0x7   : > { %206 = sbr.rel (%p203_p3) target bundleno = 183 (0xb7), region = 36  ;;  %p242_p4 = scmp.lt.s32.totalorder (!%p203_p3), %s591_s21, 63 }
   0xc   : > { %v654_v0 = vld [vmem:[%s848_s1 + $0x8] sm:$0xff]  ;;  %v653_v1 = vld [vmem:[%s848_s1] sm:$0xff]  ;;  %s857_s21 = smov (!%p242_p4, %s591_s21), 63  ;;  %vm339_vm0 = vcmask 261120  }
   0xd   : > { %370 = vmatpush.bf16.msra.mxu0 %v654_v0  ;;  %655 = vmatpush.bf16.msra.mxu1 %v654_v0  ;;  %s592_s24 = sshll.u32 %s857_s21, 2  ;;  %v777_v10 = vld [vmem:[%s849_s2] ss:$0 sm:$0xff]  ;;  %s594_s30 = sshll.u32 %s857_s21, 3 }
   0xe   : > { %656 = vmatpush.bf16.msra.mxu2 %v654_v0  ;;  %657 = vmatpush.bf16.msra.mxu3 %v654_v0  ;;  %s245_s27 = scalar_lea.vmem %s847_s0, %s592_s24  ;;  %v783_v11 = vld [vmem:[%s850_s3] ss:$0 sm:$0xff]  ;;  %s790_s9 = scalar_lea.vmem %s851_s4, %s594_s30 }
   0xf   : > { %v645_v2 = vld [vmem:[%s245_s27] sm:$0xff]  ;;  %v647_v3 = vld [vmem:[%s245_s27 + $0x10] sm:$0xff]  ;;  %v646_v6 = vld [vmem:[%s245_s27 + $0x8] sm:$0xff] }
  0x10   : > { %v649_v4 = vld [vmem:[%s245_s27 + $0x20] sm:$0xff]  ;;  %v651_v5 = vld [vmem:[%s245_s27 + $0x30] sm:$0xff]  ;;  %v648_v7 = vld [vmem:[%s245_s27 + $0x18] sm:$0xff] }
  0x11   : > { %371 = vmatpush.bf16.msra.mxu0 %v653_v1  ;;  %658 = vmatpush.bf16.msra.mxu1 %v653_v1  ;;  %v650_v8 = vld [vmem:[%s245_s27 + $0x28] sm:$0xff]  ;;  %v652_v9 = vld [vmem:[%s245_s27 + $0x38] sm:$0xff] }
  0x12   : > { %659 = vmatpush.bf16.msra.mxu2 %v653_v1  ;;  %660 = vmatpush.bf16.msra.mxu3 %v653_v1 }
  0x14   : > { %635 = vmatmul.msk.bf16.vlgmr.msra.gmra.mxu0 %vm339_vm0, %v645_v2  ;;  %637 = vmatmul.msk.bf16.vlgmr.msra.gmra.mxu1 %vm339_vm0, %v647_v3 }
  0x15   : > { %639 = vmatmul.msk.bf16.vlgmr.msra.gmra.mxu2 %vm339_vm0, %v649_v4  ;;  %641 = vmatmul.msk.bf16.vlgmr.msra.gmra.mxu3 %vm339_vm0, %v651_v5 }
  0x24   : > { %636 = vmatmul.msk.bf16.gmra.mxu0 %vm339_vm0, %v646_v6  ;;  %638 = vmatmul.msk.bf16.gmra.mxu1 %vm339_vm0, %v648_v7 }
  0x25   : > { %640 = vmatmul.msk.bf16.gmra.mxu2 %vm339_vm0, %v650_v8  ;;  %642 = vmatmul.msk.bf16.gmra.mxu3 %vm339_vm0, %v652_v9 }
  0x91   : > { %v373_v12 = vpop.f32.mrf.mxu0  ;;  %v383_v13 = vpop.f32.mrf.mxu1 }
  0x92   : > { %v417_v14 = vmul.f32 %v777_v10, %v373_v12  ;;  %v421_v15 = vmul.f32 %v777_v10, %v383_v13 }
  0x94   : > { %v437_v16 = vadd.f32 %v783_v11, %v417_v14  ;;  %v441_v17 = vadd.f32 %v783_v11, %v421_v15 }
  0x96   : > { %453 = vst [vmem:[%s790_s9] sm:$0xff] %v437_v16 }
  0x97   : > { %457 = vst [vmem:[%s790_s9 + $0x20] sm:$0xff] %v441_v17 }
  0x98   : > { %v393_v18 = vpop.f32.mrf.mxu2  ;;  %v403_v19 = vpop.f32.mrf.mxu3 }
  0x99   : > { %v425_v20 = vmul.f32 %v777_v10, %v393_v18  ;;  %v429_v21 = vmul.f32 %v777_v10, %v403_v19  ;;  %v375_v22 = vpop.f32.mrf.mxu0  ;;  %v385_v23 = vpop.f32.mrf.mxu1 }
  0x9a   : > { %v418_v24 = vmul.f32 %v777_v10, %v375_v22  ;;  %v422_v25 = vmul.f32 %v777_v10, %v385_v23 }
  0x9b   : > { %v445_v26 = vadd.f32 %v783_v11, %v425_v20  ;;  %v449_v27 = vadd.f32 %v783_v11, %v429_v21 }
  0x9c   : > { %v438_v28 = vadd.f32 %v783_v11, %v418_v24  ;;  %v442_v29 = vadd.f32 %v783_v11, %v422_v25 }
  0x9d   : > { %461 = vst [vmem:[%s790_s9 + $0x40] sm:$0xff] %v445_v26 }
  0x9e   : > { %465 = vst [vmem:[%s790_s9 + $0x60] sm:$0xff] %v449_v27 }
  0x9f   : > { %454 = vst [vmem:[%s790_s9 + $0x8] sm:$0xff] %v438_v28 }
  0xa0   : > { %458 = vst [vmem:[%s790_s9 + $0x28] sm:$0xff] %v442_v29  ;;  %v395_v30 = vpop.f32.mrf.mxu2  ;;  %v405_v31 = vpop.f32.mrf.mxu3 }
  0xa1   : > { %v426_v32 = vmul.f32 %v777_v10, %v395_v30  ;;  %v430_v33 = vmul.f32 %v777_v10, %v405_v31  ;;  %v378_v34 = vpop.f32.mrf.mxu0  ;;  %v388_v35 = vpop.f32.mrf.mxu1 }
  0xa2   : > { %v419_v36 = vmul.f32 %v777_v10, %v378_v34  ;;  %v423_v37 = vmul.f32 %v777_v10, %v388_v35 }
  0xa3   : > { %v446_v38 = vadd.f32 %v783_v11, %v426_v32  ;;  %v450_v39 = vadd.f32 %v783_v11, %v430_v33 }
  0xa4   : > { %v439_v40 = vadd.f32 %v783_v11, %v419_v36  ;;  %v443_v41 = vadd.f32 %v783_v11, %v423_v37 }
  0xa5   : > { %462 = vst [vmem:[%s790_s9 + $0x48] sm:$0xff] %v446_v38 }
  0xa6   : > { %466 = vst [vmem:[%s790_s9 + $0x68] sm:$0xff] %v450_v39 }
  0xa7   : > { %455 = vst [vmem:[%s790_s9 + $0x10] sm:$0xff] %v439_v40 }
  0xa8   : > { %459 = vst [vmem:[%s790_s9 + $0x30] sm:$0xff] %v443_v41  ;;  %v398_v42 = vpop.f32.mrf.mxu2  ;;  %v408_v43 = vpop.f32.mrf.mxu3 }
  0xa9   : > { %v427_v44 = vmul.f32 %v777_v10, %v398_v42  ;;  %v431_v45 = vmul.f32 %v777_v10, %v408_v43  ;;  %v380_v46 = vpop.f32.mrf.mxu0  ;;  %v390_v47 = vpop.f32.mrf.mxu1 }
  0xaa   : > { %v420_v48 = vmul.f32 %v777_v10, %v380_v46  ;;  %v424_v49 = vmul.f32 %v777_v10, %v390_v47 }
  0xab   : > { %v447_v50 = vadd.f32 %v783_v11, %v427_v44  ;;  %v451_v51 = vadd.f32 %v783_v11, %v431_v45 }
  0xac   : > { %v440_v52 = vadd.f32 %v783_v11, %v420_v48  ;;  %v444_v53 = vadd.f32 %v783_v11, %v424_v49 }
  0xad   : > { %463 = vst [vmem:[%s790_s9 + $0x50] sm:$0xff] %v447_v50 }
  0xae   : > { %467 = vst [vmem:[%s790_s9 + $0x70] sm:$0xff] %v451_v51 }
  0xaf   : > { %456 = vst [vmem:[%s790_s9 + $0x18] sm:$0xff] %v440_v52 }
  0xb0   : > { %460 = vst [vmem:[%s790_s9 + $0x38] sm:$0xff] %v444_v53  ;;  %v400_v54 = vpop.f32.mrf.mxu2  ;;  %v410_v55 = vpop.f32.mrf.mxu3 }
  0xb1   : > { %v428_v56 = vmul.f32 %v777_v10, %v400_v54  ;;  %v432_v57 = vmul.f32 %v777_v10, %v410_v55 }
  0xb3   : > { %v448_v58 = vadd.f32 %v783_v11, %v428_v56  ;;  %v452_v59 = vadd.f32 %v783_v11, %v432_v57 }
  0xb5   : > { %464 = vst [vmem:[%s790_s9 + $0x58] sm:$0xff] %v448_v58 }
  0xb6   : > { %468 = vst [vmem:[%s790_s9 + $0x78] sm:$0xff] %v452_v59 }
  0xb7 PF: > { %s14_s17 = sadd.s32 1, %s709_s17   ;;  %s852_s15 = smov %s705_s16 }
  0xb8   : > { %p11_p5 = scmp.ge.s32.totalorder %s14_s17, 6   ;;  %s853_s16 = smov %s855_s18 }
  0xba   :  { %13 = sbr.rel (!%p11_p5) target bundleno = 2 (0x2), region = 75 }

// kernel: _lambda_.177
= control target key start
LH: loop header
LB: loop body
LE: loop exit
PB: predicated region body
PF: predicated region fallthrough
CT: control target
= control target key end

     0   :  { %s1471_s15 = smov 0   ;;  %s1473_s16 = smov 0   ;;  %s1723_s0 = inlined_call_operand.vmem [shape: bf16[512,432], index: 0, kind: input, shape index: {}]   ;;  %s1724_s1 = inlined_call_operand.vmem [shape: bf16[432,128], index: 1, kind: input, shape index: {}]   ;;  %s1725_s2 = inlined_call_operand.vmem [shape: f32[1,128], index: 2, kind: input, shape index: {}]   ;;  %s1726_s3 = inlined_call_operand.vmem [shape: f32[1,128], index: 3, kind: input, shape index: {}]   ;;  %s1727_s4 = inlined_call_operand.vmem [shape: f32[512,128], index: 4, kind: output, shape index: {}]  }
   0x1   :  { %s1475_s17 = smov 0  }
   0x2 LB: > { %s26_s18 = sadd.s32 1, %s1440_s16  ;;  %p1084_p0 = scmp.ge.s32.totalorder %s1444_s17, 1  ;;  %s1444_s17 = sphi %s1475_s17, %s14_s17   ;;  %s1440_s16 = sphi %s1473_s16, %s1729_s16   ;;  %s1436_s15 = sphi %s1471_s15, %s1728_s15  }
   0x3   : > { %p28_p1 = scmp.ge.s32.totalorder %s26_s18, 4  ;;  %p203_p2 = scmp.lt.s32.totalorder %s1444_s17, 5 }
   0x5   : > { %s1731_s18 = smov (%p28_p1, %s26_s18), 0  ;;  %p204_p3 = pnand %p1084_p0, %p203_p2 }
   0x6   : > { %s1085_s25 = sshll.u32 (!%p204_p3), %s1436_s15, 4 }
   0x7   : > { %207 = sbr.rel (%p204_p3) target bundleno = 309 (0x135), region = 36  ;;  %p244_p4 = scmp.lt.s32.totalorder (!%p204_p3), %s1085_s25, 63 }
   0xc   : > { %v1376_v0 = vld [vmem:[%s1724_s1 + $0x38] sm:$0xff]  ;;  %v1375_v3 = vld [vmem:[%s1724_s1 + $0x30] sm:$0xff]  ;;  %s1733_s25 = smov (!%p244_p4, %s1085_s25), 63  ;;  %v1374_v7 = vld [vmem:[%s1724_s1 + $0x28] sm:$0xff]  ;;  %vm670_vm0 = vcmask 392192  }
   0xd   : > { %v1384_v1 = vld [vmem:[%s1724_s1 + $0x78] sm:$0xff]  ;;  %695 = vmatpush.bf16.msra.mxu0 %v1376_v0  ;;  %v1383_v4 = vld [vmem:[%s1724_s1 + $0x70] sm:$0xff]  ;;  %v1382_v8 = vld [vmem:[%s1724_s1 + $0x68] sm:$0xff]  ;;  %s1336_s12 = sshll.u32 %s1733_s25, 4 }
   0xe   : > { %v1392_v2 = vld [vmem:[%s1724_s1 + $0xb8] sm:$0xff]  ;;  %744 = vmatpush.bf16.msra.mxu1 %v1384_v1  ;;  %v1391_v5 = vld [vmem:[%s1724_s1 + $0xb0] sm:$0xff]  ;;  %v1390_v9 = vld [vmem:[%s1724_s1 + $0xa8] sm:$0xff]  ;;  %s1528_s22 = scalar_lea.vmem %s1723_s0, %s1336_s12  ;;  %s1089_s12 = sshll.u32 %s1733_s25, 3 }
   0xf   : > { %793 = vmatpush.bf16.msra.mxu2 %v1392_v2  ;;  %v1395_v6 = vld [vmem:[%s1724_s1 + $0xd0] sm:$0xff]  ;;  %v1394_v10 = vld [vmem:[%s1724_s1 + $0xc8] sm:$0xff]  ;;  %v1373_v11 = vld [vmem:[%s1724_s1 + $0x20] sm:$0xff]  ;;  %s1666_s15 = scalar_lea.vmem %s1727_s4, %s1089_s12 }
  0x10   : > { %847 = vmatpush.bf16.msra.mxu3 %v1395_v6  ;;  %v1381_v12 = vld [vmem:[%s1724_s1 + $0x60] sm:$0xff]  ;;  %v1338_v15 = vld [vmem:[%s1528_s22 + $0xc] sm:$0xf]  ;;  %v1102_v16 = vld [vmem:[%s1528_s22 + $0x18] sm:$0xf0] }
  0x11   : > { %696 = vmatpush.bf16.msra.mxu0 %v1375_v3  ;;  %v1389_v13 = vld [vmem:[%s1724_s1 + $0xa0] sm:$0xff]  ;;  %v1372_v17 = vld [vmem:[%s1724_s1 + $0x18] sm:$0xff]  ;;  %v1105_v20 = vor.u32 %v1338_v15, %v1102_v16  ;;  %v1371_v21 = vld [vmem:[%s1724_s1 + $0x10] sm:$0xff] }
  0x12   : > { %745 = vmatpush.bf16.msra.mxu1 %v1383_v4  ;;  %v1393_v14 = vld [vmem:[%s1724_s1 + $0xc0] sm:$0xff]  ;;  %v1380_v18 = vld [vmem:[%s1724_s1 + $0x58] sm:$0xff]  ;;  %v1379_v22 = vld [vmem:[%s1724_s1 + $0x50] sm:$0xff] }
  0x13   : > { %794 = vmatpush.bf16.msra.mxu2 %v1391_v5  ;;  %v1388_v19 = vld [vmem:[%s1724_s1 + $0x98] sm:$0xff]  ;;  %v1387_v23 = vld [vmem:[%s1724_s1 + $0x90] sm:$0xff]  ;;  %v1370_v24 = vld [vmem:[%s1724_s1 + $0x8] sm:$0xff] }
  0x14   : > { %848 = vmatpush.bf16.msra.mxu3 %v1394_v10  ;;  %v1378_v25 = vld [vmem:[%s1724_s1 + $0x48] sm:$0xff]  ;;  %v1369_v27 = vld [vmem:[%s1724_s1] sm:$0xff]  ;;  %v1339_v30 = vld [vmem:[%s1528_s22 + $0xc] sm:$0xf0] }
  0x15   : > { %697 = vmatpush.bf16.msra.mxu0 %v1374_v7  ;;  %v1386_v26 = vld [vmem:[%s1724_s1 + $0x88] sm:$0xff]  ;;  %v1377_v28 = vld [vmem:[%s1724_s1 + $0x40] sm:$0xff]  ;;  %v1094_v32 = vld [vmem:[%s1528_s22 + $0x10] sm:$0xf0] }
  0x16   : > { %746 = vmatpush.bf16.msra.mxu1 %v1382_v8  ;;  %v1092_v29 = vld [vmem:[%s1528_s22] sm:$0xf]  ;;  %v1337_v31 = vld [vmem:[%s1528_s22 + $0x4] sm:$0xf]  ;;  %v1100_v34 = vld [vmem:[%s1528_s22 + $0x8] sm:$0xf] }
  0x17   : > { %795 = vmatpush.bf16.msra.mxu2 %v1390_v9  ;;  %v1385_v33 = vld [vmem:[%s1724_s1 + $0x80] sm:$0xff]  ;;  %v1340_v35 = vld [vmem:[%s1528_s22 + $0x14] sm:$0xf0]  ;;  %v1342_v36 = vld [vmem:[%s1528_s22 + $0x2c] sm:$0xf]  ;;  %v1093_v38 = vor.u32 %v1339_v30, %v1092_v29  ;;  %v1097_v39 = vor.u32 %v1337_v31, %v1094_v32 }
  0x18   : > { %849 = vmatpush.bf16.msra.mxu3 %v1393_v14  ;;  %v1118_v37 = vld [vmem:[%s1528_s22 + $0x38] sm:$0xf0]  ;;  %v1101_v40 = vor.u32 %v1340_v35, %v1100_v34  ;;  %v1108_v42 = vld [vmem:[%s1528_s22 + $0x20] sm:$0xf]  ;;  %v1343_v43 = vld [vmem:[%s1528_s22 + $0x2c] sm:$0xf0] }
  0x19   : > { %698 = vmatpush.bf16.msra.mxu0 %v1373_v11  ;;  %v1121_v41 = vor.u32 %v1342_v36, %v1118_v37  ;;  %v1341_v44 = vld [vmem:[%s1528_s22 + $0x24] sm:$0xf]  ;;  %v1110_v45 = vld [vmem:[%s1528_s22 + $0x30] sm:$0xf0]  ;;  %v1116_v46 = vld [vmem:[%s1528_s22 + $0x28] sm:$0xf]  ;;  %v1109_v50 = vor.u32 %v1343_v43, %v1108_v42 }
  0x1a   : > { %747 = vmatpush.bf16.msra.mxu1 %v1381_v12  ;;  %v1344_v47 = vld [vmem:[%s1528_s22 + $0x34] sm:$0xf0]  ;;  %v1346_v48 = vld [vmem:[%s1528_s22 + $0x4c] sm:$0xf]  ;;  %v1134_v49 = vld [vmem:[%s1528_s22 + $0x58] sm:$0xf0]  ;;  %v1113_v51 = vor.u32 %v1341_v44, %v1110_v45 }
  0x1b   : > { %796 = vmatpush.bf16.msra.mxu2 %v1389_v13  ;;  %1326 = vmatmul.msk.bf16.vlgmr.msra.gmra.mxu3 %vm670_vm0, %v1105_v20  ;;  %v1117_v52 = vor.u32 %v1344_v47, %v1116_v46  ;;  %v1137_v53 = vor.u32 %v1346_v48, %v1134_v49  ;;  %v1124_v54 = vld [vmem:[%s1528_s22 + $0x40] sm:$0xf]  ;;  %v1347_v55 = vld [vmem:[%s1528_s22 + $0x4c] sm:$0xf0]  ;;  %v1345_v56 = vld [vmem:[%s1528_s22 + $0x44] sm:$0xf] }
  0x1c   : > { %v1126_v57 = vld [vmem:[%s1528_s22 + $0x50] sm:$0xf0]  ;;  %v1132_v58 = vld [vmem:[%s1528_s22 + $0x48] sm:$0xf]  ;;  %v1348_v59 = vld [vmem:[%s1528_s22 + $0x54] sm:$0xf0]  ;;  %v1125_v62 = vor.u32 %v1347_v55, %v1124_v54 }
  0x1d   : > { %699 = vmatpush.bf16.msra.mxu0 %v1372_v17  ;;  %v1350_v60 = vld [vmem:[%s1528_s22 + $0x6c] sm:$0xf]  ;;  %v1150_v61 = vld [vmem:[%s1528_s22 + $0x78] sm:$0xf0]  ;;  %v1129_v63 = vor.u32 %v1345_v56, %v1126_v57  ;;  %v1133_v0 = vor.u32 %v1348_v59, %v1132_v58  ;;  %v1140_v2 = vld [vmem:[%s1528_s22 + $0x60] sm:$0xf] }
  0x1e   : > { %748 = vmatpush.bf16.msra.mxu1 %v1380_v18  ;;  %v1153_v1 = vor.u32 %v1350_v60, %v1150_v61  ;;  %v1351_v3 = vld [vmem:[%s1528_s22 + $0x6c] sm:$0xf0]  ;;  %v1349_v4 = vld [vmem:[%s1528_s22 + $0x64] sm:$0xf]  ;;  %v1142_v5 = vld [vmem:[%s1528_s22 + $0x70] sm:$0xf0] }
  0x1f   : > { %797 = vmatpush.bf16.msra.mxu2 %v1388_v19  ;;  %v1148_v6 = vld [vmem:[%s1528_s22 + $0x68] sm:$0xf]  ;;  %v1352_v7 = vld [vmem:[%s1528_s22 + $0x74] sm:$0xf0]  ;;  %v1354_v8 = vld [vmem:[%s1528_s22 + $0x8c] sm:$0xf]  ;;  %v1141_v10 = vor.u32 %v1351_v3, %v1140_v2  ;;  %v1145_v11 = vor.u32 %v1349_v4, %v1142_v5 }
  0x20   : > { %v1166_v9 = vld [vmem:[%s1528_s22 + $0x98] sm:$0xf0]  ;;  %v1149_v12 = vor.u32 %v1352_v7, %v1148_v6  ;;  %v1156_v14 = vld [vmem:[%s1528_s22 + $0x80] sm:$0xf]  ;;  %v1355_v15 = vld [vmem:[%s1528_s22 + $0x8c] sm:$0xf0] }
  0x21   : > { %700 = vmatpush.bf16.msra.mxu0 %v1371_v21  ;;  %v1169_v13 = vor.u32 %v1354_v8, %v1166_v9  ;;  %v1353_v16 = vld [vmem:[%s1528_s22 + $0x84] sm:$0xf]  ;;  %v1158_v17 = vld [vmem:[%s1528_s22 + $0x90] sm:$0xf0]  ;;  %v1164_v18 = vld [vmem:[%s1528_s22 + $0x88] sm:$0xf] }
  0x22   : > { %749 = vmatpush.bf16.msra.mxu1 %v1379_v22  ;;  %v1356_v19 = vld [vmem:[%s1528_s22 + $0x94] sm:$0xf0]  ;;  %v1358_v20 = vld [vmem:[%s1528_s22 + $0xac] sm:$0xf]  ;;  %v1182_v21 = vld [vmem:[%s1528_s22 + $0xb8] sm:$0xf0]  ;;  %v1157_v22 = vor.u32 %v1355_v15, %v1156_v14 }
  0x23   : > { %798 = vmatpush.bf16.msra.mxu2 %v1387_v23  ;;  %v1161_v23 = vor.u32 %v1353_v16, %v1158_v17  ;;  %v1174_v29 = vld [vmem:[%s1528_s22 + $0xb0] sm:$0xf0]  ;;  %v1180_v30 = vld [vmem:[%s1528_s22 + $0xa8] sm:$0xf]  ;;  %v1360_v31 = vld [vmem:[%s1528_s22 + $0xb4] sm:$0xf0] }
  0x24   : > { %v1362_v32 = vld [vmem:[%s1528_s22 + $0xcc] sm:$0xf]  ;;  %v1181_v36 = vor.u32 %v1360_v31, %v1180_v30  ;;  %v1196_v42 = vld [vmem:[%s1528_s22 + $0xc8] sm:$0xf]  ;;  %v1364_v43 = vld [vmem:[%s1528_s22 + $0xd4] sm:$0xf0] }
  0x25   : > { %701 = vmatpush.bf16.msra.mxu0 %v1370_v24  ;;  %v1165_v24 = vor.u32 %v1356_v19, %v1164_v18  ;;  %v1366_v44 = vld [vmem:[%s1528_s22 + $0xec] sm:$0xf]  ;;  %v1214_v45 = vld [vmem:[%s1528_s22 + $0xf8] sm:$0xf0]  ;;  %v1197_v48 = vor.u32 %v1364_v43, %v1196_v42  ;;  %v1212_v54 = vld [vmem:[%s1528_s22 + $0xe8] sm:$0xf] }
  0x26   : > { %750 = vmatpush.bf16.msra.mxu1 %v1378_v25  ;;  %v1185_v25 = vor.u32 %v1358_v20, %v1182_v21  ;;  %v1217_v49 = vor.u32 %v1366_v44, %v1214_v45  ;;  %v1368_v55 = vld [vmem:[%s1528_s22 + $0xf4] sm:$0xf0]  ;;  %v1653_v2 = vld [vmem:[%s1725_s2] ss:$0 sm:$0xff] }
  0x27   : > { %799 = vmatpush.bf16.msra.mxu2 %v1386_v26  ;;  %v1172_v26 = vld [vmem:[%s1528_s22 + $0xa0] sm:$0xf]  ;;  %v1213_v58 = vor.u32 %v1368_v55, %v1212_v54 }
  0x28   : > { %v1658_v7 = vld [vmem:[%s1726_s3] ss:$0 sm:$0xff] }
  0x29   : > { %702 = vmatpush.bf16.msra.mxu0 %v1369_v27  ;;  %v1359_v27 = vld [vmem:[%s1528_s22 + $0xac] sm:$0xf0] }
  0x2a   : > { %751 = vmatpush.bf16.msra.mxu1 %v1377_v28  ;;  %v1357_v28 = vld [vmem:[%s1528_s22 + $0xa4] sm:$0xf]  ;;  %v1173_v34 = vor.u32 %v1359_v27, %v1172_v26 }
  0x2b   : > { %800 = vmatpush.bf16.msra.mxu2 %v1385_v33  ;;  %1327 = vmatmul.msk.bf16.gmra.mxu3 %vm670_vm0, %v1121_v41  ;;  %v1198_v33 = vld [vmem:[%s1528_s22 + $0xd8] sm:$0xf0]  ;;  %v1177_v35 = vor.u32 %v1357_v28, %v1174_v29  ;;  %v1190_v41 = vld [vmem:[%s1528_s22 + $0xd0] sm:$0xf0] }
  0x2c   : > { %703 = vmatmul.bf16.vlgmr.msra.gmra.mxu0 %v1093_v38  ;;  %v1201_v37 = vor.u32 %v1362_v32, %v1198_v33  ;;  %v1188_v38 = vld [vmem:[%s1528_s22 + $0xc0] sm:$0xf] }
  0x2d   : > { %752 = vmatmul.bf16.vlgmr.msra.gmra.mxu1 %v1097_v39  ;;  %v1363_v39 = vld [vmem:[%s1528_s22 + $0xcc] sm:$0xf0] }
  0x2e   : > { %801 = vmatmul.bf16.vlgmr.msra.gmra.mxu2 %v1101_v40  ;;  %v1361_v40 = vld [vmem:[%s1528_s22 + $0xc4] sm:$0xf]  ;;  %v1189_v46 = vor.u32 %v1363_v39, %v1188_v38 }
  0x2f   : > { %v1193_v47 = vor.u32 %v1361_v40, %v1190_v41 }
  0x3b   : > { %1328 = vmatmul.msk.bf16.gmra.mxu3 %vm670_vm0, %v1137_v53  ;;  %v1206_v53 = vld [vmem:[%s1528_s22 + $0xf0] sm:$0xf0] }
  0x3c   : > { %708 = vmatmul.bf16.gmra.mxu0 %v1109_v50  ;;  %v1204_v50 = vld [vmem:[%s1528_s22 + $0xe0] sm:$0xf] }
  0x3d   : > { %757 = vmatmul.bf16.gmra.mxu1 %v1113_v51  ;;  %v1367_v51 = vld [vmem:[%s1528_s22 + $0xec] sm:$0xf0] }
  0x3e   : > { %806 = vmatmul.bf16.gmra.mxu2 %v1117_v52  ;;  %v1365_v52 = vld [vmem:[%s1528_s22 + $0xe4] sm:$0xf]  ;;  %v1205_v56 = vor.u32 %v1367_v51, %v1204_v50 }
  0x3f   : > { %v1209_v57 = vor.u32 %v1365_v52, %v1206_v53 }
  0x4b   : > { %1329 = vmatmul.msk.bf16.gmra.mxu3 %vm670_vm0, %v1153_v1 }
  0x4c   : > { %713 = vmatmul.bf16.gmra.mxu0 %v1125_v62 }
  0x4d   : > { %762 = vmatmul.bf16.gmra.mxu1 %v1129_v63 }
  0x4e   : > { %811 = vmatmul.bf16.gmra.mxu2 %v1133_v0 }
  0x5b   : > { %1330 = vmatmul.msk.bf16.gmra.mxu3 %vm670_vm0, %v1169_v13 }
  0x5c   : > { %718 = vmatmul.bf16.gmra.mxu0 %v1141_v10 }
  0x5d   : > { %767 = vmatmul.bf16.gmra.mxu1 %v1145_v11 }
  0x5e   : > { %816 = vmatmul.bf16.gmra.mxu2 %v1149_v12 }
  0x6b   : > { %1331 = vmatmul.msk.bf16.gmra.mxu3 %vm670_vm0, %v1185_v25 }
  0x6c   : > { %723 = vmatmul.bf16.gmra.mxu0 %v1157_v22 }
  0x6d   : > { %772 = vmatmul.bf16.gmra.mxu1 %v1161_v23 }
  0x6e   : > { %821 = vmatmul.bf16.gmra.mxu2 %v1165_v24 }
  0x7b   : > { %1332 = vmatmul.msk.bf16.gmra.mxu3 %vm670_vm0, %v1201_v37 }
  0x7c   : > { %728 = vmatmul.bf16.gmra.mxu0 %v1173_v34 }
  0x7d   : > { %777 = vmatmul.bf16.gmra.mxu1 %v1177_v35 }
  0x7e   : > { %826 = vmatmul.bf16.gmra.mxu2 %v1181_v36 }
  0x8b   : > { %1333 = vmatmul.msk.bf16.gmra.mxu3 %vm670_vm0, %v1217_v49 }
  0x8c   : > { %733 = vmatmul.bf16.gmra.mxu0 %v1189_v46 }
  0x8d   : > { %782 = vmatmul.bf16.gmra.mxu1 %v1193_v47 }
  0x8e   : > { %831 = vmatmul.bf16.gmra.mxu2 %v1197_v48 }
  0x9c   : > { %738 = vmatmul.bf16.gmra.mxu0 %v1205_v56 }
  0x9d   : > { %787 = vmatmul.bf16.gmra.mxu1 %v1209_v57 }
  0x9e   : > { %836 = vmatmul.bf16.gmra.mxu2 %v1213_v58  ;;  %v851_v59 = vpop.f32.mrf.mxu3 }
  0xa6   : > { %v853_v62 = vpop.f32.mrf.mxu3 }
  0xa9   : > { %v704_v60 = vpop.f32.mrf.mxu0 }
  0xaa   : > { %v753_v61 = vpop.f32.mrf.mxu1 }
  0xab   : > { %v754_v63 = vadd.f32 %v753_v61, %v704_v60 }
  0xae   : > { %v856_v5 = vpop.f32.mrf.mxu3 }
  0xb1   : > { %v802_v0 = vpop.f32.mrf.mxu2  ;;  %v706_v3 = vpop.f32.mrf.mxu0 }
  0xb2   : > { %v803_v1 = vadd.f32 %v802_v0, %v754_v63  ;;  %v755_v4 = vpop.f32.mrf.mxu1 }
  0xb3   : > { %v756_v10 = vadd.f32 %v755_v4, %v706_v3 }
  0xb4   : > { %v852_v6 = vadd.f32 %v851_v59, %v803_v1 }
  0xb6   : > { %v895_v8 = vmul.f32 %v1653_v2, %v852_v6  ;;  %v858_v16 = vpop.f32.mrf.mxu3 }
  0xb8   : > { %v915_v9 = vadd.f32 %v1658_v7, %v895_v8 }
  0xb9   : > { %v804_v11 = vpop.f32.mrf.mxu2  ;;  %v709_v14 = vpop.f32.mrf.mxu0 }
  0xba   : > { %v931_v12 = vmax.f32 %v915_v9, 0.0  ;;  %v805_v13 = vadd.f32 %v804_v11, %v756_v10  ;;  %v758_v15 = vpop.f32.mrf.mxu1 }
  0xbb   : > { %v759_v19 = vadd.f32 %v758_v15, %v709_v14 }
  0xbc   : > { %947 = vst [vmem:[%s1666_s15] sm:$0xff] %v931_v12  ;;  %v854_v17 = vadd.f32 %v853_v62, %v805_v13 }
  0xbe   : > { %v896_v18 = vmul.f32 %v1653_v2, %v854_v17  ;;  %v861_v26 = vpop.f32.mrf.mxu3 }
  0xc0   : > { %v916_v20 = vadd.f32 %v1658_v7, %v896_v18 }
  0xc1   : > { %v807_v21 = vpop.f32.mrf.mxu2  ;;  %v711_v24 = vpop.f32.mrf.mxu0 }
  0xc2   : > { %v932_v22 = vmax.f32 %v916_v20, 0.0  ;;  %v808_v23 = vadd.f32 %v807_v21, %v759_v19  ;;  %v760_v25 = vpop.f32.mrf.mxu1 }
  0xc3   : > { %v761_v30 = vadd.f32 %v760_v25, %v711_v24 }
  0xc4   : > { %948 = vst [vmem:[%s1666_s15 + $0x8] sm:$0xff] %v932_v22  ;;  %v857_v27 = vadd.f32 %v856_v5, %v808_v23 }
  0xc6   : > { %v897_v28 = vmul.f32 %v1653_v2, %v857_v27  ;;  %v863_v36 = vpop.f32.mrf.mxu3 }
  0xc8   : > { %v917_v29 = vadd.f32 %v1658_v7, %v897_v28 }
  0xc9   : > { %v809_v31 = vpop.f32.mrf.mxu2  ;;  %v714_v34 = vpop.f32.mrf.mxu0 }
  0xca   : > { %v933_v32 = vmax.f32 %v917_v29, 0.0  ;;  %v810_v33 = vadd.f32 %v809_v31, %v761_v30  ;;  %v763_v35 = vpop.f32.mrf.mxu1 }
  0xcb   : > { %v764_v39 = vadd.f32 %v763_v35, %v714_v34 }
  0xcc   : > { %949 = vst [vmem:[%s1666_s15 + $0x10] sm:$0xff] %v933_v32  ;;  %v859_v37 = vadd.f32 %v858_v16, %v810_v33 }
  0xce   : > { %v898_v38 = vmul.f32 %v1653_v2, %v859_v37  ;;  %v866_v46 = vpop.f32.mrf.mxu3 }
  0xd0   : > { %v918_v40 = vadd.f32 %v1658_v7, %v898_v38 }
  0xd1   : > { %v812_v41 = vpop.f32.mrf.mxu2  ;;  %v716_v44 = vpop.f32.mrf.mxu0 }
  0xd2   : > { %v934_v42 = vmax.f32 %v918_v40, 0.0  ;;  %v813_v43 = vadd.f32 %v812_v41, %v764_v39  ;;  %v765_v45 = vpop.f32.mrf.mxu1 }
  0xd3   : > { %v766_v50 = vadd.f32 %v765_v45, %v716_v44 }
  0xd4   : > { %950 = vst [vmem:[%s1666_s15 + $0x18] sm:$0xff] %v934_v42  ;;  %v862_v47 = vadd.f32 %v861_v26, %v813_v43 }
  0xd6   : > { %v899_v48 = vmul.f32 %v1653_v2, %v862_v47  ;;  %v868_v56 = vpop.f32.mrf.mxu3 }
  0xd8   : > { %v919_v49 = vadd.f32 %v1658_v7, %v899_v48 }
  0xd9   : > { %v814_v51 = vpop.f32.mrf.mxu2  ;;  %v719_v54 = vpop.f32.mrf.mxu0 }
  0xda   : > { %v935_v52 = vmax.f32 %v919_v49, 0.0  ;;  %v815_v53 = vadd.f32 %v814_v51, %v766_v50  ;;  %v768_v55 = vpop.f32.mrf.mxu1 }
  0xdb   : > { %v769_v59 = vadd.f32 %v768_v55, %v719_v54 }
  0xdc   : > { %951 = vst [vmem:[%s1666_s15 + $0x20] sm:$0xff] %v935_v52  ;;  %v864_v57 = vadd.f32 %v863_v36, %v815_v53 }
  0xde   : > { %v900_v58 = vmul.f32 %v1653_v2, %v864_v57  ;;  %v871_v4 = vpop.f32.mrf.mxu3 }
  0xe0   : > { %v920_v60 = vadd.f32 %v1658_v7, %v900_v58 }
  0xe1   : > { %v817_v61 = vpop.f32.mrf.mxu2  ;;  %v721_v0 = vpop.f32.mrf.mxu0 }
  0xe2   : > { %v936_v62 = vmax.f32 %v920_v60, 0.0  ;;  %v818_v63 = vadd.f32 %v817_v61, %v769_v59  ;;  %v770_v1 = vpop.f32.mrf.mxu1 }
  0xe3   : > { %v771_v8 = vadd.f32 %v770_v1, %v721_v0 }
  0xe4   : > { %952 = vst [vmem:[%s1666_s15 + $0x28] sm:$0xff] %v936_v62  ;;  %v867_v3 = vadd.f32 %v866_v46, %v818_v63 }
  0xe6   : > { %v901_v5 = vmul.f32 %v1653_v2, %v867_v3  ;;  %v873_v17 = vpop.f32.mrf.mxu3 }
  0xe8   : > { %v921_v6 = vadd.f32 %v1658_v7, %v901_v5 }
  0xe9   : > { %v819_v9 = vpop.f32.mrf.mxu2  ;;  %v724_v12 = vpop.f32.mrf.mxu0 }
  0xea   : > { %v937_v10 = vmax.f32 %v921_v6, 0.0  ;;  %v820_v11 = vadd.f32 %v819_v9, %v771_v8  ;;  %v773_v13 = vpop.f32.mrf.mxu1 }
  0xeb   : > { %v774_v16 = vadd.f32 %v773_v13, %v724_v12 }
  0xec   : > { %953 = vst [vmem:[%s1666_s15 + $0x30] sm:$0xff] %v937_v10  ;;  %v869_v14 = vadd.f32 %v868_v56, %v820_v11 }
  0xee   : > { %v902_v15 = vmul.f32 %v1653_v2, %v869_v14  ;;  %v876_v29 = vpop.f32.mrf.mxu3 }
  0xf0   : > { %v922_v18 = vadd.f32 %v1658_v7, %v902_v15 }
  0xf1   : > { %v822_v19 = vpop.f32.mrf.mxu2  ;;  %v726_v22 = vpop.f32.mrf.mxu0 }
  0xf2   : > { %v938_v20 = vmax.f32 %v922_v18, 0.0  ;;  %v823_v21 = vadd.f32 %v822_v19, %v774_v16  ;;  %v775_v23 = vpop.f32.mrf.mxu1 }
  0xf3   : > { %v776_v27 = vadd.f32 %v775_v23, %v726_v22 }
  0xf4   : > { %954 = vst [vmem:[%s1666_s15 + $0x38] sm:$0xff] %v938_v20  ;;  %v872_v24 = vadd.f32 %v871_v4, %v823_v21 }
  0xf6   : > { %v903_v25 = vmul.f32 %v1653_v2, %v872_v24  ;;  %v878_v43 = vpop.f32.mrf.mxu3 }
  0xf8   : > { %v923_v26 = vadd.f32 %v1658_v7, %v903_v25 }
  0xf9   : > { %v824_v28 = vpop.f32.mrf.mxu2  ;;  %v729_v32 = vpop.f32.mrf.mxu0 }
  0xfa   : > { %v939_v30 = vmax.f32 %v923_v26, 0.0  ;;  %v825_v31 = vadd.f32 %v824_v28, %v776_v27  ;;  %v778_v33 = vpop.f32.mrf.mxu1 }
  0xfb   : > { %v779_v36 = vadd.f32 %v778_v33, %v729_v32 }
  0xfc   : > { %955 = vst [vmem:[%s1666_s15 + $0x40] sm:$0xff] %v939_v30  ;;  %v874_v34 = vadd.f32 %v873_v17, %v825_v31 }
  0xfe   : > { %v904_v35 = vmul.f32 %v1653_v2, %v874_v34  ;;  %v881_v54 = vpop.f32.mrf.mxu3 }
 0x100   : > { %v924_v37 = vadd.f32 %v1658_v7, %v904_v35 }
 0x101   : > { %v827_v38 = vpop.f32.mrf.mxu2  ;;  %v731_v41 = vpop.f32.mrf.mxu0 }
 0x102   : > { %v940_v39 = vmax.f32 %v924_v37, 0.0  ;;  %v828_v40 = vadd.f32 %v827_v38, %v779_v36  ;;  %v780_v42 = vpop.f32.mrf.mxu1 }
 0x103   : > { %v781_v47 = vadd.f32 %v780_v42, %v731_v41 }
 0x104   : > { %956 = vst [vmem:[%s1666_s15 + $0x48] sm:$0xff] %v940_v39  ;;  %v877_v44 = vadd.f32 %v876_v29, %v828_v40 }
 0x106   : > { %v905_v45 = vmul.f32 %v1653_v2, %v877_v44  ;;  %v883_v1 = vpop.f32.mrf.mxu3 }
 0x108   : > { %v925_v46 = vadd.f32 %v1658_v7, %v905_v45 }
 0x109   : > { %v829_v48 = vpop.f32.mrf.mxu2  ;;  %v734_v51 = vpop.f32.mrf.mxu0 }
 0x10a   : > { %v941_v49 = vmax.f32 %v925_v46, 0.0  ;;  %v830_v50 = vadd.f32 %v829_v48, %v781_v47  ;;  %v783_v52 = vpop.f32.mrf.mxu1 }
 0x10b   : > { %v784_v56 = vadd.f32 %v783_v52, %v734_v51 }
 0x10c   : > { %957 = vst [vmem:[%s1666_s15 + $0x50] sm:$0xff] %v941_v49  ;;  %v879_v53 = vadd.f32 %v878_v43, %v830_v50 }
 0x10e   : > { %v906_v55 = vmul.f32 %v1653_v2, %v879_v53  ;;  %v886_v15 = vpop.f32.mrf.mxu3 }
 0x110   : > { %v926_v57 = vadd.f32 %v1658_v7, %v906_v55 }
 0x111   : > { %v832_v58 = vpop.f32.mrf.mxu2  ;;  %v736_v61 = vpop.f32.mrf.mxu0 }
 0x112   : > { %v942_v59 = vmax.f32 %v926_v57, 0.0  ;;  %v833_v60 = vadd.f32 %v832_v58, %v784_v56  ;;  %v785_v62 = vpop.f32.mrf.mxu1 }
 0x113   : > { %v786_v4 = vadd.f32 %v785_v62, %v736_v61 }
 0x114   : > { %958 = vst [vmem:[%s1666_s15 + $0x58] sm:$0xff] %v942_v59  ;;  %v882_v63 = vadd.f32 %v881_v54, %v833_v60 }
 0x116   : > { %v907_v0 = vmul.f32 %v1653_v2, %v882_v63  ;;  %v888_v28 = vpop.f32.mrf.mxu3 }
 0x118   : > { %v927_v3 = vadd.f32 %v1658_v7, %v907_v0 }
 0x119   : > { %v834_v5 = vpop.f32.mrf.mxu2  ;;  %v739_v9 = vpop.f32.mrf.mxu0 }
 0x11a   : > { %v943_v6 = vmax.f32 %v927_v3, 0.0  ;;  %v835_v8 = vadd.f32 %v834_v5, %v786_v4  ;;  %v788_v10 = vpop.f32.mrf.mxu1 }
 0x11b   : > { %v789_v13 = vadd.f32 %v788_v10, %v739_v9 }
 0x11c   : > { %959 = vst [vmem:[%s1666_s15 + $0x60] sm:$0xff] %v943_v6  ;;  %v884_v11 = vadd.f32 %v883_v1, %v835_v8 }
 0x11e   : > { %v908_v12 = vmul.f32 %v1653_v2, %v884_v11 }
 0x120   : > { %v928_v14 = vadd.f32 %v1658_v7, %v908_v12 }
 0x121   : > { %v837_v16 = vpop.f32.mrf.mxu2  ;;  %v741_v20 = vpop.f32.mrf.mxu0 }
 0x122   : > { %v944_v17 = vmax.f32 %v928_v14, 0.0  ;;  %v838_v18 = vadd.f32 %v837_v16, %v789_v13  ;;  %v790_v21 = vpop.f32.mrf.mxu1 }
 0x123   : > { %v791_v24 = vadd.f32 %v790_v21, %v741_v20 }
 0x124   : > { %960 = vst [vmem:[%s1666_s15 + $0x68] sm:$0xff] %v944_v17  ;;  %v887_v19 = vadd.f32 %v886_v15, %v838_v18 }
 0x126   : > { %v909_v22 = vmul.f32 %v1653_v2, %v887_v19 }
 0x128   : > { %v929_v23 = vadd.f32 %v1658_v7, %v909_v22 }
 0x129   : > { %v839_v25 = vpop.f32.mrf.mxu2 }
 0x12a   : > { %v945_v26 = vmax.f32 %v929_v23, 0.0  ;;  %v840_v27 = vadd.f32 %v839_v25, %v791_v24 }
 0x12c   : > { %961 = vst [vmem:[%s1666_s15 + $0x70] sm:$0xff] %v945_v26  ;;  %v889_v29 = vadd.f32 %v888_v28, %v840_v27 }
 0x12e   : > { %v910_v30 = vmul.f32 %v1653_v2, %v889_v29 }
 0x130   : > { %v930_v31 = vadd.f32 %v1658_v7, %v910_v30 }
 0x132   : > { %v946_v32 = vmax.f32 %v930_v31, 0.0 }
 0x134   : > { %962 = vst [vmem:[%s1666_s15 + $0x78] sm:$0xff] %v946_v32 }
 0x135 PF: > { %s14_s17 = sadd.s32 1, %s1444_s17   ;;  %s1728_s15 = smov %s1440_s16 }
 0x136   : > { %p11_p5 = scmp.ge.s32.totalorder %s14_s17, 6   ;;  %s1729_s16 = smov %s1731_s18 }
 0x138   :  { %13 = sbr.rel (!%p11_p5) target bundleno = 2 (0x2), region = 75 }

// kernel: _lambda_.178
= control target key start
LH: loop header
LB: loop body
LE: loop exit
PB: predicated region body
PF: predicated region fallthrough
CT: control target
= control target key end

     0   :  { %vm326_vm0 = vcmask 392192   ;;  %s976_s1 = inlined_call_operand.vmem [shape: bf16[432,128], index: 1, kind: input, shape index: {}]   ;;  %s977_s0 = inlined_call_operand.vmem [shape: bf16[64,432], index: 0, kind: input, shape index: {}]   ;;  %s978_s2 = inlined_call_operand.vmem [shape: f32[1,128], index: 2, kind: input, shape index: {}]   ;;  %s979_s3 = inlined_call_operand.vmem [shape: f32[1,128], index: 3, kind: input, shape index: {}]   ;;  %s980_s4 = inlined_call_operand.vmem [shape: f32[64,128], index: 4, kind: output, shape index: {}]  }
   0x1   :  { %v698_v0 = vld [vmem:[%s976_s1 + $0x38] sm:$0xff]  ;;  %v697_v3 = vld [vmem:[%s976_s1 + $0x30] sm:$0xff]  ;;  %v696_v7 = vld [vmem:[%s976_s1 + $0x28] sm:$0xff] }
   0x2   :  { %v706_v1 = vld [vmem:[%s976_s1 + $0x78] sm:$0xff]  ;;  %339 = vmatpush.bf16.msra.mxu0 %v698_v0  ;;  %v705_v4 = vld [vmem:[%s976_s1 + $0x70] sm:$0xff]  ;;  %v704_v8 = vld [vmem:[%s976_s1 + $0x68] sm:$0xff] }
   0x3   :  { %v714_v2 = vld [vmem:[%s976_s1 + $0xb8] sm:$0xff]  ;;  %368 = vmatpush.bf16.msra.mxu1 %v706_v1  ;;  %v713_v5 = vld [vmem:[%s976_s1 + $0xb0] sm:$0xff]  ;;  %v712_v9 = vld [vmem:[%s976_s1 + $0xa8] sm:$0xff] }
   0x4   :  { %397 = vmatpush.bf16.msra.mxu2 %v714_v2  ;;  %v717_v6 = vld [vmem:[%s976_s1 + $0xd0] sm:$0xff]  ;;  %v716_v10 = vld [vmem:[%s976_s1 + $0xc8] sm:$0xff]  ;;  %v695_v11 = vld [vmem:[%s976_s1 + $0x20] sm:$0xff] }
   0x5   :  { %431 = vmatpush.bf16.msra.mxu3 %v717_v6  ;;  %v703_v12 = vld [vmem:[%s976_s1 + $0x60] sm:$0xff]  ;;  %v676_v15 = vld [vmem:[%s977_s0 + $0xc] sm:$0xf]  ;;  %v511_v16 = vld [vmem:[%s977_s0 + $0x18] sm:$0xf0] }
   0x6   :  { %340 = vmatpush.bf16.msra.mxu0 %v697_v3  ;;  %v711_v13 = vld [vmem:[%s976_s1 + $0xa0] sm:$0xff]  ;;  %v694_v17 = vld [vmem:[%s976_s1 + $0x18] sm:$0xff]  ;;  %v514_v20 = vor.u32 %v676_v15, %v511_v16  ;;  %v693_v21 = vld [vmem:[%s976_s1 + $0x10] sm:$0xff] }
   0x7   :  { %369 = vmatpush.bf16.msra.mxu1 %v705_v4  ;;  %v715_v14 = vld [vmem:[%s976_s1 + $0xc0] sm:$0xff]  ;;  %v702_v18 = vld [vmem:[%s976_s1 + $0x58] sm:$0xff]  ;;  %v701_v22 = vld [vmem:[%s976_s1 + $0x50] sm:$0xff] }
   0x8   :  { %398 = vmatpush.bf16.msra.mxu2 %v713_v5  ;;  %v710_v19 = vld [vmem:[%s976_s1 + $0x98] sm:$0xff]  ;;  %v709_v23 = vld [vmem:[%s976_s1 + $0x90] sm:$0xff]  ;;  %v692_v24 = vld [vmem:[%s976_s1 + $0x8] sm:$0xff] }
   0x9   :  { %432 = vmatpush.bf16.msra.mxu3 %v716_v10  ;;  %v700_v25 = vld [vmem:[%s976_s1 + $0x48] sm:$0xff]  ;;  %v691_v27 = vld [vmem:[%s976_s1] sm:$0xff]  ;;  %v677_v30 = vld [vmem:[%s977_s0 + $0xc] sm:$0xf0] }
   0xa   :  { %341 = vmatpush.bf16.msra.mxu0 %v696_v7  ;;  %v708_v26 = vld [vmem:[%s976_s1 + $0x88] sm:$0xff]  ;;  %v699_v28 = vld [vmem:[%s976_s1 + $0x40] sm:$0xff]  ;;  %v503_v32 = vld [vmem:[%s977_s0 + $0x10] sm:$0xf0] }
   0xb   :  { %370 = vmatpush.bf16.msra.mxu1 %v704_v8  ;;  %v501_v29 = vld [vmem:[%s977_s0] sm:$0xf]  ;;  %v675_v31 = vld [vmem:[%s977_s0 + $0x4] sm:$0xf]  ;;  %v509_v34 = vld [vmem:[%s977_s0 + $0x8] sm:$0xf] }
   0xc   :  { %399 = vmatpush.bf16.msra.mxu2 %v712_v9  ;;  %v707_v33 = vld [vmem:[%s976_s1 + $0x80] sm:$0xff]  ;;  %v678_v35 = vld [vmem:[%s977_s0 + $0x14] sm:$0xf0]  ;;  %v680_v36 = vld [vmem:[%s977_s0 + $0x2c] sm:$0xf]  ;;  %v502_v38 = vor.u32 %v677_v30, %v501_v29  ;;  %v506_v39 = vor.u32 %v675_v31, %v503_v32 }
   0xd   :  { %433 = vmatpush.bf16.msra.mxu3 %v715_v14  ;;  %v527_v37 = vld [vmem:[%s977_s0 + $0x38] sm:$0xf0]  ;;  %v510_v40 = vor.u32 %v678_v35, %v509_v34  ;;  %v517_v42 = vld [vmem:[%s977_s0 + $0x20] sm:$0xf]  ;;  %v681_v43 = vld [vmem:[%s977_s0 + $0x2c] sm:$0xf0] }
   0xe   :  { %342 = vmatpush.bf16.msra.mxu0 %v695_v11  ;;  %v530_v41 = vor.u32 %v680_v36, %v527_v37  ;;  %v679_v44 = vld [vmem:[%s977_s0 + $0x24] sm:$0xf]  ;;  %v519_v45 = vld [vmem:[%s977_s0 + $0x30] sm:$0xf0]  ;;  %v525_v46 = vld [vmem:[%s977_s0 + $0x28] sm:$0xf]  ;;  %v518_v50 = vor.u32 %v681_v43, %v517_v42 }
   0xf   :  { %371 = vmatpush.bf16.msra.mxu1 %v703_v12  ;;  %v682_v47 = vld [vmem:[%s977_s0 + $0x34] sm:$0xf0]  ;;  %v684_v48 = vld [vmem:[%s977_s0 + $0x4c] sm:$0xf]  ;;  %v543_v49 = vld [vmem:[%s977_s0 + $0x58] sm:$0xf0]  ;;  %v522_v51 = vor.u32 %v679_v44, %v519_v45 }
  0x10   :  { %400 = vmatpush.bf16.msra.mxu2 %v711_v13  ;;  %671 = vmatmul.msk.bf16.vlgmr.msra.gmra.mxu3 %vm326_vm0, %v514_v20  ;;  %v526_v52 = vor.u32 %v682_v47, %v525_v46  ;;  %v546_v53 = vor.u32 %v684_v48, %v543_v49  ;;  %v533_v54 = vld [vmem:[%s977_s0 + $0x40] sm:$0xf]  ;;  %v685_v55 = vld [vmem:[%s977_s0 + $0x4c] sm:$0xf0]  ;;  %v683_v56 = vld [vmem:[%s977_s0 + $0x44] sm:$0xf] }
  0x11   :  { %v535_v57 = vld [vmem:[%s977_s0 + $0x50] sm:$0xf0]  ;;  %v541_v58 = vld [vmem:[%s977_s0 + $0x48] sm:$0xf]  ;;  %v686_v59 = vld [vmem:[%s977_s0 + $0x54] sm:$0xf0]  ;;  %v534_v62 = vor.u32 %v685_v55, %v533_v54 }
  0x12   :  { %343 = vmatpush.bf16.msra.mxu0 %v694_v17  ;;  %v688_v60 = vld [vmem:[%s977_s0 + $0x6c] sm:$0xf]  ;;  %v559_v61 = vld [vmem:[%s977_s0 + $0x78] sm:$0xf0]  ;;  %v538_v63 = vor.u32 %v683_v56, %v535_v57  ;;  %v542_v0 = vor.u32 %v686_v59, %v541_v58  ;;  %v549_v2 = vld [vmem:[%s977_s0 + $0x60] sm:$0xf] }
  0x13   :  { %372 = vmatpush.bf16.msra.mxu1 %v702_v18  ;;  %v562_v1 = vor.u32 %v688_v60, %v559_v61  ;;  %v689_v3 = vld [vmem:[%s977_s0 + $0x6c] sm:$0xf0]  ;;  %v687_v4 = vld [vmem:[%s977_s0 + $0x64] sm:$0xf]  ;;  %v551_v5 = vld [vmem:[%s977_s0 + $0x70] sm:$0xf0] }
  0x14   :  { %401 = vmatpush.bf16.msra.mxu2 %v710_v19  ;;  %v557_v6 = vld [vmem:[%s977_s0 + $0x68] sm:$0xf]  ;;  %v690_v7 = vld [vmem:[%s977_s0 + $0x74] sm:$0xf0]  ;;  %v550_v8 = vor.u32 %v689_v3, %v549_v2  ;;  %v554_v9 = vor.u32 %v687_v4, %v551_v5  ;;  %v929_v18 = vld [vmem:[%s978_s2] ss:$0 sm:$0xff] }
  0x15   :  { %v558_v10 = vor.u32 %v690_v7, %v557_v6 }
  0x16   :  { %344 = vmatpush.bf16.msra.mxu0 %v693_v21 }
  0x17   :  { %373 = vmatpush.bf16.msra.mxu1 %v701_v22  ;;  %v934_v22 = vld [vmem:[%s979_s3] ss:$0 sm:$0xff] }
  0x18   :  { %402 = vmatpush.bf16.msra.mxu2 %v709_v23 }
  0x1a   :  { %345 = vmatpush.bf16.msra.mxu0 %v692_v24 }
  0x1b   :  { %374 = vmatpush.bf16.msra.mxu1 %v700_v25 }
  0x1c   :  { %403 = vmatpush.bf16.msra.mxu2 %v708_v26 }
  0x1e   :  { %346 = vmatpush.bf16.msra.mxu0 %v691_v27 }
  0x1f   :  { %375 = vmatpush.bf16.msra.mxu1 %v699_v28 }
  0x20   :  { %404 = vmatpush.bf16.msra.mxu2 %v707_v33  ;;  %672 = vmatmul.msk.bf16.gmra.mxu3 %vm326_vm0, %v530_v41 }
  0x21   :  { %347 = vmatmul.bf16.vlgmr.msra.gmra.mxu0 %v502_v38 }
  0x22   :  { %376 = vmatmul.bf16.vlgmr.msra.gmra.mxu1 %v506_v39 }
  0x23   :  { %405 = vmatmul.bf16.vlgmr.msra.gmra.mxu2 %v510_v40 }
  0x30   :  { %673 = vmatmul.msk.bf16.gmra.mxu3 %vm326_vm0, %v546_v53 }
  0x31   :  { %352 = vmatmul.bf16.gmra.mxu0 %v518_v50 }
  0x32   :  { %381 = vmatmul.bf16.gmra.mxu1 %v522_v51 }
  0x33   :  { %410 = vmatmul.bf16.gmra.mxu2 %v526_v52 }
  0x40   :  { %674 = vmatmul.msk.bf16.gmra.mxu3 %vm326_vm0, %v562_v1 }
  0x41   :  { %357 = vmatmul.bf16.gmra.mxu0 %v534_v62 }
  0x42   :  { %386 = vmatmul.bf16.gmra.mxu1 %v538_v63 }
  0x43   :  { %415 = vmatmul.bf16.gmra.mxu2 %v542_v0 }
  0x51   :  { %362 = vmatmul.bf16.gmra.mxu0 %v550_v8 }
  0x52   :  { %391 = vmatmul.bf16.gmra.mxu1 %v554_v9 }
  0x53   :  { %420 = vmatmul.bf16.gmra.mxu2 %v558_v10 }
  0x93   :  { %v435_v11 = vpop.f32.mrf.mxu3 }
  0x9b   :  { %v437_v15 = vpop.f32.mrf.mxu3 }
  0x9e   :  { %v348_v12 = vpop.f32.mrf.mxu0 }
  0x9f   :  { %v377_v13 = vpop.f32.mrf.mxu1 }
  0xa0   :  { %v378_v14 = vadd.f32 %v377_v13, %v348_v12 }
  0xa3   :  { %v440_v27 = vpop.f32.mrf.mxu3 }
  0xa6   :  { %v406_v16 = vpop.f32.mrf.mxu2  ;;  %v350_v19 = vpop.f32.mrf.mxu0 }
  0xa7   :  { %v407_v17 = vadd.f32 %v406_v16, %v378_v14  ;;  %v379_v20 = vpop.f32.mrf.mxu1 }
  0xa8   :  { %v380_v25 = vadd.f32 %v379_v20, %v350_v19 }
  0xa9   :  { %v436_v21 = vadd.f32 %v435_v11, %v407_v17 }
  0xab   :  { %v459_v23 = vmul.f32 %v929_v18, %v436_v21  ;;  %v442_v41 = vpop.f32.mrf.mxu3 }
  0xad   :  { %v471_v24 = vadd.f32 %v934_v22, %v459_v23 }
  0xae   :  { %v408_v26 = vpop.f32.mrf.mxu2  ;;  %v353_v30 = vpop.f32.mrf.mxu0 }
  0xaf   :  { %v479_v28 = vmax.f32 %v471_v24, 0.0  ;;  %v409_v29 = vadd.f32 %v408_v26, %v380_v25  ;;  %v382_v31 = vpop.f32.mrf.mxu1 }
  0xb0   :  { %v383_v34 = vadd.f32 %v382_v31, %v353_v30 }
  0xb1   :  { %487 = vst [vmem:[%s980_s4] sm:$0xff] %v479_v28  ;;  %v438_v32 = vadd.f32 %v437_v15, %v409_v29 }
  0xb3   :  { %v460_v33 = vmul.f32 %v929_v18, %v438_v32  ;;  %v445_v52 = vpop.f32.mrf.mxu3 }
  0xb5   :  { %v472_v35 = vadd.f32 %v934_v22, %v460_v33 }
  0xb6   :  { %v411_v36 = vpop.f32.mrf.mxu2  ;;  %v355_v39 = vpop.f32.mrf.mxu0 }
  0xb7   :  { %v480_v37 = vmax.f32 %v472_v35, 0.0  ;;  %v412_v38 = vadd.f32 %v411_v36, %v383_v34  ;;  %v384_v40 = vpop.f32.mrf.mxu1 }
  0xb8   :  { %v385_v45 = vadd.f32 %v384_v40, %v355_v39 }
  0xb9   :  { %488 = vst [vmem:[%s980_s4 + $0x8] sm:$0xff] %v480_v37  ;;  %v441_v42 = vadd.f32 %v440_v27, %v412_v38 }
  0xbb   :  { %v461_v43 = vmul.f32 %v929_v18, %v441_v42  ;;  %v447_v63 = vpop.f32.mrf.mxu3 }
  0xbd   :  { %v473_v44 = vadd.f32 %v934_v22, %v461_v43 }
  0xbe   :  { %v413_v46 = vpop.f32.mrf.mxu2  ;;  %v358_v49 = vpop.f32.mrf.mxu0 }
  0xbf   :  { %v481_v47 = vmax.f32 %v473_v44, 0.0  ;;  %v414_v48 = vadd.f32 %v413_v46, %v385_v45  ;;  %v387_v50 = vpop.f32.mrf.mxu1 }
  0xc0   :  { %v388_v54 = vadd.f32 %v387_v50, %v358_v49 }
  0xc1   :  { %489 = vst [vmem:[%s980_s4 + $0x10] sm:$0xff] %v481_v47  ;;  %v443_v51 = vadd.f32 %v442_v41, %v414_v48 }
  0xc3   :  { %v462_v53 = vmul.f32 %v929_v18, %v443_v51  ;;  %v450_v11 = vpop.f32.mrf.mxu3 }
  0xc5   :  { %v474_v55 = vadd.f32 %v934_v22, %v462_v53 }
  0xc6   :  { %v416_v56 = vpop.f32.mrf.mxu2  ;;  %v360_v59 = vpop.f32.mrf.mxu0 }
  0xc7   :  { %v482_v57 = vmax.f32 %v474_v55, 0.0  ;;  %v417_v58 = vadd.f32 %v416_v56, %v388_v54  ;;  %v389_v60 = vpop.f32.mrf.mxu1 }
  0xc8   :  { %v390_v1 = vadd.f32 %v389_v60, %v360_v59 }
  0xc9   :  { %490 = vst [vmem:[%s980_s4 + $0x18] sm:$0xff] %v482_v57  ;;  %v446_v61 = vadd.f32 %v445_v52, %v417_v58 }
  0xcb   :  { %v463_v62 = vmul.f32 %v929_v18, %v446_v61  ;;  %v452_v26 = vpop.f32.mrf.mxu3 }
  0xcd   :  { %v475_v0 = vadd.f32 %v934_v22, %v463_v62 }
  0xce   :  { %v418_v2 = vpop.f32.mrf.mxu2  ;;  %v363_v5 = vpop.f32.mrf.mxu0 }
  0xcf   :  { %v483_v3 = vmax.f32 %v475_v0, 0.0  ;;  %v419_v4 = vadd.f32 %v418_v2, %v390_v1  ;;  %v392_v6 = vpop.f32.mrf.mxu1 }
  0xd0   :  { %v393_v9 = vadd.f32 %v392_v6, %v363_v5 }
  0xd1   :  { %491 = vst [vmem:[%s980_s4 + $0x20] sm:$0xff] %v483_v3  ;;  %v448_v7 = vadd.f32 %v447_v63, %v419_v4 }
  0xd3   :  { %v464_v8 = vmul.f32 %v929_v18, %v448_v7 }
  0xd5   :  { %v476_v10 = vadd.f32 %v934_v22, %v464_v8 }
  0xd6   :  { %v421_v12 = vpop.f32.mrf.mxu2  ;;  %v365_v16 = vpop.f32.mrf.mxu0 }
  0xd7   :  { %v484_v13 = vmax.f32 %v476_v10, 0.0  ;;  %v422_v14 = vadd.f32 %v421_v12, %v393_v9  ;;  %v394_v17 = vpop.f32.mrf.mxu1 }
  0xd8   :  { %v395_v21 = vadd.f32 %v394_v17, %v365_v16 }
  0xd9   :  { %492 = vst [vmem:[%s980_s4 + $0x28] sm:$0xff] %v484_v13  ;;  %v451_v15 = vadd.f32 %v450_v11, %v422_v14 }
  0xdb   :  { %v465_v19 = vmul.f32 %v929_v18, %v451_v15 }
  0xdd   :  { %v477_v20 = vadd.f32 %v934_v22, %v465_v19 }
  0xde   :  { %v423_v23 = vpop.f32.mrf.mxu2 }
  0xdf   :  { %v485_v24 = vmax.f32 %v477_v20, 0.0  ;;  %v424_v25 = vadd.f32 %v423_v23, %v395_v21 }
  0xe1   :  { %493 = vst [vmem:[%s980_s4 + $0x30] sm:$0xff] %v485_v24  ;;  %v453_v27 = vadd.f32 %v452_v26, %v424_v25 }
  0xe3   :  { %v466_v28 = vmul.f32 %v929_v18, %v453_v27 }
  0xe5   :  { %v478_v29 = vadd.f32 %v934_v22, %v466_v28 }
  0xe7   :  { %v486_v30 = vmax.f32 %v478_v29, 0.0 }
  0xe9   :  { %494 = vst [vmem:[%s980_s4 + $0x38] sm:$0xff] %v486_v30 }

// kernel: _lambda_.179
= control target key start
LH: loop header
LB: loop body
LE: loop exit
PB: predicated region body
PF: predicated region fallthrough
CT: control target
= control target key end

     0   :  { %vm137_vm0 = vcmask 785408   ;;  %s335_s1 = inlined_call_operand.vmem [shape: bf16[224,128], index: 1, kind: input, shape index: {}]   ;;  %s336_s0 = inlined_call_operand.vmem [shape: bf16[8,224], index: 0, kind: input, shape index: {}]   ;;  %s337_s2 = inlined_call_operand.vmem [shape: f32[1,128], index: 2, kind: input, shape index: {}]   ;;  %s338_s3 = inlined_call_operand.vmem [shape: f32[1,128], index: 3, kind: input, shape index: {}]   ;;  %s339_s4 = inlined_call_operand.vmem [shape: f32[8,128], index: 4, kind: output, shape index: {}]  }
   0x1   :  { %v247_v0 = vld [vmem:[%s335_s1 + $0x38] sm:$0xff]  ;;  %v253_v1 = vld [vmem:[%s335_s1 + $0x68] sm:$0xff]  ;;  %v246_v2 = vld [vmem:[%s335_s1 + $0x30] sm:$0xff] }
   0x2   :  { %141 = vmatpush.bf16.msra.mxu0 %v247_v0  ;;  %156 = vmatpush.bf16.msra.mxu1 %v253_v1  ;;  %v252_v3 = vld [vmem:[%s335_s1 + $0x60] sm:$0xff]  ;;  %v245_v4 = vld [vmem:[%s335_s1 + $0x28] sm:$0xff]  ;;  %v251_v5 = vld [vmem:[%s335_s1 + $0x58] sm:$0xff] }
   0x3   :  { %v244_v6 = vld [vmem:[%s335_s1 + $0x20] sm:$0xff]  ;;  %v250_v7 = vld [vmem:[%s335_s1 + $0x50] sm:$0xff]  ;;  %v243_v8 = vld [vmem:[%s335_s1 + $0x18] sm:$0xff] }
   0x4   :  { %v249_v9 = vld [vmem:[%s335_s1 + $0x48] sm:$0xff]  ;;  %v18_v10 = vld [vmem:[%s336_s0] sm:$0xff]  ;;  %v242_v12 = vld [vmem:[%s335_s1 + $0x10] sm:$0xff] }
   0x5   :  { %v49_v11 = vunpack.c.h.b16 %v18_v10  ;;  %v248_v13 = vld [vmem:[%s335_s1 + $0x40] sm:$0xff]  ;;  %v241_v15 = vld [vmem:[%s335_s1 + $0x8] sm:$0xff]  ;;  %v48_v16 = vunpack.c.l.b16 %v18_v10 }
   0x6   :  { %142 = vmatpush.bf16.msra.mxu0 %v246_v2  ;;  %157 = vmatpush.bf16.msra.mxu1 %v252_v3  ;;  %v240_v17 = vld [vmem:[%s335_s1] sm:$0xff] }
   0x7   :  { %v51_v14 = vpack.c.b16 %v49_v11, %v49_v11  ;;  %v50_v18 = vpack.c.b16 %v48_v16, %v48_v16  ;;  %v254_v20 = vld [vmem:[%s337_s2] ss:$0 sm:$0xff] }
   0x8   :  { %v255_v24 = vld [vmem:[%s338_s3] ss:$0 sm:$0xff] }
   0xa   :  { %143 = vmatpush.bf16.msra.mxu0 %v245_v4  ;;  %158 = vmatpush.bf16.msra.mxu1 %v251_v5 }
   0xe   :  { %144 = vmatpush.bf16.msra.mxu0 %v244_v6  ;;  %159 = vmatpush.bf16.msra.mxu1 %v250_v7 }
  0x12   :  { %145 = vmatpush.bf16.msra.mxu0 %v243_v8  ;;  %160 = vmatpush.bf16.msra.mxu1 %v249_v9 }
  0x16   :  { %146 = vmatpush.bf16.msra.mxu0 %v242_v12  ;;  %161 = vmatpush.bf16.msra.mxu1 %v248_v13 }
  0x19   :  { %239 = vmatmul.msk.bf16.vlgmr.msra.gmra.mxu1 %vm137_vm0, %v51_v14 }
  0x1a   :  { %147 = vmatpush.bf16.msra.mxu0 %v241_v15 }
  0x1e   :  { %148 = vmatpush.bf16.msra.mxu0 %v240_v17 }
  0x21   :  { %149 = vmatmul.bf16.vlgmr.msra.gmra.mxu0 %v50_v18 }
  0x96   :  { %v163_v19 = vpop.f32.mrf.mxu1 }
  0x9e   :  { %v150_v21 = vpop.f32.mrf.mxu0  ;;  %v165_v22 = vpop.f32.mrf.mxu1 }
  0x9f   :  { %v164_v23 = vadd.f32 %v163_v19, %v150_v21 }
  0xa1   :  { %v171_v25 = vmul.f32 %v254_v20, %v164_v23 }
  0xa3   :  { %v176_v26 = vadd.f32 %v255_v24, %v171_v25 }
  0xa5   :  { %v177_v27 = vmax.f32 %v176_v26, 0.0 }
  0xa6   :  { %v152_v28 = vpop.f32.mrf.mxu0 }
  0xa7   :  { %178 = vst [vmem:[%s339_s4] sm:$0xff] %v177_v27 }

// kernel: _lambda_.187
= control target key start
LH: loop header
LB: loop body
LE: loop exit
PB: predicated region body
PF: predicated region fallthrough
CT: control target
= control target key end

     0   :  { %s214_s1 = inlined_call_operand.vmem [shape: bf16[128,128], index: 1, kind: input, shape index: {}]   ;;  %s215_s2 = inlined_call_operand.vmem [shape: f32[1,128], index: 2, kind: input, shape index: {}]   ;;  %s216_s3 = inlined_call_operand.vmem [shape: f32[1,128], index: 3, kind: input, shape index: {}]   ;;  %s217_s0 = inlined_call_operand.vmem [shape: bf16[8,128], index: 0, kind: input, shape index: {}]   ;;  %s218_s4 = inlined_call_operand.vmem [shape: f32[8,128], index: 4, kind: output, shape index: {}]  }
   0x1   :  { %v150_v0 = vld [vmem:[%s214_s1 + $0x38] sm:$0xff]  ;;  %v149_v1 = vld [vmem:[%s214_s1 + $0x30] sm:$0xff]  ;;  %v148_v2 = vld [vmem:[%s214_s1 + $0x28] sm:$0xff] }
   0x2   :  { %82 = vmatpush.bf16.msra.mxu0 %v150_v0  ;;  %v147_v3 = vld [vmem:[%s214_s1 + $0x20] sm:$0xff]  ;;  %v146_v4 = vld [vmem:[%s214_s1 + $0x18] sm:$0xff]  ;;  %v145_v5 = vld [vmem:[%s214_s1 + $0x10] sm:$0xff] }
   0x3   :  { %v144_v6 = vld [vmem:[%s214_s1 + $0x8] sm:$0xff]  ;;  %v143_v7 = vld [vmem:[%s214_s1] sm:$0xff] }
   0x4   :  { %v17_v8 = vld [vmem:[%s217_s0] sm:$0xf] }
   0x5   :  { %v151_v9 = vld [vmem:[%s215_s2] ss:$0 sm:$0xff] }
   0x6   :  { %83 = vmatpush.bf16.msra.mxu0 %v149_v1  ;;  %v152_v10 = vld [vmem:[%s216_s3] ss:$0 sm:$0xff] }
   0xa   :  { %84 = vmatpush.bf16.msra.mxu0 %v148_v2 }
   0xe   :  { %85 = vmatpush.bf16.msra.mxu0 %v147_v3 }
  0x12   :  { %86 = vmatpush.bf16.msra.mxu0 %v146_v4 }
  0x16   :  { %87 = vmatpush.bf16.msra.mxu0 %v145_v5 }
  0x1a   :  { %88 = vmatpush.bf16.msra.mxu0 %v144_v6 }
  0x1e   :  { %89 = vmatpush.bf16.msra.mxu0 %v143_v7 }
  0x21   :  { %90 = vmatmul.bf16.vlgmr.msra.gmra.mxu0 %v17_v8 }
  0x9e   :  { %v91_v11 = vpop.f32.mrf.mxu0 }
  0x9f   :  { %v99_v12 = vmul.f32 %v151_v9, %v91_v11 }
  0xa1   :  { %v104_v13 = vadd.f32 %v152_v10, %v99_v12 }
  0xa3   :  { %v105_v14 = vmax.f32 %v104_v13, 0.0 }
  0xa5   :  { %106 = vst [vmem:[%s218_s4] sm:$0xff] %v105_v14 }
  0xa6   :  { %v93_v15 = vpop.f32.mrf.mxu0 }

// kernel: _lambda_.180
= control target key start
LH: loop header
LB: loop body
LE: loop exit
PB: predicated region body
PF: predicated region fallthrough
CT: control target
= control target key end

     0   :  { %vm27_vm0 = vcmask 130048   ;;  %s108_s1 = inlined_call_operand.vmem [shape: bf16[16,128], index: 1, kind: input, shape index: {}]   ;;  %s109_s0 = inlined_call_operand.vmem [shape: bf16[8,16], index: 0, kind: input, shape index: {}]   ;;  %s110_s2 = inlined_call_operand.vmem [shape: f32[1,128], index: 2, kind: input, shape index: {}]   ;;  %s111_s3 = inlined_call_operand.vmem [shape: f32[1,128], index: 3, kind: input, shape index: {}]   ;;  %s112_s4 = inlined_call_operand.vmem [shape: f32[8,128], index: 4, kind: output, shape index: {}]  }
   0x1   :  { %v65_v0 = vld [vmem:[%s108_s1] sm:$0xff] }
   0x2   :  { %38 = vmatpush.bf16.msra.mxu0 %v65_v0  ;;  %v18_v1 = vld [vmem:[%s109_s0] sm:$0xf] }
   0x3   :  { %v66_v2 = vld [vmem:[%s110_s2] ss:$0 sm:$0xff] }
   0x4   :  { %v67_v3 = vld [vmem:[%s111_s3] ss:$0 sm:$0xff] }
   0x5   :  { %64 = vmatmul.msk.bf16.vlgmr.msra.gmra.mxu0 %vm27_vm0, %v18_v1 }
  0x82   :  { %v40_v4 = vpop.f32.mrf.mxu0 }
  0x83   :  { %v48_v5 = vmul.f32 %v66_v2, %v40_v4 }
  0x85   :  { %v53_v6 = vadd.f32 %v67_v3, %v48_v5 }
  0x87   :  { %v54_v7 = vmax.f32 %v53_v6, 0.0 }
  0x89   :  { %55 = vst [vmem:[%s112_s4] sm:$0xff] %v54_v7 }
  0x8a   :  { %v42_v8 = vpop.f32.mrf.mxu0 }

// kernel: _lambda_.186
= control target key start
LH: loop header
LB: loop body
LE: loop exit
PB: predicated region body
PF: predicated region fallthrough
CT: control target
= control target key end

     0   :  { %vm51_vm0 = vcmask 523264   ;;  %s156_s1 = inlined_call_operand.vmem [shape: bf16[64,128], index: 1, kind: input, shape index: {}]   ;;  %s157_s2 = inlined_call_operand.vmem [shape: f32[1,128], index: 2, kind: input, shape index: {}]   ;;  %s158_s3 = inlined_call_operand.vmem [shape: f32[1,128], index: 3, kind: input, shape index: {}]   ;;  %s159_s0 = inlined_call_operand.vmem [shape: bf16[8,64], index: 0, kind: input, shape index: {}]   ;;  %s160_s4 = inlined_call_operand.vmem [shape: f32[8,128], index: 4, kind: output, shape index: {}]  }
   0x1   :  { %v104_v0 = vld [vmem:[%s156_s1 + $0x18] sm:$0xff]  ;;  %v103_v1 = vld [vmem:[%s156_s1 + $0x10] sm:$0xff]  ;;  %v102_v2 = vld [vmem:[%s156_s1 + $0x8] sm:$0xff] }
   0x2   :  { %59 = vmatpush.bf16.msra.mxu0 %v104_v0  ;;  %v101_v3 = vld [vmem:[%s156_s1] sm:$0xff] }
   0x3   :  { %v18_v4 = vld [vmem:[%s159_s0] sm:$0xf] }
   0x4   :  { %v105_v5 = vld [vmem:[%s157_s2] ss:$0 sm:$0xff] }
   0x5   :  { %v106_v6 = vld [vmem:[%s158_s3] ss:$0 sm:$0xff] }
   0x6   :  { %60 = vmatpush.bf16.msra.mxu0 %v103_v1 }
   0xa   :  { %61 = vmatpush.bf16.msra.mxu0 %v102_v2 }
   0xe   :  { %62 = vmatpush.bf16.msra.mxu0 %v101_v3 }
  0x11   :  { %100 = vmatmul.msk.bf16.vlgmr.msra.gmra.mxu0 %vm51_vm0, %v18_v4 }
  0x8e   :  { %v64_v7 = vpop.f32.mrf.mxu0 }
  0x8f   :  { %v72_v8 = vmul.f32 %v105_v5, %v64_v7 }
  0x91   :  { %v77_v9 = vadd.f32 %v106_v6, %v72_v8 }
  0x93   :  { %v78_v10 = vmax.f32 %v77_v9, 0.0 }
  0x95   :  { %79 = vst [vmem:[%s160_s4] sm:$0xff] %v78_v10 }
  0x96   :  { %v66_v11 = vpop.f32.mrf.mxu0 }

// kernel: _lambda_.181
= control target key start
LH: loop header
LB: loop body
LE: loop exit
PB: predicated region body
PF: predicated region fallthrough
CT: control target
= control target key end

     0   :  { %vm35_vm0 = vcmask 261120   ;;  %s124_s1 = inlined_call_operand.vmem [shape: bf16[32,128], index: 1, kind: input, shape index: {}]   ;;  %s125_s2 = inlined_call_operand.vmem [shape: f32[1,128], index: 2, kind: input, shape index: {}]   ;;  %s126_s3 = inlined_call_operand.vmem [shape: f32[1,128], index: 3, kind: input, shape index: {}]   ;;  %s127_s0 = inlined_call_operand.vmem [shape: bf16[8,32], index: 0, kind: input, shape index: {}]   ;;  %s128_s4 = inlined_call_operand.vmem [shape: f32[8,128], index: 4, kind: output, shape index: {}]  }
   0x1   :  { %v78_v0 = vld [vmem:[%s124_s1 + $0x8] sm:$0xff]  ;;  %v77_v1 = vld [vmem:[%s124_s1] sm:$0xff] }
   0x2   :  { %45 = vmatpush.bf16.msra.mxu0 %v78_v0  ;;  %v18_v2 = vld [vmem:[%s127_s0] sm:$0xf] }
   0x3   :  { %v79_v3 = vld [vmem:[%s125_s2] ss:$0 sm:$0xff] }
   0x4   :  { %v80_v4 = vld [vmem:[%s126_s3] ss:$0 sm:$0xff] }
   0x6   :  { %46 = vmatpush.bf16.msra.mxu0 %v77_v1 }
   0x9   :  { %76 = vmatmul.msk.bf16.vlgmr.msra.gmra.mxu0 %vm35_vm0, %v18_v2 }
  0x86   :  { %v48_v5 = vpop.f32.mrf.mxu0 }
  0x87   :  { %v56_v6 = vmul.f32 %v79_v3, %v48_v5 }
  0x89   :  { %v61_v7 = vadd.f32 %v80_v4, %v56_v6 }
  0x8b   :  { %v62_v8 = vmax.f32 %v61_v7, 0.0 }
  0x8d   :  { %63 = vst [vmem:[%s128_s4] sm:$0xff] %v62_v8 }
  0x8e   :  { %v50_v9 = vpop.f32.mrf.mxu0 }

// kernel: _lambda_.189
= control target key start
LH: loop header
LB: loop body
LE: loop exit
PB: predicated region body
PF: predicated region fallthrough
CT: control target
= control target key end

     0   :  { %vm54_vm0 = vcmask 130048   ;;  %s244_s1 = inlined_call_operand.vmem [shape: bf16[16,128], index: 1, kind: input, shape index: {}]   ;;  %s245_s0 = inlined_call_operand.vmem [shape: bf16[64,16], index: 0, kind: input, shape index: {}]   ;;  %s246_s2 = inlined_call_operand.vmem [shape: f32[1,128], index: 2, kind: input, shape index: {}]   ;;  %s247_s3 = inlined_call_operand.vmem [shape: f32[1,128], index: 3, kind: input, shape index: {}]   ;;  %s248_s4 = inlined_call_operand.vmem [shape: f32[64,128], index: 4, kind: output, shape index: {}]  }
   0x1   :  { %v168_v0 = vld [vmem:[%s244_s1] sm:$0xff]  ;;  %v165_v2 = vld [vmem:[%s245_s0 + $0x8] sm:$0xff]  ;;  %v166_v3 = vld [vmem:[%s245_s0 + $0x10] sm:$0xff] }
   0x2   :  { %v164_v1 = vld [vmem:[%s245_s0] sm:$0xff]  ;;  %74 = vmatpush.bf16.msra.mxu0 %v168_v0  ;;  %169 = vmatpush.bf16.msra.mxu1 %v168_v0  ;;  %v167_v4 = vld [vmem:[%s245_s0 + $0x18] sm:$0xff] }
   0x3   :  { %170 = vmatpush.bf16.msra.mxu2 %v168_v0  ;;  %171 = vmatpush.bf16.msra.mxu3 %v168_v0  ;;  %v172_v5 = vld [vmem:[%s246_s2] ss:$0 sm:$0xff] }
   0x4   :  { %v173_v6 = vld [vmem:[%s247_s3] ss:$0 sm:$0xff] }
   0x5   :  { %160 = vmatmul.msk.bf16.vlgmr.msra.gmra.mxu0 %vm54_vm0, %v164_v1  ;;  %161 = vmatmul.msk.bf16.vlgmr.msra.gmra.mxu1 %vm54_vm0, %v165_v2 }
   0x6   :  { %162 = vmatmul.msk.bf16.vlgmr.msra.gmra.mxu2 %vm54_vm0, %v166_v3  ;;  %163 = vmatmul.msk.bf16.vlgmr.msra.gmra.mxu3 %vm54_vm0, %v167_v4 }
  0x82   :  { %v76_v7 = vpop.f32.mrf.mxu0  ;;  %v81_v8 = vpop.f32.mrf.mxu1 }
  0x83   :  { %v100_v9 = vmul.f32 %v172_v5, %v76_v7  ;;  %v102_v10 = vmul.f32 %v172_v5, %v81_v8 }
  0x85   :  { %v112_v11 = vadd.f32 %v173_v6, %v100_v9  ;;  %v114_v12 = vadd.f32 %v173_v6, %v102_v10 }
  0x87   :  { %v120_v13 = vmax.f32 %v112_v11, 0.0  ;;  %v122_v14 = vmax.f32 %v114_v12, 0.0 }
  0x89   :  { %128 = vst [vmem:[%s248_s4] sm:$0xff] %v120_v13  ;;  %v86_v15 = vpop.f32.mrf.mxu2  ;;  %v91_v16 = vpop.f32.mrf.mxu3 }
  0x8a   :  { %130 = vst [vmem:[%s248_s4 + $0x10] sm:$0xff] %v122_v14  ;;  %v104_v17 = vmul.f32 %v172_v5, %v86_v15  ;;  %v106_v18 = vmul.f32 %v172_v5, %v91_v16  ;;  %v78_v19 = vpop.f32.mrf.mxu0  ;;  %v83_v20 = vpop.f32.mrf.mxu1 }
  0x8b   :  { %v101_v21 = vmul.f32 %v172_v5, %v78_v19  ;;  %v103_v22 = vmul.f32 %v172_v5, %v83_v20 }
  0x8c   :  { %v116_v23 = vadd.f32 %v173_v6, %v104_v17  ;;  %v118_v24 = vadd.f32 %v173_v6, %v106_v18 }
  0x8d   :  { %v113_v25 = vadd.f32 %v173_v6, %v101_v21  ;;  %v115_v26 = vadd.f32 %v173_v6, %v103_v22 }
  0x8e   :  { %v124_v27 = vmax.f32 %v116_v23, 0.0  ;;  %v126_v28 = vmax.f32 %v118_v24, 0.0 }
  0x8f   :  { %v121_v29 = vmax.f32 %v113_v25, 0.0  ;;  %v123_v30 = vmax.f32 %v115_v26, 0.0 }
  0x90   :  { %132 = vst [vmem:[%s248_s4 + $0x20] sm:$0xff] %v124_v27 }
  0x91   :  { %134 = vst [vmem:[%s248_s4 + $0x30] sm:$0xff] %v126_v28  ;;  %v88_v31 = vpop.f32.mrf.mxu2  ;;  %v93_v32 = vpop.f32.mrf.mxu3 }
  0x92   :  { %129 = vst [vmem:[%s248_s4 + $0x8] sm:$0xff] %v121_v29  ;;  %v105_v33 = vmul.f32 %v172_v5, %v88_v31  ;;  %v107_v34 = vmul.f32 %v172_v5, %v93_v32 }
  0x93   :  { %131 = vst [vmem:[%s248_s4 + $0x18] sm:$0xff] %v123_v30 }
  0x94   :  { %v117_v35 = vadd.f32 %v173_v6, %v105_v33  ;;  %v119_v36 = vadd.f32 %v173_v6, %v107_v34 }
  0x96   :  { %v125_v37 = vmax.f32 %v117_v35, 0.0  ;;  %v127_v38 = vmax.f32 %v119_v36, 0.0 }
  0x98   :  { %133 = vst [vmem:[%s248_s4 + $0x28] sm:$0xff] %v125_v37 }
  0x99   :  { %135 = vst [vmem:[%s248_s4 + $0x38] sm:$0xff] %v127_v38 }

// kernel: _lambda_.196
= control target key start
LH: loop header
LB: loop body
LE: loop exit
PB: predicated region body
PF: predicated region fallthrough
CT: control target
= control target key end

     0   :  { %s720_s15 = smov 0   ;;  %s722_s16 = smov 0   ;;  %s824_s0 = inlined_call_operand.vmem [shape: bf16[512,16], index: 0, kind: input, shape index: {}]   ;;  %s825_s1 = inlined_call_operand.vmem [shape: bf16[16,128], index: 1, kind: input, shape index: {}]   ;;  %s826_s2 = inlined_call_operand.vmem [shape: f32[1,128], index: 2, kind: input, shape index: {}]   ;;  %s827_s3 = inlined_call_operand.vmem [shape: f32[1,128], index: 3, kind: input, shape index: {}]   ;;  %s828_s4 = inlined_call_operand.vmem [shape: f32[512,128], index: 4, kind: output, shape index: {}]  }
   0x1   :  { %s724_s17 = smov 0  }
   0x2 LB: > { %s26_s18 = sadd.s32 1, %s689_s16  ;;  %p582_p0 = scmp.ge.s32.totalorder %s693_s17, 1  ;;  %s693_s17 = sphi %s724_s17, %s14_s17   ;;  %s689_s16 = sphi %s722_s16, %s830_s16   ;;  %s685_s15 = sphi %s720_s15, %s829_s15  }
   0x3   : > { %p28_p1 = scmp.ge.s32.totalorder %s26_s18, 4  ;;  %p202_p2 = scmp.lt.s32.totalorder %s693_s17, 5 }
   0x5   : > { %s832_s18 = smov (%p28_p1, %s26_s18), 0  ;;  %p203_p3 = pnand %p582_p0, %p202_p2 }
   0x6   : > { %s583_s21 = sshll.u32 (!%p203_p3), %s685_s15, 4 }
   0x7   : > { %206 = sbr.rel (%p203_p3) target bundleno = 179 (0xb3), region = 36  ;;  %p242_p4 = scmp.lt.s32.totalorder (!%p203_p3), %s583_s21, 63 }
   0xc   : > { %v641_v0 = vld [vmem:[%s825_s1] sm:$0xff]  ;;  %s834_s21 = smov (!%p242_p4, %s583_s21), 63  ;;  %vm331_vm0 = vcmask 130048  }
   0xd   : > { %363 = vmatpush.bf16.msra.mxu0 %v641_v0  ;;  %642 = vmatpush.bf16.msra.mxu1 %v641_v0  ;;  %s584_s22 = sshll.u32 %s834_s21, 2  ;;  %v755_v9 = vld [vmem:[%s826_s2] ss:$0 sm:$0xff]  ;;  %s586_s28 = sshll.u32 %s834_s21, 3 }
   0xe   : > { %643 = vmatpush.bf16.msra.mxu2 %v641_v0  ;;  %644 = vmatpush.bf16.msra.mxu3 %v641_v0  ;;  %s245_s25 = scalar_lea.vmem %s824_s0, %s584_s22  ;;  %v760_v10 = vld [vmem:[%s827_s3] ss:$0 sm:$0xff]  ;;  %s767_s7 = scalar_lea.vmem %s828_s4, %s586_s28 }
   0xf   : > { %v633_v1 = vld [vmem:[%s245_s25] sm:$0xff]  ;;  %v635_v2 = vld [vmem:[%s245_s25 + $0x10] sm:$0xff]  ;;  %v634_v5 = vld [vmem:[%s245_s25 + $0x8] sm:$0xff] }
  0x10   : > { %v637_v3 = vld [vmem:[%s245_s25 + $0x20] sm:$0xff]  ;;  %v639_v4 = vld [vmem:[%s245_s25 + $0x30] sm:$0xff]  ;;  %623 = vmatmul.msk.bf16.vlgmr.msra.gmra.mxu0 %vm331_vm0, %v633_v1  ;;  %625 = vmatmul.msk.bf16.vlgmr.msra.gmra.mxu1 %vm331_vm0, %v635_v2  ;;  %v636_v6 = vld [vmem:[%s245_s25 + $0x18] sm:$0xff] }
  0x11   : > { %627 = vmatmul.msk.bf16.vlgmr.msra.gmra.mxu2 %vm331_vm0, %v637_v3  ;;  %629 = vmatmul.msk.bf16.vlgmr.msra.gmra.mxu3 %vm331_vm0, %v639_v4  ;;  %v638_v7 = vld [vmem:[%s245_s25 + $0x28] sm:$0xff]  ;;  %v640_v8 = vld [vmem:[%s245_s25 + $0x38] sm:$0xff] }
  0x20   : > { %624 = vmatmul.msk.bf16.gmra.mxu0 %vm331_vm0, %v634_v5  ;;  %626 = vmatmul.msk.bf16.gmra.mxu1 %vm331_vm0, %v636_v6 }
  0x21   : > { %628 = vmatmul.msk.bf16.gmra.mxu2 %vm331_vm0, %v638_v7  ;;  %630 = vmatmul.msk.bf16.gmra.mxu3 %vm331_vm0, %v640_v8 }
  0x8d   : > { %v365_v11 = vpop.f32.mrf.mxu0  ;;  %v375_v12 = vpop.f32.mrf.mxu1 }
  0x8e   : > { %v409_v13 = vmul.f32 %v755_v9, %v365_v11  ;;  %v413_v14 = vmul.f32 %v755_v9, %v375_v12 }
  0x90   : > { %v429_v15 = vadd.f32 %v760_v10, %v409_v13  ;;  %v433_v16 = vadd.f32 %v760_v10, %v413_v14 }
  0x92   : > { %445 = vst [vmem:[%s767_s7] sm:$0xff] %v429_v15 }
  0x93   : > { %449 = vst [vmem:[%s767_s7 + $0x20] sm:$0xff] %v433_v16 }
  0x94   : > { %v385_v17 = vpop.f32.mrf.mxu2  ;;  %v395_v18 = vpop.f32.mrf.mxu3 }
  0x95   : > { %v417_v19 = vmul.f32 %v755_v9, %v385_v17  ;;  %v421_v20 = vmul.f32 %v755_v9, %v395_v18  ;;  %v367_v21 = vpop.f32.mrf.mxu0  ;;  %v377_v22 = vpop.f32.mrf.mxu1 }
  0x96   : > { %v410_v23 = vmul.f32 %v755_v9, %v367_v21  ;;  %v414_v24 = vmul.f32 %v755_v9, %v377_v22 }
  0x97   : > { %v437_v25 = vadd.f32 %v760_v10, %v417_v19  ;;  %v441_v26 = vadd.f32 %v760_v10, %v421_v20 }
  0x98   : > { %v430_v27 = vadd.f32 %v760_v10, %v410_v23  ;;  %v434_v28 = vadd.f32 %v760_v10, %v414_v24 }
  0x99   : > { %453 = vst [vmem:[%s767_s7 + $0x40] sm:$0xff] %v437_v25 }
  0x9a   : > { %457 = vst [vmem:[%s767_s7 + $0x60] sm:$0xff] %v441_v26 }
  0x9b   : > { %446 = vst [vmem:[%s767_s7 + $0x8] sm:$0xff] %v430_v27 }
  0x9c   : > { %450 = vst [vmem:[%s767_s7 + $0x28] sm:$0xff] %v434_v28  ;;  %v387_v29 = vpop.f32.mrf.mxu2  ;;  %v397_v30 = vpop.f32.mrf.mxu3 }
  0x9d   : > { %v418_v31 = vmul.f32 %v755_v9, %v387_v29  ;;  %v422_v32 = vmul.f32 %v755_v9, %v397_v30  ;;  %v370_v33 = vpop.f32.mrf.mxu0  ;;  %v380_v34 = vpop.f32.mrf.mxu1 }
  0x9e   : > { %v411_v35 = vmul.f32 %v755_v9, %v370_v33  ;;  %v415_v36 = vmul.f32 %v755_v9, %v380_v34 }
  0x9f   : > { %v438_v37 = vadd.f32 %v760_v10, %v418_v31  ;;  %v442_v38 = vadd.f32 %v760_v10, %v422_v32 }
  0xa0   : > { %v431_v39 = vadd.f32 %v760_v10, %v411_v35  ;;  %v435_v40 = vadd.f32 %v760_v10, %v415_v36 }
  0xa1   : > { %454 = vst [vmem:[%s767_s7 + $0x48] sm:$0xff] %v438_v37 }
  0xa2   : > { %458 = vst [vmem:[%s767_s7 + $0x68] sm:$0xff] %v442_v38 }
  0xa3   : > { %447 = vst [vmem:[%s767_s7 + $0x10] sm:$0xff] %v431_v39 }
  0xa4   : > { %451 = vst [vmem:[%s767_s7 + $0x30] sm:$0xff] %v435_v40  ;;  %v390_v41 = vpop.f32.mrf.mxu2  ;;  %v400_v42 = vpop.f32.mrf.mxu3 }
  0xa5   : > { %v419_v43 = vmul.f32 %v755_v9, %v390_v41  ;;  %v423_v44 = vmul.f32 %v755_v9, %v400_v42  ;;  %v372_v45 = vpop.f32.mrf.mxu0  ;;  %v382_v46 = vpop.f32.mrf.mxu1 }
  0xa6   : > { %v412_v47 = vmul.f32 %v755_v9, %v372_v45  ;;  %v416_v48 = vmul.f32 %v755_v9, %v382_v46 }
  0xa7   : > { %v439_v49 = vadd.f32 %v760_v10, %v419_v43  ;;  %v443_v50 = vadd.f32 %v760_v10, %v423_v44 }
  0xa8   : > { %v432_v51 = vadd.f32 %v760_v10, %v412_v47  ;;  %v436_v52 = vadd.f32 %v760_v10, %v416_v48 }
  0xa9   : > { %455 = vst [vmem:[%s767_s7 + $0x50] sm:$0xff] %v439_v49 }
  0xaa   : > { %459 = vst [vmem:[%s767_s7 + $0x70] sm:$0xff] %v443_v50 }
  0xab   : > { %448 = vst [vmem:[%s767_s7 + $0x18] sm:$0xff] %v432_v51 }
  0xac   : > { %452 = vst [vmem:[%s767_s7 + $0x38] sm:$0xff] %v436_v52  ;;  %v392_v53 = vpop.f32.mrf.mxu2  ;;  %v402_v54 = vpop.f32.mrf.mxu3 }
  0xad   : > { %v420_v55 = vmul.f32 %v755_v9, %v392_v53  ;;  %v424_v56 = vmul.f32 %v755_v9, %v402_v54 }
  0xaf   : > { %v440_v57 = vadd.f32 %v760_v10, %v420_v55  ;;  %v444_v58 = vadd.f32 %v760_v10, %v424_v56 }
  0xb1   : > { %456 = vst [vmem:[%s767_s7 + $0x58] sm:$0xff] %v440_v57 }
  0xb2   : > { %460 = vst [vmem:[%s767_s7 + $0x78] sm:$0xff] %v444_v58 }
  0xb3 PF: > { %s14_s17 = sadd.s32 1, %s693_s17   ;;  %s829_s15 = smov %s689_s16 }
  0xb4   : > { %p11_p5 = scmp.ge.s32.totalorder %s14_s17, 6   ;;  %s830_s16 = smov %s832_s18 }
  0xb6   :  { %13 = sbr.rel (!%p11_p5) target bundleno = 2 (0x2), region = 75 }

</bundles_post_ra>
